<compile_context>
chip_gen: v7x
topology: tpu7x:2x2x1
jax: 0.10.0
libtpu: 0.0.40
codegen_flags: <defaults>
</compile_context>

<pallas_src>
import functools

import jax
import jax.numpy as jnp
from jax.experimental import pallas as pl
from jax.experimental.pallas import tpu as pltpu


_COMPILER_PARAMS = pltpu.CompilerParams(
    dimension_semantics=("parallel",),
    vmem_limit_bytes=64 * 1024 * 1024,   # explicit budget (v7x only has 64 MiB)
)


# ------------------------------ tiling helpers ------------------------------

def _round_up(x, m):
    return ((x + m - 1) // m) * m


def _row_tile(rows):
    """Large row tiles amortize the ~0.35us per-step overhead; multiple of 8."""
    return 512 if rows >= 512 else _round_up(rows, 8)


def _pad_rows(x, rows_padded):
    rows = x.shape[0]
    if rows == rows_padded:
        return x
    pad = [(0, rows_padded - rows)] + [(0, 0)] * (x.ndim - 1)
    return jnp.pad(x, pad)


# ----------------------------- Pallas kernels -------------------------------

def _fused_proj_kernel(x_ref, w_ref, b_ref, v_ref, off_ref, attn_ref, *, c, n_off):
    x = x_ref[...].astype(jnp.float32)
    w = w_ref[...].astype(jnp.float32)
    y = jnp.dot(x, w, preferred_element_type=jnp.float32)
    y = y + b_ref[...].astype(jnp.float32)
    v_ref[...] = y[:, :c].astype(v_ref.dtype)
    off_ref[...] = y[:, c:c + n_off].astype(off_ref.dtype)
    attn_ref[...] = y[:, c + n_off:].astype(attn_ref.dtype)


def pallas_fused_qkv_proj(x, w_cat, b_cat, c, n_off, n_attn):
    """x: (R, K); w_cat: (K, c+n_off+n_attn) = [value | offsets | attn-logits].
    Returns (value (R, c), offsets (R, n_off), attn logits (R, n_attn))."""
    R, K = x.shape
    N = c + n_off + n_attn
    RB = _row_tile(R)
    Rp = _round_up(R, RB)
    v, off, attn = pl.pallas_call(
        functools.partial(_fused_proj_kernel, c=c, n_off=n_off),
        out_shape=(jax.ShapeDtypeStruct((Rp, c), x.dtype),
                   jax.ShapeDtypeStruct((Rp, n_off), x.dtype),
                   jax.ShapeDtypeStruct((Rp, n_attn), x.dtype)),
        grid_spec=pltpu.PrefetchScalarGridSpec(
            num_scalar_prefetch=0,
            grid=(Rp // RB,),
            in_specs=[pl.BlockSpec((RB, K), lambda i: (i, 0)),
                      pl.BlockSpec((K, N), lambda i: (0, 0)),
                      pl.BlockSpec((1, N), lambda i: (0, 0))],
            out_specs=[pl.BlockSpec((RB, c), lambda i: (i, 0)),
                       pl.BlockSpec((RB, n_off), lambda i: (i, 0)),
                       pl.BlockSpec((RB, n_attn), lambda i: (i, 0))]),
        compiler_params=_COMPILER_PARAMS,
    )(_pad_rows(x, Rp), w_cat, b_cat.reshape(1, N))
    return v[:R], off[:R], attn[:R]


def _linear_kernel(x_ref, w_ref, b_ref, o_ref, *, act):
    y = jnp.dot(x_ref[...].astype(jnp.float32), w_ref[...].astype(jnp.float32),
                preferred_element_type=jnp.float32)
    y = y + b_ref[...].astype(jnp.float32)
    if act == "relu":
        y = jnp.maximum(y, 0.0)
    o_ref[...] = y.astype(o_ref.dtype)


def pallas_linear(x, w, b, act=None):
    """y = x @ w + b (optional ReLU).  x: (R, K), w: (K, N), b: (N,)."""
    R, K = x.shape
    N = w.shape[1]
    RB = _row_tile(R)
    Rp = _round_up(R, RB)
    out = pl.pallas_call(
        functools.partial(_linear_kernel, act=act),
        out_shape=jax.ShapeDtypeStruct((Rp, N), x.dtype),
        grid_spec=pltpu.PrefetchScalarGridSpec(
            num_scalar_prefetch=0,
            grid=(Rp // RB,),
            in_specs=[pl.BlockSpec((RB, K), lambda i: (i, 0)),
                      pl.BlockSpec((K, N), lambda i: (0, 0)),
                      pl.BlockSpec((1, N), lambda i: (0, 0))],
            out_specs=pl.BlockSpec((RB, N), lambda i: (i, 0))),
        compiler_params=_COMPILER_PARAMS,
    )(_pad_rows(x, Rp), w, b.reshape(1, N))
    return out[:R]


def _linear_add_ln_kernel(x_ref, w_ref, b_ref, res_ref, g_ref, bb_ref, o_ref, *, eps):
    y = jnp.dot(x_ref[...].astype(jnp.float32), w_ref[...].astype(jnp.float32),
                preferred_element_type=jnp.float32)
    z = res_ref[...].astype(jnp.float32) + y + b_ref[...].astype(jnp.float32)
    mu = jnp.mean(z, axis=-1, keepdims=True)
    zc = z - mu
    var = jnp.mean(zc * zc, axis=-1, keepdims=True)
    zn = zc * jax.lax.rsqrt(var + eps)
    o_ref[...] = (zn * g_ref[...].astype(jnp.float32)
                  + bb_ref[...].astype(jnp.float32)).astype(o_ref.dtype)


def pallas_linear_add_ln(x, w, b, res, gamma, beta, eps=1e-5):
    """LayerNorm(res + (x @ w + b)) over last dim, fused as matmul epilogue.
    x: (R, K), w: (K, N), res: (R, N)."""
    R, K = x.shape
    N = w.shape[1]
    RB = _row_tile(R)
    Rp = _round_up(R, RB)
    out = pl.pallas_call(
        functools.partial(_linear_add_ln_kernel, eps=eps),
        out_shape=jax.ShapeDtypeStruct((Rp, N), x.dtype),
        grid_spec=pltpu.PrefetchScalarGridSpec(
            num_scalar_prefetch=0,
            grid=(Rp // RB,),
            in_specs=[pl.BlockSpec((RB, K), lambda i: (i, 0)),
                      pl.BlockSpec((K, N), lambda i: (0, 0)),
                      pl.BlockSpec((1, N), lambda i: (0, 0)),
                      pl.BlockSpec((RB, N), lambda i: (i, 0)),
                      pl.BlockSpec((1, N), lambda i: (0, 0)),
                      pl.BlockSpec((1, N), lambda i: (0, 0))],
            out_specs=pl.BlockSpec((RB, N), lambda i: (i, 0))),
        compiler_params=_COMPILER_PARAMS,
    )(_pad_rows(x, Rp), w, b.reshape(1, N), _pad_rows(res, Rp),
      gamma.reshape(1, N), beta.reshape(1, N))
    return out[:R]


def _agg_kernel(s_ref, a_ref, o_ref, *, n_heads, head_dim):
    # per-head softmax over (levels*points), then weighted sum of sampled
    # values; heads folded into lanes -> lane-dense (RB, C) output.
    a = a_ref[...].astype(jnp.float32)                       # (RB, KP, M)
    a = a - jnp.max(a, axis=1, keepdims=True)
    e = jnp.exp(a)
    w = e / jnp.sum(e, axis=1, keepdims=True)                # (RB, KP, M)
    s = s_ref[...].astype(jnp.float32)                       # (RB, KP, M*D)
    for m in range(n_heads):
        wm = w[:, :, m:m + 1]                                 # (RB, KP, 1)
        sm = s[:, :, m * head_dim:(m + 1) * head_dim]         # (RB, KP, D)
        o_ref[:, m * head_dim:(m + 1) * head_dim] = (
            jnp.sum(wm * sm, axis=1).astype(o_ref.dtype))     # (RB, D)


def pallas_softmax_agg(s, a, n_heads):
    """s: (R, KP, C) sampled values (head-major channels), a: (R, KP, M)
    attention logits -> (R, C) per-head softmax-weighted aggregation."""
    R, KP, C = s.shape
    D = C // n_heads
    RB = _row_tile(R)
    Rp = _round_up(R, RB)
    out = pl.pallas_call(
        functools.partial(_agg_kernel, n_heads=n_heads, head_dim=D),
        out_shape=jax.ShapeDtypeStruct((Rp, C), s.dtype),
        grid_spec=pltpu.PrefetchScalarGridSpec(
            num_scalar_prefetch=0,
            grid=(Rp // RB,),
            in_specs=[pl.BlockSpec((RB, KP, C), lambda i: (i, 0, 0)),
                      pl.BlockSpec((RB, KP, n_heads), lambda i: (i, 0, 0))],
            out_specs=pl.BlockSpec((RB, C), lambda i: (i, 0))),
        compiler_params=_COMPILER_PARAMS,
    )(_pad_rows(s, Rp), _pad_rows(a, Rp))
    return out[:R]


# -------------------------------- JAX glue -----------------------------------

def bilinear_sample_all_levels(value, loc, H, W):
    """grid_sample(bilinear, zeros padding, align_corners=False) for all levels
    in one gather per corner.
    value: (B, Lq, M, D) with Lq = L*H*W, rows level-major.
    loc:   (B, Lq, M, L, P, 2) normalized to [0, 1].
    Returns (B, Lq, L*P, M*D) sampled values, head-major channels."""
    # TODO(synk): data-dependent gather stays in XLA; no robust Pallas gather path.
    B, Lq, M, D = value.shape
    L, P = loc.shape[3], loc.shape[4]
    HW = H * W
    x = loc[..., 0] * W - 0.5                                 # (B,Lq,M,L,P)
    y = loc[..., 1] * H - 0.5
    x0 = jnp.floor(x)
    y0 = jnp.floor(y)
    lvl_off = (jnp.arange(L, dtype=jnp.int32) * HW)[None, None, None, :, None]
    out = jnp.zeros((B, Lq, L, P, M, D), jnp.float32)
    for dy in (0, 1):
        for dx in (0, 1):
            xc = x0 + dx
            yc = y0 + dy
            wgt = (1.0 - jnp.abs(x - xc)) * (1.0 - jnp.abs(y - yc))
            valid = (xc >= 0) & (xc <= W - 1) & (yc >= 0) & (yc <= H - 1)
            xi = jnp.clip(xc, 0, W - 1).astype(jnp.int32)
            yi = jnp.clip(yc, 0, H - 1).astype(jnp.int32)
            idx = yi * W + xi + lvl_off                        # (B,Lq,M,L,P)
            idx = jnp.transpose(idx, (0, 1, 3, 4, 2))          # (B,Lq,L,P,M)
            g = jnp.take_along_axis(
                value, idx.reshape(B, Lq * L * P, M)[..., None], axis=1)
            g = g.reshape(B, Lq, L, P, M, D)
            wv = jnp.transpose(wgt * valid.astype(jnp.float32), (0, 1, 3, 4, 2))
            out = out + wv[..., None] * g
    return out.reshape(B, Lq, L * P, M * D)


def encoder_layer_forward(p, src_flat, ref_pts, H, W, T, n_heads, n_points):
    """One DeformableTransformerEncoderLayer (MSDeformAttn v0 + FFN)."""
    B, Lq, C = src_flat.shape
    M, L, P = n_heads, T, n_points
    D = C // M
    KP = L * P
    rows = B * Lq
    x2d = src_flat.reshape(rows, C)

    # --- fused value / sampling-offset / attention-logit projection ---
    value, off, attn = pallas_fused_qkv_proj(
        x2d, p["proj_w"], p["proj_b"], C, M * L * P * 2, M * L * P)
    value = value.reshape(B, Lq, M, D)
    off = off.reshape(B, Lq, M, L, P, 2)
    attn = jnp.transpose(attn.reshape(rows, M, KP), (0, 2, 1))        # (rows,KP,M)

    # sampling locations: ref + offset / (W, H)    (valid ratios are all 1)
    normalizer = jnp.stack(
        [jnp.full((L,), float(W), jnp.float32),
         jnp.full((L,), float(H), jnp.float32)], axis=-1)             # (L, 2)
    loc = (ref_pts[None, :, None, None, None, :]
           + off / normalizer[None, None, None, :, None, :])          # (B,Lq,M,L,P,2)

    # --- bilinear sampling of all levels, one gather per corner (JAX glue) ---
    sampled = bilinear_sample_all_levels(value, loc, H, W)            # (B,Lq,KP,C)

    # --- per-head softmax over L*P + weighted aggregation (Pallas) ---
    attn_out = pallas_softmax_agg(sampled.reshape(rows, KP, C), attn, M)

    # --- output proj + residual + norm1, FFN + residual + norm2 (fused) ---
    src_n1 = pallas_linear_add_ln(attn_out, *p["output_proj"], x2d, *p["norm1"])
    h = pallas_linear(src_n1, *p["linear1"], act="relu")
    out = pallas_linear_add_ln(h, *p["linear2"], src_n1, *p["norm2"])
    return out.reshape(B, Lq, C), loc


def deformable_transformer_encoders_forward(params, src, n_heads, n_points):
    """src: (B, T, H, W, C) -> (memory (B,T,H,W,C),
                                sampling_locations (B,T,H,W,M,T,P,2))."""
    B, T, H, W, C = src.shape
    HW = H * W
    # reference points (valid ratios are all 1 because mask = ones)
    ref_x = (jnp.arange(W, dtype=jnp.float32) + 0.5) / W
    ref_y = (jnp.arange(H, dtype=jnp.float32) + 0.5) / H
    ry, rx = jnp.meshgrid(ref_y, ref_x, indexing="ij")
    ref = jnp.stack([rx.reshape(-1), ry.reshape(-1)], axis=-1)        # (HW, 2)
    ref_pts = jnp.tile(ref, (T, 1))                                   # (T*HW, 2)

    output = src.reshape(B, T * HW, C)
    sampling_locations = None
    for p in params:
        output, sampling_locations = encoder_layer_forward(
            p, output, ref_pts, H, W, T, n_heads, n_points)

    memory = output.reshape(B, T, H, W, C)
    M, L, P = n_heads, T, n_points
    sampling_locations = sampling_locations.reshape(B, T, H, W, M, L, P, 2)
    return memory, sampling_locations


# ------------------------------ parameter init -------------------------------

def init_params(key, num_layers, d_model, n_heads, n_levels, n_points, d_ffn):
    # TODO(synk): MSDeformAttn's special grid-direction bias init for
    # sampling_offsets is replaced by a generic xavier-style init (synthetic weights).
    def lin(k, fan_in, fan_out):
        k1, k2 = jax.random.split(k)
        limit = (6.0 / (fan_in + fan_out)) ** 0.5
        w = jax.random.uniform(k1, (fan_in, fan_out), jnp.float32, -limit, limit)
        b = 0.01 * jax.random.normal(k2, (fan_out,), jnp.float32)
        return w, b

    params = []
    for _ in range(num_layers):
        key, *ks = jax.random.split(key, 7)
        wv, bv = lin(ks[0], d_model, d_model)
        wo, bo = lin(ks[1], d_model, n_heads * n_levels * n_points * 2)
        wa, ba = lin(ks[2], d_model, n_heads * n_levels * n_points)
        p = {
            # fused [value_proj | sampling_offsets | attention_weights]
            "proj_w": jnp.concatenate([wv, wo, wa], axis=1),
            "proj_b": jnp.concatenate([bv, bo, ba], axis=0),
            "output_proj": lin(ks[3], d_model, d_model),
            "linear1": lin(ks[4], d_model, d_ffn),
            "linear2": lin(ks[5], d_ffn, d_model),
            "norm1": (jnp.ones((d_model,), jnp.float32),
                      jnp.zeros((d_model,), jnp.float32)),
            "norm2": (jnp.ones((d_model,), jnp.float32),
                      jnp.zeros((d_model,), jnp.float32)),
        }
        params.append(p)
    return params


# ----------------------------------- main -------------------------------------

if __name__ == "__main__":
    B, T, H, W = 2, 2, 4, 4
    d_model, n_heads, n_levels, n_points = 32, 4, 2, 2
    d_ffn, num_layers = 64, 2
    assert n_levels == T  # required by the module's broadcasting semantics

    key = jax.random.PRNGKey(0)
    kparam, kx = jax.random.split(key)
    params = init_params(kparam, num_layers, d_model, n_heads, n_levels,
                         n_points, d_ffn)
    src = jax.random.normal(kx, (B, T, H, W, d_model), jnp.float32)

    fwd = jax.jit(functools.partial(deformable_transformer_encoders_forward,
                                    n_heads=n_heads, n_points=n_points))
    memory, sampling_locations = fwd(params, src)
    jax.block_until_ready((memory, sampling_locations))

    assert memory.shape == (B, T, H, W, d_model)
    assert memory.dtype == jnp.float32
    assert sampling_locations.shape == (B, T, H, W, n_heads, n_levels, n_points, 2)
    assert bool(jnp.all(jnp.isfinite(memory)))
    print("KERNEL_OK")
</pallas_src>

<mosaic_0001>
module attributes {stable_mosaic.version = 11 : i64} {
  func.func @_fused_proj_kernel(%arg0: i32, %arg1: memref<64x32xf32, #tpu.memory_space<vmem>>, %arg2: memref<32x80xf32, #tpu.memory_space<vmem>>, %arg3: memref<1x80xf32, #tpu.memory_space<vmem>>, %arg4: memref<64x32xf32, #tpu.memory_space<vmem>>, %arg5: memref<64x32xf32, #tpu.memory_space<vmem>>, %arg6: memref<64x16xf32, #tpu.memory_space<vmem>>) attributes {dimension_semantics = [#tpu.dimension_semantics<parallel>], iteration_bounds = array<i64: 1>, scalar_prefetch = 0 : i64, scratch_operands = 0 : i64, tpu.core_type = #tpu.core_type<tc>, window_params = [{transform_indices = @transform_0, window_bounds = array<i64: 64, 32>}, {pipeline_mode = #tpu.pipeline_mode<synchronous>, transform_indices = @transform_1, window_bounds = array<i64: 32, 80>}, {pipeline_mode = #tpu.pipeline_mode<synchronous>, transform_indices = @transform_2, window_bounds = array<i64: 1, 80>}, {transform_indices = @transform_3, window_bounds = array<i64: 64, 32>}, {transform_indices = @transform_4, window_bounds = array<i64: 64, 32>}, {transform_indices = @transform_5, window_bounds = array<i64: 64, 16>}]} {
    %c0 = arith.constant 0 : index
    %c0_0 = arith.constant 0 : index
    %0 = vector.load %arg1[%c0, %c0_0] : memref<64x32xf32, #tpu.memory_space<vmem>>, vector<64x32xf32>
    %c0_1 = arith.constant 0 : index
    %c0_2 = arith.constant 0 : index
    %1 = vector.load %arg2[%c0_1, %c0_2] : memref<32x80xf32, #tpu.memory_space<vmem>>, vector<32x80xf32>
    %cst = arith.constant dense<0.000000e+00> : vector<64x80xf32>
    %2 = tpu.matmul %0, %1, %cst {dimension_numbers = #tpu.dot_dimension_numbers<[1], [0], [0], [1], [0, 0, 1, 1], [], []>} : vector<64x32xf32>, vector<32x80xf32>, vector<64x80xf32> -> vector<64x80xf32>
    %c0_3 = arith.constant 0 : index
    %c0_4 = arith.constant 0 : index
    %3 = vector.load %arg3[%c0_3, %c0_4] : memref<1x80xf32, #tpu.memory_space<vmem>>, vector<1x80xf32>
    %4 = vector.broadcast %3 : vector<1x80xf32> to vector<64x80xf32>
    %5 = arith.addf %2, %4 : vector<64x80xf32>
    %6 = vector.extract_strided_slice %5 {offsets = [0, 0], sizes = [64, 32], strides = [1, 1]} : vector<64x80xf32> to vector<64x32xf32>
    %c0_5 = arith.constant 0 : index
    %c0_6 = arith.constant 0 : index
    %7 = vector.load %arg4[%c0_5, %c0_6] : memref<64x32xf32, #tpu.memory_space<vmem>>, vector<64x32xf32>
    tpu.vector_store %arg4[%c0_5, %c0_6], %6 {strides = array<i32>} : memref<64x32xf32, #tpu.memory_space<vmem>>, vector<64x32xf32>,
    %8 = vector.extract_strided_slice %5 {offsets = [0, 32], sizes = [64, 32], strides = [1, 1]} : vector<64x80xf32> to vector<64x32xf32>
    %c0_7 = arith.constant 0 : index
    %c0_8 = arith.constant 0 : index
    %9 = vector.load %arg5[%c0_7, %c0_8] : memref<64x32xf32, #tpu.memory_space<vmem>>, vector<64x32xf32>
    tpu.vector_store %arg5[%c0_7, %c0_8], %8 {strides = array<i32>} : memref<64x32xf32, #tpu.memory_space<vmem>>, vector<64x32xf32>,
    %10 = vector.extract_strided_slice %5 {offsets = [0, 64], sizes = [64, 16], strides = [1, 1]} : vector<64x80xf32> to vector<64x16xf32>
    %c0_9 = arith.constant 0 : index
    %c0_10 = arith.constant 0 : index
    %11 = vector.load %arg6[%c0_9, %c0_10] : memref<64x16xf32, #tpu.memory_space<vmem>>, vector<64x16xf32>
    tpu.vector_store %arg6[%c0_9, %c0_10], %10 {strides = array<i32>} : memref<64x16xf32, #tpu.memory_space<vmem>>, vector<64x16xf32>,
    return
  }
  func.func @transform_0(%arg0: i32) -> (i32, i32) {
    %c0_i32 = arith.constant 0 : i32
    %c0_i32_0 = arith.constant 0 : i32
    return %arg0, %c0_i32 : i32, i32
  }
  func.func @transform_1(%arg0: i32) -> (i32, i32) {
    %c0_i32 = arith.constant 0 : i32
    %c0_i32_0 = arith.constant 0 : i32
    %c0_i32_1 = arith.constant 0 : i32
    return %c0_i32, %c0_i32_0 : i32, i32
  }
  func.func @transform_2(%arg0: i32) -> (i32, i32) {
    %c0_i32 = arith.constant 0 : i32
    %c0_i32_0 = arith.constant 0 : i32
    %c0_i32_1 = arith.constant 0 : i32
    return %c0_i32, %c0_i32_0 : i32, i32
  }
  func.func @transform_3(%arg0: i32) -> (i32, i32) {
    %c0_i32 = arith.constant 0 : i32
    %c0_i32_0 = arith.constant 0 : i32
    return %arg0, %c0_i32 : i32, i32
  }
  func.func @transform_4(%arg0: i32) -> (i32, i32) {
    %c0_i32 = arith.constant 0 : i32
    %c0_i32_0 = arith.constant 0 : i32
    return %arg0, %c0_i32 : i32, i32
  }
  func.func @transform_5(%arg0: i32) -> (i32, i32) {
    %c0_i32 = arith.constant 0 : i32
    %c0_i32_0 = arith.constant 0 : i32
    return %arg0, %c0_i32 : i32, i32
  }
}

module attributes {stable_mosaic.version = 11 : i64} {
  func.func @_agg_kernel(%arg0: i32, %arg1: memref<64x4x32xf32, #tpu.memory_space<vmem>>, %arg2: memref<64x4x4xf32, #tpu.memory_space<vmem>>, %arg3: memref<64x32xf32, #tpu.memory_space<vmem>>) attributes {dimension_semantics = [#tpu.dimension_semantics<parallel>], iteration_bounds = array<i64: 1>, scalar_prefetch = 0 : i64, scratch_operands = 0 : i64, tpu.core_type = #tpu.core_type<tc>, window_params = [{transform_indices = @transform_0, window_bounds = array<i64: 64, 4, 32>}, {transform_indices = @transform_1, window_bounds = array<i64: 64, 4, 4>}, {transform_indices = @transform_2, window_bounds = array<i64: 64, 32>}]} {
    %c0 = arith.constant 0 : index
    %c0_0 = arith.constant 0 : index
    %c0_1 = arith.constant 0 : index
    %0 = vector.load %arg2[%c0, %c0_0, %c0_1] : memref<64x4x4xf32, #tpu.memory_space<vmem>>, vector<64x4x4xf32>
    %cst = arith.constant dense<0xFF800000> : vector<64x4xf32>
    %1 = vector.multi_reduction <maximumf>, %0, %cst [1] : vector<64x4x4xf32> to vector<64x4xf32>
    %2 = vector.shape_cast %1 : vector<64x4xf32> to vector<64x1x4xf32>
    %3 = vector.broadcast %2 : vector<64x1x4xf32> to vector<64x4x4xf32>
    %4 = arith.subf %0, %3 : vector<64x4x4xf32>
    %5 = math.exp %4 : vector<64x4x4xf32>
    %cst_2 = arith.constant dense<0.000000e+00> : vector<64x4xf32>
    %6 = vector.multi_reduction <add>, %5, %cst_2 [1] : vector<64x4x4xf32> to vector<64x4xf32>
    %7 = vector.shape_cast %6 : vector<64x4xf32> to vector<64x1x4xf32>
    %8 = vector.broadcast %7 : vector<64x1x4xf32> to vector<64x4x4xf32>
    %9 = arith.divf %5, %8 : vector<64x4x4xf32>
    %c0_3 = arith.constant 0 : index
    %c0_4 = arith.constant 0 : index
    %c0_5 = arith.constant 0 : index
    %10 = vector.load %arg1[%c0_3, %c0_4, %c0_5] : memref<64x4x32xf32, #tpu.memory_space<vmem>>, vector<64x4x32xf32>
    %11 = vector.extract_strided_slice %9 {offsets = [0, 0, 0], sizes = [64, 4, 1], strides = [1, 1, 1]} : vector<64x4x4xf32> to vector<64x4x1xf32>
    %12 = vector.extract_strided_slice %10 {offsets = [0, 0, 0], sizes = [64, 4, 8], strides = [1, 1, 1]} : vector<64x4x32xf32> to vector<64x4x8xf32>
    %13 = vector.broadcast %11 : vector<64x4x1xf32> to vector<64x4x8xf32>
    %14 = arith.mulf %13, %12 : vector<64x4x8xf32>
    %cst_6 = arith.constant dense<0.000000e+00> : vector<64x8xf32>
    %15 = vector.multi_reduction <add>, %14, %cst_6 [1] : vector<64x4x8xf32> to vector<64x8xf32>
    %c0_7 = arith.constant 0 : index
    %c0_8 = arith.constant 0 : index
    %16 = vector.load %arg3[%c0_7, %c0_8] : memref<64x32xf32, #tpu.memory_space<vmem>>, vector<64x8xf32>
    tpu.vector_store %arg3[%c0_7, %c0_8], %15 {strides = array<i32>} : memref<64x32xf32, #tpu.memory_space<vmem>>, vector<64x8xf32>,
    %17 = vector.extract_strided_slice %9 {offsets = [0, 0, 1], sizes = [64, 4, 1], strides = [1, 1, 1]} : vector<64x4x4xf32> to vector<64x4x1xf32>
    %18 = vector.extract_strided_slice %10 {offsets = [0, 0, 8], sizes = [64, 4, 8], strides = [1, 1, 1]} : vector<64x4x32xf32> to vector<64x4x8xf32>
    %19 = vector.broadcast %17 : vector<64x4x1xf32> to vector<64x4x8xf32>
    %20 = arith.mulf %19, %18 : vector<64x4x8xf32>
    %cst_9 = arith.constant dense<0.000000e+00> : vector<64x8xf32>
    %21 = vector.multi_reduction <add>, %20, %cst_9 [1] : vector<64x4x8xf32> to vector<64x8xf32>
    %c0_10 = arith.constant 0 : index
    %c8 = arith.constant 8 : index
    %22 = vector.load %arg3[%c0_10, %c8] : memref<64x32xf32, #tpu.memory_space<vmem>>, vector<64x8xf32>
    tpu.vector_store %arg3[%c0_10, %c8], %21 {strides = array<i32>} : memref<64x32xf32, #tpu.memory_space<vmem>>, vector<64x8xf32>,
    %23 = vector.extract_strided_slice %9 {offsets = [0, 0, 2], sizes = [64, 4, 1], strides = [1, 1, 1]} : vector<64x4x4xf32> to vector<64x4x1xf32>
    %24 = vector.extract_strided_slice %10 {offsets = [0, 0, 16], sizes = [64, 4, 8], strides = [1, 1, 1]} : vector<64x4x32xf32> to vector<64x4x8xf32>
    %25 = vector.broadcast %23 : vector<64x4x1xf32> to vector<64x4x8xf32>
    %26 = arith.mulf %25, %24 : vector<64x4x8xf32>
    %cst_11 = arith.constant dense<0.000000e+00> : vector<64x8xf32>
    %27 = vector.multi_reduction <add>, %26, %cst_11 [1] : vector<64x4x8xf32> to vector<64x8xf32>
    %c0_12 = arith.constant 0 : index
    %c16 = arith.constant 16 : index
    %28 = vector.load %arg3[%c0_12, %c16] : memref<64x32xf32, #tpu.memory_space<vmem>>, vector<64x8xf32>
    tpu.vector_store %arg3[%c0_12, %c16], %27 {strides = array<i32>} : memref<64x32xf32, #tpu.memory_space<vmem>>, vector<64x8xf32>,
    %29 = vector.extract_strided_slice %9 {offsets = [0, 0, 3], sizes = [64, 4, 1], strides = [1, 1, 1]} : vector<64x4x4xf32> to vector<64x4x1xf32>
    %30 = vector.extract_strided_slice %10 {offsets = [0, 0, 24], sizes = [64, 4, 8], strides = [1, 1, 1]} : vector<64x4x32xf32> to vector<64x4x8xf32>
    %31 = vector.broadcast %29 : vector<64x4x1xf32> to vector<64x4x8xf32>
    %32 = arith.mulf %31, %30 : vector<64x4x8xf32>
    %cst_13 = arith.constant dense<0.000000e+00> : vector<64x8xf32>
    %33 = vector.multi_reduction <add>, %32, %cst_13 [1] : vector<64x4x8xf32> to vector<64x8xf32>
    %c0_14 = arith.constant 0 : index
    %c24 = arith.constant 24 : index
    %34 = vector.load %arg3[%c0_14, %c24] : memref<64x32xf32, #tpu.memory_space<vmem>>, vector<64x8xf32>
    tpu.vector_store %arg3[%c0_14, %c24], %33 {strides = array<i32>} : memref<64x32xf32, #tpu.memory_space<vmem>>, vector<64x8xf32>,
    return
  }
  func.func @transform_0(%arg0: i32) -> (i32, i32, i32) {
    %c0_i32 = arith.constant 0 : i32
    %c0_i32_0 = arith.constant 0 : i32
    %c0_i32_1 = arith.constant 0 : i32
    return %arg0, %c0_i32, %c0_i32_0 : i32, i32, i32
  }
  func.func @transform_1(%arg0: i32) -> (i32, i32, i32) {
    %c0_i32 = arith.constant 0 : i32
    %c0_i32_0 = arith.constant 0 : i32
    %c0_i32_1 = arith.constant 0 : i32
    return %arg0, %c0_i32, %c0_i32_0 : i32, i32, i32
  }
  func.func @transform_2(%arg0: i32) -> (i32, i32) {
    %c0_i32 = arith.constant 0 : i32
    %c0_i32_0 = arith.constant 0 : i32
    return %arg0, %c0_i32 : i32, i32
  }
}

module attributes {stable_mosaic.version = 11 : i64} {
  func.func @_linear_add_ln_kernel(%arg0: i32, %arg1: memref<64x32xf32, #tpu.memory_space<vmem>>, %arg2: memref<32x32xf32, #tpu.memory_space<vmem>>, %arg3: memref<1x32xf32, #tpu.memory_space<vmem>>, %arg4: memref<64x32xf32, #tpu.memory_space<vmem>>, %arg5: memref<1x32xf32, #tpu.memory_space<vmem>>, %arg6: memref<1x32xf32, #tpu.memory_space<vmem>>, %arg7: memref<64x32xf32, #tpu.memory_space<vmem>>) attributes {dimension_semantics = [#tpu.dimension_semantics<parallel>], iteration_bounds = array<i64: 1>, scalar_prefetch = 0 : i64, scratch_operands = 0 : i64, tpu.core_type = #tpu.core_type<tc>, window_params = [{transform_indices = @transform_0, window_bounds = array<i64: 64, 32>}, {pipeline_mode = #tpu.pipeline_mode<synchronous>, transform_indices = @transform_1, window_bounds = array<i64: 32, 32>}, {pipeline_mode = #tpu.pipeline_mode<synchronous>, transform_indices = @transform_2, window_bounds = array<i64: 1, 32>}, {transform_indices = @transform_3, window_bounds = array<i64: 64, 32>}, {pipeline_mode = #tpu.pipeline_mode<synchronous>, transform_indices = @transform_4, window_bounds = array<i64: 1, 32>}, {pipeline_mode = #tpu.pipeline_mode<synchronous>, transform_indices = @transform_5, window_bounds = array<i64: 1, 32>}, {transform_indices = @transform_6, window_bounds = array<i64: 64, 32>}]} {
    %c0 = arith.constant 0 : index
    %c0_0 = arith.constant 0 : index
    %0 = vector.load %arg1[%c0, %c0_0] : memref<64x32xf32, #tpu.memory_space<vmem>>, vector<64x32xf32>
    %c0_1 = arith.constant 0 : index
    %c0_2 = arith.constant 0 : index
    %1 = vector.load %arg2[%c0_1, %c0_2] : memref<32x32xf32, #tpu.memory_space<vmem>>, vector<32x32xf32>
    %cst = arith.constant dense<0.000000e+00> : vector<64x32xf32>
    %2 = tpu.matmul %0, %1, %cst {dimension_numbers = #tpu.dot_dimension_numbers<[1], [0], [0], [1], [0, 0, 1, 1], [], []>} : vector<64x32xf32>, vector<32x32xf32>, vector<64x32xf32> -> vector<64x32xf32>
    %c0_3 = arith.constant 0 : index
    %c0_4 = arith.constant 0 : index
    %3 = vector.load %arg4[%c0_3, %c0_4] : memref<64x32xf32, #tpu.memory_space<vmem>>, vector<64x32xf32>
    %4 = arith.addf %3, %2 : vector<64x32xf32>
    %c0_5 = arith.constant 0 : index
    %c0_6 = arith.constant 0 : index
    %5 = vector.load %arg3[%c0_5, %c0_6] : memref<1x32xf32, #tpu.memory_space<vmem>>, vector<1x32xf32>
    %6 = vector.broadcast %5 : vector<1x32xf32> to vector<64x32xf32>
    %7 = arith.addf %4, %6 : vector<64x32xf32>
    %cst_7 = arith.constant dense<0.000000e+00> : vector<64xf32>
    %8 = vector.multi_reduction <add>, %7, %cst_7 [1] : vector<64x32xf32> to vector<64xf32>
    %9 = vector.shape_cast %8 : vector<64xf32> to vector<64x1xf32>
    %cst_8 = arith.constant 3.200000e+01 : f32
    %10 = vector.broadcast %cst_8 : f32 to vector<64x1xf32>
    %11 = arith.divf %9, %10 : vector<64x1xf32>
    %12 = vector.broadcast %11 : vector<64x1xf32> to vector<64x32xf32>
    %13 = arith.subf %7, %12 : vector<64x32xf32>
    %14 = arith.mulf %13, %13 : vector<64x32xf32>
    %cst_9 = arith.constant dense<0.000000e+00> : vector<64xf32>
    %15 = vector.multi_reduction <add>, %14, %cst_9 [1] : vector<64x32xf32> to vector<64xf32>
    %16 = vector.shape_cast %15 : vector<64xf32> to vector<64x1xf32>
    %cst_10 = arith.constant 3.200000e+01 : f32
    %17 = vector.broadcast %cst_10 : f32 to vector<64x1xf32>
    %18 = arith.divf %16, %17 : vector<64x1xf32>
    %cst_11 = arith.constant 9.99999974E-6 : f32
    %19 = vector.broadcast %cst_11 : f32 to vector<64x1xf32>
    %20 = arith.addf %18, %19 : vector<64x1xf32>
    %21 = math.rsqrt %20 : vector<64x1xf32>
    %22 = vector.broadcast %21 : vector<64x1xf32> to vector<64x32xf32>
    %23 = arith.mulf %13, %22 : vector<64x32xf32>
    %c0_12 = arith.constant 0 : index
    %c0_13 = arith.constant 0 : index
    %24 = vector.load %arg5[%c0_12, %c0_13] : memref<1x32xf32, #tpu.memory_space<vmem>>, vector<1x32xf32>
    %25 = vector.broadcast %24 : vector<1x32xf32> to vector<64x32xf32>
    %26 = arith.mulf %23, %25 : vector<64x32xf32>
    %c0_14 = arith.constant 0 : index
    %c0_15 = arith.constant 0 : index
    %27 = vector.load %arg6[%c0_14, %c0_15] : memref<1x32xf32, #tpu.memory_space<vmem>>, vector<1x32xf32>
    %28 = vector.broadcast %27 : vector<1x32xf32> to vector<64x32xf32>
    %29 = arith.addf %26, %28 : vector<64x32xf32>
    %c0_16 = arith.constant 0 : index
    %c0_17 = arith.constant 0 : index
    %30 = vector.load %arg7[%c0_16, %c0_17] : memref<64x32xf32, #tpu.memory_space<vmem>>, vector<64x32xf32>
    tpu.vector_store %arg7[%c0_16, %c0_17], %29 {strides = array<i32>} : memref<64x32xf32, #tpu.memory_space<vmem>>, vector<64x32xf32>,
    return
  }
  func.func @transform_0(%arg0: i32) -> (i32, i32) {
    %c0_i32 = arith.constant 0 : i32
    %c0_i32_0 = arith.constant 0 : i32
    return %arg0, %c0_i32 : i32, i32
  }
  func.func @transform_1(%arg0: i32) -> (i32, i32) {
    %c0_i32 = arith.constant 0 : i32
    %c0_i32_0 = arith.constant 0 : i32
    %c0_i32_1 = arith.constant 0 : i32
    return %c0_i32, %c0_i32_0 : i32, i32
  }
  func.func @transform_2(%arg0: i32) -> (i32, i32) {
    %c0_i32 = arith.constant 0 : i32
    %c0_i32_0 = arith.constant 0 : i32
    %c0_i32_1 = arith.constant 0 : i32
    return %c0_i32, %c0_i32_0 : i32, i32
  }
  func.func @transform_3(%arg0: i32) -> (i32, i32) {
    %c0_i32 = arith.constant 0 : i32
    %c0_i32_0 = arith.constant 0 : i32
    return %arg0, %c0_i32 : i32, i32
  }
  func.func @transform_4(%arg0: i32) -> (i32, i32) {
    %c0_i32 = arith.constant 0 : i32
    %c0_i32_0 = arith.constant 0 : i32
    %c0_i32_1 = arith.constant 0 : i32
    return %c0_i32, %c0_i32_0 : i32, i32
  }
  func.func @transform_5(%arg0: i32) -> (i32, i32) {
    %c0_i32 = arith.constant 0 : i32
    %c0_i32_0 = arith.constant 0 : i32
    %c0_i32_1 = arith.constant 0 : i32
    return %c0_i32, %c0_i32_0 : i32, i32
  }
  func.func @transform_6(%arg0: i32) -> (i32, i32) {
    %c0_i32 = arith.constant 0 : i32
    %c0_i32_0 = arith.constant 0 : i32
    return %arg0, %c0_i32 : i32, i32
  }
}

module attributes {stable_mosaic.version = 11 : i64} {
  func.func @_linear_add_ln_kernel(%arg0: i32, %arg1: memref<64x64xf32, #tpu.memory_space<vmem>>, %arg2: memref<64x32xf32, #tpu.memory_space<vmem>>, %arg3: memref<1x32xf32, #tpu.memory_space<vmem>>, %arg4: memref<64x32xf32, #tpu.memory_space<vmem>>, %arg5: memref<1x32xf32, #tpu.memory_space<vmem>>, %arg6: memref<1x32xf32, #tpu.memory_space<vmem>>, %arg7: memref<64x32xf32, #tpu.memory_space<vmem>>) attributes {dimension_semantics = [#tpu.dimension_semantics<parallel>], iteration_bounds = array<i64: 1>, scalar_prefetch = 0 : i64, scratch_operands = 0 : i64, tpu.core_type = #tpu.core_type<tc>, window_params = [{transform_indices = @transform_0, window_bounds = array<i64: 64, 64>}, {pipeline_mode = #tpu.pipeline_mode<synchronous>, transform_indices = @transform_1, window_bounds = array<i64: 64, 32>}, {pipeline_mode = #tpu.pipeline_mode<synchronous>, transform_indices = @transform_2, window_bounds = array<i64: 1, 32>}, {transform_indices = @transform_3, window_bounds = array<i64: 64, 32>}, {pipeline_mode = #tpu.pipeline_mode<synchronous>, transform_indices = @transform_4, window_bounds = array<i64: 1, 32>}, {pipeline_mode = #tpu.pipeline_mode<synchronous>, transform_indices = @transform_5, window_bounds = array<i64: 1, 32>}, {transform_indices = @transform_6, window_bounds = array<i64: 64, 32>}]} {
    %c0 = arith.constant 0 : index
    %c0_0 = arith.constant 0 : index
    %0 = vector.load %arg1[%c0, %c0_0] : memref<64x64xf32, #tpu.memory_space<vmem>>, vector<64x64xf32>
    %c0_1 = arith.constant 0 : index
    %c0_2 = arith.constant 0 : index
    %1 = vector.load %arg2[%c0_1, %c0_2] : memref<64x32xf32, #tpu.memory_space<vmem>>, vector<64x32xf32>
    %cst = arith.constant dense<0.000000e+00> : vector<64x32xf32>
    %2 = tpu.matmul %0, %1, %cst {dimension_numbers = #tpu.dot_dimension_numbers<[1], [0], [0], [1], [0, 0, 1, 1], [], []>} : vector<64x64xf32>, vector<64x32xf32>, vector<64x32xf32> -> vector<64x32xf32>
    %c0_3 = arith.constant 0 : index
    %c0_4 = arith.constant 0 : index
    %3 = vector.load %arg4[%c0_3, %c0_4] : memref<64x32xf32, #tpu.memory_space<vmem>>, vector<64x32xf32>
    %4 = arith.addf %3, %2 : vector<64x32xf32>
    %c0_5 = arith.constant 0 : index
    %c0_6 = arith.constant 0 : index
    %5 = vector.load %arg3[%c0_5, %c0_6] : memref<1x32xf32, #tpu.memory_space<vmem>>, vector<1x32xf32>
    %6 = vector.broadcast %5 : vector<1x32xf32> to vector<64x32xf32>
    %7 = arith.addf %4, %6 : vector<64x32xf32>
    %cst_7 = arith.constant dense<0.000000e+00> : vector<64xf32>
    %8 = vector.multi_reduction <add>, %7, %cst_7 [1] : vector<64x32xf32> to vector<64xf32>
    %9 = vector.shape_cast %8 : vector<64xf32> to vector<64x1xf32>
    %cst_8 = arith.constant 3.200000e+01 : f32
    %10 = vector.broadcast %cst_8 : f32 to vector<64x1xf32>
    %11 = arith.divf %9, %10 : vector<64x1xf32>
    %12 = vector.broadcast %11 : vector<64x1xf32> to vector<64x32xf32>
    %13 = arith.subf %7, %12 : vector<64x32xf32>
    %14 = arith.mulf %13, %13 : vector<64x32xf32>
    %cst_9 = arith.constant dense<0.000000e+00> : vector<64xf32>
    %15 = vector.multi_reduction <add>, %14, %cst_9 [1] : vector<64x32xf32> to vector<64xf32>
    %16 = vector.shape_cast %15 : vector<64xf32> to vector<64x1xf32>
    %cst_10 = arith.constant 3.200000e+01 : f32
    %17 = vector.broadcast %cst_10 : f32 to vector<64x1xf32>
    %18 = arith.divf %16, %17 : vector<64x1xf32>
    %cst_11 = arith.constant 9.99999974E-6 : f32
    %19 = vector.broadcast %cst_11 : f32 to vector<64x1xf32>
    %20 = arith.addf %18, %19 : vector<64x1xf32>
    %21 = math.rsqrt %20 : vector<64x1xf32>
    %22 = vector.broadcast %21 : vector<64x1xf32> to vector<64x32xf32>
    %23 = arith.mulf %13, %22 : vector<64x32xf32>
    %c0_12 = arith.constant 0 : index
    %c0_13 = arith.constant 0 : index
    %24 = vector.load %arg5[%c0_12, %c0_13] : memref<1x32xf32, #tpu.memory_space<vmem>>, vector<1x32xf32>
    %25 = vector.broadcast %24 : vector<1x32xf32> to vector<64x32xf32>
    %26 = arith.mulf %23, %25 : vector<64x32xf32>
    %c0_14 = arith.constant 0 : index
    %c0_15 = arith.constant 0 : index
    %27 = vector.load %arg6[%c0_14, %c0_15] : memref<1x32xf32, #tpu.memory_space<vmem>>, vector<1x32xf32>
    %28 = vector.broadcast %27 : vector<1x32xf32> to vector<64x32xf32>
    %29 = arith.addf %26, %28 : vector<64x32xf32>
    %c0_16 = arith.constant 0 : index
    %c0_17 = arith.constant 0 : index
    %30 = vector.load %arg7[%c0_16, %c0_17] : memref<64x32xf32, #tpu.memory_space<vmem>>, vector<64x32xf32>
    tpu.vector_store %arg7[%c0_16, %c0_17], %29 {strides = array<i32>} : memref<64x32xf32, #tpu.memory_space<vmem>>, vector<64x32xf32>,
    return
  }
  func.func @transform_0(%arg0: i32) -> (i32, i32) {
    %c0_i32 = arith.constant 0 : i32
    %c0_i32_0 = arith.constant 0 : i32
    return %arg0, %c0_i32 : i32, i32
  }
  func.func @transform_1(%arg0: i32) -> (i32, i32) {
    %c0_i32 = arith.constant 0 : i32
    %c0_i32_0 = arith.constant 0 : i32
    %c0_i32_1 = arith.constant 0 : i32
    return %c0_i32, %c0_i32_0 : i32, i32
  }
  func.func @transform_2(%arg0: i32) -> (i32, i32) {
    %c0_i32 = arith.constant 0 : i32
    %c0_i32_0 = arith.constant 0 : i32
    %c0_i32_1 = arith.constant 0 : i32
    return %c0_i32, %c0_i32_0 : i32, i32
  }
  func.func @transform_3(%arg0: i32) -> (i32, i32) {
    %c0_i32 = arith.constant 0 : i32
    %c0_i32_0 = arith.constant 0 : i32
    return %arg0, %c0_i32 : i32, i32
  }
  func.func @transform_4(%arg0: i32) -> (i32, i32) {
    %c0_i32 = arith.constant 0 : i32
    %c0_i32_0 = arith.constant 0 : i32
    %c0_i32_1 = arith.constant 0 : i32
    return %c0_i32, %c0_i32_0 : i32, i32
  }
  func.func @transform_5(%arg0: i32) -> (i32, i32) {
    %c0_i32 = arith.constant 0 : i32
    %c0_i32_0 = arith.constant 0 : i32
    %c0_i32_1 = arith.constant 0 : i32
    return %c0_i32, %c0_i32_0 : i32, i32
  }
  func.func @transform_6(%arg0: i32) -> (i32, i32) {
    %c0_i32 = arith.constant 0 : i32
    %c0_i32_0 = arith.constant 0 : i32
    return %arg0, %c0_i32 : i32, i32
  }
}

module attributes {stable_mosaic.version = 11 : i64} {
  func.func @_linear_kernel(%arg0: i32, %arg1: memref<64x32xf32, #tpu.memory_space<vmem>>, %arg2: memref<32x64xf32, #tpu.memory_space<vmem>>, %arg3: memref<1x64xf32, #tpu.memory_space<vmem>>, %arg4: memref<64x64xf32, #tpu.memory_space<vmem>>) attributes {dimension_semantics = [#tpu.dimension_semantics<parallel>], iteration_bounds = array<i64: 1>, scalar_prefetch = 0 : i64, scratch_operands = 0 : i64, tpu.core_type = #tpu.core_type<tc>, window_params = [{transform_indices = @transform_0, window_bounds = array<i64: 64, 32>}, {pipeline_mode = #tpu.pipeline_mode<synchronous>, transform_indices = @transform_1, window_bounds = array<i64: 32, 64>}, {pipeline_mode = #tpu.pipeline_mode<synchronous>, transform_indices = @transform_2, window_bounds = array<i64: 1, 64>}, {transform_indices = @transform_3, window_bounds = array<i64: 64, 64>}]} {
    %c0 = arith.constant 0 : index
    %c0_0 = arith.constant 0 : index
    %0 = vector.load %arg1[%c0, %c0_0] : memref<64x32xf32, #tpu.memory_space<vmem>>, vector<64x32xf32>
    %c0_1 = arith.constant 0 : index
    %c0_2 = arith.constant 0 : index
    %1 = vector.load %arg2[%c0_1, %c0_2] : memref<32x64xf32, #tpu.memory_space<vmem>>, vector<32x64xf32>
    %cst = arith.constant dense<0.000000e+00> : vector<64x64xf32>
    %2 = tpu.matmul %0, %1, %cst {dimension_numbers = #tpu.dot_dimension_numbers<[1], [0], [0], [1], [0, 0, 1, 1], [], []>} : vector<64x32xf32>, vector<32x64xf32>, vector<64x64xf32> -> vector<64x64xf32>
    %c0_3 = arith.constant 0 : index
    %c0_4 = arith.constant 0 : index
    %3 = vector.load %arg3[%c0_3, %c0_4] : memref<1x64xf32, #tpu.memory_space<vmem>>, vector<1x64xf32>
    %4 = vector.broadcast %3 : vector<1x64xf32> to vector<64x64xf32>
    %5 = arith.addf %2, %4 : vector<64x64xf32>
    %cst_5 = arith.constant 0.000000e+00 : f32
    %6 = vector.broadcast %cst_5 : f32 to vector<64x64xf32>
    %7 = arith.maximumf %5, %6 : vector<64x64xf32>
    %c0_6 = arith.constant 0 : index
    %c0_7 = arith.constant 0 : index
    %8 = vector.load %arg4[%c0_6, %c0_7] : memref<64x64xf32, #tpu.memory_space<vmem>>, vector<64x64xf32>
    tpu.vector_store %arg4[%c0_6, %c0_7], %7 {strides = array<i32>} : memref<64x64xf32, #tpu.memory_space<vmem>>, vector<64x64xf32>,
    return
  }
  func.func @transform_0(%arg0: i32) -> (i32, i32) {
    %c0_i32 = arith.constant 0 : i32
    %c0_i32_0 = arith.constant 0 : i32
    return %arg0, %c0_i32 : i32, i32
  }
  func.func @transform_1(%arg0: i32) -> (i32, i32) {
    %c0_i32 = arith.constant 0 : i32
    %c0_i32_0 = arith.constant 0 : i32
    %c0_i32_1 = arith.constant 0 : i32
    return %c0_i32, %c0_i32_0 : i32, i32
  }
  func.func @transform_2(%arg0: i32) -> (i32, i32) {
    %c0_i32 = arith.constant 0 : i32
    %c0_i32_0 = arith.constant 0 : i32
    %c0_i32_1 = arith.constant 0 : i32
    return %c0_i32, %c0_i32_0 : i32, i32
  }
  func.func @transform_3(%arg0: i32) -> (i32, i32) {
    %c0_i32 = arith.constant 0 : i32
    %c0_i32_0 = arith.constant 0 : i32
    return %arg0, %c0_i32 : i32, i32
  }
}

</mosaic_0001>

<bundles_post_ra>
// kernel: deformable_transformer_encoders_forward.10
= control target key start
LH: loop header
LB: loop body
LE: loop exit
PB: predicated region body
PF: predicated region fallthrough
CT: control target
= control target key end

     0   :  { %11 = vsyncpa [#allocation3], 0  ;;  %s722_s0 = inlined_call_operand.hbm [shape: f32[64,32], index: 0, kind: input, shape index: {}]   ;;  %s723_s1 = inlined_call_operand.hbm [shape: f32[32,80], index: 1, kind: input, shape index: {}]   ;;  %s724_s2 = inlined_call_operand.hbm [shape: f32[1,80], index: 2, kind: input, shape index: {}]   ;;  %s725_s3 = inlined_call_operand.hbm [shape: f32[64,32], index: 3, kind: output, shape index: {0}]   ;;  %s726_s4 = inlined_call_operand.hbm [shape: f32[64,32], index: 4, kind: output, shape index: {1}]   ;;  %s727_s5 = inlined_call_operand.hbm [shape: f32[64,16], index: 5, kind: output, shape index: {2}]  }
   0x1   :  { %12 = vsyncpa [#allocation6], 0 }
   0x2   :  { %13 = vsyncpa [#allocation4], 0 }
   0x3   :  { %14 = vsyncpa [#allocation10], 0  ;;  %s540_s18 = smov [#allocation5]   ;;  %s541_s20 = smov [#allocation2]  }
   0x4   :  { %s32_s19 = sshll.u32 %s540_s18, 4  ;;  %s20_s21 = sshll.u32 %s541_s20, 4  ;;  %s33_s19 = int_to_ptr.vmem [resolvable:$true] %s32_s19  ;;  %s580_s21 = int_to_ptr.vmem [resolvable:$true] %s20_s21 }
   0x5   :  { %s400_s24 = scalar_lea.hbm %s723_s1, 512 }
   0x6   :  { %p401_p0 = scmp.ne.s32.totalorder %s723_s1, %s400_s24  ;;  %p404_p1 = scmp.lt.u32.totalorder %s400_s24, %s723_s1 }
   0x8   :  { %p406_p2 = pnand %p404_p1, %p401_p0 }
   0xa   :  { %409 = shalt.err (!%p406_p2)
}
   0xb   :  { %s410_s29 = scalar_lea.vmem %s33_s19, 512  ;;  %p415_p4 = scmp.lt.s32.totalorder %s33_s19, %s33_s19 }
   0xc   :  { %p411_p3 = scmp.ne.s32.totalorder %s33_s19, %s410_s29  ;;  %p416_p5 = scmp.lt.s32.totalorder %s410_s29, %s410_s29 }
   0xe   :  { %p417_p6 = por %p416_p5, %p415_p4 }
  0x10   :  { %p418_p7 = pnand %p417_p6, %p411_p3 }
  0x12   :  { %421 = shalt.err (!%p418_p7)
}
  0x13   :  { %s542_s30 = smov 128   ;;  %s543_s6 = smov 8  }
  0x14   :  { %38 = dma.hbm_to_vmem [thread:$0]  %s723_s1, 512, %s33_s19, [#allocation6], %s542_s30, %s542_s30, %s543_s6  }
  0x15   :  { %s422_s11 = scalar_lea.hbm %s722_s0, 1024 }
  0x16   :  { %p423_p8 = scmp.ne.s32.totalorder %s722_s0, %s422_s11  ;;  %p426_p9 = scmp.lt.u32.totalorder %s422_s11, %s722_s0 }
  0x18   :  { %p428_p10 = pnand %p426_p9, %p423_p8 }
  0x1a   :  { %431 = shalt.err (!%p428_p10)
}
  0x1b   :  { %s432_s16 = scalar_lea.vmem %s580_s21, 1024  ;;  %p437_p12 = scmp.lt.s32.totalorder %s580_s21, %s580_s21 }
  0x1c   :  { %p433_p11 = scmp.ne.s32.totalorder %s580_s21, %s432_s16  ;;  %p438_p13 = scmp.lt.s32.totalorder %s432_s16, %s432_s16 }
  0x1e   :  { %p439_p0 = por %p438_p13, %p437_p12 }
  0x20   :  { %p440_p1 = pnand %p439_p0, %p433_p11 }
  0x22   :  { %443 = shalt.err (!%p440_p1)
}
  0x23   :  { %26 = dma.hbm_to_vmem [thread:$0]  %s722_s0, 1024, %s580_s21, [#allocation3], %s542_s30, %s542_s30, %s543_s6  }
  0x24   :  { %s544_s18 = smov [#allocation7]   ;;  %s444_s23 = scalar_lea.hbm %s724_s2, 16 }
  0x25   :  { %s45_s19 = sshll.u32 %s544_s18, 4  ;;  %p445_p2 = scmp.ne.s32.totalorder %s724_s2, %s444_s23  ;;  %s46_s19 = int_to_ptr.vmem [resolvable:$true] %s45_s19 }
  0x26   :  { %p448_p3 = scmp.lt.u32.totalorder %s444_s23, %s724_s2 }
  0x28   :  { %p450_p4 = pnand %p448_p3, %p445_p2 }
  0x2a   :  { %453 = shalt.err (!%p450_p4)
}
  0x2b   :  { %s454_s28 = scalar_lea.vmem %s46_s19, 16  ;;  %s458_s0 = scalar_lea.vmem %s46_s19, 32 }
  0x2c   :  { %p455_p5 = scmp.ne.s32.totalorder %s46_s19, %s454_s28  ;;  %p459_p6 = scmp.lt.s32.totalorder %s46_s19, %s46_s19 }
  0x2d   :  { %p460_p7 = scmp.lt.s32.totalorder %s458_s0, %s454_s28 }
  0x2f   :  { %p461_p8 = por %p460_p7, %p459_p6 }
  0x31   :  { %p462_p9 = pnand %p461_p8, %p455_p5 }
  0x33   :  { %465 = shalt.err (!%p462_p9)
}
  0x34   :  { %48 = dma.hbm_to_vmem [thread:$0]  %s724_s2, 16, %s46_s19, [#allocation6]  }
  0x35   :  { %532 = dma.done.wait [#allocation3], 1024  }
  0x36   :  { %533 = vsyncadd [#allocation3], 4294966272 }
  0x37   :  { %534 = dma.done.wait [#allocation6], 528  }
  0x38   :  { %535 = vsyncadd [#allocation6], 4294966768  ;;  %vm77_vm0 = vcmask 261120   ;;  %v66_v0 = vld [vmem:[#allocation5] sm:$0xff]  ;;  %v67_v1 = vld [vmem:[#allocation5 + $0x8] sm:$0xff]  ;;  %s545_s2 = smov 96  }
  0x39   :  { %v68_v2 = vld [vmem:[#allocation5 + $0x10] sm:$0xff]  ;;  %v378_v3 = vpack.c.bf16 %v67_v1, %v66_v0  ;;  %v69_v4 = vld [vmem:[#allocation5 + $0x18] sm:$0xff]  ;;  %v58_v5 = vld [vmem:[#allocation2] sm:$0xff]  ;;  %s546_s7 = smov 64   ;;  %s547_s8 = smov [#allocation8]  }
  0x3a   :  { %v62_v6 = vld [vmem:[#allocation2 + $0x20] sm:$0xff]  ;;  %v382_v7 = vpack.c.bf16 %v69_v4, %v68_v2  ;;  %366 = vmatprep.mubr.msk.f32.mxu0 %vm77_vm0, %v58_v5  ;;  %v59_v8 = vld [vmem:[#allocation2 + $0x8] sm:$0xff]  ;;  %v60_v10 = vld [vmem:[#allocation2 + $0x10] sm:$0xff]  ;;  %s293_s9 = sshll.u32 %s547_s8, 4  ;;  %s294_s9 = int_to_ptr.vmem [resolvable:$true] %s293_s9 }
  0x3b   :  { %372 = vmatprep.mubr.msk.f32.mxu1 %vm77_vm0, %v62_v6  ;;  %379 = vmatprep.subr.bf16.mxu0 %v378_v3  ;;  %v63_v9 = vld [vmem:[#allocation2 + $0x28] sm:$0xff]  ;;  %v64_v11 = vld [vmem:[#allocation2 + $0x30] sm:$0xff]  ;;  %v61_v12 = vld [vmem:[#allocation2 + $0x18] sm:$0xff]  ;;  %s466_s10 = scalar_lea.vmem %s294_s9, 1024  ;;  %p471_p11 = scmp.lt.s32.totalorder %s294_s9, %s294_s9 }
  0x3c   :  { %386 = vmatprep.subr.bf16.mxu1 %v378_v3  ;;  %381 = vmatpush3.bf16.msra.mxu0 %v378_v3  ;;  %v65_v13 = vld [vmem:[#allocation2 + $0x38] sm:$0xff]  ;;  %v337_v14 = vld [vmem:[#allocation7] ss:$0 sm:$0xff]  ;;  %p467_p10 = scmp.ne.s32.totalorder %s294_s9, %s466_s10  ;;  %p472_p12 = scmp.lt.s32.totalorder %s466_s10, %s466_s10 }
  0x3d   :  { %388 = vmatpush3.bf16.msra.mxu1 %v378_v3  ;;  %383 = vmatprep.subr.bf16.mxu0 %v382_v7 }
  0x3e   :  { %387 = vmatprep.subr.bf16.mxu1 %v382_v7  ;;  %p473_p13 = por %p472_p12, %p471_p11 }
  0x40   :  { %385 = vmatpush3.bf16.msra.mxu0 %v382_v7  ;;  %p474_p0 = pnand %p473_p13, %p467_p10 }
  0x41   :  { %389 = vmatpush3.bf16.msra.mxu1 %v382_v7 }
  0x43   :  { %367 = vmatmul.mubr.msk.f32.vlgmr.msra.gmra.mrb[0].mxu0 %vm77_vm0, %v59_v8 }
  0x44   :  { %373 = vmatmul.mubr.msk.f32.vlgmr.msra.gmra.mrb[0].mxu1 %vm77_vm0, %v63_v9  ;;  %369 = vmatprep.mubr.msk.f32.mxu0 %vm77_vm0, %v60_v10 }
  0x45   :  { %375 = vmatprep.mubr.msk.f32.mxu1 %vm77_vm0, %v64_v11 }
  0x47   :  { %370 = vmatmul.mubr.msk.f32.gmra.mrb[2].mxu0 %vm77_vm0, %v61_v12 }
  0x48   :  { %376 = vmatmul.mubr.msk.f32.gmra.mrb[2].mxu1 %vm77_vm0, %v65_v13 }
 0x116   :  { %v368_v15 = vpop.f32.mrb[0].mxu0 }
 0x117   :  { %v374_v16 = vpop.f32.mrb[0].mxu1  ;;  %v174_v17 = vadd.f32 %v368_v15, %v337_v14  ;;  %v168_v19 = vpop.f32.mrb[1].mxu0 }
 0x118   :  { %v194_v18 = vadd.f32 %v374_v16, %v337_v14  ;;  %v188_v20 = vpop.f32.mrb[1].mxu1  ;;  %v169_v21 = vadd.f32 %v337_v14, %v168_v19 }
 0x119   :  { %v189_v22 = vadd.f32 %v337_v14, %v188_v20  ;;  %208 = vst.msk [vmem:[#allocation8 + $0x8] sm:$0xff] %vm77_vm0, %v174_v17  ;;  %225 = vrot.lane.b32.xlu0 %v174_v17, %s545_s2 }
 0x11a   :  { %212 = vst.msk [vmem:[#allocation8 + $0x28] sm:$0xff] %vm77_vm0, %v194_v18  ;;  %233 = vrot.lane.b32.xlu1 %v194_v18, %s545_s2  ;;  %207 = vst.msk [vmem:[#allocation8] sm:$0xff] %vm77_vm0, %v169_v21  ;;  %v371_v23 = vpop.f32.mrb[2].mxu0 }
 0x11b   :  { %211 = vst.msk [vmem:[#allocation8 + $0x20] sm:$0xff] %vm77_vm0, %v189_v22  ;;  %v377_v24 = vpop.f32.mrb[2].mxu1  ;;  %v184_v25 = vadd.f32 %v371_v23, %v337_v14  ;;  %v178_v26 = vpop.f32.mrb[3].mxu0 }
 0x11c   :  { %v204_v27 = vadd.f32 %v377_v24, %v337_v14  ;;  %v198_v28 = vpop.f32.mrb[3].mxu1  ;;  %v179_v29 = vadd.f32 %v337_v14, %v178_v26 }
 0x11d   :  { %v199_v30 = vadd.f32 %v337_v14, %v198_v28  ;;  %223 = vrot.lane.b32.xlu0 %v169_v21, %s545_s2  ;;  %210 = vst.msk [vmem:[#allocation8 + $0x18] sm:$0xff] %vm77_vm0, %v184_v25 }
 0x11e   :  { %257 = vrot.lane.b32.xlu1 %v174_v17, %s546_s7  ;;  %214 = vst.msk [vmem:[#allocation8 + $0x38] sm:$0xff] %vm77_vm0, %v204_v27  ;;  %209 = vst.msk [vmem:[#allocation8 + $0x10] sm:$0xff] %vm77_vm0, %v179_v29 }
 0x11f   :  { %213 = vst.msk [vmem:[#allocation8 + $0x30] sm:$0xff] %vm77_vm0, %v199_v30 }
 0x121   :  { %231 = vrot.lane.b32.xlu0 %v189_v22, %s545_s2 }
 0x122   :  { %265 = vrot.lane.b32.xlu1 %v194_v18, %s546_s7 }
 0x125   :  { %255 = vrot.lane.b32.xlu0 %v169_v21, %s546_s7 }
 0x126   :  { %229 = vrot.lane.b32.xlu1 %v184_v25, %s545_s2 }
 0x129   :  { %263 = vrot.lane.b32.xlu0 %v189_v22, %s546_s7 }
 0x12a   :  { %237 = vrot.lane.b32.xlu1 %v204_v27, %s545_s2 }
 0x12b   :  { %477 = shalt.err (!%p474_p0)
}
 0x12c   :  { %s478_s13 = scalar_lea.hbm %s725_s3, 1024 }
 0x12d   :  { %p479_p1 = scmp.ne.s32.totalorder %s725_s3, %s478_s13  ;;  %p482_p2 = scmp.lt.u32.totalorder %s478_s13, %s725_s3 }
 0x12f   :  { %p484_p3 = pnand %p482_p2, %p479_p1 }
 0x131   :  { %487 = shalt.err (!%p484_p3)
}
 0x132   :  { %299 = dma.vmem_to_hbm [thread:$0]  %s294_s9, 1024, %s725_s3, [#allocation4], %s542_s30, %s542_s30, %s543_s6   ;;  %vm279_vm1 = vcmask 130048  }
 0x133   :  { %261 = vrot.lane.b32.xlu1 %v184_v25, %s546_s7  ;;  %235 = vrot.lane.b32.xlu0 %v199_v30, %s545_s2  ;;  %s548_s3 = smov [#allocation9]   ;;  %s549_s20 = smov [#allocation11]  }
 0x134   :  { %s305_s19 = sshll.u32 %s548_s3, 4  ;;  %s317_s22 = sshll.u32 %s549_s20, 4  ;;  %s306_s19 = int_to_ptr.vmem [resolvable:$true] %s305_s19  ;;  %s318_s22 = int_to_ptr.vmem [resolvable:$true] %s317_s22 }
 0x135   :  { %s488_s23 = scalar_lea.vmem %s306_s19, 1024  ;;  %p493_p5 = scmp.lt.s32.totalorder %s306_s19, %s306_s19 }
 0x136   :  { %p489_p4 = scmp.ne.s32.totalorder %s306_s19, %s488_s23  ;;  %p494_p6 = scmp.lt.s32.totalorder %s488_s23, %s488_s23 }
 0x137   :  { %227 = vrot.lane.b32.xlu1 %v179_v29, %s545_s2  ;;  %259 = vrot.lane.b32.xlu0 %v179_v29, %s546_s7 }
 0x138   :  { %p495_p7 = por %p494_p6, %p493_p5 }
 0x13a   :  { %p496_p8 = pnand %p495_p7, %p489_p4 }
 0x13b   :  { %269 = vrot.lane.b32.xlu1 %v204_v27, %s546_s7  ;;  %267 = vrot.lane.b32.xlu0 %v199_v30, %s546_s7 }
 0x18b   :  { %v226_v32 = vpop.permute.xlu0 %225 }
 0x18c   :  { %v234_v31 = vpop.permute.xlu1 %233  ;;  %248 = vst.msk [vmem:[#allocation9 + $0x8] sm:$0xff] %vm77_vm0, %v226_v32 }
 0x18d   :  { %252 = vst.msk [vmem:[#allocation9 + $0x28] sm:$0xff] %vm77_vm0, %v234_v31 }
 0x18f   :  { %v224_v34 = vpop.permute.xlu0 %223 }
 0x190   :  { %v258_v33 = vpop.permute.xlu1 %257  ;;  %247 = vst.msk [vmem:[#allocation9] sm:$0xff] %vm77_vm0, %v224_v34 }
 0x191   :  { %281 = vst.msk [vmem:[#allocation11 + $0x8] sm:$0xff] %vm279_vm1, %v258_v33 }
 0x193   :  { %v232_v36 = vpop.permute.xlu0 %231 }
 0x194   :  { %v266_v35 = vpop.permute.xlu1 %265  ;;  %251 = vst.msk [vmem:[#allocation9 + $0x20] sm:$0xff] %vm77_vm0, %v232_v36 }
 0x195   :  { %285 = vst.msk [vmem:[#allocation11 + $0x28] sm:$0xff] %vm279_vm1, %v266_v35 }
 0x197   :  { %v256_v38 = vpop.permute.xlu0 %255 }
 0x198   :  { %v230_v37 = vpop.permute.xlu1 %229  ;;  %280 = vst.msk [vmem:[#allocation11] sm:$0xff] %vm279_vm1, %v256_v38 }
 0x199   :  { %250 = vst.msk [vmem:[#allocation9 + $0x18] sm:$0xff] %vm77_vm0, %v230_v37 }
 0x19b   :  { %v264_v40 = vpop.permute.xlu0 %263 }
 0x19c   :  { %v238_v39 = vpop.permute.xlu1 %237  ;;  %284 = vst.msk [vmem:[#allocation11 + $0x20] sm:$0xff] %vm279_vm1, %v264_v40 }
 0x19d   :  { %254 = vst.msk [vmem:[#allocation9 + $0x38] sm:$0xff] %vm77_vm0, %v238_v39 }
 0x1a5   :  { %v262_v41 = vpop.permute.xlu1 %261  ;;  %v236_v42 = vpop.permute.xlu0 %235 }
 0x1a6   :  { %283 = vst.msk [vmem:[#allocation11 + $0x18] sm:$0xff] %vm279_vm1, %v262_v41 }
 0x1a7   :  { %253 = vst.msk [vmem:[#allocation9 + $0x30] sm:$0xff] %vm77_vm0, %v236_v42 }
 0x1a9   :  { %v228_v43 = vpop.permute.xlu1 %227  ;;  %v260_v44 = vpop.permute.xlu0 %259 }
 0x1aa   :  { %249 = vst.msk [vmem:[#allocation9 + $0x10] sm:$0xff] %vm77_vm0, %v228_v43 }
 0x1ab   :  { %282 = vst.msk [vmem:[#allocation11 + $0x10] sm:$0xff] %vm279_vm1, %v260_v44 }
 0x1ac   :  { %499 = shalt.err (!%p496_p8)
}
 0x1ad   :  { %s500_s26 = scalar_lea.hbm %s726_s4, 1024 }
 0x1ae   :  { %p501_p9 = scmp.ne.s32.totalorder %s726_s4, %s500_s26  ;;  %p504_p10 = scmp.lt.u32.totalorder %s500_s26, %s726_s4 }
 0x1b0   :  { %p506_p11 = pnand %p504_p10, %p501_p9 }
 0x1b2   :  { %509 = shalt.err (!%p506_p11)
}
 0x1b3   :  { %311 = dma.vmem_to_hbm [thread:$0]  %s306_s19, 1024, %s726_s4, [#allocation10], %s542_s30, %s542_s30, %s543_s6   ;;  %v270_v45 = vpop.permute.xlu1 %269  ;;  %v268_v46 = vpop.permute.xlu0 %267 }
 0x1b4   :  { %287 = vst.msk [vmem:[#allocation11 + $0x38] sm:$0xff] %vm279_vm1, %v270_v45  ;;  %286 = vst.msk [vmem:[#allocation11 + $0x30] sm:$0xff] %vm279_vm1, %v268_v46  ;;  %s510_s7 = scalar_lea.vmem %s318_s22, 1024  ;;  %p515_p13 = scmp.lt.s32.totalorder %s318_s22, %s318_s22 }
 0x1b5   :  { %p511_p12 = scmp.ne.s32.totalorder %s318_s22, %s510_s7  ;;  %p516_p0 = scmp.lt.s32.totalorder %s510_s7, %s510_s7 }
 0x1b7   :  { %p517_p1 = por %p516_p0, %p515_p13 }
 0x1b9   :  { %p518_p2 = pnand %p517_p1, %p511_p12 }
 0x1bb   :  { %521 = shalt.err (!%p518_p2)
}
 0x1bc   :  { %s522_s10 = scalar_lea.hbm %s727_s5, 1024 }
 0x1bd   :  { %p523_p3 = scmp.ne.s32.totalorder %s727_s5, %s522_s10  ;;  %p526_p4 = scmp.lt.u32.totalorder %s522_s10, %s727_s5 }
 0x1bf   :  { %p528_p5 = pnand %p526_p4, %p523_p3 }
 0x1c1   :  { %531 = shalt.err (!%p528_p5)
}
 0x1c2   :  { %323 = dma.vmem_to_hbm [thread:$0]  %s318_s22, 1024, %s727_s5, [#allocation10], %s542_s30, %s542_s30, %s543_s6  }
 0x1c3   :  { %536 = dma.done.wait [#allocation4], 1024  }
 0x1c4   :  { %537 = vsyncadd [#allocation4], 4294966272 }
 0x1c5   :  { %538 = dma.done.wait [#allocation10], 2048  }
 0x1c6   :  { %539 = vsyncadd [#allocation10], 4294965248 }
 0x1c7   :  { %333 = vsyncpa [#allocation3], 1 }
 0x1c8   :  { %334 = vsyncpa [#allocation6], 1 }
 0x1c9   :  { %335 = vsyncpa [#allocation4], 1 }
 0x1ca   :  { %336 = vsyncpa [#allocation10], 1 }

// kernel: deformable_transformer_encoders_forward.12
= control target key start
LH: loop header
LB: loop body
LE: loop exit
PB: predicated region body
PF: predicated region fallthrough
CT: control target
= control target key end

     0   :  { %11 = vsyncpa [#allocation3], 0  ;;  %s899_s0 = inlined_call_operand.hbm [shape: f32[64,32], index: 0, kind: input, shape index: {}]   ;;  %s900_s1 = inlined_call_operand.hbm [shape: f32[32,32], index: 1, kind: input, shape index: {}]   ;;  %s901_s2 = inlined_call_operand.hbm [shape: f32[1,32], index: 2, kind: input, shape index: {}]   ;;  %s902_s3 = inlined_call_operand.hbm [shape: f32[64,32], index: 3, kind: input, shape index: {}]   ;;  %s903_s4 = inlined_call_operand.hbm [shape: f32[1,32], index: 4, kind: input, shape index: {}]   ;;  %s904_s5 = inlined_call_operand.hbm [shape: f32[1,32], index: 5, kind: input, shape index: {}]   ;;  %s905_s6 = inlined_call_operand.hbm [shape: f32[64,32], index: 6, kind: output, shape index: {}]  }
   0x1   :  { %12 = vsyncpa [#allocation6], 0 }
   0x2   :  { %13 = vsyncpa [#allocation9], 0 }
   0x3   :  { %14 = vsyncpa [#allocation12], 0 }
   0x4   :  { %15 = vsyncpa [#allocation4], 0  ;;  %s680_s21 = smov [#allocation5]   ;;  %s681_s23 = smov [#allocation8]  }
   0x5   :  { %s33_s22 = sshll.u32 %s680_s21, 4  ;;  %s55_s24 = sshll.u32 %s681_s23, 4  ;;  %s34_s22 = int_to_ptr.vmem [resolvable:$true] %s33_s22  ;;  %s724_s24 = int_to_ptr.vmem [resolvable:$true] %s55_s24 }
   0x6   :  { %s516_s27 = scalar_lea.hbm %s900_s1, 512 }
   0x7   :  { %p517_p0 = scmp.ne.s32.totalorder %s900_s1, %s516_s27  ;;  %p520_p1 = scmp.lt.u32.totalorder %s516_s27, %s900_s1 }
   0x9   :  { %p522_p2 = pnand %p520_p1, %p517_p0 }
   0xb   :  { %525 = shalt.err (!%p522_p2)
}
   0xc   :  { %s526_s8 = scalar_lea.vmem %s34_s22, 512  ;;  %p531_p4 = scmp.lt.s32.totalorder %s34_s22, %s34_s22 }
   0xd   :  { %p527_p3 = scmp.ne.s32.totalorder %s34_s22, %s526_s8  ;;  %p532_p5 = scmp.lt.s32.totalorder %s526_s8, %s526_s8 }
   0xf   :  { %p533_p6 = por %p532_p5, %p531_p4 }
  0x11   :  { %p534_p7 = pnand %p533_p6, %p527_p3 }
  0x13   :  { %537 = shalt.err (!%p534_p7)
}
  0x14   :  { %s682_s9 = smov 128   ;;  %s683_s10 = smov 8  }
  0x15   :  { %39 = dma.hbm_to_vmem [thread:$0]  %s900_s1, 512, %s34_s22, [#allocation6], %s682_s9, %s682_s9, %s683_s10  }
  0x16   :  { %s538_s15 = scalar_lea.hbm %s902_s3, 1024 }
  0x17   :  { %p539_p8 = scmp.ne.s32.totalorder %s902_s3, %s538_s15  ;;  %p542_p9 = scmp.lt.u32.totalorder %s538_s15, %s902_s3 }
  0x19   :  { %p544_p10 = pnand %p542_p9, %p539_p8 }
  0x1b   :  { %547 = shalt.err (!%p544_p10)
}
  0x1c   :  { %s548_s20 = scalar_lea.vmem %s724_s24, 1024  ;;  %p553_p12 = scmp.lt.s32.totalorder %s724_s24, %s724_s24 }
  0x1d   :  { %p549_p11 = scmp.ne.s32.totalorder %s724_s24, %s548_s20  ;;  %p554_p13 = scmp.lt.s32.totalorder %s548_s20, %s548_s20 }
  0x1f   :  { %p555_p0 = por %p554_p13, %p553_p12 }
  0x21   :  { %p556_p1 = pnand %p555_p0, %p549_p11 }
  0x23   :  { %559 = shalt.err (!%p556_p1)
}
  0x24   :  { %61 = dma.hbm_to_vmem [thread:$0]  %s902_s3, 1024, %s724_s24, [#allocation9], %s682_s9, %s682_s9, %s683_s10  }
  0x25   :  { %s684_s22 = smov [#allocation2]   ;;  %s685_s25 = smov [#allocation7]  }
  0x26   :  { %s21_s23 = sshll.u32 %s684_s22, 4  ;;  %s46_s26 = sshll.u32 %s685_s25, 4  ;;  %s22_s23 = int_to_ptr.vmem [resolvable:$true] %s21_s23  ;;  %s47_s26 = int_to_ptr.vmem [resolvable:$true] %s46_s26 }
  0x27   :  { %s560_s29 = scalar_lea.hbm %s899_s0, 1024 }
  0x28   :  { %p561_p2 = scmp.ne.s32.totalorder %s899_s0, %s560_s29  ;;  %p564_p3 = scmp.lt.u32.totalorder %s560_s29, %s899_s0 }
  0x2a   :  { %p566_p4 = pnand %p564_p3, %p561_p2 }
  0x2c   :  { %569 = shalt.err (!%p566_p4)
}
  0x2d   :  { %s570_s3 = scalar_lea.vmem %s22_s23, 1024  ;;  %p575_p6 = scmp.lt.s32.totalorder %s22_s23, %s22_s23 }
  0x2e   :  { %p571_p5 = scmp.ne.s32.totalorder %s22_s23, %s570_s3  ;;  %p576_p7 = scmp.lt.s32.totalorder %s570_s3, %s570_s3 }
  0x30   :  { %p577_p8 = por %p576_p7, %p575_p6 }
  0x32   :  { %p578_p9 = pnand %p577_p8, %p571_p5 }
  0x34   :  { %581 = shalt.err (!%p578_p9)
}
  0x35   :  { %27 = dma.hbm_to_vmem [thread:$0]  %s899_s0, 1024, %s22_s23, [#allocation3], %s682_s9, %s682_s9, %s683_s10  }
  0x36   :  { %s582_s15 = scalar_lea.hbm %s901_s2, 16 }
  0x37   :  { %p583_p10 = scmp.ne.s32.totalorder %s901_s2, %s582_s15  ;;  %p586_p11 = scmp.lt.u32.totalorder %s582_s15, %s901_s2 }
  0x39   :  { %p588_p12 = pnand %p586_p11, %p583_p10 }
  0x3b   :  { %591 = shalt.err (!%p588_p12)
}
  0x3c   :  { %s592_s20 = scalar_lea.vmem %s47_s26, 16  ;;  %s596_s1 = scalar_lea.vmem %s47_s26, 32 }
  0x3d   :  { %p593_p13 = scmp.ne.s32.totalorder %s47_s26, %s592_s20  ;;  %p597_p0 = scmp.lt.s32.totalorder %s47_s26, %s47_s26 }
  0x3e   :  { %p598_p1 = scmp.lt.s32.totalorder %s596_s1, %s592_s20 }
  0x40   :  { %p599_p2 = por %p598_p1, %p597_p0 }
  0x42   :  { %p600_p3 = pnand %p599_p2, %p593_p13 }
  0x44   :  { %603 = shalt.err (!%p600_p3)
}
  0x45   :  { %49 = dma.hbm_to_vmem [thread:$0]  %s901_s2, 16, %s47_s26, [#allocation6]  }
  0x46   :  { %s686_s22 = smov [#allocation10]   ;;  %s687_s25 = smov [#allocation11]  }
  0x47   :  { %s68_s23 = sshll.u32 %s686_s22, 4  ;;  %s78_s27 = sshll.u32 %s687_s25, 4  ;;  %s69_s23 = int_to_ptr.vmem [resolvable:$true] %s68_s23  ;;  %s79_s27 = int_to_ptr.vmem [resolvable:$true] %s78_s27 }
  0x48   :  { %s604_s30 = scalar_lea.hbm %s903_s4, 16 }
  0x49   :  { %p605_p4 = scmp.ne.s32.totalorder %s903_s4, %s604_s30  ;;  %p608_p5 = scmp.lt.u32.totalorder %s604_s30, %s903_s4 }
  0x4b   :  { %p610_p6 = pnand %p608_p5, %p605_p4 }
  0x4d   :  { %613 = shalt.err (!%p610_p6)
}
  0x4e   :  { %s614_s2 = scalar_lea.vmem %s69_s23, 16  ;;  %s618_s26 = scalar_lea.vmem %s69_s23, 32 }
  0x4f   :  { %p615_p7 = scmp.ne.s32.totalorder %s69_s23, %s614_s2  ;;  %p619_p8 = scmp.lt.s32.totalorder %s69_s23, %s69_s23 }
  0x50   :  { %p620_p9 = scmp.lt.s32.totalorder %s618_s26, %s614_s2 }
  0x52   :  { %p621_p10 = por %p620_p9, %p619_p8 }
  0x54   :  { %p622_p11 = pnand %p621_p10, %p615_p7 }
  0x56   :  { %625 = shalt.err (!%p622_p11)
}
  0x57   :  { %71 = dma.hbm_to_vmem [thread:$0]  %s903_s4, 16, %s69_s23, [#allocation9]  }
  0x58   :  { %s626_s15 = scalar_lea.hbm %s904_s5, 16 }
  0x59   :  { %p627_p12 = scmp.ne.s32.totalorder %s904_s5, %s626_s15  ;;  %p630_p13 = scmp.lt.u32.totalorder %s626_s15, %s904_s5 }
  0x5b   :  { %p632_p0 = pnand %p630_p13, %p627_p12 }
  0x5d   :  { %635 = shalt.err (!%p632_p0)
}
  0x5e   :  { %s636_s20 = scalar_lea.vmem %s79_s27, 16  ;;  %s640_s1 = scalar_lea.vmem %s79_s27, 32 }
  0x5f   :  { %p637_p1 = scmp.ne.s32.totalorder %s79_s27, %s636_s20  ;;  %p641_p2 = scmp.lt.s32.totalorder %s79_s27, %s79_s27 }
  0x60   :  { %p642_p3 = scmp.lt.s32.totalorder %s640_s1, %s636_s20 }
  0x62   :  { %p643_p4 = por %p642_p3, %p641_p2 }
  0x64   :  { %p644_p5 = pnand %p643_p4, %p637_p1 }
  0x66   :  { %647 = shalt.err (!%p644_p5)
}
  0x67   :  { %81 = dma.hbm_to_vmem [thread:$0]  %s904_s5, 16, %s79_s27, [#allocation12]  }
  0x68   :  { %670 = dma.done.wait [#allocation3], 1024  }
  0x69   :  { %671 = vsyncadd [#allocation3], 4294966272 }
  0x6a   :  { %672 = dma.done.wait [#allocation6], 528  }
  0x6b   :  { %673 = vsyncadd [#allocation6], 4294966768 }
  0x6c   :  { %674 = dma.done.wait [#allocation9], 1040  }
  0x6d   :  { %675 = vsyncadd [#allocation9], 4294966256 }
  0x6e   :  { %676 = dma.done.wait [#allocation12], 16  }
  0x6f   :  { %677 = vsyncadd [#allocation12], 4294967280  ;;  %vm112_vm0 = vcmask 261120   ;;  %v108_v0 = vld [vmem:[#allocation5] sm:$0xff]  ;;  %v109_v1 = vld [vmem:[#allocation5 + $0x8] sm:$0xff]  ;;  %s688_s5 = smov [#allocation13]  }
  0x70   :  { %v110_v2 = vld [vmem:[#allocation5 + $0x10] sm:$0xff]  ;;  %v479_v3 = vpack.c.bf16 %v109_v1, %v108_v0  ;;  %v111_v4 = vld [vmem:[#allocation5 + $0x18] sm:$0xff]  ;;  %v100_v5 = vld [vmem:[#allocation2] sm:$0xff]  ;;  %s421_s21 = sshll.u32 %s688_s5, 4  ;;  %s422_s21 = int_to_ptr.vmem [resolvable:$true] %s421_s21 }
  0x71   :  { %v104_v6 = vld [vmem:[#allocation2 + $0x20] sm:$0xff]  ;;  %v483_v7 = vpack.c.bf16 %v111_v4, %v110_v2  ;;  %467 = vmatprep.mubr.msk.f32.mxu0 %vm112_vm0, %v100_v5  ;;  %v101_v8 = vld [vmem:[#allocation2 + $0x8] sm:$0xff]  ;;  %v102_v10 = vld [vmem:[#allocation2 + $0x10] sm:$0xff]  ;;  %s648_s22 = scalar_lea.vmem %s422_s21, 1024  ;;  %p653_p7 = scmp.lt.s32.totalorder %s422_s21, %s422_s21 }
  0x72   :  { %473 = vmatprep.mubr.msk.f32.mxu1 %vm112_vm0, %v104_v6  ;;  %480 = vmatprep.subr.bf16.mxu0 %v479_v3  ;;  %v105_v9 = vld [vmem:[#allocation2 + $0x28] sm:$0xff]  ;;  %v106_v11 = vld [vmem:[#allocation2 + $0x30] sm:$0xff]  ;;  %v103_v12 = vld [vmem:[#allocation2 + $0x18] sm:$0xff]  ;;  %p649_p6 = scmp.ne.s32.totalorder %s422_s21, %s648_s22  ;;  %p654_p8 = scmp.lt.s32.totalorder %s648_s22, %s648_s22 }
  0x73   :  { %487 = vmatprep.subr.bf16.mxu1 %v479_v3  ;;  %482 = vmatpush3.bf16.msra.mxu0 %v479_v3  ;;  %v107_v13 = vld [vmem:[#allocation2 + $0x38] sm:$0xff]  ;;  %v243_v14 = vld [vmem:[#allocation8 + $0x8] sm:$0xff]  ;;  %v242_v16 = vld [vmem:[#allocation8] sm:$0xff] }
  0x74   :  { %489 = vmatpush3.bf16.msra.mxu1 %v479_v3  ;;  %484 = vmatprep.subr.bf16.mxu0 %v483_v7  ;;  %v247_v15 = vld [vmem:[#allocation8 + $0x28] sm:$0xff]  ;;  %v444_v19 = vld [vmem:[#allocation7] ss:$0 sm:$0xff]  ;;  %v246_v24 = vld [vmem:[#allocation8 + $0x20] sm:$0xff]  ;;  %p655_p9 = por %p654_p8, %p653_p7 }
  0x75   :  { %488 = vmatprep.subr.bf16.mxu1 %v483_v7  ;;  %v245_v26 = vld [vmem:[#allocation8 + $0x18] sm:$0xff]  ;;  %v244_v29 = vld [vmem:[#allocation8 + $0x10] sm:$0xff] }
  0x76   :  { %v249_v33 = vld [vmem:[#allocation8 + $0x38] sm:$0xff]  ;;  %v248_v34 = vld [vmem:[#allocation8 + $0x30] sm:$0xff]  ;;  %p656_p10 = pnand %p655_p9, %p649_p6 }
  0x77   :  { %486 = vmatpush3.bf16.msra.mxu0 %v483_v7 }
  0x78   :  { %490 = vmatpush3.bf16.msra.mxu1 %v483_v7 }
  0x7a   :  { %468 = vmatmul.mubr.msk.f32.vlgmr.msra.gmra.mrb[0].mxu0 %vm112_vm0, %v101_v8 }
  0x7b   :  { %474 = vmatmul.mubr.msk.f32.vlgmr.msra.gmra.mrb[0].mxu1 %vm112_vm0, %v105_v9  ;;  %470 = vmatprep.mubr.msk.f32.mxu0 %vm112_vm0, %v102_v10 }
  0x7c   :  { %476 = vmatprep.mubr.msk.f32.mxu1 %vm112_vm0, %v106_v11 }
  0x7e   :  { %471 = vmatmul.mubr.msk.f32.gmra.mrb[2].mxu0 %vm112_vm0, %v103_v12 }
  0x7f   :  { %477 = vmatmul.mubr.msk.f32.gmra.mrb[2].mxu1 %vm112_vm0, %v107_v13 }
 0x14d   :  { %v469_v17 = vpop.f32.mrb[0].mxu0 }
 0x14e   :  { %v475_v18 = vpop.f32.mrb[0].mxu1  ;;  %v251_v20 = vadd.f32 %v469_v17, %v243_v14  ;;  %v203_v22 = vpop.f32.mrb[1].mxu0 }
 0x14f   :  { %v255_v21 = vadd.f32 %v475_v18, %v247_v15  ;;  %v223_v23 = vpop.f32.mrb[1].mxu1  ;;  %v250_v25 = vadd.f32 %v242_v16, %v203_v22 }
 0x150   :  { %v266_v28 = vadd.f32 %v444_v19, %v251_v20  ;;  %v254_v31 = vadd.f32 %v246_v24, %v223_v23 }
 0x151   :  { %v270_v27 = vadd.f32 %v444_v19, %v255_v21  ;;  %v472_v30 = vpop.f32.mrb[2].mxu0  ;;  %v265_v39 = vadd.f32 %v444_v19, %v250_v25 }
 0x152   :  { %v478_v32 = vpop.f32.mrb[2].mxu1  ;;  %v253_v35 = vadd.f32 %v472_v30, %v245_v26  ;;  %v276_v37 = vsel %vm112_vm0, %v266_v28, 0.0  ;;  %v213_v38 = vpop.f32.mrb[3].mxu0  ;;  %v269_v48 = vadd.f32 %v444_v19, %v254_v31 }
 0x153   :  { %v288_v36 = vsel %vm112_vm0, %v270_v27, 0.0  ;;  %v233_v40 = vpop.f32.mrb[3].mxu1  ;;  %277 = vadd.xlane.f32.xlu0 %v276_v37  ;;  %v252_v41 = vadd.f32 %v244_v29, %v213_v38  ;;  %v257_v43 = vadd.f32 %v478_v32, %v249_v33  ;;  %v273_v46 = vsel %vm112_vm0, %v265_v39, 0.0 }
 0x154   :  { %289 = vadd.xlane.f32.xlu1 %v288_v36  ;;  %v268_v42 = vadd.f32 %v444_v19, %v253_v35  ;;  %v256_v44 = vadd.f32 %v248_v34, %v233_v40  ;;  %v285_v52 = vsel %vm112_vm0, %v269_v48, 0.0 }
 0x155   :  { %v267_v45 = vadd.f32 %v444_v19, %v252_v41  ;;  %v272_v51 = vadd.f32 %v444_v19, %v257_v43 }
 0x156   :  { %v282_v47 = vsel %vm112_vm0, %v268_v42, 0.0  ;;  %v271_v50 = vadd.f32 %v444_v19, %v256_v44 }
 0x157   :  { %274 = vadd.xlane.f32.xlu0 %v273_v46  ;;  %v279_v49 = vsel %vm112_vm0, %v267_v45, 0.0  ;;  %v294_v54 = vsel %vm112_vm0, %v272_v51, 0.0 }
 0x158   :  { %283 = vadd.xlane.f32.xlu1 %v282_v47  ;;  %v291_v53 = vsel %vm112_vm0, %v271_v50, 0.0 }
 0x15b   :  { %286 = vadd.xlane.f32.xlu0 %v285_v52 }
 0x15c   :  { %280 = vadd.xlane.f32.xlu1 %v279_v49 }
 0x15f   :  { %292 = vadd.xlane.f32.xlu0 %v291_v53 }
 0x160   :  { %295 = vadd.xlane.f32.xlu1 %v294_v54 }
 0x1e0   :  { %v278_v56 = vpop.xlane.xlu0 %277 }
 0x1e1   :  { %v290_v55 = vpop.xlane.xlu1 %289  ;;  %v299_v58 = vmul.f32 0.03125, %v278_v56  ;;  %v446_v56 = vld [vmem:[#allocation11] ss:$0 sm:$0xff] }
 0x1e2   :  { %v303_v57 = vmul.f32 0.03125, %v290_v55 }
 0x1e3   :  { %v830_v60 = vsub.f32 %v266_v28, %v299_v58 }
 0x1e4   :  { %v828_v59 = vsub.f32 %v270_v27, %v303_v57  ;;  %v275_v61 = vpop.xlane.xlu0 %274 }
 0x1e5   :  { %v284_v62 = vpop.xlane.xlu1 %283  ;;  %v298_v63 = vmul.f32 0.03125, %v275_v61  ;;  %v315_v1 = vmul.f32 %v830_v60, %v830_v60 }
 0x1e6   :  { %v301_v0 = vmul.f32 0.03125, %v284_v62  ;;  %v319_v5 = vmul.f32 %v828_v59, %v828_v59 }
 0x1e7   :  { %v834_v2 = vsub.f32 %v265_v39, %v298_v63  ;;  %v325_v4 = vsel %vm112_vm0, %v315_v1, 0.0 }
 0x1e8   :  { %v836_v3 = vsub.f32 %v268_v42, %v301_v0  ;;  %v287_v6 = vpop.xlane.xlu0 %286  ;;  %326 = vadd.xlane.f32.xlu1 %v325_v4  ;;  %v337_v15 = vsel %vm112_vm0, %v319_v5, 0.0 }
 0x1e9   :  { %v281_v7 = vpop.xlane.xlu1 %280  ;;  %v302_v8 = vmul.f32 0.03125, %v287_v6  ;;  %v314_v10 = vmul.f32 %v834_v2, %v834_v2 }
 0x1ea   :  { %v300_v9 = vmul.f32 0.03125, %v281_v7  ;;  %v317_v11 = vmul.f32 %v836_v3, %v836_v3 }
 0x1eb   :  { %v845_v12 = vsub.f32 %v269_v48, %v302_v8  ;;  %v322_v14 = vsel %vm112_vm0, %v314_v10, 0.0 }
 0x1ec   :  { %v847_v13 = vsub.f32 %v267_v45, %v300_v9  ;;  %323 = vadd.xlane.f32.xlu0 %v322_v14  ;;  %v293_v16 = vpop.xlane.xlu0 %292  ;;  %338 = vadd.xlane.f32.xlu1 %v337_v15  ;;  %v331_v21 = vsel %vm112_vm0, %v317_v11, 0.0 }
 0x1ed   :  { %v296_v17 = vpop.xlane.xlu1 %295  ;;  %v304_v18 = vmul.f32 0.03125, %v293_v16  ;;  %v318_v20 = vmul.f32 %v845_v12, %v845_v12 }
 0x1ee   :  { %v305_v19 = vmul.f32 0.03125, %v296_v17  ;;  %v316_v25 = vmul.f32 %v847_v13, %v847_v13 }
 0x1ef   :  { %v854_v22 = vsub.f32 %v271_v50, %v304_v18  ;;  %v334_v24 = vsel %vm112_vm0, %v318_v20, 0.0 }
 0x1f0   :  { %v856_v23 = vsub.f32 %v272_v51, %v305_v19  ;;  %335 = vadd.xlane.f32.xlu0 %v334_v24  ;;  %332 = vadd.xlane.f32.xlu1 %v331_v21  ;;  %v328_v27 = vsel %vm112_vm0, %v316_v25, 0.0  ;;  %v445_v51 = vld [vmem:[#allocation10] ss:$0 sm:$0xff] }
 0x1f1   :  { %v320_v29 = vmul.f32 %v854_v22, %v854_v22 }
 0x1f2   :  { %v321_v26 = vmul.f32 %v856_v23, %v856_v23 }
 0x1f3   :  { %v340_v30 = vsel %vm112_vm0, %v320_v29, 0.0 }
 0x1f4   :  { %v343_v28 = vsel %vm112_vm0, %v321_v26, 0.0  ;;  %329 = vadd.xlane.f32.xlu0 %v328_v27 }
 0x1f5   :  { %344 = vadd.xlane.f32.xlu1 %v343_v28 }
 0x1f8   :  { %341 = vadd.xlane.f32.xlu0 %v340_v30 }
 0x275   :  { %v327_v31 = vpop.xlane.xlu1 %326 }
 0x276   :  { %v347_v32 = vmul.f32 0.03125, %v327_v31 }
 0x278   :  { %v355_v33 = vadd.f32 1e-05, %v347_v32 }
 0x279   :  { %v324_v34 = vpop.xlane.xlu0 %323  ;;  %v339_v35 = vpop.xlane.xlu1 %338 }
 0x27a   :  { %500 = vrsqrt.f32 %v355_v33  ;;  %v346_v36 = vmul.f32 0.03125, %v324_v34  ;;  %v351_v37 = vmul.f32 0.03125, %v339_v35 }
 0x27c   :  { %v354_v38 = vadd.f32 1e-05, %v346_v36  ;;  %v359_v39 = vadd.f32 1e-05, %v351_v37 }
 0x27d   :  { %v336_v40 = vpop.xlane.xlu0 %335  ;;  %v333_v41 = vpop.xlane.xlu1 %332 }
 0x27e   :  { %502 = vrsqrt.f32 %v354_v38  ;;  %v350_v42 = vmul.f32 0.03125, %v336_v40  ;;  %v349_v43 = vmul.f32 0.03125, %v333_v41 }
 0x27f   :  { %504 = vrsqrt.f32 %v359_v39 }
 0x280   :  { %v358_v44 = vadd.f32 1e-05, %v350_v42  ;;  %v357_v45 = vadd.f32 1e-05, %v349_v43 }
 0x281   :  { %v330_v46 = vpop.xlane.xlu0 %329 }
 0x282   :  { %v345_v47 = vpop.xlane.xlu1 %344  ;;  %506 = vrsqrt.f32 %v358_v44  ;;  %v348_v48 = vmul.f32 0.03125, %v330_v46 }
 0x283   :  { %v353_v49 = vmul.f32 0.03125, %v345_v47  ;;  %508 = vrsqrt.f32 %v357_v45 }
 0x284   :  { %v501_v50 = vpop.eup %500  ;;  %v356_v52 = vadd.f32 1e-05, %v348_v48 }
 0x285   :  { %v361_v53 = vadd.f32 1e-05, %v353_v49  ;;  %v371_v54 = vmul.f32 %v501_v50, %v830_v60  ;;  %v342_v55 = vpop.xlane.xlu0 %341 }
 0x286   :  { %510 = vrsqrt.f32 %v356_v52  ;;  %v352_v57 = vmul.f32 0.03125, %v342_v55 }
 0x287   :  { %v386_v58 = vmul.f32 %v445_v51, %v371_v54  ;;  %512 = vrsqrt.f32 %v361_v53 }
 0x288   :  { %v503_v61 = vpop.eup %502  ;;  %v360_v62 = vadd.f32 1e-05, %v352_v57 }
 0x289   :  { %v505_v63 = vpop.eup %504  ;;  %v401_v0 = vadd.f32 %v446_v56, %v386_v58  ;;  %v370_v1 = vmul.f32 %v503_v61, %v834_v2 }
 0x28a   :  { %v375_v4 = vmul.f32 %v505_v63, %v828_v59  ;;  %514 = vrsqrt.f32 %v360_v62 }
 0x28b   :  { %409 = vst.msk [vmem:[#allocation13 + $0x8] sm:$0xff] %vm112_vm0, %v401_v0  ;;  %v385_v5 = vmul.f32 %v445_v51, %v370_v1 }
 0x28c   :  { %v507_v6 = vpop.eup %506  ;;  %v390_v60 = vmul.f32 %v445_v51, %v375_v4 }
 0x28d   :  { %v509_v7 = vpop.eup %508  ;;  %v400_v8 = vadd.f32 %v446_v56, %v385_v5  ;;  %v374_v9 = vmul.f32 %v507_v6, %v845_v12 }
 0x28e   :  { %v405_v10 = vadd.f32 %v446_v56, %v390_v60  ;;  %v373_v11 = vmul.f32 %v509_v7, %v836_v3 }
 0x28f   :  { %408 = vst.msk [vmem:[#allocation13] sm:$0xff] %vm112_vm0, %v400_v8  ;;  %v389_v14 = vmul.f32 %v445_v51, %v374_v9 }
 0x290   :  { %v511_v15 = vpop.eup %510  ;;  %413 = vst.msk [vmem:[#allocation13 + $0x28] sm:$0xff] %vm112_vm0, %v405_v10  ;;  %v388_v59 = vmul.f32 %v445_v51, %v373_v11 }
 0x291   :  { %v513_v2 = vpop.eup %512  ;;  %v404_v16 = vadd.f32 %v446_v56, %v389_v14  ;;  %v372_v17 = vmul.f32 %v511_v15, %v847_v13 }
 0x292   :  { %v403_v18 = vadd.f32 %v446_v56, %v388_v59  ;;  %v377_v19 = vmul.f32 %v513_v2, %v856_v23 }
 0x293   :  { %412 = vst.msk [vmem:[#allocation13 + $0x20] sm:$0xff] %vm112_vm0, %v404_v16  ;;  %v387_v12 = vmul.f32 %v445_v51, %v372_v17 }
 0x294   :  { %v515_v20 = vpop.eup %514  ;;  %411 = vst.msk [vmem:[#allocation13 + $0x18] sm:$0xff] %vm112_vm0, %v403_v18  ;;  %v392_v3 = vmul.f32 %v445_v51, %v377_v19 }
 0x295   :  { %v402_v21 = vadd.f32 %v446_v56, %v387_v12  ;;  %v376_v24 = vmul.f32 %v515_v20, %v854_v22 }
 0x296   :  { %v407_v25 = vadd.f32 %v446_v56, %v392_v3 }
 0x297   :  { %410 = vst.msk [vmem:[#allocation13 + $0x10] sm:$0xff] %vm112_vm0, %v402_v21  ;;  %v391_v26 = vmul.f32 %v445_v51, %v376_v24 }
 0x298   :  { %415 = vst.msk [vmem:[#allocation13 + $0x38] sm:$0xff] %vm112_vm0, %v407_v25 }
 0x299   :  { %v406_v13 = vadd.f32 %v446_v56, %v391_v26 }
 0x29b   :  { %414 = vst.msk [vmem:[#allocation13 + $0x30] sm:$0xff] %vm112_vm0, %v406_v13 }
 0x29c   :  { %659 = shalt.err (!%p656_p10)
}
 0x29d   :  { %s660_s27 = scalar_lea.hbm %s905_s6, 1024 }
 0x29e   :  { %p661_p11 = scmp.ne.s32.totalorder %s905_s6, %s660_s27  ;;  %p664_p12 = scmp.lt.u32.totalorder %s660_s27, %s905_s6 }
 0x2a0   :  { %p666_p13 = pnand %p664_p12, %p661_p11 }
 0x2a2   :  { %669 = shalt.err (!%p666_p13)
}
 0x2a3   :  { %427 = dma.vmem_to_hbm [thread:$0]  %s422_s21, 1024, %s905_s6, [#allocation4], %s682_s9, %s682_s9, %s683_s10  }
 0x2a4   :  { %678 = dma.done.wait [#allocation4], 1024  }
 0x2a5   :  { %679 = vsyncadd [#allocation4], 4294966272 }
 0x2a6   :  { %431 = vsyncpa [#allocation3], 1 }
 0x2a7   :  { %432 = vsyncpa [#allocation6], 1 }
 0x2a8   :  { %433 = vsyncpa [#allocation9], 1 }
 0x2a9   :  { %434 = vsyncpa [#allocation12], 1 }
 0x2aa   :  { %435 = vsyncpa [#allocation4], 1 }

// kernel: deformable_transformer_encoders_forward.14
= control target key start
LH: loop header
LB: loop body
LE: loop exit
PB: predicated region body
PF: predicated region fallthrough
CT: control target
= control target key end

     0   :  { %11 = vsyncpa [#allocation3], 0  ;;  %s928_s0 = inlined_call_operand.hbm [shape: f32[64,64], index: 0, kind: input, shape index: {}]   ;;  %s929_s1 = inlined_call_operand.hbm [shape: f32[64,32], index: 1, kind: input, shape index: {}]   ;;  %s930_s2 = inlined_call_operand.hbm [shape: f32[1,32], index: 2, kind: input, shape index: {}]   ;;  %s931_s3 = inlined_call_operand.hbm [shape: f32[64,32], index: 3, kind: input, shape index: {}]   ;;  %s932_s4 = inlined_call_operand.hbm [shape: f32[1,32], index: 4, kind: input, shape index: {}]   ;;  %s933_s5 = inlined_call_operand.hbm [shape: f32[1,32], index: 5, kind: input, shape index: {}]   ;;  %s934_s6 = inlined_call_operand.hbm [shape: f32[64,32], index: 6, kind: output, shape index: {}]  }
   0x1   :  { %12 = vsyncpa [#allocation6], 0 }
   0x2   :  { %13 = vsyncpa [#allocation9], 0 }
   0x3   :  { %14 = vsyncpa [#allocation12], 0 }
   0x4   :  { %15 = vsyncpa [#allocation4], 0  ;;  %s709_s21 = smov [#allocation5]   ;;  %s710_s23 = smov [#allocation8]  }
   0x5   :  { %s33_s22 = sshll.u32 %s709_s21, 4  ;;  %s55_s24 = sshll.u32 %s710_s23, 4  ;;  %s34_s22 = int_to_ptr.vmem [resolvable:$true] %s33_s22  ;;  %s753_s24 = int_to_ptr.vmem [resolvable:$true] %s55_s24 }
   0x6   :  { %s545_s27 = scalar_lea.hbm %s929_s1, 1024 }
   0x7   :  { %p546_p0 = scmp.ne.s32.totalorder %s929_s1, %s545_s27  ;;  %p549_p1 = scmp.lt.u32.totalorder %s545_s27, %s929_s1 }
   0x9   :  { %p551_p2 = pnand %p549_p1, %p546_p0 }
   0xb   :  { %554 = shalt.err (!%p551_p2)
}
   0xc   :  { %s555_s8 = scalar_lea.vmem %s34_s22, 1024  ;;  %p560_p4 = scmp.lt.s32.totalorder %s34_s22, %s34_s22 }
   0xd   :  { %p556_p3 = scmp.ne.s32.totalorder %s34_s22, %s555_s8  ;;  %p561_p5 = scmp.lt.s32.totalorder %s555_s8, %s555_s8 }
   0xf   :  { %p562_p6 = por %p561_p5, %p560_p4 }
  0x11   :  { %p563_p7 = pnand %p562_p6, %p556_p3 }
  0x13   :  { %566 = shalt.err (!%p563_p7)
}
  0x14   :  { %s711_s9 = smov 128   ;;  %s712_s10 = smov 8  }
  0x15   :  { %39 = dma.hbm_to_vmem [thread:$0]  %s929_s1, 1024, %s34_s22, [#allocation6], %s711_s9, %s711_s9, %s712_s10  }
  0x16   :  { %s567_s15 = scalar_lea.hbm %s931_s3, 1024 }
  0x17   :  { %p568_p8 = scmp.ne.s32.totalorder %s931_s3, %s567_s15  ;;  %p571_p9 = scmp.lt.u32.totalorder %s567_s15, %s931_s3 }
  0x19   :  { %p573_p10 = pnand %p571_p9, %p568_p8 }
  0x1b   :  { %576 = shalt.err (!%p573_p10)
}
  0x1c   :  { %s577_s20 = scalar_lea.vmem %s753_s24, 1024  ;;  %p582_p12 = scmp.lt.s32.totalorder %s753_s24, %s753_s24 }
  0x1d   :  { %p578_p11 = scmp.ne.s32.totalorder %s753_s24, %s577_s20  ;;  %p583_p13 = scmp.lt.s32.totalorder %s577_s20, %s577_s20 }
  0x1f   :  { %p584_p0 = por %p583_p13, %p582_p12 }
  0x21   :  { %p585_p1 = pnand %p584_p0, %p578_p11 }
  0x23   :  { %588 = shalt.err (!%p585_p1)
}
  0x24   :  { %61 = dma.hbm_to_vmem [thread:$0]  %s931_s3, 1024, %s753_s24, [#allocation9], %s711_s9, %s711_s9, %s712_s10  }
  0x25   :  { %s713_s22 = smov [#allocation2]   ;;  %s714_s25 = smov [#allocation7]  }
  0x26   :  { %s21_s23 = sshll.u32 %s713_s22, 4  ;;  %s46_s26 = sshll.u32 %s714_s25, 4  ;;  %s22_s23 = int_to_ptr.vmem [resolvable:$true] %s21_s23  ;;  %s47_s26 = int_to_ptr.vmem [resolvable:$true] %s46_s26 }
  0x27   :  { %s589_s29 = scalar_lea.hbm %s928_s0, 1024 }
  0x28   :  { %p590_p2 = scmp.ne.s32.totalorder %s928_s0, %s589_s29  ;;  %p593_p3 = scmp.lt.u32.totalorder %s589_s29, %s928_s0 }
  0x2a   :  { %p595_p4 = pnand %p593_p3, %p590_p2 }
  0x2c   :  { %598 = shalt.err (!%p595_p4)
}
  0x2d   :  { %s599_s3 = scalar_lea.vmem %s22_s23, 1024  ;;  %p604_p6 = scmp.lt.s32.totalorder %s22_s23, %s22_s23 }
  0x2e   :  { %p600_p5 = scmp.ne.s32.totalorder %s22_s23, %s599_s3  ;;  %p605_p7 = scmp.lt.s32.totalorder %s599_s3, %s599_s3 }
  0x30   :  { %p606_p8 = por %p605_p7, %p604_p6 }
  0x32   :  { %p607_p9 = pnand %p606_p8, %p600_p5 }
  0x34   :  { %610 = shalt.err (!%p607_p9)
}
  0x35   :  { %27 = dma.hbm_to_vmem [thread:$0]  %s928_s0, 1024, %s22_s23, [#allocation3], %s711_s9, %s711_s9, %s712_s10  }
  0x36   :  { %s611_s15 = scalar_lea.hbm %s930_s2, 16 }
  0x37   :  { %p612_p10 = scmp.ne.s32.totalorder %s930_s2, %s611_s15  ;;  %p615_p11 = scmp.lt.u32.totalorder %s611_s15, %s930_s2 }
  0x39   :  { %p617_p12 = pnand %p615_p11, %p612_p10 }
  0x3b   :  { %620 = shalt.err (!%p617_p12)
}
  0x3c   :  { %s621_s20 = scalar_lea.vmem %s47_s26, 16  ;;  %s625_s1 = scalar_lea.vmem %s47_s26, 32 }
  0x3d   :  { %p622_p13 = scmp.ne.s32.totalorder %s47_s26, %s621_s20  ;;  %p626_p0 = scmp.lt.s32.totalorder %s47_s26, %s47_s26 }
  0x3e   :  { %p627_p1 = scmp.lt.s32.totalorder %s625_s1, %s621_s20 }
  0x40   :  { %p628_p2 = por %p627_p1, %p626_p0 }
  0x42   :  { %p629_p3 = pnand %p628_p2, %p622_p13 }
  0x44   :  { %632 = shalt.err (!%p629_p3)
}
  0x45   :  { %49 = dma.hbm_to_vmem [thread:$0]  %s930_s2, 16, %s47_s26, [#allocation6]  }
  0x46   :  { %s715_s22 = smov [#allocation10]   ;;  %s716_s25 = smov [#allocation11]  }
  0x47   :  { %s68_s23 = sshll.u32 %s715_s22, 4  ;;  %s78_s27 = sshll.u32 %s716_s25, 4  ;;  %s69_s23 = int_to_ptr.vmem [resolvable:$true] %s68_s23  ;;  %s79_s27 = int_to_ptr.vmem [resolvable:$true] %s78_s27 }
  0x48   :  { %s633_s30 = scalar_lea.hbm %s932_s4, 16 }
  0x49   :  { %p634_p4 = scmp.ne.s32.totalorder %s932_s4, %s633_s30  ;;  %p637_p5 = scmp.lt.u32.totalorder %s633_s30, %s932_s4 }
  0x4b   :  { %p639_p6 = pnand %p637_p5, %p634_p4 }
  0x4d   :  { %642 = shalt.err (!%p639_p6)
}
  0x4e   :  { %s643_s2 = scalar_lea.vmem %s69_s23, 16  ;;  %s647_s26 = scalar_lea.vmem %s69_s23, 32 }
  0x4f   :  { %p644_p7 = scmp.ne.s32.totalorder %s69_s23, %s643_s2  ;;  %p648_p8 = scmp.lt.s32.totalorder %s69_s23, %s69_s23 }
  0x50   :  { %p649_p9 = scmp.lt.s32.totalorder %s647_s26, %s643_s2 }
  0x52   :  { %p650_p10 = por %p649_p9, %p648_p8 }
  0x54   :  { %p651_p11 = pnand %p650_p10, %p644_p7 }
  0x56   :  { %654 = shalt.err (!%p651_p11)
}
  0x57   :  { %71 = dma.hbm_to_vmem [thread:$0]  %s932_s4, 16, %s69_s23, [#allocation9]  }
  0x58   :  { %s655_s15 = scalar_lea.hbm %s933_s5, 16 }
  0x59   :  { %p656_p12 = scmp.ne.s32.totalorder %s933_s5, %s655_s15  ;;  %p659_p13 = scmp.lt.u32.totalorder %s655_s15, %s933_s5 }
  0x5b   :  { %p661_p0 = pnand %p659_p13, %p656_p12 }
  0x5d   :  { %664 = shalt.err (!%p661_p0)
}
  0x5e   :  { %s665_s20 = scalar_lea.vmem %s79_s27, 16  ;;  %s669_s1 = scalar_lea.vmem %s79_s27, 32 }
  0x5f   :  { %p666_p1 = scmp.ne.s32.totalorder %s79_s27, %s665_s20  ;;  %p670_p2 = scmp.lt.s32.totalorder %s79_s27, %s79_s27 }
  0x60   :  { %p671_p3 = scmp.lt.s32.totalorder %s669_s1, %s665_s20 }
  0x62   :  { %p672_p4 = por %p671_p3, %p670_p2 }
  0x64   :  { %p673_p5 = pnand %p672_p4, %p666_p1 }
  0x66   :  { %676 = shalt.err (!%p673_p5)
}
  0x67   :  { %81 = dma.hbm_to_vmem [thread:$0]  %s933_s5, 16, %s79_s27, [#allocation12]  }
  0x68   :  { %699 = dma.done.wait [#allocation3], 1024  }
  0x69   :  { %700 = vsyncadd [#allocation3], 4294966272 }
  0x6a   :  { %701 = dma.done.wait [#allocation6], 1040  }
  0x6b   :  { %702 = vsyncadd [#allocation6], 4294966256 }
  0x6c   :  { %703 = dma.done.wait [#allocation9], 1040  }
  0x6d   :  { %704 = vsyncadd [#allocation9], 4294966256 }
  0x6e   :  { %705 = dma.done.wait [#allocation12], 16  }
  0x6f   :  { %706 = vsyncadd [#allocation12], 4294967280  ;;  %v108_v0 = vld [vmem:[#allocation5] sm:$0xff]  ;;  %v109_v1 = vld [vmem:[#allocation5 + $0x8] sm:$0xff]  ;;  %vm116_vm0 = vcmask 523264   ;;  %vm277_vm1 = vcmask 261120  }
  0x70   :  { %v110_v2 = vld [vmem:[#allocation5 + $0x10] sm:$0xff]  ;;  %v496_v3 = vpack.c.bf16 %v109_v1, %v108_v0  ;;  %v111_v4 = vld [vmem:[#allocation5 + $0x18] sm:$0xff]  ;;  %v112_v6 = vld [vmem:[#allocation5 + $0x20] sm:$0xff]  ;;  %s717_s5 = smov [#allocation13]  }
  0x71   :  { %v500_v5 = vpack.c.bf16 %v111_v4, %v110_v2  ;;  %v113_v7 = vld [vmem:[#allocation5 + $0x28] sm:$0xff]  ;;  %v100_v8 = vld [vmem:[#allocation2] sm:$0xff]  ;;  %v114_v11 = vld [vmem:[#allocation5 + $0x30] sm:$0xff]  ;;  %s426_s21 = sshll.u32 %s717_s5, 4  ;;  %s427_s21 = int_to_ptr.vmem [resolvable:$true] %s426_s21 }
  0x72   :  { %497 = vmatprep.subr.bf16.mxu0 %v496_v3  ;;  %512 = vmatprep.subr.bf16.mxu1 %v496_v3  ;;  %v104_v9 = vld [vmem:[#allocation2 + $0x20] sm:$0xff]  ;;  %v504_v10 = vpack.c.bf16 %v113_v7, %v112_v6  ;;  %v115_v12 = vld [vmem:[#allocation5 + $0x38] sm:$0xff]  ;;  %v101_v14 = vld [vmem:[#allocation2 + $0x8] sm:$0xff]  ;;  %s677_s22 = scalar_lea.vmem %s427_s21, 1024  ;;  %p682_p7 = scmp.lt.s32.totalorder %s427_s21, %s427_s21 }
  0x73   :  { %499 = vmatpush3.bf16.msra.mxu0 %v496_v3  ;;  %516 = vmatpush3.bf16.msra.mxu1 %v496_v3  ;;  %v508_v13 = vpack.c.bf16 %v115_v12, %v114_v11  ;;  %v105_v15 = vld [vmem:[#allocation2 + $0x28] sm:$0xff]  ;;  %v102_v16 = vld [vmem:[#allocation2 + $0x10] sm:$0xff]  ;;  %v103_v18 = vld [vmem:[#allocation2 + $0x18] sm:$0xff]  ;;  %p678_p6 = scmp.ne.s32.totalorder %s427_s21, %s677_s22  ;;  %p683_p8 = scmp.lt.s32.totalorder %s677_s22, %s677_s22 }
  0x74   :  { %501 = vmatprep.subr.bf16.mxu0 %v500_v5  ;;  %513 = vmatprep.subr.bf16.mxu1 %v500_v5  ;;  %v106_v17 = vld [vmem:[#allocation2 + $0x30] sm:$0xff]  ;;  %v107_v19 = vld [vmem:[#allocation2 + $0x38] sm:$0xff]  ;;  %v246_v22 = vld [vmem:[#allocation8] sm:$0xff] }
  0x75   :  { %484 = vmatprep.mubr.msk.f32.mxu0 %vm116_vm0, %v100_v8  ;;  %490 = vmatprep.mubr.msk.f32.mxu1 %vm116_vm0, %v104_v9  ;;  %v247_v20 = vld [vmem:[#allocation8 + $0x8] sm:$0xff]  ;;  %v449_v25 = vld [vmem:[#allocation7] ss:$0 sm:$0xff]  ;;  %v250_v30 = vld [vmem:[#allocation8 + $0x20] sm:$0xff]  ;;  %p684_p9 = por %p683_p8, %p682_p7 }
  0x76   :  { %v251_v21 = vld [vmem:[#allocation8 + $0x28] sm:$0xff]  ;;  %v249_v32 = vld [vmem:[#allocation8 + $0x18] sm:$0xff]  ;;  %v248_v35 = vld [vmem:[#allocation8 + $0x10] sm:$0xff] }
  0x77   :  { %503 = vmatpush3.bf16.msra.mxu0 %v500_v5  ;;  %517 = vmatpush3.bf16.msra.mxu1 %v500_v5  ;;  %v253_v39 = vld [vmem:[#allocation8 + $0x38] sm:$0xff]  ;;  %v252_v40 = vld [vmem:[#allocation8 + $0x30] sm:$0xff]  ;;  %p685_p10 = pnand %p684_p9, %p678_p6 }
  0x78   :  { %505 = vmatprep.subr.bf16.mxu0 %v504_v10  ;;  %514 = vmatprep.subr.bf16.mxu1 %v504_v10 }
  0x7b   :  { %507 = vmatpush3.bf16.msra.mxu0 %v504_v10  ;;  %518 = vmatpush3.bf16.msra.mxu1 %v504_v10 }
  0x7c   :  { %509 = vmatprep.subr.bf16.mxu0 %v508_v13  ;;  %515 = vmatprep.subr.bf16.mxu1 %v508_v13 }
  0x7f   :  { %511 = vmatpush3.bf16.msra.mxu0 %v508_v13  ;;  %519 = vmatpush3.bf16.msra.mxu1 %v508_v13 }
  0x82   :  { %485 = vmatmul.mubr.msk.f32.vlgmr.msra.gmra.mrb[0].mxu0 %vm116_vm0, %v101_v14  ;;  %491 = vmatmul.mubr.msk.f32.vlgmr.msra.gmra.mrb[0].mxu1 %vm116_vm0, %v105_v15 }
  0x83   :  { %487 = vmatprep.mubr.msk.f32.mxu0 %vm116_vm0, %v102_v16  ;;  %493 = vmatprep.mubr.msk.f32.mxu1 %vm116_vm0, %v106_v17 }
  0x86   :  { %488 = vmatmul.mubr.msk.f32.gmra.mrb[2].mxu0 %vm116_vm0, %v103_v18  ;;  %494 = vmatmul.mubr.msk.f32.gmra.mrb[2].mxu1 %vm116_vm0, %v107_v19 }
 0x155   :  { %v486_v23 = vpop.f32.mrb[0].mxu0  ;;  %v492_v24 = vpop.f32.mrb[0].mxu1 }
 0x156   :  { %v255_v26 = vadd.f32 %v486_v23, %v247_v20  ;;  %v259_v27 = vadd.f32 %v492_v24, %v251_v21  ;;  %v207_v28 = vpop.f32.mrb[1].mxu0  ;;  %v227_v29 = vpop.f32.mrb[1].mxu1 }
 0x157   :  { %v254_v31 = vadd.f32 %v246_v22, %v207_v28  ;;  %v258_v37 = vadd.f32 %v250_v30, %v227_v29 }
 0x158   :  { %v274_v33 = vadd.f32 %v449_v25, %v259_v27  ;;  %v270_v34 = vadd.f32 %v449_v25, %v255_v26 }
 0x159   :  { %v489_v36 = vpop.f32.mrb[2].mxu0  ;;  %v495_v38 = vpop.f32.mrb[2].mxu1  ;;  %v269_v45 = vadd.f32 %v449_v25, %v254_v31  ;;  %v273_v54 = vadd.f32 %v449_v25, %v258_v37 }
 0x15a   :  { %v257_v41 = vadd.f32 %v489_v36, %v249_v32  ;;  %v293_v42 = vsel %vm277_vm1, %v274_v33, 0.0  ;;  %v281_v43 = vsel %vm277_vm1, %v270_v34, 0.0  ;;  %v217_v44 = vpop.f32.mrb[3].mxu0  ;;  %v237_v46 = vpop.f32.mrb[3].mxu1  ;;  %v261_v49 = vadd.f32 %v495_v38, %v253_v39 }
 0x15b   :  { %294 = vadd.xlane.f32.xlu1 %v293_v42  ;;  %282 = vadd.xlane.f32.xlu0 %v281_v43  ;;  %v256_v47 = vadd.f32 %v248_v35, %v217_v44  ;;  %v260_v50 = vadd.f32 %v252_v40, %v237_v46  ;;  %v278_v52 = vsel %vm277_vm1, %v269_v45, 0.0  ;;  %v290_v58 = vsel %vm277_vm1, %v273_v54, 0.0 }
 0x15c   :  { %v272_v48 = vadd.f32 %v449_v25, %v257_v41  ;;  %v276_v57 = vadd.f32 %v449_v25, %v261_v49 }
 0x15d   :  { %v271_v51 = vadd.f32 %v449_v25, %v256_v47  ;;  %v275_v56 = vadd.f32 %v449_v25, %v260_v50 }
 0x15e   :  { %v287_v53 = vsel %vm277_vm1, %v272_v48, 0.0  ;;  %v299_v60 = vsel %vm277_vm1, %v276_v57, 0.0 }
 0x15f   :  { %279 = vadd.xlane.f32.xlu0 %v278_v52  ;;  %288 = vadd.xlane.f32.xlu1 %v287_v53  ;;  %v284_v55 = vsel %vm277_vm1, %v271_v51, 0.0  ;;  %v296_v59 = vsel %vm277_vm1, %v275_v56, 0.0 }
 0x163   :  { %291 = vadd.xlane.f32.xlu0 %v290_v58  ;;  %285 = vadd.xlane.f32.xlu1 %v284_v55 }
 0x167   :  { %297 = vadd.xlane.f32.xlu0 %v296_v59  ;;  %300 = vadd.xlane.f32.xlu1 %v299_v60 }
 0x1e8   :  { %v295_v61 = vpop.xlane.xlu1 %294  ;;  %v283_v62 = vpop.xlane.xlu0 %282 }
 0x1e9   :  { %v308_v63 = vmul.f32 0.03125, %v295_v61  ;;  %v304_v0 = vmul.f32 0.03125, %v283_v62  ;;  %v451_v62 = vld [vmem:[#allocation11] ss:$0 sm:$0xff] }
 0x1eb   :  { %v857_v1 = vsub.f32 %v274_v33, %v308_v63  ;;  %v859_v2 = vsub.f32 %v270_v34, %v304_v0 }
 0x1ec   :  { %v280_v3 = vpop.xlane.xlu0 %279  ;;  %v289_v4 = vpop.xlane.xlu1 %288 }
 0x1ed   :  { %v303_v5 = vmul.f32 0.03125, %v280_v3  ;;  %v306_v6 = vmul.f32 0.03125, %v289_v4  ;;  %v320_v7 = vmul.f32 %v859_v2, %v859_v2  ;;  %v324_v11 = vmul.f32 %v857_v1, %v857_v1 }
 0x1ef   :  { %v863_v8 = vsub.f32 %v269_v45, %v303_v5  ;;  %v865_v9 = vsub.f32 %v272_v48, %v306_v6  ;;  %v330_v10 = vsel %vm277_vm1, %v320_v7, 0.0  ;;  %v342_v21 = vsel %vm277_vm1, %v324_v11, 0.0 }
 0x1f0   :  { %v292_v12 = vpop.xlane.xlu0 %291  ;;  %331 = vadd.xlane.f32.xlu1 %v330_v10  ;;  %v286_v13 = vpop.xlane.xlu1 %285 }
 0x1f1   :  { %v307_v14 = vmul.f32 0.03125, %v292_v12  ;;  %v305_v15 = vmul.f32 0.03125, %v286_v13  ;;  %v319_v16 = vmul.f32 %v863_v8, %v863_v8  ;;  %v322_v17 = vmul.f32 %v865_v9, %v865_v9 }
 0x1f3   :  { %v874_v18 = vsub.f32 %v273_v54, %v307_v14  ;;  %v876_v19 = vsub.f32 %v271_v51, %v305_v15  ;;  %v327_v20 = vsel %vm277_vm1, %v319_v16, 0.0  ;;  %v336_v27 = vsel %vm277_vm1, %v322_v17, 0.0 }
 0x1f4   :  { %328 = vadd.xlane.f32.xlu0 %v327_v20  ;;  %v298_v22 = vpop.xlane.xlu0 %297  ;;  %343 = vadd.xlane.f32.xlu1 %v342_v21  ;;  %v301_v23 = vpop.xlane.xlu1 %300 }
 0x1f5   :  { %v309_v24 = vmul.f32 0.03125, %v298_v22  ;;  %v310_v25 = vmul.f32 0.03125, %v301_v23  ;;  %v323_v26 = vmul.f32 %v874_v18, %v874_v18  ;;  %v321_v31 = vmul.f32 %v876_v19, %v876_v19 }
 0x1f7   :  { %v883_v28 = vsub.f32 %v275_v56, %v309_v24  ;;  %v885_v29 = vsub.f32 %v276_v57, %v310_v25  ;;  %v339_v30 = vsel %vm277_vm1, %v323_v26, 0.0  ;;  %v333_v33 = vsel %vm277_vm1, %v321_v31, 0.0  ;;  %v450_v57 = vld [vmem:[#allocation10] ss:$0 sm:$0xff] }
 0x1f8   :  { %340 = vadd.xlane.f32.xlu0 %v339_v30  ;;  %337 = vadd.xlane.f32.xlu1 %v336_v27 }
 0x1f9   :  { %v326_v32 = vmul.f32 %v885_v29, %v885_v29  ;;  %v325_v35 = vmul.f32 %v883_v28, %v883_v28 }
 0x1fb   :  { %v348_v34 = vsel %vm277_vm1, %v326_v32, 0.0  ;;  %v345_v36 = vsel %vm277_vm1, %v325_v35, 0.0 }
 0x1fc   :  { %334 = vadd.xlane.f32.xlu0 %v333_v33  ;;  %349 = vadd.xlane.f32.xlu1 %v348_v34 }
 0x200   :  { %346 = vadd.xlane.f32.xlu0 %v345_v36 }
 0x27d   :  { %v332_v37 = vpop.xlane.xlu1 %331 }
 0x27e   :  { %v352_v38 = vmul.f32 0.03125, %v332_v37 }
 0x280   :  { %v360_v39 = vadd.f32 1e-05, %v352_v38 }
 0x281   :  { %v329_v40 = vpop.xlane.xlu0 %328  ;;  %v344_v41 = vpop.xlane.xlu1 %343 }
 0x282   :  { %529 = vrsqrt.f32 %v360_v39  ;;  %v351_v42 = vmul.f32 0.03125, %v329_v40  ;;  %v356_v43 = vmul.f32 0.03125, %v344_v41 }
 0x284   :  { %v359_v44 = vadd.f32 1e-05, %v351_v42  ;;  %v364_v45 = vadd.f32 1e-05, %v356_v43 }
 0x285   :  { %v341_v46 = vpop.xlane.xlu0 %340  ;;  %v338_v47 = vpop.xlane.xlu1 %337 }
 0x286   :  { %531 = vrsqrt.f32 %v359_v44  ;;  %v355_v48 = vmul.f32 0.03125, %v341_v46  ;;  %v354_v49 = vmul.f32 0.03125, %v338_v47 }
 0x287   :  { %533 = vrsqrt.f32 %v364_v45 }
 0x288   :  { %v363_v50 = vadd.f32 1e-05, %v355_v48  ;;  %v362_v51 = vadd.f32 1e-05, %v354_v49 }
 0x289   :  { %v335_v52 = vpop.xlane.xlu0 %334  ;;  %v350_v53 = vpop.xlane.xlu1 %349 }
 0x28a   :  { %535 = vrsqrt.f32 %v363_v50  ;;  %v353_v54 = vmul.f32 0.03125, %v335_v52  ;;  %v358_v55 = vmul.f32 0.03125, %v350_v53 }
 0x28b   :  { %537 = vrsqrt.f32 %v362_v51 }
 0x28c   :  { %v530_v56 = vpop.eup %529  ;;  %v361_v58 = vadd.f32 1e-05, %v353_v54  ;;  %v366_v59 = vadd.f32 1e-05, %v358_v55 }
 0x28d   :  { %v376_v60 = vmul.f32 %v530_v56, %v859_v2  ;;  %v347_v61 = vpop.xlane.xlu0 %346 }
 0x28e   :  { %539 = vrsqrt.f32 %v361_v58  ;;  %v357_v63 = vmul.f32 0.03125, %v347_v61 }
 0x28f   :  { %v391_v0 = vmul.f32 %v450_v57, %v376_v60  ;;  %541 = vrsqrt.f32 %v366_v59 }
 0x290   :  { %v532_v3 = vpop.eup %531  ;;  %v365_v4 = vadd.f32 1e-05, %v357_v63 }
 0x291   :  { %v534_v5 = vpop.eup %533  ;;  %v406_v6 = vadd.f32 %v451_v62, %v391_v0  ;;  %v375_v7 = vmul.f32 %v532_v3, %v863_v8 }
 0x292   :  { %v380_v10 = vmul.f32 %v534_v5, %v857_v1  ;;  %543 = vrsqrt.f32 %v365_v4 }
 0x293   :  { %414 = vst.msk [vmem:[#allocation13 + $0x8] sm:$0xff] %vm277_vm1, %v406_v6  ;;  %v390_v11 = vmul.f32 %v450_v57, %v375_v7 }
 0x294   :  { %v536_v12 = vpop.eup %535  ;;  %v395_v2 = vmul.f32 %v450_v57, %v380_v10 }
 0x295   :  { %v538_v13 = vpop.eup %537  ;;  %v405_v14 = vadd.f32 %v451_v62, %v390_v11  ;;  %v379_v15 = vmul.f32 %v536_v12, %v874_v18 }
 0x296   :  { %v410_v16 = vadd.f32 %v451_v62, %v395_v2  ;;  %v378_v17 = vmul.f32 %v538_v13, %v865_v9 }
 0x297   :  { %413 = vst.msk [vmem:[#allocation13] sm:$0xff] %vm277_vm1, %v405_v14  ;;  %v394_v20 = vmul.f32 %v450_v57, %v379_v15 }
 0x298   :  { %v540_v21 = vpop.eup %539  ;;  %418 = vst.msk [vmem:[#allocation13 + $0x28] sm:$0xff] %vm277_vm1, %v410_v16  ;;  %v393_v1 = vmul.f32 %v450_v57, %v378_v17 }
 0x299   :  { %v542_v8 = vpop.eup %541  ;;  %v409_v22 = vadd.f32 %v451_v62, %v394_v20  ;;  %v377_v23 = vmul.f32 %v540_v21, %v876_v19 }
 0x29a   :  { %v408_v24 = vadd.f32 %v451_v62, %v393_v1  ;;  %v382_v25 = vmul.f32 %v542_v8, %v885_v29 }
 0x29b   :  { %417 = vst.msk [vmem:[#allocation13 + $0x20] sm:$0xff] %vm277_vm1, %v409_v22  ;;  %v392_v18 = vmul.f32 %v450_v57, %v377_v23 }
 0x29c   :  { %v544_v26 = vpop.eup %543  ;;  %416 = vst.msk [vmem:[#allocation13 + $0x18] sm:$0xff] %vm277_vm1, %v408_v24  ;;  %v397_v9 = vmul.f32 %v450_v57, %v382_v25 }
 0x29d   :  { %v407_v27 = vadd.f32 %v451_v62, %v392_v18  ;;  %v381_v30 = vmul.f32 %v544_v26, %v883_v28 }
 0x29e   :  { %v412_v31 = vadd.f32 %v451_v62, %v397_v9 }
 0x29f   :  { %415 = vst.msk [vmem:[#allocation13 + $0x10] sm:$0xff] %vm277_vm1, %v407_v27  ;;  %v396_v32 = vmul.f32 %v450_v57, %v381_v30 }
 0x2a0   :  { %420 = vst.msk [vmem:[#allocation13 + $0x38] sm:$0xff] %vm277_vm1, %v412_v31 }
 0x2a1   :  { %v411_v19 = vadd.f32 %v451_v62, %v396_v32 }
 0x2a3   :  { %419 = vst.msk [vmem:[#allocation13 + $0x30] sm:$0xff] %vm277_vm1, %v411_v19 }
 0x2a4   :  { %688 = shalt.err (!%p685_p10)
}
 0x2a5   :  { %s689_s27 = scalar_lea.hbm %s934_s6, 1024 }
 0x2a6   :  { %p690_p11 = scmp.ne.s32.totalorder %s934_s6, %s689_s27  ;;  %p693_p12 = scmp.lt.u32.totalorder %s689_s27, %s934_s6 }
 0x2a8   :  { %p695_p13 = pnand %p693_p12, %p690_p11 }
 0x2aa   :  { %698 = shalt.err (!%p695_p13)
}
 0x2ab   :  { %432 = dma.vmem_to_hbm [thread:$0]  %s427_s21, 1024, %s934_s6, [#allocation4], %s711_s9, %s711_s9, %s712_s10  }
 0x2ac   :  { %707 = dma.done.wait [#allocation4], 1024  }
 0x2ad   :  { %708 = vsyncadd [#allocation4], 4294966272 }
 0x2ae   :  { %436 = vsyncpa [#allocation3], 1 }
 0x2af   :  { %437 = vsyncpa [#allocation6], 1 }
 0x2b0   :  { %438 = vsyncpa [#allocation9], 1 }
 0x2b1   :  { %439 = vsyncpa [#allocation12], 1 }
 0x2b2   :  { %440 = vsyncpa [#allocation4], 1 }

// kernel: deformable_transformer_encoders_forward.13
= control target key start
LH: loop header
LB: loop body
LE: loop exit
PB: predicated region body
PF: predicated region fallthrough
CT: control target
= control target key end

     0   :  { %8 = vsyncpa [#allocation3], 0  ;;  %s497_s0 = inlined_call_operand.hbm [shape: f32[64,32], index: 0, kind: input, shape index: {}]   ;;  %s498_s1 = inlined_call_operand.hbm [shape: f32[32,64], index: 1, kind: input, shape index: {}]   ;;  %s499_s2 = inlined_call_operand.hbm [shape: f32[1,64], index: 2, kind: input, shape index: {}]   ;;  %s500_s3 = inlined_call_operand.hbm [shape: f32[64,64], index: 3, kind: output, shape index: {}]  }
   0x1   :  { %9 = vsyncpa [#allocation6], 0 }
   0x2   :  { %10 = vsyncpa [#allocation4], 0  ;;  %s391_s12 = smov [#allocation5]   ;;  %s392_s14 = smov [#allocation2]  }
   0x3   :  { %s28_s13 = sshll.u32 %s391_s12, 4  ;;  %s16_s15 = sshll.u32 %s392_s14, 4  ;;  %s29_s13 = int_to_ptr.vmem [resolvable:$true] %s28_s13  ;;  %s417_s15 = int_to_ptr.vmem [resolvable:$true] %s16_s15 }
   0x4   :  { %s297_s18 = scalar_lea.hbm %s498_s1, 512 }
   0x5   :  { %p298_p0 = scmp.ne.s32.totalorder %s498_s1, %s297_s18  ;;  %p301_p1 = scmp.lt.u32.totalorder %s297_s18, %s498_s1 }
   0x7   :  { %p303_p2 = pnand %p301_p1, %p298_p0 }
   0x9   :  { %306 = shalt.err (!%p303_p2)
}
   0xa   :  { %s307_s23 = scalar_lea.vmem %s29_s13, 512  ;;  %p312_p4 = scmp.lt.s32.totalorder %s29_s13, %s29_s13 }
   0xb   :  { %p308_p3 = scmp.ne.s32.totalorder %s29_s13, %s307_s23  ;;  %p313_p5 = scmp.lt.s32.totalorder %s307_s23, %s307_s23 }
   0xd   :  { %p314_p6 = por %p313_p5, %p312_p4 }
   0xf   :  { %p315_p7 = pnand %p314_p6, %p308_p3 }
  0x11   :  { %318 = shalt.err (!%p315_p7)
}
  0x12   :  { %s393_s24 = smov 128   ;;  %s394_s25 = smov 8  }
  0x13   :  { %34 = dma.hbm_to_vmem [thread:$0]  %s498_s1, 512, %s29_s13, [#allocation6], %s393_s24, %s393_s24, %s394_s25  }
  0x14   :  { %s319_s30 = scalar_lea.hbm %s497_s0, 1024 }
  0x15   :  { %p320_p8 = scmp.ne.s32.totalorder %s497_s0, %s319_s30  ;;  %p323_p9 = scmp.lt.u32.totalorder %s319_s30, %s497_s0 }
  0x17   :  { %p325_p10 = pnand %p323_p9, %p320_p8 }
  0x19   :  { %328 = shalt.err (!%p325_p10)
}
  0x1a   :  { %s329_s8 = scalar_lea.vmem %s417_s15, 1024  ;;  %p334_p12 = scmp.lt.s32.totalorder %s417_s15, %s417_s15 }
  0x1b   :  { %p330_p11 = scmp.ne.s32.totalorder %s417_s15, %s329_s8  ;;  %p335_p13 = scmp.lt.s32.totalorder %s329_s8, %s329_s8 }
  0x1d   :  { %p336_p0 = por %p335_p13, %p334_p12 }
  0x1f   :  { %p337_p1 = pnand %p336_p0, %p330_p11 }
  0x21   :  { %340 = shalt.err (!%p337_p1)
}
  0x22   :  { %22 = dma.hbm_to_vmem [thread:$0]  %s497_s0, 1024, %s417_s15, [#allocation3], %s393_s24, %s393_s24, %s394_s25  }
  0x23   :  { %s395_s10 = smov [#allocation7]   ;;  %s341_s14 = scalar_lea.hbm %s499_s2, 16 }
  0x24   :  { %s41_s11 = sshll.u32 %s395_s10, 4  ;;  %p342_p2 = scmp.ne.s32.totalorder %s499_s2, %s341_s14  ;;  %s42_s11 = int_to_ptr.vmem [resolvable:$true] %s41_s11 }
  0x25   :  { %p345_p3 = scmp.lt.u32.totalorder %s341_s14, %s499_s2 }
  0x27   :  { %p347_p4 = pnand %p345_p3, %p342_p2 }
  0x29   :  { %350 = shalt.err (!%p347_p4)
}
  0x2a   :  { %s351_s20 = scalar_lea.vmem %s42_s11, 16  ;;  %s355_s0 = scalar_lea.vmem %s42_s11, 32 }
  0x2b   :  { %p352_p5 = scmp.ne.s32.totalorder %s42_s11, %s351_s20  ;;  %p356_p6 = scmp.lt.s32.totalorder %s42_s11, %s42_s11 }
  0x2c   :  { %p357_p7 = scmp.lt.s32.totalorder %s355_s0, %s351_s20 }
  0x2e   :  { %p358_p8 = por %p357_p7, %p356_p6 }
  0x30   :  { %p359_p9 = pnand %p358_p8, %p352_p5 }
  0x32   :  { %362 = shalt.err (!%p359_p9)
}
  0x33   :  { %44 = dma.hbm_to_vmem [thread:$0]  %s499_s2, 16, %s42_s11, [#allocation6]  }
  0x34   :  { %385 = dma.done.wait [#allocation3], 1024  }
  0x35   :  { %386 = vsyncadd [#allocation3], 4294966272 }
  0x36   :  { %387 = dma.done.wait [#allocation6], 528  }
  0x37   :  { %388 = vsyncadd [#allocation6], 4294966768  ;;  %vm73_vm0 = vcmask 261120   ;;  %v62_v0 = vld [vmem:[#allocation5] sm:$0xff]  ;;  %v63_v1 = vld [vmem:[#allocation5 + $0x8] sm:$0xff]  ;;  %vm211_vm1 = vcmask 523264  }
  0x38   :  { %v64_v2 = vld [vmem:[#allocation5 + $0x10] sm:$0xff]  ;;  %v279_v3 = vpack.c.bf16 %v63_v1, %v62_v0  ;;  %v65_v4 = vld [vmem:[#allocation5 + $0x18] sm:$0xff]  ;;  %v54_v5 = vld [vmem:[#allocation2] sm:$0xff]  ;;  %s396_s2 = smov [#allocation8]  }
  0x39   :  { %v58_v6 = vld [vmem:[#allocation2 + $0x20] sm:$0xff]  ;;  %v283_v7 = vpack.c.bf16 %v65_v4, %v64_v2  ;;  %267 = vmatprep.mubr.msk.f32.mxu0 %vm73_vm0, %v54_v5  ;;  %v55_v8 = vld [vmem:[#allocation2 + $0x8] sm:$0xff]  ;;  %v56_v10 = vld [vmem:[#allocation2 + $0x10] sm:$0xff]  ;;  %s225_s22 = sshll.u32 %s396_s2, 4  ;;  %s226_s22 = int_to_ptr.vmem [resolvable:$true] %s225_s22 }
  0x3a   :  { %273 = vmatprep.mubr.msk.f32.mxu1 %vm73_vm0, %v58_v6  ;;  %280 = vmatprep.subr.bf16.mxu0 %v279_v3  ;;  %v59_v9 = vld [vmem:[#allocation2 + $0x28] sm:$0xff]  ;;  %v60_v11 = vld [vmem:[#allocation2 + $0x30] sm:$0xff]  ;;  %v57_v12 = vld [vmem:[#allocation2 + $0x18] sm:$0xff]  ;;  %s363_s23 = scalar_lea.vmem %s226_s22, 1024  ;;  %p368_p11 = scmp.lt.s32.totalorder %s226_s22, %s226_s22 }
  0x3b   :  { %287 = vmatprep.subr.bf16.mxu1 %v279_v3  ;;  %282 = vmatpush3.bf16.msra.mxu0 %v279_v3  ;;  %v61_v13 = vld [vmem:[#allocation2 + $0x38] sm:$0xff]  ;;  %v238_v14 = vld [vmem:[#allocation7] ss:$0 sm:$0xff]  ;;  %p364_p10 = scmp.ne.s32.totalorder %s226_s22, %s363_s23  ;;  %p369_p12 = scmp.lt.s32.totalorder %s363_s23, %s363_s23 }
  0x3c   :  { %289 = vmatpush3.bf16.msra.mxu1 %v279_v3  ;;  %284 = vmatprep.subr.bf16.mxu0 %v283_v7 }
  0x3d   :  { %288 = vmatprep.subr.bf16.mxu1 %v283_v7  ;;  %p370_p13 = por %p369_p12, %p368_p11 }
  0x3f   :  { %286 = vmatpush3.bf16.msra.mxu0 %v283_v7  ;;  %p371_p0 = pnand %p370_p13, %p364_p10 }
  0x40   :  { %290 = vmatpush3.bf16.msra.mxu1 %v283_v7 }
  0x42   :  { %268 = vmatmul.mubr.msk.f32.vlgmr.msra.gmra.mrb[0].mxu0 %vm73_vm0, %v55_v8 }
  0x43   :  { %274 = vmatmul.mubr.msk.f32.vlgmr.msra.gmra.mrb[0].mxu1 %vm73_vm0, %v59_v9  ;;  %270 = vmatprep.mubr.msk.f32.mxu0 %vm73_vm0, %v56_v10 }
  0x44   :  { %276 = vmatprep.mubr.msk.f32.mxu1 %vm73_vm0, %v60_v11 }
  0x46   :  { %271 = vmatmul.mubr.msk.f32.gmra.mrb[2].mxu0 %vm73_vm0, %v57_v12 }
  0x47   :  { %277 = vmatmul.mubr.msk.f32.gmra.mrb[2].mxu1 %vm73_vm0, %v61_v13 }
 0x115   :  { %v269_v15 = vpop.f32.mrb[0].mxu0 }
 0x116   :  { %v275_v16 = vpop.f32.mrb[0].mxu1  ;;  %v170_v17 = vadd.f32 %v269_v15, %v238_v14  ;;  %v164_v19 = vpop.f32.mrb[1].mxu0 }
 0x117   :  { %v190_v18 = vadd.f32 %v275_v16, %v238_v14  ;;  %v184_v20 = vpop.f32.mrb[1].mxu1  ;;  %v165_v21 = vadd.f32 %v238_v14, %v164_v19 }
 0x118   :  { %v185_v22 = vadd.f32 %v238_v14, %v184_v20  ;;  %v204_v23 = vmax.f32 %v170_v17, 0.0 }
 0x119   :  { %v208_v24 = vmax.f32 %v190_v18, 0.0  ;;  %v203_v25 = vmax.f32 %v165_v21, 0.0  ;;  %v272_v27 = vpop.f32.mrb[2].mxu0 }
 0x11a   :  { %v207_v26 = vmax.f32 %v185_v22, 0.0  ;;  %v278_v28 = vpop.f32.mrb[2].mxu1  ;;  %213 = vst.msk [vmem:[#allocation8 + $0x8] sm:$0xff] %vm211_vm1, %v204_v23  ;;  %v180_v29 = vadd.f32 %v272_v27, %v238_v14  ;;  %v174_v31 = vpop.f32.mrb[3].mxu0 }
 0x11b   :  { %217 = vst.msk [vmem:[#allocation8 + $0x28] sm:$0xff] %vm211_vm1, %v208_v24  ;;  %v200_v30 = vadd.f32 %v278_v28, %v238_v14  ;;  %v194_v32 = vpop.f32.mrb[3].mxu1  ;;  %212 = vst.msk [vmem:[#allocation8] sm:$0xff] %vm211_vm1, %v203_v25  ;;  %v175_v33 = vadd.f32 %v238_v14, %v174_v31 }
 0x11c   :  { %216 = vst.msk [vmem:[#allocation8 + $0x20] sm:$0xff] %vm211_vm1, %v207_v26  ;;  %v195_v34 = vadd.f32 %v238_v14, %v194_v32  ;;  %v206_v35 = vmax.f32 %v180_v29, 0.0 }
 0x11d   :  { %v210_v36 = vmax.f32 %v200_v30, 0.0  ;;  %v205_v37 = vmax.f32 %v175_v33, 0.0 }
 0x11e   :  { %v209_v38 = vmax.f32 %v195_v34, 0.0  ;;  %215 = vst.msk [vmem:[#allocation8 + $0x18] sm:$0xff] %vm211_vm1, %v206_v35 }
 0x11f   :  { %219 = vst.msk [vmem:[#allocation8 + $0x38] sm:$0xff] %vm211_vm1, %v210_v36  ;;  %214 = vst.msk [vmem:[#allocation8 + $0x10] sm:$0xff] %vm211_vm1, %v205_v37 }
 0x120   :  { %218 = vst.msk [vmem:[#allocation8 + $0x30] sm:$0xff] %vm211_vm1, %v209_v38 }
 0x121   :  { %374 = shalt.err (!%p371_p0)
}
 0x122   :  { %s375_s28 = scalar_lea.hbm %s500_s3, 1024 }
 0x123   :  { %p376_p1 = scmp.ne.s32.totalorder %s500_s3, %s375_s28  ;;  %p379_p2 = scmp.lt.u32.totalorder %s375_s28, %s500_s3 }
 0x125   :  { %p381_p3 = pnand %p379_p2, %p376_p1 }
 0x127   :  { %384 = shalt.err (!%p381_p3)
}
 0x128   :  { %231 = dma.vmem_to_hbm [thread:$0]  %s226_s22, 1024, %s500_s3, [#allocation4], %s393_s24, %s393_s24, %s394_s25  }
 0x129   :  { %389 = dma.done.wait [#allocation4], 1024  }
 0x12a   :  { %390 = vsyncadd [#allocation4], 4294966272 }
 0x12b   :  { %235 = vsyncpa [#allocation3], 1 }
 0x12c   :  { %236 = vsyncpa [#allocation6], 1 }
 0x12d   :  { %237 = vsyncpa [#allocation4], 1 }

// kernel: deformable_transformer_encoders_forward.11
= control target key start
LH: loop header
LB: loop body
LE: loop exit
PB: predicated region body
PF: predicated region fallthrough
CT: control target
= control target key end

     0   :  { %7 = vsyncpa [#allocation3], 0  ;;  %s7803_s0 = inlined_call_operand.hbm [shape: f32[64,4,32], index: 0, kind: input, shape index: {}]   ;;  %s7804_s1 = inlined_call_operand.hbm [shape: f32[64,4,4], index: 1, kind: input, shape index: {}]   ;;  %s7805_s2 = inlined_call_operand.hbm [shape: f32[64,32], index: 2, kind: output, shape index: {}]  }
   0x1   :  { %8 = vsyncpa [#allocation6], 0 }
   0x2   :  { %9 = vsyncpa [#allocation4], 0  ;;  %s5635_s9 = smov [#allocation2]   ;;  %s5563_s13 = scalar_lea.hbm %s7803_s0, 4096 }
   0x3   :  { %s15_s10 = sshll.u32 %s5635_s9, 4  ;;  %p5564_p0 = scmp.ne.s32.totalorder %s7803_s0, %s5563_s13  ;;  %s16_s10 = int_to_ptr.vmem [resolvable:$true] %s15_s10 }
   0x4   :  { %p5567_p1 = scmp.lt.u32.totalorder %s5563_s13, %s7803_s0 }
   0x6   :  { %p5569_p2 = pnand %p5567_p1, %p5564_p0 }
   0x8   :  { %5572 = shalt.err (!%p5569_p2)
}
   0x9   :  { %s5573_s18 = scalar_lea.vmem %s16_s10, 4096  ;;  %p5578_p4 = scmp.lt.s32.totalorder %s16_s10, %s16_s10 }
   0xa   :  { %p5574_p3 = scmp.ne.s32.totalorder %s16_s10, %s5573_s18  ;;  %p5579_p5 = scmp.lt.s32.totalorder %s5573_s18, %s5573_s18 }
   0xc   :  { %p5580_p6 = por %p5579_p5, %p5578_p4 }
   0xe   :  { %p5581_p7 = pnand %p5580_p6, %p5574_p3 }
  0x10   :  { %5584 = shalt.err (!%p5581_p7)
}
  0x11   :  { %s5636_s19 = smov 64   ;;  %s5637_s20 = smov 4  }
  0x12   :  { %21 = dma.hbm_to_vmem [thread:$0]  %s7803_s0, 4096, %s16_s10, [#allocation3], %s5636_s19, %s5636_s19, %s5637_s20  }
  0x13   :  { %s5638_s23 = smov [#allocation5]   ;;  %s5585_s27 = scalar_lea.hbm %s7804_s1, 4096 }
  0x14   :  { %s27_s24 = sshll.u32 %s5638_s23, 4  ;;  %p5586_p8 = scmp.ne.s32.totalorder %s7804_s1, %s5585_s27  ;;  %s28_s24 = int_to_ptr.vmem [resolvable:$true] %s27_s24 }
  0x15   :  { %p5589_p9 = scmp.lt.u32.totalorder %s5585_s27, %s7804_s1 }
  0x17   :  { %p5591_p10 = pnand %p5589_p9, %p5586_p8 }
  0x19   :  { %5594 = shalt.err (!%p5591_p10)
}
  0x1a   :  { %s5595_s4 = scalar_lea.vmem %s28_s24, 4096  ;;  %p5600_p12 = scmp.lt.s32.totalorder %s28_s24, %s28_s24 }
  0x1b   :  { %p5596_p11 = scmp.ne.s32.totalorder %s28_s24, %s5595_s4  ;;  %p5601_p13 = scmp.lt.s32.totalorder %s5595_s4, %s5595_s4 }
  0x1d   :  { %p5602_p0 = por %p5601_p13, %p5600_p12 }
  0x1f   :  { %p5603_p1 = pnand %p5602_p0, %p5596_p11 }
  0x21   :  { %5606 = shalt.err (!%p5603_p1)
}
  0x22   :  { %33 = dma.hbm_to_vmem [thread:$0]  %s7804_s1, 4096, %s28_s24, [#allocation6], %s5636_s19, %s5636_s19, %s5637_s20  }
  0x23   :  { %5629 = dma.done.wait [#allocation3], 4096  }
  0x24   :  { %5630 = vsyncadd [#allocation3], 4294963200 }
  0x25   :  { %5631 = dma.done.wait [#allocation6], 4096  }
  0x26   :  { %5632 = vsyncadd [#allocation6], 4294963200  ;;  %v5639_v0 = vmov 0   ;;  %vm104_vm0 = vcmask 27648   ;;  %v5685_v1 = vld [vmem:[#allocation5 + $0x8] sm:$0xf] }
  0x27   :  { %5110 = vset.pattern.permute.xlu1 %v5639_v0  ;;  %5109 = vset.pattern.permute.xlu0 %v5639_v0  ;;  %v5687_v2 = vld [vmem:[#allocation5] sm:$0xf]  ;;  %v5689_v3 = vld [vmem:[#allocation5 + $0xc] sm:$0xf]  ;;  %v119_v4 = vsel %vm104_vm0, %v5685_v1, -inf  ;;  %vm1769_vm1 = vcmask 60416  }
  0x28   :  { %v105_v5 = vsel %vm104_vm0, %v5687_v2, -inf  ;;  %v126_v6 = vsel %vm104_vm0, %v5689_v3, -inf  ;;  %v5697_v7 = vld [vmem:[#allocation5 + $0x4] sm:$0xf]  ;;  %v120_v8 = vrot.slane %v119_v4, 4  ;;  %vm2282_vm2 = vcmask 1041409  }
  0x29   :  { %v106_v9 = vrot.slane %v105_v5, 4  ;;  %v127_v10 = vrot.slane %v126_v6, 4  ;;  %v112_v11 = vsel %vm104_vm0, %v5697_v7, -inf  ;;  %v5701_v12 = vld [vmem:[#allocation5 + $0x14] sm:$0xf]  ;;  %vm2284_vm3 = vcmask 1042434  }
  0x2a   :  { %v113_v13 = vrot.slane %v112_v11, 4  ;;  %v140_v14 = vsel %vm104_vm0, %v5701_v12, -inf  ;;  %v5705_v15 = vld [vmem:[#allocation5 + $0x10] sm:$0xf]  ;;  %v5707_v16 = vld [vmem:[#allocation5 + $0x1c] sm:$0xf]  ;;  %v121_v17 = vmax.f32 %v119_v4, %v120_v8 }
  0x2b   :  { %v107_v18 = vmax.f32 %v105_v5, %v106_v9  ;;  %v128_v19 = vmax.f32 %v126_v6, %v127_v10  ;;  %v141_v20 = vrot.slane %v140_v14, 4  ;;  %v5709_v21 = vld [vmem:[#allocation5 + $0x18] sm:$0xf]  ;;  %v133_v23 = vsel %vm104_vm0, %v5705_v15, -inf  ;;  %v5720_v62 = vld [vmem:[#allocation5 + $0x24] sm:$0xf] }
  0x2c   :  { %v114_v22 = vmax.f32 %v112_v11, %v113_v13  ;;  %v154_v24 = vsel %vm104_vm0, %v5707_v16, -inf  ;;  %v147_v25 = vsel %vm104_vm0, %v5709_v21, -inf  ;;  %v122_v26 = vrot.slane %v121_v17, 2  ;;  %v5723_v6 = vld [vmem:[#allocation5 + $0x20] sm:$0xf]  ;;  %s5643_s1 = smov [#allocation7]  }
  0x2d   :  { %v108_v27 = vrot.slane %v107_v18, 2  ;;  %v129_v28 = vrot.slane %v128_v19, 2  ;;  %v142_v29 = vmax.f32 %v140_v14, %v141_v20  ;;  %v134_v31 = vrot.slane %v133_v23, 4  ;;  %s5085_s6 = sshll.u32 %s5643_s1, 4  ;;  %s5086_s6 = int_to_ptr.vmem [resolvable:$true] %s5085_s6 }
  0x2e   :  { %v115_v30 = vrot.slane %v114_v22, 2  ;;  %v155_v32 = vrot.slane %v154_v24, 4  ;;  %v148_v33 = vrot.slane %v147_v25, 4  ;;  %v123_v34 = vmax.f32 %v121_v17, %v122_v26  ;;  %s5607_s7 = scalar_lea.vmem %s5086_s6, 1024  ;;  %p5612_p3 = scmp.lt.s32.totalorder %s5086_s6, %s5086_s6 }
  0x2f   :  { %v109_v35 = vmax.f32 %v107_v18, %v108_v27  ;;  %v130_v36 = vmax.f32 %v128_v19, %v129_v28  ;;  %v143_v37 = vrot.slane %v142_v29, 2  ;;  %v135_v39 = vmax.f32 %v133_v23, %v134_v31  ;;  %v5737_v23 = vld [vmem:[#allocation5 + $0x34] sm:$0xf]  ;;  %v5741_v27 = vld [vmem:[#allocation5 + $0x30] sm:$0xf]  ;;  %p5608_p2 = scmp.ne.s32.totalorder %s5086_s6, %s5607_s7  ;;  %p5613_p4 = scmp.lt.s32.totalorder %s5607_s7, %s5607_s7 }
  0x30   :  { %v116_v38 = vmax.f32 %v114_v22, %v115_v30  ;;  %v156_v40 = vmax.f32 %v154_v24, %v155_v32  ;;  %v149_v41 = vmax.f32 %v147_v25, %v148_v33  ;;  %v124_v42 = vrot.slane %v123_v34, 1  ;;  %v5735_v22 = vld [vmem:[#allocation5 + $0x28] sm:$0xf] }
  0x31   :  { %v110_v43 = vrot.slane %v109_v35, 1  ;;  %v131_v44 = vrot.slane %v130_v36, 1  ;;  %v144_v45 = vmax.f32 %v142_v29, %v143_v37  ;;  %v136_v47 = vrot.slane %v135_v39, 2  ;;  %p5614_p5 = por %p5613_p4, %p5612_p3 }
  0x32   :  { %v117_v46 = vrot.slane %v116_v38, 1  ;;  %v157_v48 = vrot.slane %v156_v40, 2  ;;  %v150_v49 = vrot.slane %v149_v41, 2  ;;  %v125_v50 = vmax.f32 %v123_v34, %v124_v42  ;;  %v5749_v34 = vld [vmem:[#allocation5 + $0x3c] sm:$0xf] }
  0x33   :  { %v111_v51 = vmax.f32 %v109_v35, %v110_v43  ;;  %v132_v52 = vmax.f32 %v130_v36, %v131_v44  ;;  %v145_v53 = vrot.slane %v144_v45, 1  ;;  %v137_v55 = vmax.f32 %v135_v39, %v136_v47  ;;  %p5615_p6 = pnand %p5614_p5, %p5608_p2 }
  0x34   :  { %v118_v54 = vmax.f32 %v116_v38, %v117_v46  ;;  %v158_v56 = vmax.f32 %v156_v40, %v157_v48  ;;  %v151_v57 = vmax.f32 %v149_v41, %v150_v49  ;;  %v555_v58 = vsub.f32 %v5685_v1, %v125_v50  ;;  %v5751_v41 = vld [vmem:[#allocation5 + $0x38] sm:$0xf] }
  0x35   :  { %v553_v59 = vsub.f32 %v5687_v2, %v111_v51  ;;  %v556_v60 = vsub.f32 %v5689_v3, %v132_v52  ;;  %v146_v61 = vmax.f32 %v144_v45, %v145_v53  ;;  %v138_v0 = vrot.slane %v137_v55, 1  ;;  %v5726_v3 = vld [vmem:[#allocation5 + $0x2c] sm:$0xf] }
  0x36   :  { %v554_v63 = vsub.f32 %v5697_v7, %v118_v54  ;;  %v159_v4 = vrot.slane %v158_v56, 1  ;;  %v152_v5 = vrot.slane %v151_v57, 1  ;;  %v621_v8 = vmul.f32 1.442695, %v555_v58 }
  0x37   :  { %v617_v9 = vmul.f32 1.442695, %v553_v59  ;;  %v623_v10 = vmul.f32 1.442695, %v556_v60  ;;  %v558_v11 = vsub.f32 %v5701_v12, %v146_v61  ;;  %v139_v13 = vmax.f32 %v137_v55, %v138_v0 }
  0x38   :  { %v619_v1 = vmul.f32 1.442695, %v554_v63  ;;  %v160_v2 = vmax.f32 %v158_v56, %v159_v4  ;;  %v153_v14 = vmax.f32 %v151_v57, %v152_v5  ;;  %5117 = vpow2.f32 %v621_v8 }
  0x39   :  { %v627_v17 = vmul.f32 1.442695, %v558_v11  ;;  %v168_v7 = vsel %vm104_vm0, %v5720_v62, -inf  ;;  %v161_v18 = vsel %vm104_vm0, %v5723_v6, -inf  ;;  %5119 = vpow2.f32 %v617_v9 }
  0x3a   :  { %v557_v19 = vsub.f32 %v5705_v15, %v139_v13  ;;  %v560_v20 = vsub.f32 %v5707_v16, %v160_v2  ;;  %v559_v12 = vsub.f32 %v5709_v21, %v153_v14  ;;  %5121 = vpow2.f32 %v623_v10 }
  0x3b   :  { %v169_v24 = vrot.slane %v168_v7, 4  ;;  %v162_v25 = vrot.slane %v161_v18, 4  ;;  %v182_v26 = vsel %vm104_vm0, %v5726_v3, -inf  ;;  %5123 = vpow2.f32 %v619_v1 }
  0x3c   :  { %v625_v28 = vmul.f32 1.442695, %v557_v19  ;;  %v631_v29 = vmul.f32 1.442695, %v560_v20  ;;  %v629_v15 = vmul.f32 1.442695, %v559_v12  ;;  %5125 = vpow2.f32 %v627_v17 }
  0x3d   :  { %v170_v16 = vmax.f32 %v168_v7, %v169_v24  ;;  %v163_v30 = vmax.f32 %v161_v18, %v162_v25  ;;  %v183_v21 = vrot.slane %v182_v26, 4  ;;  %v175_v31 = vsel %vm104_vm0, %v5735_v22, -inf }
  0x3e   :  { %5127 = vpow2.f32 %v625_v28  ;;  %v196_v32 = vsel %vm104_vm0, %v5737_v23, -inf  ;;  %v189_v33 = vsel %vm104_vm0, %v5741_v27, -inf  ;;  %v176_v38 = vrot.slane %v175_v31, 4 }
  0x3f   :  { %5129 = vpow2.f32 %v631_v29  ;;  %v171_v35 = vrot.slane %v170_v16, 2  ;;  %v164_v36 = vrot.slane %v163_v30, 2  ;;  %v184_v37 = vmax.f32 %v182_v26, %v183_v21 }
  0x40   :  { %5131 = vpow2.f32 %v629_v15  ;;  %v197_v39 = vrot.slane %v196_v32, 4  ;;  %v190_v40 = vrot.slane %v189_v33, 4  ;;  %v5755_v45 = vsel %vm104_vm0, %v5749_v34, -inf }
  0x41   :  { %v172_v42 = vmax.f32 %v170_v16, %v171_v35  ;;  %v165_v43 = vmax.f32 %v163_v30, %v164_v36  ;;  %v185_v44 = vrot.slane %v184_v37, 2  ;;  %v177_v46 = vmax.f32 %v175_v31, %v176_v38 }
  0x42   :  { %v5757_v47 = vmax.f32 %v196_v32, %v197_v39  ;;  %v5759_v48 = vmax.f32 %v189_v33, %v190_v40  ;;  %v211_v49 = vrot.slane %v5755_v45, 4  ;;  %v5762_v50 = vpop.eup %5117  ;;  %v5768_v54 = vsel %vm104_vm0, %v5751_v41, -inf }
  0x43   :  { %v173_v51 = vrot.slane %v172_v42, 1  ;;  %v166_v52 = vrot.slane %v165_v43, 1  ;;  %v5764_v53 = vmax.f32 %v184_v37, %v185_v44  ;;  %v5770_v55 = vpop.eup %5119  ;;  %v759_v56 = vsel %vm104_vm0, %v5762_v50, 0.0 }
  0x44   :  { %v178_v57 = vrot.slane %v177_v46, 2  ;;  %v199_v58 = vrot.slane %v5757_v47, 2  ;;  %v192_v59 = vrot.slane %v5759_v48, 2  ;;  %v5776_v60 = vpop.eup %5121  ;;  %v760_v61 = vrot.slane %v759_v56, 4 }
  0x45   :  { %v745_v63 = vsel %vm104_vm0, %v5770_v55, 0.0  ;;  %v174_v0 = vmax.f32 %v172_v42, %v173_v51  ;;  %v5780_v4 = vmax.f32 %v165_v43, %v166_v52  ;;  %v5782_v5 = vpop.eup %5123  ;;  %v766_v9 = vsel %vm104_vm0, %v5776_v60, 0.0 }
  0x46   :  { %v746_v8 = vrot.slane %v745_v63, 4  ;;  %v187_v10 = vrot.slane %v5764_v53, 1  ;;  %v5787_v11 = vmax.f32 %v177_v46, %v178_v57  ;;  %v5789_v1 = vpop.eup %5125  ;;  %v761_v13 = vadd.f32 %v760_v61, %v759_v56 }
  0x47   :  { %v767_v2 = vrot.slane %v766_v9, 4  ;;  %v752_v14 = vsel %vm104_vm0, %v5782_v5, 0.0  ;;  %v562_v17 = vsub.f32 %v5720_v62, %v174_v0  ;;  %v780_v20 = vsel %vm104_vm0, %v5789_v1, 0.0 }
  0x48   :  { %v5794_v7 = vpop.eup %5127  ;;  %v747_v18 = vadd.f32 %v746_v8, %v745_v63  ;;  %v753_v19 = vrot.slane %v752_v14, 4  ;;  %v561_v12 = vsub.f32 %v5723_v6, %v5780_v4  ;;  %v762_v25 = vrot.slane %v761_v13, 2 }
  0x49   :  { %v5800_v24 = vpop.eup %5129  ;;  %v768_v26 = vadd.f32 %v767_v2, %v766_v9  ;;  %v781_v28 = vrot.slane %v780_v20, 4  ;;  %v773_v29 = vsel %vm104_vm0, %v5794_v7, 0.0  ;;  %vm2286_vm4 = vcmask 1043459  }
  0x4a   :  { %v5804_v15 = vpop.eup %5131  ;;  %v748_v62 = vrot.slane %v747_v18, 2  ;;  %v754_v16 = vadd.f32 %v753_v19, %v752_v14  ;;  %v774_v30 = vrot.slane %v773_v29, 4  ;;  %v794_v21 = vsel %vm104_vm0, %v5800_v24, 0.0 }
  0x4b   :  { %v763_v31 = vadd.f32 %v762_v25, %v761_v13  ;;  %v769_v32 = vrot.slane %v768_v26, 2  ;;  %v782_v33 = vadd.f32 %v781_v28, %v780_v20  ;;  %v795_v6 = vrot.slane %v794_v21, 4 }
  0x4c   :  { %v749_v35 = vadd.f32 %v748_v62, %v747_v18  ;;  %v755_v36 = vrot.slane %v754_v16, 2  ;;  %v775_v37 = vadd.f32 %v774_v30, %v773_v29  ;;  %v787_v38 = vsel %vm104_vm0, %v5804_v15, 0.0 }
  0x4d   :  { %v764_v39 = vrot.slane %v763_v31, 1  ;;  %v770_v40 = vadd.f32 %v769_v32, %v768_v26  ;;  %v783_v42 = vrot.slane %v782_v33, 2  ;;  %v796_v43 = vadd.f32 %v795_v6, %v794_v21 }
  0x4e   :  { %v750_v44 = vrot.slane %v749_v35, 1  ;;  %v756_v46 = vadd.f32 %v755_v36, %v754_v16  ;;  %v776_v51 = vrot.slane %v775_v37, 2  ;;  %v788_v52 = vrot.slane %v787_v38, 4 }
  0x4f   :  { %v765_v56 = vadd.f32 %v764_v39, %v763_v31  ;;  %v771_v57 = vrot.slane %v770_v40, 1  ;;  %v784_v61 = vadd.f32 %v783_v42, %v782_v33  ;;  %v797_v63 = vrot.slane %v796_v43, 2 }
  0x50   :  { %v751_v0 = vadd.f32 %v750_v44, %v749_v35  ;;  %v757_v4 = vrot.slane %v756_v46, 1  ;;  %v777_v8 = vadd.f32 %v776_v51, %v775_v37  ;;  %v789_v9 = vadd.f32 %v788_v52, %v787_v38  ;;  %v5825_v37 = vld [vmem:[#allocation5 + $0x44] sm:$0xf] }
  0x51   :  { %5133 = vrcp.f32 %v765_v56  ;;  %v772_v13 = vadd.f32 %v771_v57, %v770_v40  ;;  %v785_v2 = vrot.slane %v784_v61, 1  ;;  %v798_v14 = vadd.f32 %v797_v63, %v796_v43 }
  0x52   :  { %5135 = vrcp.f32 %v751_v0  ;;  %v758_v18 = vadd.f32 %v757_v4, %v756_v46  ;;  %v778_v19 = vrot.slane %v777_v8, 1  ;;  %v790_v20 = vrot.slane %v789_v9, 2  ;;  %v5837_v46 = vld [vmem:[#allocation5 + $0x40] sm:$0xf] }
  0x53   :  { %5137 = vrcp.f32 %v772_v13  ;;  %v786_v25 = vadd.f32 %v785_v2, %v784_v61  ;;  %v799_v26 = vrot.slane %v798_v14, 1  ;;  %v635_v28 = vmul.f32 1.442695, %v562_v17 }
  0x54   :  { %5139 = vrcp.f32 %v758_v18  ;;  %v779_v29 = vadd.f32 %v778_v19, %v777_v8  ;;  %v791_v62 = vadd.f32 %v790_v20, %v789_v9  ;;  %v633_v16 = vmul.f32 1.442695, %v561_v12  ;;  %v5852_v9 = vld [vmem:[#allocation5 + $0x4c] sm:$0xf] }
  0x55   :  { %5141 = vrcp.f32 %v786_v25  ;;  %v800_v30 = vadd.f32 %v799_v26, %v798_v14  ;;  %v188_v21 = vmax.f32 %v5764_v53, %v187_v10  ;;  %v180_v31 = vrot.slane %v5787_v11, 1 }
  0x56   :  { %5143 = vrcp.f32 %v779_v29  ;;  %v792_v32 = vrot.slane %v791_v62, 1  ;;  %v200_v33 = vmax.f32 %v5757_v47, %v199_v58  ;;  %v193_v17 = vmax.f32 %v5759_v48, %v192_v59 }
  0x57   :  { %5145 = vrcp.f32 %v800_v30  ;;  %v564_v12 = vsub.f32 %v5726_v3, %v188_v21  ;;  %v181_v6 = vmax.f32 %v5787_v11, %v180_v31  ;;  %v212_v53 = vmax.f32 %v5755_v45, %v211_v49 }
  0x58   :  { %v793_v10 = vadd.f32 %v792_v32, %v791_v62  ;;  %5147 = vpow2.f32 %v635_v28  ;;  %v201_v35 = vrot.slane %v200_v33, 1  ;;  %v194_v36 = vrot.slane %v193_v17, 1 }
  0x59   :  { %5149 = vpow2.f32 %v633_v16  ;;  %v639_v47 = vmul.f32 1.442695, %v564_v12  ;;  %v563_v58 = vsub.f32 %v5735_v22, %v181_v6  ;;  %v213_v48 = vrot.slane %v212_v53, 2 }
  0x5a   :  { %5151 = vrcp.f32 %v793_v10  ;;  %v202_v59 = vmax.f32 %v200_v33, %v201_v35  ;;  %v195_v3 = vmax.f32 %v193_v17, %v194_v36  ;;  %v204_v11 = vrot.slane %v5768_v54, 4 }
  0x5b   :  { %v5134_v38 = vpop.eup %5133  ;;  %5153 = vpow2.f32 %v639_v47  ;;  %v637_v39 = vmul.f32 1.442695, %v563_v58  ;;  %v214_v45 = vmax.f32 %v212_v53, %v213_v48  ;;  %v224_v49 = vsel %vm104_vm0, %v5825_v37, -inf }
  0x5c   :  { %v5136_v40 = vpop.eup %5135  ;;  %v5832_v42 = vmul.f32 %v5134_v38, %v5762_v50  ;;  %v566_v43 = vsub.f32 %v5737_v23, %v202_v59  ;;  %v565_v22 = vsub.f32 %v5741_v27, %v195_v3  ;;  %v205_v44 = vmax.f32 %v5768_v54, %v204_v11 }
  0x5d   :  { %v5138_v51 = vpop.eup %5137  ;;  %v5840_v52 = vmul.f32 %v5136_v40, %v5770_v55  ;;  %5155 = vpow2.f32 %v637_v39  ;;  %v215_v56 = vrot.slane %v214_v45, 1  ;;  %v225_v57 = vrot.slane %v224_v49, 4 }
  0x5e   :  { %7909 = vst [vmem:[#allocation11_spill] sm:$0xff] %v5832_v42  ;;  %v5140_v61 = vpop.eup %5139  ;;  %1397 = vperm.xlu1 %5110, %v5832_v42   ;;  %v5844_v50 = vmul.f32 %v5138_v51, %v5776_v60  ;;  %v643_v23 = vmul.f32 1.442695, %v566_v43  ;;  %v641_v63 = vmul.f32 1.442695, %v565_v22  ;;  %v206_v27 = vrot.slane %v205_v44, 2 }
  0x5f   :  { %v5142_v0 = vpop.eup %5141  ;;  %1387 = vperm.xlu0 %5109, %v5840_v52   ;;  %v5848_v54 = vmul.f32 %v5140_v61, %v5782_v5  ;;  %v216_v55 = vmax.f32 %v214_v45, %v215_v56  ;;  %v226_v4 = vmax.f32 %v224_v49, %v225_v57  ;;  %v217_v8 = vsel %vm104_vm0, %v5837_v46, -inf }
  0x60   :  { %v5144_v13 = vpop.eup %5143  ;;  %v5855_v60 = vmul.f32 %v5142_v0, %v5789_v1  ;;  %5157 = vpow2.f32 %v643_v23  ;;  %v207_v2 = vmax.f32 %v205_v44, %v206_v27  ;;  %v218_v14 = vrot.slane %v217_v8, 4 }
  0x61   :  { %v5146_v18 = vpop.eup %5145  ;;  %v5858_v19 = vmul.f32 %v5144_v13, %v5794_v7  ;;  %5159 = vpow2.f32 %v641_v63  ;;  %v568_v5 = vsub.f32 %v5749_v34, %v216_v55  ;;  %v227_v20 = vrot.slane %v226_v4, 2 }
  0x62   :  { %v5861_v25 = vpop.eup %5147  ;;  %1402 = vperm.xlu1 %5110, %v5844_v50   ;;  %v5865_v26 = vmul.f32 %v5146_v18, %v5800_v24  ;;  %v208_v1 = vrot.slane %v207_v2, 1  ;;  %v219_v28 = vmax.f32 %v217_v8, %v218_v14  ;;  %v238_v29 = vsel %vm104_vm0, %v5852_v9, -inf }
  0x63   :  { %7910 = vst [vmem:[#allocation12_spill] sm:$0xff] %v5858_v19  ;;  %v5869_v62 = vpop.eup %5149  ;;  %1392 = vperm.xlu0 %5109, %v5848_v54   ;;  %v808_v34 = vsel %vm104_vm0, %v5861_v25, 0.0  ;;  %v647_v7 = vmul.f32 1.442695, %v568_v5  ;;  %v228_v16 = vmax.f32 %v226_v4, %v227_v20  ;;  %v239_v30 = vrot.slane %v238_v29, 4 }
  0x64   :  { %v5152_v21 = vpop.eup %5151  ;;  %v809_v31 = vrot.slane %v808_v34, 4  ;;  %v801_v24 = vsel %vm104_vm0, %v5869_v62, 0.0  ;;  %v209_v32 = vmax.f32 %v207_v2, %v208_v1  ;;  %v220_v33 = vrot.slane %v219_v28, 2 }
  0x65   :  { %v5876_v17 = vpop.eup %5153  ;;  %v5879_v12 = vmul.f32 %v5152_v21, %v5804_v15  ;;  %v802_v6 = vrot.slane %v801_v24, 4  ;;  %5161 = vpow2.f32 %v647_v7  ;;  %v229_v53 = vrot.slane %v228_v16, 1 }
  0x66   :  { %1412 = vperm.xlu1 %5110, %v5855_v60   ;;  %v810_v10 = vadd.f32 %v809_v31, %v808_v34  ;;  %v822_v35 = vsel %vm104_vm0, %v5876_v17, 0.0  ;;  %v567_v36 = vsub.f32 %v5751_v41, %v209_v32  ;;  %v221_v47 = vmax.f32 %v219_v28, %v220_v33  ;;  %v5906_v31 = vld [vmem:[#allocation5 + $0x48] sm:$0xf] }
  0x67   :  { %v5885_v58 = vpop.eup %5155  ;;  %1407 = vperm.xlu0 %5109, %v5858_v19   ;;  %v803_v48 = vadd.f32 %v802_v6, %v801_v24  ;;  %v823_v59 = vrot.slane %v822_v35, 4  ;;  %v230_v15 = vmax.f32 %v228_v16, %v229_v53  ;;  %v240_v3 = vmax.f32 %v238_v29, %v239_v30 }
  0x68   :  { %v811_v11 = vrot.slane %v810_v10, 2  ;;  %v815_v38 = vsel %vm104_vm0, %v5885_v58, 0.0  ;;  %v645_v39 = vmul.f32 1.442695, %v567_v36  ;;  %v222_v45 = vrot.slane %v221_v47, 1 }
  0x69   :  { %v804_v49 = vrot.slane %v803_v48, 2  ;;  %v824_v40 = vadd.f32 %v823_v59, %v822_v35  ;;  %v816_v43 = vrot.slane %v815_v38, 4  ;;  %v570_v41 = vsub.f32 %v5825_v37, %v230_v15 }
  0x6a   :  { %v5891_v22 = vpop.eup %5157  ;;  %1422 = vperm.xlu1 %5110, %v5865_v26   ;;  %v812_v44 = vadd.f32 %v811_v11, %v810_v10  ;;  %5163 = vpow2.f32 %v645_v39  ;;  %v223_v51 = vmax.f32 %v221_v47, %v222_v45  ;;  %v241_v56 = vrot.slane %v240_v3, 2  ;;  %v5908_v10 = vld [vmem:[#allocation5 + $0x54] sm:$0xf]  ;;  %v5914_v39 = vld [vmem:[#allocation5 + $0x50] sm:$0xf] }
  0x6b   :  { %v5894_v57 = vpop.eup %5159  ;;  %1417 = vperm.xlu0 %5109, %v5879_v12   ;;  %v805_v61 = vadd.f32 %v804_v49, %v803_v48  ;;  %v825_v23 = vrot.slane %v824_v40, 2  ;;  %v817_v63 = vadd.f32 %v816_v43, %v815_v38  ;;  %v836_v27 = vsel %vm104_vm0, %v5891_v22, 0.0 }
  0x6c   :  { %v813_v0 = vrot.slane %v812_v44, 1  ;;  %v837_v37 = vrot.slane %v836_v27, 4  ;;  %v829_v55 = vsel %vm104_vm0, %v5894_v57, 0.0  ;;  %v651_v4 = vmul.f32 1.442695, %v570_v41 }
  0x6d   :  { %v806_v8 = vrot.slane %v805_v61, 1  ;;  %v826_v13 = vadd.f32 %v825_v23, %v824_v40  ;;  %v818_v2 = vrot.slane %v817_v63, 2  ;;  %v830_v14 = vrot.slane %v829_v55, 4 }
  0x6e   :  { %v814_v18 = vadd.f32 %v813_v0, %v812_v44  ;;  %v838_v5 = vadd.f32 %v837_v37, %v836_v27  ;;  %5165 = vpow2.f32 %v651_v4  ;;  %v569_v20 = vsub.f32 %v5837_v46, %v223_v51 }
  0x6f   :  { %v5902_v1 = vpop.eup %5161  ;;  %v807_v28 = vadd.f32 %v806_v8, %v805_v61  ;;  %v827_v29 = vrot.slane %v826_v13, 1  ;;  %v819_v34 = vadd.f32 %v818_v2, %v817_v63  ;;  %v831_v7 = vadd.f32 %v830_v14, %v829_v55 }
  0x70   :  { %5167 = vrcp.f32 %v814_v18  ;;  %v839_v16 = vrot.slane %v838_v5, 2  ;;  %v850_v30 = vsel %vm104_vm0, %v5902_v1, 0.0  ;;  %v649_v21 = vmul.f32 1.442695, %v569_v20 }
  0x71   :  { %5169 = vrcp.f32 %v807_v28  ;;  %v828_v24 = vadd.f32 %v827_v29, %v826_v13  ;;  %v820_v32 = vrot.slane %v819_v34, 1  ;;  %v832_v33 = vrot.slane %v831_v7, 2 }
  0x72   :  { %v840_v6 = vadd.f32 %v839_v16, %v838_v5  ;;  %v851_v46 = vrot.slane %v850_v30, 4  ;;  %5171 = vpow2.f32 %v649_v21  ;;  %v242_v53 = vmax.f32 %v240_v3, %v241_v56 }
  0x73   :  { %5173 = vrcp.f32 %v828_v24  ;;  %v821_v35 = vadd.f32 %v820_v32, %v819_v34  ;;  %v833_v36 = vadd.f32 %v832_v33, %v831_v7  ;;  %v231_v47 = vsel %vm104_vm0, %v5906_v31, -inf }
  0x74   :  { %v5912_v48 = vpop.eup %5163  ;;  %v841_v59 = vrot.slane %v840_v6, 1  ;;  %v852_v15 = vadd.f32 %v851_v46, %v850_v30  ;;  %v243_v11 = vrot.slane %v242_v53, 1  ;;  %v232_v38 = vrot.slane %v231_v47, 4  ;;  %v5938_v46 = vld [vmem:[#allocation5 + $0x5c] sm:$0xf] }
  0x75   :  { %5175 = vrcp.f32 %v821_v35  ;;  %v834_v45 = vrot.slane %v833_v36, 1  ;;  %v843_v3 = vsel %vm104_vm0, %v5912_v48, 0.0  ;;  %v252_v49 = vsel %vm104_vm0, %v5908_v10, -inf }
  0x76   :  { %v842_v40 = vadd.f32 %v841_v59, %v840_v6  ;;  %v853_v43 = vrot.slane %v852_v15, 2  ;;  %v844_v41 = vrot.slane %v843_v3, 4  ;;  %v244_v44 = vmax.f32 %v242_v53, %v243_v11 }
  0x77   :  { %v835_v51 = vadd.f32 %v834_v45, %v833_v36  ;;  %v233_v56 = vmax.f32 %v231_v47, %v232_v38  ;;  %v253_v61 = vrot.slane %v252_v49, 4  ;;  %v245_v23 = vsel %vm104_vm0, %v5914_v39, -inf  ;;  %v5944_v38 = vld [vmem:[#allocation5 + $0x58] sm:$0xf] }
  0x78   :  { %v5922_v63 = vpop.eup %5165  ;;  %5177 = vrcp.f32 %v842_v40  ;;  %v854_v27 = vadd.f32 %v853_v43, %v852_v15  ;;  %v845_v0 = vadd.f32 %v844_v41, %v843_v3  ;;  %v572_v37 = vsub.f32 %v5852_v9, %v244_v44 }
  0x79   :  { %5179 = vrcp.f32 %v835_v51  ;;  %v864_v55 = vsel %vm104_vm0, %v5922_v63, 0.0  ;;  %v234_v4 = vrot.slane %v233_v56, 2  ;;  %v254_v8 = vmax.f32 %v252_v49, %v253_v61 }
  0x7a   :  { %v5168_v13 = vpop.eup %5167  ;;  %v855_v2 = vrot.slane %v854_v27, 1  ;;  %v846_v14 = vrot.slane %v845_v0, 2  ;;  %v865_v18 = vrot.slane %v864_v55, 4  ;;  %v655_v5 = vmul.f32 1.442695, %v572_v37 }
  0x7b   :  { %v5170_v20 = vpop.eup %5169  ;;  %v5928_v28 = vmul.f32 %v5168_v13, %v5861_v25  ;;  %v235_v29 = vmax.f32 %v233_v56, %v234_v4  ;;  %v255_v34 = vrot.slane %v254_v8, 2  ;;  %v246_v7 = vrot.slane %v245_v23, 4 }
  0x7c   :  { %v5930_v16 = vpop.eup %5171  ;;  %v5933_v9 = vmul.f32 %v5170_v20, %v5869_v62  ;;  %v856_v30 = vadd.f32 %v855_v2, %v854_v27  ;;  %v847_v21 = vadd.f32 %v846_v14, %v845_v0  ;;  %v866_v24 = vadd.f32 %v865_v18, %v864_v55 }
  0x7d   :  { %7911 = vst [vmem:[#allocation13_spill] sm:$0xff] %v5928_v28  ;;  %v5174_v32 = vpop.eup %5173  ;;  %1432 = vperm.xlu1 %5110, %v5928_v28   ;;  %v857_v33 = vsel %vm104_vm0, %v5930_v16, 0.0  ;;  %5181 = vpow2.f32 %v655_v5  ;;  %v236_v25 = vrot.slane %v235_v29, 1  ;;  %v256_v6 = vmax.f32 %v254_v8, %v255_v34 }
  0x7e   :  { %7912 = vst [vmem:[#allocation14_spill] sm:$0xff] %v5933_v9  ;;  %1427 = vperm.xlu0 %5109, %v5933_v9   ;;  %v5942_v53 = vmul.f32 %v5174_v32, %v5876_v17  ;;  %5183 = vrcp.f32 %v856_v30  ;;  %v848_v62 = vrot.slane %v847_v21, 1  ;;  %v867_v35 = vrot.slane %v866_v24, 2 }
  0x7f   :  { %v5176_v36 = vpop.eup %5175  ;;  %v858_v47 = vrot.slane %v857_v33, 4  ;;  %v237_v59 = vmax.f32 %v235_v29, %v236_v25  ;;  %v257_v15 = vrot.slane %v256_v6, 1  ;;  %v247_v11 = vmax.f32 %v245_v23, %v246_v7 }
  0x80   :  { %v5947_v45 = vmul.f32 %v5176_v36, %v5885_v58  ;;  %v849_v3 = vadd.f32 %v848_v62, %v847_v21  ;;  %v868_v49 = vadd.f32 %v867_v35, %v866_v24  ;;  %v266_v40 = vsel %vm104_vm0, %v5938_v46, -inf }
  0x81   :  { %1442 = vperm.xlu1 %5110, %v5942_v53   ;;  %v859_v17 = vadd.f32 %v858_v47, %v857_v33  ;;  %v571_v43 = vsub.f32 %v5906_v31, %v237_v59  ;;  %v258_v41 = vmax.f32 %v256_v6, %v257_v15  ;;  %v248_v44 = vrot.slane %v247_v11, 2  ;;  %v5960_v31 = vld [vmem:[#allocation5 + $0x64] sm:$0xf]  ;;  %v5977_v6 = vld [vmem:[#allocation5 + $0x6c] sm:$0xf] }
  0x82   :  { %v5178_v51 = vpop.eup %5177  ;;  %1437 = vperm.xlu0 %5109, %v5947_v45   ;;  %5185 = vrcp.f32 %v849_v3  ;;  %v869_v56 = vrot.slane %v868_v49, 1  ;;  %v267_v61 = vrot.slane %v266_v40, 4  ;;  %v259_v58 = vsel %vm104_vm0, %v5944_v38, -inf }
  0x83   :  { %v5180_v23 = vpop.eup %5179  ;;  %v5957_v27 = vmul.f32 %v5178_v51, %v5891_v22  ;;  %v860_v0 = vrot.slane %v859_v17, 2  ;;  %v653_v37 = vmul.f32 1.442695, %v571_v43  ;;  %v574_v55 = vsub.f32 %v5908_v10, %v258_v41  ;;  %v5966_v22 = vld [vmem:[#allocation5 + $0x60] sm:$0xf] }
  0x84   :  { %v5963_v4 = vmul.f32 %v5180_v23, %v5894_v57  ;;  %v870_v8 = vadd.f32 %v869_v56, %v868_v49  ;;  %v249_v13 = vmax.f32 %v247_v11, %v248_v44  ;;  %v268_v2 = vmax.f32 %v266_v40, %v267_v61  ;;  %v5986_v56 = vld [vmem:[#allocation5 + $0x68] sm:$0xf] }
  0x85   :  { %1452 = vperm.xlu1 %5110, %v5957_v27   ;;  %v861_v14 = vadd.f32 %v860_v0, %v859_v17  ;;  %5187 = vpow2.f32 %v653_v37  ;;  %v659_v18 = vmul.f32 1.442695, %v574_v55  ;;  %v260_v5 = vrot.slane %v259_v58, 4 }
  0x86   :  { %7913 = vst [vmem:[#allocation15_spill] sm:$0xff] %v5963_v4  ;;  %1447 = vperm.xlu0 %5109, %v5963_v4   ;;  %5189 = vrcp.f32 %v870_v8  ;;  %v250_v10 = vrot.slane %v249_v13, 1  ;;  %v269_v20 = vrot.slane %v268_v2, 2  ;;  %v280_v57 = vsel %vm104_vm0, %v5960_v31, -inf }
  0x87   :  { %v5971_v29 = vpop.eup %5181  ;;  %v862_v34 = vrot.slane %v861_v14, 1  ;;  %5191 = vpow2.f32 %v659_v18  ;;  %v261_v7 = vmax.f32 %v259_v58, %v260_v5  ;;  %v281_v30 = vrot.slane %v280_v57, 4 }
  0x88   :  { %v5184_v21 = vpop.eup %5183  ;;  %v878_v24 = vsel %vm104_vm0, %v5971_v29, 0.0  ;;  %v251_v32 = vmax.f32 %v249_v13, %v250_v10  ;;  %v270_v33 = vmax.f32 %v268_v2, %v269_v20  ;;  %v273_v25 = vsel %vm104_vm0, %v5966_v22, -inf }
  0x89   :  { %v5980_v62 = vmul.f32 %v5184_v21, %v5902_v1  ;;  %v863_v35 = vadd.f32 %v862_v34, %v861_v14  ;;  %v879_v36 = vrot.slane %v878_v24, 4  ;;  %v262_v47 = vrot.slane %v261_v7, 2 }
  0x8a   :  { %v573_v59 = vsub.f32 %v5914_v39, %v251_v32  ;;  %v271_v15 = vrot.slane %v270_v33, 1  ;;  %v282_v11 = vmax.f32 %v280_v57, %v281_v30  ;;  %v274_v3 = vrot.slane %v273_v25, 4 }
  0x8b   :  { %1462 = vperm.xlu1 %5110, %v5980_v62   ;;  %5193 = vrcp.f32 %v863_v35  ;;  %v880_v49 = vadd.f32 %v879_v36, %v878_v24  ;;  %v263_v40 = vmax.f32 %v261_v7, %v262_v47  ;;  %v294_v17 = vsel %vm104_vm0, %v5977_v6, -inf }
  0x8c   :  { %v5186_v43 = vpop.eup %5185  ;;  %v657_v41 = vmul.f32 1.442695, %v573_v59  ;;  %v272_v1 = vmax.f32 %v270_v33, %v271_v15  ;;  %v283_v44 = vrot.slane %v282_v11, 2  ;;  %v275_v51 = vmax.f32 %v273_v25, %v274_v3  ;;  %v6007_v25 = vld [vmem:[#allocation5 + $0x74] sm:$0xf] }
  0x8d   :  { %v5989_v39 = vmul.f32 %v5186_v43, %v5912_v48  ;;  %v881_v61 = vrot.slane %v880_v49, 2  ;;  %v264_v58 = vrot.slane %v263_v40, 1  ;;  %v295_v23 = vrot.slane %v294_v17, 4  ;;  %v6013_v43 = vld [vmem:[#allocation5 + $0x70] sm:$0xf] }
  0x8e   :  { %5195 = vpow2.f32 %v657_v41  ;;  %v576_v0 = vsub.f32 %v5938_v46, %v272_v1  ;;  %v284_v37 = vmax.f32 %v282_v11, %v283_v44  ;;  %v276_v55 = vrot.slane %v275_v51, 2 }
  0x8f   :  { %v5992_v8 = vpop.eup %5187  ;;  %1457 = vperm.xlu0 %5109, %v5989_v39   ;;  %v882_v13 = vadd.f32 %v881_v61, %v880_v49  ;;  %v265_v2 = vmax.f32 %v263_v40, %v264_v58  ;;  %v296_v14 = vmax.f32 %v294_v17, %v295_v23  ;;  %v287_v18 = vsel %vm104_vm0, %v5986_v56, -inf }
  0x90   :  { %v5190_v48 = vpop.eup %5189  ;;  %v871_v5 = vsel %vm104_vm0, %v5992_v8, 0.0  ;;  %v663_v10 = vmul.f32 1.442695, %v576_v0  ;;  %v285_v20 = vrot.slane %v284_v37, 1  ;;  %v277_v57 = vmax.f32 %v275_v51, %v276_v55 }
  0x91   :  { %v5999_v46 = vpop.eup %5191  ;;  %v6002_v34 = vmul.f32 %v5190_v48, %v5922_v63  ;;  %v883_v7 = vrot.slane %v882_v13, 1  ;;  %v872_v30 = vrot.slane %v871_v5, 4  ;;  %v575_v21 = vsub.f32 %v5944_v38, %v265_v2  ;;  %v6026_v48 = vld [vmem:[#allocation5 + $0x7c] sm:$0xf] }
  0x92   :  { %v892_v24 = vsel %vm104_vm0, %v5999_v46, 0.0  ;;  %5197 = vpow2.f32 %v663_v10  ;;  %v286_v32 = vmax.f32 %v284_v37, %v285_v20  ;;  %v278_v33 = vrot.slane %v277_v57, 1 }
  0x93   :  { %7914 = vst [vmem:[#allocation16_spill] sm:$0xff] %v6002_v34  ;;  %1472 = vperm.xlu1 %5110, %v6002_v34   ;;  %v884_v35 = vadd.f32 %v883_v7, %v882_v13  ;;  %v873_v36 = vadd.f32 %v872_v30, %v871_v5  ;;  %v893_v47 = vrot.slane %v892_v24, 4  ;;  %v661_v59 = vmul.f32 1.442695, %v575_v21 }
  0x94   :  { %v578_v63 = vsub.f32 %v5960_v31, %v286_v32  ;;  %v279_v15 = vmax.f32 %v277_v57, %v278_v33  ;;  %v297_v11 = vrot.slane %v296_v14, 2  ;;  %v288_v3 = vrot.slane %v287_v18, 4 }
  0x95   :  { %v5194_v38 = vpop.eup %5193  ;;  %5199 = vrcp.f32 %v884_v35  ;;  %v874_v49 = vrot.slane %v873_v36, 2  ;;  %v894_v40 = vadd.f32 %v893_v47, %v892_v24  ;;  %v308_v17 = vsel %vm104_vm0, %v6007_v25, -inf }
  0x96   :  { %v6016_v41 = vmul.f32 %v5194_v38, %v5930_v16  ;;  %5201 = vpow2.f32 %v661_v59  ;;  %v667_v1 = vmul.f32 1.442695, %v578_v63  ;;  %v577_v44 = vsub.f32 %v5966_v22, %v279_v15 }
  0x97   :  { %v875_v31 = vadd.f32 %v874_v49, %v873_v36  ;;  %v895_v51 = vrot.slane %v894_v40, 2  ;;  %v298_v61 = vmax.f32 %v296_v14, %v297_v11  ;;  %v289_v58 = vmax.f32 %v287_v18, %v288_v3 }
  0x98   :  { %v6019_v23 = vpop.eup %5195  ;;  %1467 = vperm.xlu0 %5109, %v6016_v41   ;;  %5203 = vpow2.f32 %v667_v1  ;;  %v665_v0 = vmul.f32 1.442695, %v577_v44  ;;  %v309_v37 = vrot.slane %v308_v17, 4  ;;  %v301_v55 = vsel %vm104_vm0, %v6013_v43, -inf }
  0x99   :  { %v876_v16 = vrot.slane %v875_v31, 1  ;;  %v896_v13 = vadd.f32 %v895_v51, %v894_v40  ;;  %v885_v2 = vsel %vm104_vm0, %v6019_v23, 0.0  ;;  %v299_v22 = vrot.slane %v298_v61, 1 }
  0x9a   :  { %v886_v14 = vrot.slane %v885_v2, 4  ;;  %5205 = vpow2.f32 %v665_v0  ;;  %v290_v18 = vrot.slane %v289_v58, 2  ;;  %v310_v5 = vmax.f32 %v308_v17, %v309_v37 }
  0x9b   :  { %v877_v10 = vadd.f32 %v876_v16, %v875_v31  ;;  %v897_v20 = vrot.slane %v896_v13, 1  ;;  %v300_v57 = vmax.f32 %v298_v61, %v299_v22  ;;  %v302_v7 = vrot.slane %v301_v55, 4 }
  0x9c   :  { %v6028_v30 = vpop.eup %5197  ;;  %v887_v21 = vadd.f32 %v886_v14, %v885_v2  ;;  %v291_v24 = vmax.f32 %v289_v58, %v290_v18  ;;  %v311_v32 = vrot.slane %v310_v5, 2  ;;  %v322_v33 = vsel %vm104_vm0, %v6026_v48, -inf }
  0x9d   :  { %5207 = vrcp.f32 %v877_v10  ;;  %v898_v35 = vadd.f32 %v897_v20, %v896_v13  ;;  %v906_v36 = vsel %vm104_vm0, %v6028_v30, 0.0  ;;  %v580_v47 = vsub.f32 %v5977_v6, %v300_v57 }
  0x9e   :  { %v888_v59 = vrot.slane %v887_v21, 2  ;;  %v907_v63 = vrot.slane %v906_v36, 4  ;;  %v292_v15 = vrot.slane %v291_v24, 1  ;;  %v312_v11 = vmax.f32 %v310_v5, %v311_v32 }
  0x9f   :  { %v5200_v3 = vpop.eup %5199  ;;  %5209 = vrcp.f32 %v898_v35  ;;  %v671_v38 = vmul.f32 1.442695, %v580_v47  ;;  %v303_v49 = vmax.f32 %v301_v55, %v302_v7  ;;  %v323_v40 = vrot.slane %v322_v33, 4 }
  0xa0   :  { %v6035_v17 = vpop.eup %5201  ;;  %v6038_v1 = vmul.f32 %v5200_v3, %v5971_v29  ;;  %v889_v44 = vadd.f32 %v888_v59, %v887_v21  ;;  %v908_v31 = vadd.f32 %v907_v63, %v906_v36  ;;  %v293_v51 = vmax.f32 %v291_v24, %v292_v15 }
  0xa1   :  { %v899_v6 = vsel %vm104_vm0, %v6035_v17, 0.0  ;;  %5211 = vpow2.f32 %v671_v38  ;;  %v313_v61 = vrot.slane %v312_v11, 1  ;;  %v304_v58 = vrot.slane %v303_v49, 2 }
  0xa2   :  { %7915 = vst [vmem:[#allocation17_spill] sm:$0xff] %v6038_v1  ;;  %v6042_v0 = vpop.eup %5203  ;;  %1482 = vperm.xlu1 %5110, %v6038_v1   ;;  %v890_v37 = vrot.slane %v889_v44, 1  ;;  %v909_v55 = vrot.slane %v908_v31, 2  ;;  %v900_v16 = vrot.slane %v899_v6, 4  ;;  %v579_v13 = vsub.f32 %v5986_v56, %v293_v51 }
  0xa3   :  { %v920_v29 = vsel %vm104_vm0, %v6042_v0, 0.0  ;;  %v314_v2 = vmax.f32 %v312_v11, %v313_v61  ;;  %v305_v22 = vmax.f32 %v303_v49, %v304_v58  ;;  %v324_v14 = vmax.f32 %v322_v33, %v323_v40  ;;  %v6056_v49 = vld [vmem:[#allocation5 + $0x78] sm:$0xf] }
  0xa4   :  { %v6048_v18 = vpop.eup %5205  ;;  %v891_v5 = vadd.f32 %v890_v37, %v889_v44  ;;  %v910_v10 = vadd.f32 %v909_v55, %v908_v31  ;;  %v901_v20 = vadd.f32 %v900_v16, %v899_v6  ;;  %v921_v57 = vrot.slane %v920_v29, 4 }
  0xa5   :  { %v913_v7 = vsel %vm104_vm0, %v6048_v18, 0.0  ;;  %v669_v21 = vmul.f32 1.442695, %v579_v13  ;;  %v582_v24 = vsub.f32 %v6007_v25, %v314_v2  ;;  %v306_v32 = vrot.slane %v305_v22, 1  ;;  %v6067_v13 = vld [vmem:[#allocation5 + $0x84] sm:$0xf] }
  0xa6   :  { %5213 = vrcp.f32 %v891_v5  ;;  %v911_v56 = vrot.slane %v910_v10, 1  ;;  %v902_v35 = vrot.slane %v901_v20, 2  ;;  %v922_v36 = vadd.f32 %v921_v57, %v920_v29 }
  0xa7   :  { %v5208_v47 = vpop.eup %5207  ;;  %v914_v59 = vrot.slane %v913_v7, 4  ;;  %5215 = vpow2.f32 %v669_v21  ;;  %v675_v33 = vmul.f32 1.442695, %v582_v24  ;;  %v307_v63 = vmax.f32 %v305_v22, %v306_v32 }
  0xa8   :  { %v6054_v15 = vmul.f32 %v5208_v47, %v5992_v8  ;;  %v912_v11 = vadd.f32 %v911_v56, %v910_v10  ;;  %v903_v3 = vadd.f32 %v902_v35, %v901_v20  ;;  %v923_v38 = vrot.slane %v922_v36, 2  ;;  %v6072_v20 = vld [vmem:[#allocation5 + $0x80] sm:$0xf] }
  0xa9   :  { %v5210_v40 = vpop.eup %5209  ;;  %v915_v25 = vadd.f32 %v914_v59, %v913_v7  ;;  %5217 = vpow2.f32 %v675_v33  ;;  %v581_v44 = vsub.f32 %v6013_v43, %v307_v63  ;;  %v325_v31 = vrot.slane %v324_v14, 2 }
  0xaa   :  { %7916 = vst [vmem:[#allocation18_spill] sm:$0xff] %v6054_v15  ;;  %1477 = vperm.xlu0 %5109, %v6054_v15   ;;  %v6061_v51 = vmul.f32 %v5210_v40, %v5999_v46  ;;  %5219 = vrcp.f32 %v912_v11  ;;  %v904_v6 = vrot.slane %v903_v3, 1  ;;  %v924_v8 = vadd.f32 %v923_v38, %v922_v36 }
  0xab   :  { %v6063_v61 = vpop.eup %5211  ;;  %v916_v58 = vrot.slane %v915_v25, 2  ;;  %v673_v37 = vmul.f32 1.442695, %v581_v44  ;;  %v326_v55 = vmax.f32 %v324_v14, %v325_v31  ;;  %v315_v16 = vsel %vm104_vm0, %v6056_v49, -inf  ;;  %v6074_v14 = vld [vmem:[#allocation5 + $0x8c] sm:$0xf] }
  0xac   :  { %7917 = vst [vmem:[#allocation19_spill] sm:$0xff] %v6061_v51  ;;  %1492 = vperm.xlu1 %5110, %v6061_v51   ;;  %v905_v43 = vadd.f32 %v904_v6, %v903_v3  ;;  %v925_v29 = vrot.slane %v924_v8, 1  ;;  %v934_v46 = vsel %vm104_vm0, %v6063_v61, 0.0  ;;  %v316_v2 = vrot.slane %v315_v16, 4 }
  0xad   :  { %v917_v22 = vadd.f32 %v916_v58, %v915_v25  ;;  %v935_v5 = vrot.slane %v934_v46, 4  ;;  %5221 = vpow2.f32 %v673_v37  ;;  %v327_v10 = vrot.slane %v326_v55, 1 }
  0xae   :  { %5223 = vrcp.f32 %v905_v43  ;;  %v926_v57 = vadd.f32 %v925_v29, %v924_v8  ;;  %v317_v7 = vmax.f32 %v315_v16, %v316_v2  ;;  %v336_v21 = vsel %vm104_vm0, %v6067_v13, -inf }
  0xaf   :  { %v918_v24 = vrot.slane %v917_v22, 1  ;;  %v936_v32 = vadd.f32 %v935_v5, %v934_v46  ;;  %v328_v56 = vmax.f32 %v326_v55, %v327_v10  ;;  %v337_v35 = vrot.slane %v336_v21, 4 }
  0xb0   :  { %v5214_v36 = vpop.eup %5213  ;;  %5225 = vrcp.f32 %v926_v57  ;;  %v318_v47 = vrot.slane %v317_v7, 2  ;;  %v329_v59 = vsel %vm104_vm0, %v6072_v20, -inf  ;;  %v350_v33 = vsel %vm104_vm0, %v6074_v14, -inf }
  0xb1   :  { %v6082_v63 = vpop.eup %5215  ;;  %v6085_v11 = vmul.f32 %v5214_v36, %v6019_v23  ;;  %v919_v3 = vadd.f32 %v918_v24, %v917_v22  ;;  %v937_v38 = vrot.slane %v936_v32, 2  ;;  %v584_v40 = vsub.f32 %v6026_v48, %v328_v56 }
  0xb2   :  { %v927_v25 = vsel %vm104_vm0, %v6082_v63, 0.0  ;;  %v319_v44 = vmax.f32 %v317_v7, %v318_v47  ;;  %v338_v31 = vmax.f32 %v336_v21, %v337_v35  ;;  %v330_v6 = vrot.slane %v329_v59, 4 }
  0xb3   :  { %7918 = vst [vmem:[#allocation20_spill] sm:$0xff] %v6085_v11  ;;  %v6090_v8 = vpop.eup %5217  ;;  %1487 = vperm.xlu0 %5109, %v6085_v11   ;;  %5227 = vrcp.f32 %v919_v3  ;;  %v938_v58 = vadd.f32 %v937_v38, %v936_v32  ;;  %v928_v37 = vrot.slane %v927_v25, 4  ;;  %v679_v55 = vmul.f32 1.442695, %v584_v40 }
  0xb4   :  { %v5220_v23 = vpop.eup %5219  ;;  %v948_v16 = vsel %vm104_vm0, %v6090_v8, 0.0  ;;  %v320_v43 = vrot.slane %v319_v44, 1  ;;  %v339_v48 = vrot.slane %v338_v31, 2  ;;  %v331_v29 = vmax.f32 %v329_v59, %v330_v6 }
  0xb5   :  { %v6096_v46 = vmul.f32 %v5220_v23, %v6028_v30  ;;  %v939_v2 = vrot.slane %v938_v58, 1  ;;  %v929_v22 = vadd.f32 %v928_v37, %v927_v25  ;;  %v949_v5 = vrot.slane %v948_v16, 4 }
  0xb6   :  { %5229 = vpow2.f32 %v679_v55  ;;  %v321_v10 = vmax.f32 %v319_v44, %v320_v43  ;;  %v340_v57 = vmax.f32 %v338_v31, %v339_v48  ;;  %v332_v7 = vrot.slane %v331_v29, 2  ;;  %v6107_v55 = vld [vmem:[#allocation5 + $0x88] sm:$0xf] }
  0xb7   :  { %7919 = vst [vmem:[#allocation21_spill] sm:$0xff] %v6096_v46  ;;  %v6098_v21 = vpop.eup %5221  ;;  %1502 = vperm.xlu1 %5110, %v6096_v46   ;;  %v940_v24 = vadd.f32 %v939_v2, %v938_v58  ;;  %v930_v32 = vrot.slane %v929_v22, 2  ;;  %v950_v56 = vadd.f32 %v949_v5, %v948_v16  ;;  %v351_v35 = vrot.slane %v350_v33, 4 }
  0xb8   :  { %v5224_v36 = vpop.eup %5223  ;;  %v941_v30 = vsel %vm104_vm0, %v6098_v21, 0.0  ;;  %v583_v47 = vsub.f32 %v6056_v49, %v321_v10  ;;  %v341_v59 = vrot.slane %v340_v57, 1  ;;  %v333_v3 = vmax.f32 %v331_v29, %v332_v7  ;;  %v6117_v7 = vld [vmem:[#allocation5 + $0x94] sm:$0xf] }
  0xb9   :  { %v6105_v38 = vmul.f32 %v5224_v36, %v6035_v17  ;;  %5231 = vrcp.f32 %v940_v24  ;;  %v931_v40 = vadd.f32 %v930_v32, %v929_v22  ;;  %v951_v25 = vrot.slane %v950_v56, 2  ;;  %v6123_v36 = vld [vmem:[#allocation5 + $0x90] sm:$0xf] }
  0xba   :  { %v5226_v44 = vpop.eup %5225  ;;  %v942_v31 = vrot.slane %v941_v30, 4  ;;  %v677_v6 = vmul.f32 1.442695, %v583_v47  ;;  %v342_v58 = vmax.f32 %v340_v57, %v341_v59  ;;  %v334_v37 = vrot.slane %v333_v3, 1 }
  0xbb   :  { %7920 = vst [vmem:[#allocation22_spill] sm:$0xff] %v6105_v38  ;;  %1497 = vperm.xlu0 %5109, %v6105_v38   ;;  %v6111_v23 = vmul.f32 %v5226_v44, %v6042_v0  ;;  %v932_v49 = vrot.slane %v931_v40, 1  ;;  %v952_v16 = vadd.f32 %v951_v25, %v950_v56  ;;  %v352_v43 = vmax.f32 %v350_v33, %v351_v35 }
  0xbc   :  { %v943_v17 = vadd.f32 %v942_v31, %v941_v30  ;;  %5233 = vpow2.f32 %v677_v6  ;;  %v586_v48 = vsub.f32 %v6067_v13, %v342_v58  ;;  %v335_v29 = vmax.f32 %v333_v3, %v334_v37  ;;  %v6130_v3 = vld [vmem:[#allocation5 + $0x9c] sm:$0xf] }
  0xbd   :  { %7921 = vst [vmem:[#allocation23_spill] sm:$0xff] %v6111_v23  ;;  %v5228_v2 = vpop.eup %5227  ;;  %1512 = vperm.xlu1 %5110, %v6111_v23   ;;  %v933_v22 = vadd.f32 %v932_v49, %v931_v40  ;;  %v953_v5 = vrot.slane %v952_v16, 1  ;;  %v353_v10 = vrot.slane %v352_v43, 2  ;;  %v343_v57 = vsel %vm104_vm0, %v6107_v55, -inf }
  0xbe   :  { %v6120_v0 = vmul.f32 %v5228_v2, %v6048_v18  ;;  %v944_v33 = vrot.slane %v943_v17, 2  ;;  %v683_v24 = vmul.f32 1.442695, %v586_v48  ;;  %v585_v32 = vsub.f32 %v6072_v20, %v335_v29 }
  0xbf   :  { %5235 = vrcp.f32 %v933_v22  ;;  %v954_v13 = vadd.f32 %v953_v5, %v952_v16  ;;  %v354_v56 = vmax.f32 %v352_v43, %v353_v10  ;;  %v344_v35 = vrot.slane %v343_v57, 4 }
  0xc0   :  { %7922 = vst [vmem:[#allocation24_spill] sm:$0xff] %v6120_v0  ;;  %v6125_v30 = vpop.eup %5229  ;;  %1507 = vperm.xlu0 %5109, %v6120_v0   ;;  %v945_v47 = vadd.f32 %v944_v33, %v943_v17  ;;  %5237 = vpow2.f32 %v683_v24  ;;  %v681_v59 = vmul.f32 1.442695, %v585_v32  ;;  %v364_v18 = vsel %vm104_vm0, %v6117_v7, -inf  ;;  %v6138_v17 = vld [vmem:[#allocation5 + $0x98] sm:$0xf] }
  0xc1   :  { %5239 = vrcp.f32 %v954_v13  ;;  %v962_v20 = vsel %vm104_vm0, %v6125_v30, 0.0  ;;  %v355_v40 = vrot.slane %v354_v56, 1  ;;  %v345_v25 = vmax.f32 %v343_v57, %v344_v35 }
  0xc2   :  { %v946_v44 = vrot.slane %v945_v47, 1  ;;  %v963_v31 = vrot.slane %v962_v20, 4  ;;  %5241 = vpow2.f32 %v681_v59  ;;  %v365_v6 = vrot.slane %v364_v18, 4 }
  0xc3   :  { %v5232_v58 = vpop.eup %5231  ;;  %v356_v37 = vmax.f32 %v354_v56, %v355_v40  ;;  %v346_v49 = vrot.slane %v345_v25, 2  ;;  %v357_v16 = vsel %vm104_vm0, %v6123_v36, -inf  ;;  %v378_v43 = vsel %vm104_vm0, %v6130_v3, -inf }
  0xc4   :  { %v6141_v48 = vmul.f32 %v5232_v58, %v6063_v61  ;;  %v947_v29 = vadd.f32 %v946_v44, %v945_v47  ;;  %v964_v2 = vadd.f32 %v963_v31, %v962_v20  ;;  %v366_v22 = vmax.f32 %v364_v18, %v365_v6 }
  0xc5   :  { %v588_v5 = vsub.f32 %v6074_v14, %v356_v37  ;;  %v347_v10 = vmax.f32 %v345_v25, %v346_v49  ;;  %v358_v57 = vrot.slane %v357_v16, 4  ;;  %v379_v33 = vrot.slane %v378_v43, 4 }
  0xc6   :  { %7923 = vst [vmem:[#allocation25_spill] sm:$0xff] %v6141_v48  ;;  %v6144_v24 = vpop.eup %5233  ;;  %1522 = vperm.xlu1 %5110, %v6141_v48   ;;  %5243 = vrcp.f32 %v947_v29  ;;  %v965_v32 = vrot.slane %v964_v2, 2  ;;  %v367_v13 = vrot.slane %v366_v22, 2  ;;  %v371_v56 = vsel %vm104_vm0, %v6138_v17, -inf }
  0xc7   :  { %v955_v61 = vsel %vm104_vm0, %v6144_v24, 0.0  ;;  %v687_v35 = vmul.f32 1.442695, %v588_v5  ;;  %v348_v47 = vrot.slane %v347_v10, 1  ;;  %v359_v59 = vmax.f32 %v357_v16, %v358_v57 }
  0xc8   :  { %v966_v14 = vadd.f32 %v965_v32, %v964_v2  ;;  %v956_v18 = vrot.slane %v955_v61, 4  ;;  %v368_v20 = vmax.f32 %v366_v22, %v367_v13  ;;  %v380_v40 = vmax.f32 %v378_v43, %v379_v33 }
  0xc9   :  { %v5236_v25 = vpop.eup %5235  ;;  %5245 = vpow2.f32 %v687_v35  ;;  %v349_v44 = vmax.f32 %v347_v10, %v348_v47  ;;  %v360_v31 = vrot.slane %v359_v59, 2  ;;  %v372_v6 = vrot.slane %v371_v56, 4 }
  0xca   :  { %v6151_v58 = vpop.eup %5237  ;;  %v6154_v37 = vmul.f32 %v5236_v25, %v6082_v63  ;;  %v967_v49 = vrot.slane %v966_v14, 1  ;;  %v957_v29 = vadd.f32 %v956_v18, %v955_v61  ;;  %v369_v48 = vrot.slane %v368_v20, 1 }
  0xcb   :  { %v5240_v5 = vpop.eup %5239  ;;  %v976_v16 = vsel %vm104_vm0, %v6151_v58, 0.0  ;;  %v587_v2 = vsub.f32 %v6107_v55, %v349_v44  ;;  %v361_v43 = vmax.f32 %v359_v59, %v360_v31  ;;  %v381_v22 = vrot.slane %v380_v40, 2 }
  0xcc   :  { %7924 = vst [vmem:[#allocation26_spill] sm:$0xff] %v6154_v37  ;;  %v6159_v57 = vpop.eup %5241  ;;  %1517 = vperm.xlu0 %5109, %v6154_v37   ;;  %v6163_v10 = vmul.f32 %v5240_v5, %v6090_v8  ;;  %v968_v63 = vadd.f32 %v967_v49, %v966_v14  ;;  %v958_v33 = vrot.slane %v957_v29, 2  ;;  %v977_v32 = vrot.slane %v976_v16, 4  ;;  %v6169_v37 = vld [vmem:[#allocation5 + $0xa4] sm:$0xf] }
  0xcd   :  { %v969_v13 = vsel %vm104_vm0, %v6159_v57, 0.0  ;;  %v685_v61 = vmul.f32 1.442695, %v587_v2  ;;  %v370_v35 = vmax.f32 %v368_v20, %v369_v48  ;;  %v362_v47 = vrot.slane %v361_v43, 1 }
  0xce   :  { %7925 = vst [vmem:[#allocation27_spill] sm:$0xff] %v6163_v10  ;;  %1532 = vperm.xlu1 %5110, %v6163_v10   ;;  %5247 = vrcp.f32 %v968_v63  ;;  %v959_v55 = vadd.f32 %v958_v33, %v957_v29  ;;  %v978_v59 = vadd.f32 %v977_v32, %v976_v16  ;;  %v970_v18 = vrot.slane %v969_v13, 4 }
  0xcf   :  { %5249 = vpow2.f32 %v685_v61  ;;  %v590_v25 = vsub.f32 %v6117_v7, %v370_v35  ;;  %v363_v8 = vmax.f32 %v361_v43, %v362_v47  ;;  %v382_v44 = vmax.f32 %v380_v40, %v381_v22  ;;  %v6185_v47 = vld [vmem:[#allocation5 + $0xac] sm:$0xf] }
  0xd0   :  { %v5244_v14 = vpop.eup %5243  ;;  %v960_v31 = vrot.slane %v959_v55, 1  ;;  %v979_v49 = vrot.slane %v978_v59, 2  ;;  %v971_v5 = vadd.f32 %v970_v18, %v969_v13  ;;  %v373_v23 = vmax.f32 %v371_v56, %v372_v6 }
  0xd1   :  { %v6172_v48 = vmul.f32 %v5244_v14, %v6098_v21  ;;  %v691_v20 = vmul.f32 1.442695, %v590_v25  ;;  %v589_v29 = vsub.f32 %v6123_v36, %v363_v8  ;;  %v383_v16 = vrot.slane %v382_v44, 1  ;;  %v6180_v21 = vld [vmem:[#allocation5 + $0xa0] sm:$0xf] }
  0xd2   :  { %v961_v2 = vadd.f32 %v960_v31, %v959_v55  ;;  %v980_v63 = vadd.f32 %v979_v49, %v978_v59  ;;  %v972_v33 = vrot.slane %v971_v5, 2  ;;  %v374_v7 = vrot.slane %v373_v23, 2 }
  0xd3   :  { %7926 = vst [vmem:[#allocation28_spill] sm:$0xff] %v6172_v48  ;;  %v6175_v43 = vpop.eup %5245  ;;  %1527 = vperm.xlu0 %5109, %v6172_v48   ;;  %5251 = vpow2.f32 %v691_v20  ;;  %v689_v40 = vmul.f32 1.442695, %v589_v29  ;;  %v384_v56 = vmax.f32 %v382_v44, %v383_v16  ;;  %v392_v6 = vsel %vm104_vm0, %v6169_v37, -inf }
  0xd4   :  { %5253 = vrcp.f32 %v961_v2  ;;  %v981_v22 = vrot.slane %v980_v63, 1  ;;  %v973_v36 = vadd.f32 %v972_v33, %v971_v5  ;;  %v990_v32 = vsel %vm104_vm0, %v6175_v43, 0.0  ;;  %v6198_v33 = vld [vmem:[#allocation5 + $0xb4] sm:$0xf] }
  0xd5   :  { %v991_v13 = vrot.slane %v990_v32, 4  ;;  %5255 = vpow2.f32 %v689_v40  ;;  %v592_v61 = vsub.f32 %v6130_v3, %v384_v56  ;;  %v375_v35 = vmax.f32 %v373_v23, %v374_v7 }
  0xd6   :  { %v982_v55 = vadd.f32 %v981_v22, %v980_v63  ;;  %v974_v59 = vrot.slane %v973_v36, 1  ;;  %v393_v18 = vrot.slane %v392_v6, 4  ;;  %v385_v25 = vsel %vm104_vm0, %v6180_v21, -inf  ;;  %v6196_v63 = vld [vmem:[#allocation5 + $0xa8] sm:$0xf] }
  0xd7   :  { %v992_v8 = vadd.f32 %v991_v13, %v990_v32  ;;  %v695_v44 = vmul.f32 1.442695, %v592_v61  ;;  %v376_v14 = vrot.slane %v375_v35, 1  ;;  %v386_v31 = vrot.slane %v385_v25, 4 }
  0xd8   :  { %v5248_v49 = vpop.eup %5247  ;;  %5257 = vrcp.f32 %v982_v55  ;;  %v975_v5 = vadd.f32 %v974_v59, %v973_v36  ;;  %v394_v20 = vmax.f32 %v392_v6, %v393_v18  ;;  %v406_v3 = vsel %vm104_vm0, %v6185_v47, -inf }
  0xd9   :  { %v6191_v23 = vpop.eup %5249  ;;  %v6194_v29 = vmul.f32 %v5248_v49, %v6125_v30  ;;  %v993_v16 = vrot.slane %v992_v8, 2  ;;  %5259 = vpow2.f32 %v695_v44  ;;  %v377_v2 = vmax.f32 %v375_v35, %v376_v14 }
  0xda   :  { %5261 = vrcp.f32 %v975_v5  ;;  %v983_v7 = vsel %vm104_vm0, %v6191_v23, 0.0  ;;  %v395_v40 = vrot.slane %v394_v20, 2  ;;  %v387_v56 = vmax.f32 %v385_v25, %v386_v31 }
  0xdb   :  { %7927 = vst [vmem:[#allocation29_spill] sm:$0xff] %v6194_v29  ;;  %1542 = vperm.xlu1 %5110, %v6194_v29   ;;  %v994_v6 = vadd.f32 %v993_v16, %v992_v8  ;;  %v984_v22 = vrot.slane %v983_v7, 4  ;;  %v591_v30 = vsub.f32 %v6138_v17, %v377_v2  ;;  %v407_v36 = vrot.slane %v406_v3, 4 }
  0xdc   :  { %v396_v32 = vmax.f32 %v394_v20, %v395_v40  ;;  %v388_v13 = vrot.slane %v387_v56, 2  ;;  %v399_v61 = vsel %vm104_vm0, %v6196_v63, -inf  ;;  %v6208_v35 = vsel %vm104_vm0, %v6198_v33, -inf }
  0xdd   :  { %v6210_v55 = vpop.eup %5251  ;;  %v995_v59 = vrot.slane %v994_v6, 1  ;;  %v985_v18 = vadd.f32 %v984_v22, %v983_v7  ;;  %v693_v25 = vmul.f32 1.442695, %v591_v30  ;;  %v408_v44 = vmax.f32 %v406_v3, %v407_v36 }
  0xde   :  { %v5254_v8 = vpop.eup %5253  ;;  %v1004_v17 = vsel %vm104_vm0, %v6210_v55, 0.0  ;;  %v397_v14 = vrot.slane %v396_v32, 1  ;;  %v389_v31 = vmax.f32 %v387_v56, %v388_v13  ;;  %v400_v49 = vrot.slane %v399_v61, 4 }
  0xdf   :  { %v6214_v5 = vpop.eup %5255  ;;  %v6217_v20 = vmul.f32 %v5254_v8, %v6144_v24  ;;  %v996_v16 = vadd.f32 %v995_v59, %v994_v6  ;;  %v986_v2 = vrot.slane %v985_v18, 2  ;;  %v1005_v40 = vrot.slane %v1004_v17, 4 }
  0xe0   :  { %v997_v7 = vsel %vm104_vm0, %v6214_v5, 0.0  ;;  %5263 = vpow2.f32 %v693_v25  ;;  %v398_v3 = vmax.f32 %v396_v32, %v397_v14  ;;  %v390_v22 = vrot.slane %v389_v31, 1 }
  0xe1   :  { %7928 = vst [vmem:[#allocation30_spill] sm:$0xff] %v6217_v20  ;;  %1537 = vperm.xlu0 %5109, %v6217_v20   ;;  %5265 = vrcp.f32 %v996_v16  ;;  %v987_v30 = vadd.f32 %v986_v2, %v985_v18  ;;  %v1006_v56 = vadd.f32 %v1005_v40, %v1004_v17  ;;  %v998_v36 = vrot.slane %v997_v7, 4 }
  0xe2   :  { %v5258_v13 = vpop.eup %5257  ;;  %v594_v29 = vsub.f32 %v6169_v37, %v398_v3  ;;  %v391_v24 = vmax.f32 %v389_v31, %v390_v22  ;;  %v409_v8 = vrot.slane %v408_v44, 2  ;;  %v401_v6 = vmax.f32 %v399_v61, %v400_v49  ;;  %v6235_v3 = vld [vmem:[#allocation5 + $0xb0] sm:$0xf] }
  0xe3   :  { %v6223_v59 = vpop.eup %5259  ;;  %v6226_v10 = vmul.f32 %v5258_v13, %v6151_v58  ;;  %v988_v25 = vrot.slane %v987_v30, 1  ;;  %v1007_v32 = vrot.slane %v1006_v56, 2  ;;  %v999_v14 = vadd.f32 %v998_v36, %v997_v7 }
  0xe4   :  { %v5262_v48 = vpop.eup %5261  ;;  %v1018_v18 = vsel %vm104_vm0, %v6223_v59, 0.0  ;;  %v699_v17 = vmul.f32 1.442695, %v594_v29  ;;  %v593_v16 = vsub.f32 %v6180_v21, %v391_v24  ;;  %v410_v2 = vmax.f32 %v408_v44, %v409_v8 }
  0xe5   :  { %7929 = vst [vmem:[#allocation31_spill] sm:$0xff] %v6226_v10  ;;  %1552 = vperm.xlu1 %5110, %v6226_v10   ;;  %v6233_v37 = vmul.f32 %v5262_v48, %v6159_v57  ;;  %v989_v61 = vadd.f32 %v988_v25, %v987_v30  ;;  %v1008_v31 = vadd.f32 %v1007_v32, %v1006_v56  ;;  %v1000_v58 = vrot.slane %v999_v14, 2 }
  0xe6   :  { %v1019_v49 = vrot.slane %v1018_v18, 4  ;;  %5267 = vpow2.f32 %v699_v17  ;;  %v697_v40 = vmul.f32 1.442695, %v593_v16  ;;  %v411_v7 = vrot.slane %v410_v2, 1 }
  0xe7   :  { %7930 = vst [vmem:[#allocation32_spill] sm:$0xff] %v6233_v37  ;;  %1547 = vperm.xlu0 %5109, %v6233_v37   ;;  %5269 = vrcp.f32 %v989_v61  ;;  %v1009_v29 = vrot.slane %v1008_v31, 1  ;;  %v1001_v21 = vadd.f32 %v1000_v58, %v999_v14  ;;  %v402_v44 = vrot.slane %v401_v6, 2  ;;  %v6247_v61 = vld [vmem:[#allocation5 + $0xbc] sm:$0xf] }
  0xe8   :  { %v1020_v22 = vadd.f32 %v1019_v49, %v1018_v18  ;;  %5271 = vpow2.f32 %v697_v40  ;;  %v412_v36 = vmax.f32 %v410_v2, %v411_v7  ;;  %v421_v57 = vrot.slane %v6208_v35, 4  ;;  %v6252_v7 = vld [vmem:[#allocation5 + $0xb8] sm:$0xf] }
  0xe9   :  { %v1010_v48 = vadd.f32 %v1009_v29, %v1008_v31  ;;  %v1002_v30 = vrot.slane %v1001_v21, 1  ;;  %v403_v56 = vmax.f32 %v401_v6, %v402_v44  ;;  %v413_v13 = vsel %vm104_vm0, %v6235_v3, -inf  ;;  %v6254_v29 = vld [vmem:[#allocation5 + $0xc4] sm:$0xf] }
  0xea   :  { %v6241_v24 = vpop.eup %5263  ;;  %v1021_v8 = vrot.slane %v1020_v22, 2  ;;  %v596_v25 = vsub.f32 %v6185_v47, %v412_v36  ;;  %v422_v32 = vmax.f32 %v6208_v35, %v421_v57  ;;  %v414_v14 = vrot.slane %v413_v13, 4 }
  0xeb   :  { %v5266_v17 = vpop.eup %5265  ;;  %5273 = vrcp.f32 %v1010_v48  ;;  %v1003_v18 = vadd.f32 %v1002_v30, %v1001_v21  ;;  %v1011_v16 = vsel %vm104_vm0, %v6241_v24, 0.0  ;;  %v404_v2 = vrot.slane %v403_v56, 1 }
  0xec   :  { %v6250_v6 = vmul.f32 %v5266_v17, %v6175_v43  ;;  %v1022_v31 = vadd.f32 %v1021_v8, %v1020_v22  ;;  %v1012_v58 = vrot.slane %v1011_v16, 4  ;;  %v703_v49 = vmul.f32 1.442695, %v596_v25 }
  0xed   :  { %5275 = vrcp.f32 %v1003_v18  ;;  %v405_v47 = vmax.f32 %v403_v56, %v404_v2  ;;  %v423_v40 = vrot.slane %v422_v32, 2  ;;  %v415_v35 = vmax.f32 %v413_v13, %v414_v14 }
  0xee   :  { %7931 = vst [vmem:[#allocation33_spill] sm:$0xff] %v6250_v6  ;;  %1562 = vperm.xlu1 %5110, %v6250_v6   ;;  %v1023_v21 = vrot.slane %v1022_v31, 1  ;;  %v1013_v44 = vadd.f32 %v1012_v58, %v1011_v16  ;;  %5277 = vpow2.f32 %v703_v49  ;;  %v434_v43 = vsel %vm104_vm0, %v6247_v61, -inf }
  0xef   :  { %v595_v22 = vsub.f32 %v6196_v63, %v405_v47  ;;  %v424_v36 = vmax.f32 %v422_v32, %v423_v40  ;;  %v416_v57 = vrot.slane %v415_v35, 2  ;;  %v435_v48 = vrot.slane %v434_v43, 4 }
  0xf0   :  { %v6260_v30 = vpop.eup %5267  ;;  %v1024_v56 = vadd.f32 %v1023_v21, %v1022_v31  ;;  %v1014_v13 = vrot.slane %v1013_v44, 2  ;;  %v427_v8 = vsel %vm104_vm0, %v6252_v7, -inf  ;;  %v448_v25 = vsel %vm104_vm0, %v6254_v29, -inf }
  0xf1   :  { %v5270_v14 = vpop.eup %5269  ;;  %v1032_v17 = vsel %vm104_vm0, %v6260_v30, 0.0  ;;  %v701_v18 = vmul.f32 1.442695, %v595_v22  ;;  %v425_v16 = vrot.slane %v424_v36, 1  ;;  %v417_v63 = vmax.f32 %v415_v35, %v416_v57 }
  0xf2   :  { %v6268_v32 = vpop.eup %5271  ;;  %v6271_v2 = vmul.f32 %v5270_v14, %v6191_v23  ;;  %5279 = vrcp.f32 %v1024_v56  ;;  %v1015_v31 = vadd.f32 %v1014_v13, %v1013_v44  ;;  %v1033_v58 = vrot.slane %v1032_v17, 4 }
  0xf3   :  { %v1025_v49 = vsel %vm104_vm0, %v6268_v32, 0.0  ;;  %5281 = vpow2.f32 %v701_v18  ;;  %v426_v47 = vmax.f32 %v424_v36, %v425_v16  ;;  %v418_v40 = vrot.slane %v417_v63, 1 }
  0xf4   :  { %7932 = vst [vmem:[#allocation34_spill] sm:$0xff] %v6271_v2  ;;  %1557 = vperm.xlu0 %5109, %v6271_v2   ;;  %v1016_v21 = vrot.slane %v1015_v31, 1  ;;  %v1034_v22 = vadd.f32 %v1033_v58, %v1032_v17  ;;  %v1026_v6 = vrot.slane %v1025_v49, 4  ;;  %v436_v35 = vmax.f32 %v434_v43, %v435_v48  ;;  %v6287_v48 = vld [vmem:[#allocation5 + $0xc0] sm:$0xf] }
  0xf5   :  { %v5274_v57 = vpop.eup %5273  ;;  %v598_v10 = vsub.f32 %v6198_v33, %v426_v47  ;;  %v419_v23 = vmax.f32 %v417_v63, %v418_v40  ;;  %v428_v14 = vrot.slane %v427_v8, 4  ;;  %v449_v56 = vrot.slane %v448_v25, 4 }
  0xf6   :  { %v6278_v44 = vmul.f32 %v5274_v57, %v6210_v55  ;;  %v1017_v13 = vadd.f32 %v1016_v21, %v1015_v31  ;;  %v1035_v37 = vrot.slane %v1034_v22, 2  ;;  %v1027_v18 = vadd.f32 %v1026_v6, %v1025_v49 }
  0xf7   :  { %v5276_v36 = vpop.eup %5275  ;;  %v707_v16 = vmul.f32 1.442695, %v598_v10  ;;  %v597_v2 = vsub.f32 %v6235_v3, %v419_v23  ;;  %v437_v20 = vrot.slane %v436_v35, 2  ;;  %v429_v17 = vmax.f32 %v427_v8, %v428_v14 }
  0xf8   :  { %7933 = vst [vmem:[#allocation35_spill] sm:$0xff] %v6278_v44  ;;  %v6281_v58 = vpop.eup %5277  ;;  %1572 = vperm.xlu1 %5110, %v6278_v44   ;;  %v6285_v33 = vmul.f32 %v5276_v36, %v6214_v5  ;;  %5283 = vrcp.f32 %v1017_v13  ;;  %v1036_v43 = vadd.f32 %v1035_v37, %v1034_v22  ;;  %v1028_v55 = vrot.slane %v1027_v18, 2 }
  0xf9   :  { %v1046_v6 = vsel %vm104_vm0, %v6281_v58, 0.0  ;;  %5285 = vpow2.f32 %v707_v16  ;;  %v705_v10 = vmul.f32 1.442695, %v597_v2  ;;  %v438_v3 = vmax.f32 %v436_v35, %v437_v20 }
  0xfa   :  { %7934 = vst [vmem:[#allocation36_spill] sm:$0xff] %v6285_v33  ;;  %1567 = vperm.xlu0 %5109, %v6285_v33   ;;  %v1037_v8 = vrot.slane %v1036_v43, 1  ;;  %v1029_v63 = vadd.f32 %v1028_v55, %v1027_v18  ;;  %v1047_v31 = vrot.slane %v1046_v6, 4  ;;  %v430_v49 = vrot.slane %v429_v17, 2  ;;  %v6299_v18 = vld [vmem:[#allocation5 + $0xcc] sm:$0xf]  ;;  %v6427_v33 = vpop.permute.xlu0 %1387 }
  0xfb   :  { %5287 = vpow2.f32 %v705_v10  ;;  %v439_v5 = vrot.slane %v438_v3, 1  ;;  %v450_v47 = vmax.f32 %v448_v25, %v449_v56  ;;  %v441_v37 = vsel %vm104_vm0, %v6287_v48, -inf }
  0xfc   :  { %v5280_v40 = vpop.eup %5279  ;;  %v1038_v21 = vadd.f32 %v1037_v8, %v1036_v43  ;;  %v1030_v22 = vrot.slane %v1029_v63, 1  ;;  %v1048_v57 = vadd.f32 %v1047_v31, %v1046_v6  ;;  %v431_v23 = vmax.f32 %v429_v17, %v430_v49 }
  0xfd   :  { %v6294_v14 = vpop.eup %5281  ;;  %v6297_v20 = vmul.f32 %v5280_v40, %v6223_v59  ;;  %v440_v2 = vmax.f32 %v438_v3, %v439_v5  ;;  %v451_v35 = vrot.slane %v450_v47, 2  ;;  %v442_v13 = vrot.slane %v441_v37, 4  ;;  %v6305_v59 = vld [vmem:[#allocation5 + $0xc8] sm:$0xf] }
  0xfe   :  { %5289 = vrcp.f32 %v1038_v21  ;;  %v1031_v25 = vadd.f32 %v1030_v22, %v1029_v63  ;;  %v1049_v56 = vrot.slane %v1048_v57, 2  ;;  %v1039_v36 = vsel %vm104_vm0, %v6294_v14, 0.0 }
  0xff   :  { %7935 = vst [vmem:[#allocation37_spill] sm:$0xff] %v6297_v20  ;;  %1582 = vperm.xlu1 %5110, %v6297_v20   ;;  %v1040_v16 = vrot.slane %v1039_v36, 4  ;;  %v600_v17 = vsub.f32 %v6247_v61, %v440_v2  ;;  %v432_v43 = vrot.slane %v431_v23, 1  ;;  %v452_v55 = vmax.f32 %v450_v47, %v451_v35 }
 0x100   :  { %5291 = vrcp.f32 %v1031_v25  ;;  %v1050_v6 = vadd.f32 %v1049_v56, %v1048_v57  ;;  %v443_v10 = vmax.f32 %v441_v37, %v442_v13  ;;  %v462_v3 = vsel %vm104_vm0, %v6299_v18, -inf }
 0x101   :  { %v1041_v8 = vadd.f32 %v1040_v16, %v1039_v36  ;;  %v711_v63 = vmul.f32 1.442695, %v600_v17  ;;  %v433_v31 = vmax.f32 %v431_v23, %v432_v43  ;;  %v453_v49 = vrot.slane %v452_v55, 1 }
 0x102   :  { %v5284_v5 = vpop.eup %5283  ;;  %v1051_v40 = vrot.slane %v1050_v6, 1  ;;  %v444_v21 = vrot.slane %v443_v10, 2  ;;  %v463_v22 = vrot.slane %v462_v3, 4  ;;  %v455_v61 = vsel %vm104_vm0, %v6305_v59, -inf }
 0x103   :  { %v6311_v47 = vpop.eup %5285  ;;  %v6314_v2 = vmul.f32 %v5284_v5, %v6241_v24  ;;  %v1042_v37 = vrot.slane %v1041_v8, 2  ;;  %5293 = vpow2.f32 %v711_v63  ;;  %v599_v57 = vsub.f32 %v6252_v7, %v433_v31 }
 0x104   :  { %v1052_v35 = vadd.f32 %v1051_v40, %v1050_v6  ;;  %v1060_v23 = vsel %vm104_vm0, %v6311_v47, 0.0  ;;  %v454_v13 = vmax.f32 %v452_v55, %v453_v49  ;;  %v445_v25 = vmax.f32 %v443_v10, %v444_v21 }
 0x105   :  { %7936 = vst [vmem:[#allocation38_spill] sm:$0xff] %v6314_v2  ;;  %v6319_v56 = vpop.eup %5287  ;;  %1577 = vperm.xlu0 %5109, %v6314_v2   ;;  %v1043_v36 = vadd.f32 %v1042_v37, %v1041_v8  ;;  %v1061_v16 = vrot.slane %v1060_v23, 4  ;;  %v709_v17 = vmul.f32 1.442695, %v599_v57  ;;  %v464_v43 = vmax.f32 %v462_v3, %v463_v22  ;;  %v6328_v57 = vld [vmem:[#allocation5 + $0xd4] sm:$0xf] }
 0x106   :  { %5295 = vrcp.f32 %v1052_v35  ;;  %v1053_v24 = vsel %vm104_vm0, %v6319_v56, 0.0  ;;  %v602_v7 = vsub.f32 %v6254_v29, %v454_v13  ;;  %v446_v6 = vrot.slane %v445_v25, 1 }
 0x107   :  { %v1044_v63 = vrot.slane %v1043_v36, 1  ;;  %v1062_v31 = vadd.f32 %v1061_v16, %v1060_v23  ;;  %v1054_v5 = vrot.slane %v1053_v24, 4  ;;  %5297 = vpow2.f32 %v709_v17  ;;  %v6331_v16 = vld [vmem:[#allocation5 + $0xd0] sm:$0xf] }
 0x108   :  { %v5290_v55 = vpop.eup %5289  ;;  %v715_v10 = vmul.f32 1.442695, %v602_v7  ;;  %v447_v49 = vmax.f32 %v445_v25, %v446_v6  ;;  %v465_v40 = vrot.slane %v464_v43, 2  ;;  %v456_v21 = vrot.slane %v455_v61, 4 }
 0x109   :  { %v6326_v8 = vmul.f32 %v5290_v55, %v6260_v30  ;;  %v1045_v3 = vadd.f32 %v1044_v63, %v1043_v36  ;;  %v1063_v22 = vrot.slane %v1062_v31, 2  ;;  %v1055_v37 = vadd.f32 %v1054_v5, %v1053_v24  ;;  %v6344_v5 = vld [vmem:[#allocation5 + $0xdc] sm:$0xf] }
 0x10a   :  { %v5292_v35 = vpop.eup %5291  ;;  %5299 = vpow2.f32 %v715_v10  ;;  %v601_v29 = vsub.f32 %v6287_v48, %v447_v49  ;;  %v466_v23 = vmax.f32 %v464_v43, %v465_v40  ;;  %v457_v13 = vmax.f32 %v455_v61, %v456_v21 }
 0x10b   :  { %7937 = vst [vmem:[#allocation39_spill] sm:$0xff] %v6326_v8  ;;  %1592 = vperm.xlu1 %5110, %v6326_v8   ;;  %v6335_v25 = vmul.f32 %v5292_v35, %v6268_v32  ;;  %5301 = vrcp.f32 %v1045_v3  ;;  %v1064_v30 = vadd.f32 %v1063_v22, %v1062_v31  ;;  %v1056_v36 = vrot.slane %v1055_v37, 2 }
 0x10c   :  { %v713_v17 = vmul.f32 1.442695, %v601_v29  ;;  %v467_v24 = vrot.slane %v466_v23, 1  ;;  %v458_v7 = vrot.slane %v457_v13, 2  ;;  %v476_v6 = vsel %vm104_vm0, %v6328_v57, -inf }
 0x10d   :  { %7938 = vst [vmem:[#allocation40_spill] sm:$0xff] %v6335_v25  ;;  %v6339_v63 = vpop.eup %5293  ;;  %1587 = vperm.xlu0 %5109, %v6335_v25   ;;  %v1065_v48 = vrot.slane %v1064_v30, 1  ;;  %v1057_v61 = vadd.f32 %v1056_v36, %v1055_v37  ;;  %v477_v43 = vrot.slane %v476_v6, 4  ;;  %v469_v32 = vsel %vm104_vm0, %v6331_v16, -inf }
 0x10e   :  { %v1074_v31 = vsel %vm104_vm0, %v6339_v63, 0.0  ;;  %5303 = vpow2.f32 %v713_v17  ;;  %v468_v55 = vmax.f32 %v466_v23, %v467_v24  ;;  %v459_v10 = vmax.f32 %v457_v13, %v458_v7 }
 0x10f   :  { %v1066_v49 = vadd.f32 %v1065_v48, %v1064_v30  ;;  %v1058_v40 = vrot.slane %v1057_v61, 1  ;;  %v1075_v21 = vrot.slane %v1074_v31, 4  ;;  %v478_v3 = vmax.f32 %v476_v6, %v477_v43 }
 0x110   :  { %v5296_v22 = vpop.eup %5295  ;;  %v604_v35 = vsub.f32 %v6299_v18, %v468_v55  ;;  %v460_v37 = vrot.slane %v459_v10, 1  ;;  %v470_v29 = vrot.slane %v469_v32, 4  ;;  %v490_v36 = vsel %vm104_vm0, %v6344_v5, -inf }
 0x111   :  { %v6351_v8 = vpop.eup %5297  ;;  %v6354_v20 = vmul.f32 %v5296_v22, %v6281_v58  ;;  %5305 = vrcp.f32 %v1066_v49  ;;  %v1059_v23 = vadd.f32 %v1058_v40, %v1057_v61  ;;  %v1076_v13 = vadd.f32 %v1075_v21, %v1074_v31  ;;  %v6364_v22 = vld [vmem:[#allocation5 + $0xd8] sm:$0xf] }
 0x112   :  { %v1067_v30 = vsel %vm104_vm0, %v6351_v8, 0.0  ;;  %v719_v17 = vmul.f32 1.442695, %v604_v35  ;;  %v461_v24 = vmax.f32 %v459_v10, %v460_v37  ;;  %v479_v7 = vrot.slane %v478_v3, 2 }
 0x113   :  { %7939 = vst [vmem:[#allocation41_spill] sm:$0xff] %v6354_v20  ;;  %1602 = vperm.xlu1 %5110, %v6354_v20   ;;  %5307 = vrcp.f32 %v1059_v23  ;;  %v1077_v18 = vrot.slane %v1076_v13, 2  ;;  %v1068_v6 = vrot.slane %v1067_v30, 4  ;;  %v471_v48 = vmax.f32 %v469_v32, %v470_v29 }
 0x114   :  { %v6359_v43 = vpop.eup %5299  ;;  %5309 = vpow2.f32 %v719_v17  ;;  %v603_v58 = vsub.f32 %v6305_v59, %v461_v24  ;;  %v480_v55 = vmax.f32 %v478_v3, %v479_v7  ;;  %v491_v61 = vrot.slane %v490_v36, 4 }
 0x115   :  { %v5302_v31 = vpop.eup %5301  ;;  %v1078_v49 = vadd.f32 %v1077_v18, %v1076_v13  ;;  %v1069_v40 = vadd.f32 %v1068_v6, %v1067_v30  ;;  %v1088_v10 = vsel %vm104_vm0, %v6359_v43, 0.0  ;;  %v472_v21 = vrot.slane %v471_v48, 2 }
 0x116   :  { %v6367_v35 = vmul.f32 %v5302_v31, %v6294_v14  ;;  %v1089_v32 = vrot.slane %v1088_v10, 4  ;;  %v717_v37 = vmul.f32 1.442695, %v603_v58  ;;  %v481_v29 = vrot.slane %v480_v55, 1 }
 0x117   :  { %v1079_v23 = vrot.slane %v1078_v49, 1  ;;  %v1070_v17 = vrot.slane %v1069_v40, 2  ;;  %v473_v59 = vmax.f32 %v471_v48, %v472_v21  ;;  %v492_v3 = vmax.f32 %v490_v36, %v491_v61 }
 0x118   :  { %7940 = vst [vmem:[#allocation42_spill] sm:$0xff] %v6367_v35  ;;  %v6369_v24 = vpop.eup %5303  ;;  %1597 = vperm.xlu0 %5109, %v6367_v35   ;;  %v1090_v13 = vadd.f32 %v1089_v32, %v1088_v10  ;;  %5311 = vpow2.f32 %v717_v37  ;;  %v482_v30 = vmax.f32 %v480_v55, %v481_v29  ;;  %v483_v7 = vsel %vm104_vm0, %v6364_v22, -inf }
 0x119   :  { %v1080_v18 = vadd.f32 %v1079_v23, %v1078_v49  ;;  %v1071_v14 = vadd.f32 %v1070_v17, %v1069_v40  ;;  %v1081_v6 = vsel %vm104_vm0, %v6369_v24, 0.0  ;;  %v474_v58 = vrot.slane %v473_v59, 1 }
 0x11a   :  { %v1091_v31 = vrot.slane %v1090_v13, 2  ;;  %v1082_v20 = vrot.slane %v1081_v6, 4  ;;  %v606_v36 = vsub.f32 %v6328_v57, %v482_v30  ;;  %v493_v48 = vrot.slane %v492_v3, 2 }
 0x11b   :  { %v5306_v61 = vpop.eup %5305  ;;  %5313 = vrcp.f32 %v1080_v18  ;;  %v1072_v21 = vrot.slane %v1071_v14, 1  ;;  %v475_v10 = vmax.f32 %v473_v59, %v474_v58  ;;  %v484_v32 = vrot.slane %v483_v7, 4 }
 0x11c   :  { %v6378_v55 = vmul.f32 %v5306_v61, %v6311_v47  ;;  %v1092_v37 = vadd.f32 %v1091_v31, %v1090_v13  ;;  %v1083_v49 = vadd.f32 %v1082_v20, %v1081_v6  ;;  %v723_v40 = vmul.f32 1.442695, %v606_v36  ;;  %v6387_v47 = vld [vmem:[#allocation5 + $0xe4] sm:$0xf]  ;;  %v6389_v20 = vld [vmem:[#allocation5 + $0xe0] sm:$0xf] }
 0x11d   :  { %v5308_v29 = vpop.eup %5307  ;;  %v1073_v23 = vadd.f32 %v1072_v21, %v1071_v14  ;;  %v605_v17 = vsub.f32 %v6331_v16, %v475_v10  ;;  %v494_v35 = vmax.f32 %v492_v3, %v493_v48  ;;  %v485_v25 = vmax.f32 %v483_v7, %v484_v32  ;;  %v6400_v10 = vld [vmem:[#allocation5 + $0xec] sm:$0xf] }
 0x11e   :  { %7941 = vst [vmem:[#allocation43_spill] sm:$0xff] %v6378_v55  ;;  %v6381_v44 = vpop.eup %5309  ;;  %1612 = vperm.xlu1 %5110, %v6378_v55   ;;  %v6385_v57 = vmul.f32 %v5308_v29, %v6319_v56  ;;  %v1093_v59 = vrot.slane %v1092_v37, 1  ;;  %v1084_v30 = vrot.slane %v1083_v49, 2  ;;  %5315 = vpow2.f32 %v723_v40 }
 0x11f   :  { %5317 = vrcp.f32 %v1073_v23  ;;  %v1102_v16 = vsel %vm104_vm0, %v6381_v44, 0.0  ;;  %v721_v3 = vmul.f32 1.442695, %v605_v17  ;;  %v495_v13 = vrot.slane %v494_v35, 1 }
 0x120   :  { %7942 = vst [vmem:[#allocation44_spill] sm:$0xff] %v6385_v57  ;;  %1607 = vperm.xlu0 %5109, %v6385_v57   ;;  %v1094_v7 = vadd.f32 %v1093_v59, %v1092_v37  ;;  %v1085_v18 = vadd.f32 %v1084_v30, %v1083_v49  ;;  %v1103_v14 = vrot.slane %v1102_v16, 4  ;;  %v486_v56 = vrot.slane %v485_v25, 2 }
 0x121   :  { %5319 = vpow2.f32 %v721_v3  ;;  %v496_v6 = vmax.f32 %v494_v35, %v495_v13  ;;  %v504_v58 = vsel %vm104_vm0, %v6387_v47, -inf  ;;  %v497_v31 = vsel %vm104_vm0, %v6389_v20, -inf }
 0x122   :  { %v6398_v36 = vpop.eup %5311  ;;  %5321 = vrcp.f32 %v1094_v7  ;;  %v1086_v48 = vrot.slane %v1085_v18, 1  ;;  %v1104_v61 = vadd.f32 %v1103_v14, %v1102_v16  ;;  %v487_v21 = vmax.f32 %v485_v25, %v486_v56  ;;  %v6407_v16 = vld [vmem:[#allocation5 + $0xe8] sm:$0xf] }
 0x123   :  { %v1095_v32 = vsel %vm104_vm0, %v6398_v36, 0.0  ;;  %v608_v37 = vsub.f32 %v6344_v5, %v496_v6  ;;  %v505_v35 = vrot.slane %v504_v58, 4  ;;  %v498_v49 = vrot.slane %v497_v31, 4 }
 0x124   :  { %v1087_v40 = vadd.f32 %v1086_v48, %v1085_v18  ;;  %v1105_v29 = vrot.slane %v1104_v61, 2  ;;  %v1096_v23 = vrot.slane %v1095_v32, 4  ;;  %v488_v17 = vrot.slane %v487_v21, 1 }
 0x125   :  { %v5314_v59 = vpop.eup %5313  ;;  %v727_v30 = vmul.f32 1.442695, %v608_v37  ;;  %v506_v3 = vmax.f32 %v504_v58, %v505_v35  ;;  %v499_v13 = vmax.f32 %v497_v31, %v498_v49  ;;  %v518_v25 = vsel %vm104_vm0, %v6400_v10, -inf  ;;  %v6417_v49 = vpop.permute.xlu1 %1397 }
 0x126   :  { %v6410_v7 = vmul.f32 %v5314_v59, %v6339_v63  ;;  %5323 = vrcp.f32 %v1087_v40  ;;  %v1106_v5 = vadd.f32 %v1105_v29, %v1104_v61  ;;  %v1097_v14 = vadd.f32 %v1096_v23, %v1095_v32 }
 0x127   :  { %5325 = vpow2.f32 %v727_v30  ;;  %v489_v18 = vmax.f32 %v487_v21, %v488_v17  ;;  %v507_v56 = vrot.slane %v506_v3, 2  ;;  %v500_v6 = vrot.slane %v499_v13, 2 }
 0x128   :  { %7943 = vst [vmem:[#allocation45_spill] sm:$0xff] %v6410_v7  ;;  %v6412_v48 = vpop.eup %5315  ;;  %1622 = vperm.xlu1 %5110, %v6410_v7   ;;  %v1107_v58 = vrot.slane %v1106_v5, 1  ;;  %v1098_v31 = vrot.slane %v1097_v14, 2  ;;  %v519_v37 = vrot.slane %v518_v25, 4  ;;  %v511_v35 = vsel %vm104_vm0, %v6407_v16, -inf }
 0x129   :  { %v5318_v63 = vpop.eup %5317  ;;  %v1116_v61 = vsel %vm104_vm0, %v6412_v48, 0.0  ;;  %v607_v21 = vsub.f32 %v6364_v22, %v489_v18  ;;  %v508_v32 = vmax.f32 %v506_v3, %v507_v56  ;;  %v501_v40 = vmax.f32 %v499_v13, %v500_v6  ;;  %v6432_v13 = vld [vmem:[#allocation5 + $0xf4] sm:$0xf] }
 0x12a   :  { %v6423_v29 = vmul.f32 %v5318_v63, %v6351_v8  ;;  %v1108_v23 = vadd.f32 %v1107_v58, %v1106_v5  ;;  %v1099_v17 = vadd.f32 %v1098_v31, %v1097_v14  ;;  %v1117_v59 = vrot.slane %v1116_v61, 4  ;;  %v6437_v31 = vpop.permute.xlu1 %1402 }
 0x12b   :  { %v6425_v30 = vpop.eup %5319  ;;  %v725_v7 = vmul.f32 1.442695, %v607_v21  ;;  %v509_v55 = vrot.slane %v508_v32, 1  ;;  %v502_v57 = vrot.slane %v501_v40, 1  ;;  %v520_v2 = vmax.f32 %v518_v25, %v519_v37 }
 0x12c   :  { %7944 = vst [vmem:[#allocation46_spill] sm:$0xff] %v6423_v29  ;;  %v5322_v46 = vpop.eup %5321  ;;  %1617 = vperm.xlu0 %5109, %v6423_v29   ;;  %5327 = vrcp.f32 %v1108_v23  ;;  %v1100_v22 = vrot.slane %v1099_v17, 1  ;;  %v1118_v3 = vadd.f32 %v1117_v59, %v1116_v61  ;;  %v1109_v8 = vsel %vm104_vm0, %v6425_v30, 0.0  ;;  %v6449_v59 = vld [vmem:[#allocation5 + $0xf0] sm:$0xf] }
 0x12d   :  { %v6435_v5 = vmul.f32 %v5322_v46, %v6359_v43  ;;  %v1110_v14 = vrot.slane %v1109_v8, 4  ;;  %5329 = vpow2.f32 %v725_v7  ;;  %v510_v18 = vmax.f32 %v508_v32, %v509_v55 }
 0x12e   :  { %v1101_v25 = vadd.f32 %v1100_v22, %v1099_v17  ;;  %v1119_v56 = vrot.slane %v1118_v3, 2  ;;  %v503_v6 = vmax.f32 %v501_v40, %v502_v57  ;;  %v521_v58 = vrot.slane %v520_v2, 2 }
 0x12f   :  { %7945 = vst [vmem:[#allocation47_spill] sm:$0xff] %v6435_v5  ;;  %1632 = vperm.xlu1 %5110, %v6435_v5   ;;  %v1111_v37 = vadd.f32 %v1110_v14, %v1109_v8  ;;  %v610_v63 = vsub.f32 %v6387_v47, %v510_v18  ;;  %v512_v61 = vrot.slane %v511_v35, 4  ;;  %v532_v21 = vsel %vm104_vm0, %v6432_v13, -inf  ;;  %v6451_v47 = vpop.permute.xlu0 %1392 }
 0x130   :  { %v5324_v46 = vpop.eup %5323  ;;  %5331 = vrcp.f32 %v1101_v25  ;;  %v1120_v43 = vadd.f32 %v1119_v56, %v1118_v3  ;;  %v609_v55 = vsub.f32 %v6389_v20, %v503_v6  ;;  %v522_v7 = vmax.f32 %v520_v2, %v521_v58  ;;  %v6456_v56 = vpop.permute.xlu1 %1412 }
 0x131   :  { %v6444_v32 = vpop.eup %5325  ;;  %v6447_v57 = vmul.f32 %v5324_v46, %v6369_v24  ;;  %v1112_v40 = vrot.slane %v1111_v37, 2  ;;  %v731_v23 = vmul.f32 1.442695, %v610_v63  ;;  %v513_v17 = vmax.f32 %v511_v35, %v512_v61 }
 0x132   :  { %v1121_v22 = vrot.slane %v1120_v43, 1  ;;  %v1130_v8 = vsel %vm104_vm0, %v6444_v32, 0.0  ;;  %v729_v3 = vmul.f32 1.442695, %v609_v55  ;;  %v523_v14 = vrot.slane %v522_v7, 1 }
 0x133   :  { %7946 = vst [vmem:[#allocation48_spill] sm:$0xff] %v6447_v57  ;;  %1627 = vperm.xlu0 %5109, %v6447_v57   ;;  %v1113_v2 = vadd.f32 %v1112_v40, %v1111_v37  ;;  %v1131_v20 = vrot.slane %v1130_v8, 4  ;;  %5333 = vpow2.f32 %v731_v23  ;;  %v514_v24 = vrot.slane %v513_v17, 2 }
 0x134   :  { %v1122_v18 = vadd.f32 %v1121_v22, %v1120_v43  ;;  %5335 = vpow2.f32 %v729_v3  ;;  %v524_v25 = vmax.f32 %v522_v7, %v523_v14  ;;  %v533_v35 = vrot.slane %v532_v21, 4  ;;  %v6466_v14 = vld [vmem:[#allocation5 + $0xfc] sm:$0xf]  ;;  %v6477_v5 = vpop.permute.xlu1 %1422 }
 0x135   :  { %v1114_v6 = vrot.slane %v1113_v2, 1  ;;  %v1132_v58 = vadd.f32 %v1131_v20, %v1130_v8  ;;  %v515_v63 = vmax.f32 %v513_v17, %v514_v24  ;;  %v525_v61 = vsel %vm104_vm0, %v6449_v59, -inf  ;;  %v6468_v17 = vpop.permute.xlu0 %1407 }
 0x136   :  { %v5328_v46 = vpop.eup %5327  ;;  %5337 = vrcp.f32 %v1122_v18  ;;  %v612_v55 = vsub.f32 %v6400_v10, %v524_v25  ;;  %v534_v37 = vmax.f32 %v532_v21, %v533_v35  ;;  %v526_v40 = vrot.slane %v525_v61, 4  ;;  %v6473_v25 = vld [vmem:[#allocation5 + $0xf8] sm:$0xf] }
 0x137   :  { %v6461_v23 = vpop.eup %5329  ;;  %v6464_v43 = vmul.f32 %v5328_v46, %v6381_v44  ;;  %v1115_v7 = vadd.f32 %v1114_v6, %v1113_v2  ;;  %v1133_v22 = vrot.slane %v1132_v58, 2  ;;  %v516_v3 = vrot.slane %v515_v63, 1 }
 0x138   :  { %v1123_v8 = vsel %vm104_vm0, %v6461_v23, 0.0  ;;  %v735_v20 = vmul.f32 1.442695, %v612_v55  ;;  %v535_v24 = vrot.slane %v534_v37, 2  ;;  %v527_v10 = vmax.f32 %v525_v61, %v526_v40  ;;  %v6497_v0 = vpop.permute.xlu1 %1432 }
 0x139   :  { %7947 = vst [vmem:[#allocation49_spill] sm:$0xff] %v6464_v43  ;;  %1642 = vperm.xlu1 %5110, %v6464_v43   ;;  %5339 = vrcp.f32 %v1115_v7  ;;  %v1134_v21 = vadd.f32 %v1133_v22, %v1132_v58  ;;  %v1124_v18 = vrot.slane %v1123_v8, 4  ;;  %v517_v44 = vmax.f32 %v515_v63, %v516_v3 }
 0x13a   :  { %v5332_v2 = vpop.eup %5331  ;;  %5341 = vpow2.f32 %v735_v20  ;;  %v536_v35 = vmax.f32 %v534_v37, %v535_v24  ;;  %v528_v6 = vrot.slane %v527_v10, 2  ;;  %v546_v46 = vsel %vm104_vm0, %v6466_v14, -inf }
 0x13b   :  { %v6480_v55 = vmul.f32 %v5332_v2, %v6398_v36  ;;  %v1135_v61 = vrot.slane %v1134_v21, 1  ;;  %v1125_v40 = vadd.f32 %v1124_v18, %v1123_v8  ;;  %v611_v58 = vsub.f32 %v6407_v16, %v517_v44  ;;  %v6488_v36 = vpop.permute.xlu0 %1417 }
 0x13c   :  { %v537_v7 = vrot.slane %v536_v35, 1  ;;  %v529_v63 = vmax.f32 %v527_v10, %v528_v6  ;;  %v547_v22 = vrot.slane %v546_v46, 4  ;;  %v539_v3 = vsel %vm104_vm0, %v6473_v25, -inf }
 0x13d   :  { %7948 = vst [vmem:[#allocation50_spill] sm:$0xff] %v6480_v55  ;;  %v6485_v37 = vpop.eup %5333  ;;  %1637 = vperm.xlu0 %5109, %v6480_v55   ;;  %v1136_v20 = vadd.f32 %v1135_v61, %v1134_v21  ;;  %v1126_v24 = vrot.slane %v1125_v40, 2  ;;  %v733_v43 = vmul.f32 1.442695, %v611_v58  ;;  %v540_v57 = vrot.slane %v539_v3, 4 }
 0x13e   :  { %v6490_v2 = vpop.eup %5335  ;;  %v1144_v16 = vsel %vm104_vm0, %v6485_v37, 0.0  ;;  %v538_v8 = vmax.f32 %v536_v35, %v537_v7  ;;  %v530_v10 = vrot.slane %v529_v63, 1  ;;  %v548_v18 = vmax.f32 %v546_v46, %v547_v22 }
 0x13f   :  { %5343 = vrcp.f32 %v1136_v20  ;;  %v1127_v44 = vadd.f32 %v1126_v24, %v1125_v40  ;;  %v1145_v6 = vrot.slane %v1144_v16, 4  ;;  %v1137_v55 = vsel %vm104_vm0, %v6490_v2, 0.0 }
 0x140   :  { %v5338_v21 = vpop.eup %5337  ;;  %v1138_v61 = vrot.slane %v1137_v55, 4  ;;  %5345 = vpow2.f32 %v733_v43  ;;  %v614_v58 = vsub.f32 %v6432_v13, %v538_v8  ;;  %v531_v29 = vmax.f32 %v529_v63, %v530_v10  ;;  %v1323_v63 = vld [vmem:[#allocation2 + $0x8] sm:$0xf]  ;;  %v6504_v8 = vpop.permute.xlu0 %1427 }
 0x141   :  { %v6500_v51 = vmul.f32 %v5338_v21, %v6412_v48  ;;  %v1128_v35 = vrot.slane %v1127_v44, 1  ;;  %v1146_v7 = vadd.f32 %v1145_v6, %v1144_v16  ;;  %v549_v46 = vrot.slane %v548_v18, 2  ;;  %v6514_v21 = vpop.permute.xlu1 %1442 }
 0x142   :  { %v1139_v22 = vadd.f32 %v1138_v61, %v1137_v55  ;;  %v739_v40 = vmul.f32 1.442695, %v614_v58  ;;  %v613_v20 = vsub.f32 %v6449_v59, %v531_v29  ;;  %v541_v24 = vmax.f32 %v539_v3, %v540_v57  ;;  %v1321_v29 = vld [vmem:[#allocation2] sm:$0xf] }
 0x143   :  { %7949 = vst [vmem:[#allocation51_spill] sm:$0xff] %v6500_v51  ;;  %v5340_v38 = vpop.eup %5339  ;;  %1652 = vperm.xlu1 %5110, %v6500_v51   ;;  %v1129_v43 = vadd.f32 %v1128_v35, %v1127_v44  ;;  %v1147_v1 = vrot.slane %v1146_v7, 2  ;;  %v550_v13 = vmax.f32 %v548_v18, %v549_v46  ;;  %v1707_v61 = vmul.f32 %v6417_v49, %v1323_v63 }
 0x144   :  { %v6506_v48 = vpop.eup %5341  ;;  %v6509_v16 = vmul.f32 %v5340_v38, %v6425_v30  ;;  %v1140_v55 = vrot.slane %v1139_v22, 2  ;;  %5347 = vpow2.f32 %v739_v40  ;;  %v737_v10 = vmul.f32 1.442695, %v613_v20 }
 0x145   :  { %5349 = vrcp.f32 %v1129_v43  ;;  %v1148_v57 = vadd.f32 %v1147_v1, %v1146_v7  ;;  %v1158_v59 = vsel %vm104_vm0, %v6506_v48, 0.0  ;;  %v551_v3 = vrot.slane %v550_v13, 1 }
 0x146   :  { %7950 = vst [vmem:[#allocation52_spill] sm:$0xff] %v6509_v16  ;;  %1647 = vperm.xlu0 %5109, %v6509_v16   ;;  %v1141_v18 = vadd.f32 %v1140_v55, %v1139_v22  ;;  %v1159_v44 = vrot.slane %v1158_v59, 4  ;;  %5351 = vpow2.f32 %v737_v10  ;;  %v542_v6 = vrot.slane %v541_v24, 2  ;;  %v6521_v55 = vpop.permute.xlu0 %1437 }
 0x147   :  { %v1149_v38 = vrot.slane %v1148_v57, 1  ;;  %v552_v30 = vmax.f32 %v550_v13, %v551_v3  ;;  %v1705_v58 = vmul.f32 %v6427_v33, %v1321_v29  ;;  %v1784_v22 = vsel %vm1769_vm1, %v1707_v61, 0.0  ;;  %v1324_v29 = vld [vmem:[#allocation2 + $0xc] sm:$0xf] }
 0x148   :  { %v1142_v35 = vrot.slane %v1141_v18, 1  ;;  %v1160_v1 = vadd.f32 %v1159_v44, %v1158_v59  ;;  %v543_v7 = vmax.f32 %v541_v24, %v542_v6  ;;  %v6531_v6 = vpop.permute.xlu1 %1452  ;;  %vm2288_vm5 = vcmask 1044484  }
 0x149   :  { %v5344_v46 = vpop.eup %5343  ;;  %v1150_v40 = vadd.f32 %v1149_v38, %v1148_v57  ;;  %v616_v20 = vsub.f32 %v6466_v14, %v552_v30  ;;  %v1770_v43 = vsel %vm1769_vm1, %v1705_v58, 0.0  ;;  %v1785_v57 = vrot.slane %v1784_v22, 4 }
 0x14a   :  { %v6523_v10 = vpop.eup %5345  ;;  %v6526_v13 = vmul.f32 %v5344_v46, %v6444_v32  ;;  %v1143_v49 = vadd.f32 %v1142_v35, %v1141_v18  ;;  %v1161_v33 = vrot.slane %v1160_v1, 2  ;;  %v544_v63 = vrot.slane %v543_v7, 1 }
 0x14b   :  { %5353 = vrcp.f32 %v1150_v40  ;;  %v1151_v24 = vsel %vm104_vm0, %v6523_v10, 0.0  ;;  %v743_v14 = vmul.f32 1.442695, %v616_v20  ;;  %v1786_v32 = vadd.f32 %v1785_v57, %v1784_v22 }
 0x14c   :  { %7951 = vst [vmem:[#allocation53_spill] sm:$0xff] %v6526_v13  ;;  %1662 = vperm.xlu1 %5110, %v6526_v13   ;;  %5355 = vrcp.f32 %v1143_v49  ;;  %v1162_v59 = vadd.f32 %v1161_v33, %v1160_v1  ;;  %v1152_v3 = vrot.slane %v1151_v24, 4  ;;  %v545_v44 = vmax.f32 %v543_v7, %v544_v63  ;;  %v6540_v49 = vpop.permute.xlu0 %1447 }
 0x14d   :  { %5357 = vpow2.f32 %v743_v14  ;;  %v1771_v18 = vrot.slane %v1770_v43, 4  ;;  %v1708_v38 = vmul.f32 %v6437_v31, %v1324_v29  ;;  %v1787_v1 = vrot.slane %v1786_v32, 2 }
 0x14e   :  { %v6534_v30 = vpop.eup %5347  ;;  %v1163_v61 = vrot.slane %v1162_v59, 1  ;;  %v1153_v58 = vadd.f32 %v1152_v3, %v1151_v24  ;;  %v615_v35 = vsub.f32 %v6473_v25, %v545_v44  ;;  %v1322_v44 = vld [vmem:[#allocation2 + $0x4] sm:$0xf]  ;;  %vm2290_vm6 = vcmask 1045509  }
 0x14f   :  { %v5350_v46 = vpop.eup %5349  ;;  %v1172_v40 = vsel %vm104_vm0, %v6534_v30, 0.0  ;;  %v1772_v20 = vadd.f32 %v1771_v18, %v1770_v43  ;;  %v1791_v7 = vsel %vm1769_vm1, %v1708_v38, 0.0  ;;  %v1788_v14 = vadd.f32 %v1787_v1, %v1786_v32  ;;  %v6550_v18 = vpop.permute.xlu1 %1462 }
 0x150   :  { %v6542_v22 = vpop.eup %5351  ;;  %v6545_v31 = vmul.f32 %v5350_v46, %v6461_v23  ;;  %v1164_v33 = vadd.f32 %v1163_v61, %v1162_v59  ;;  %v1154_v63 = vrot.slane %v1153_v58, 2  ;;  %v1173_v29 = vrot.slane %v1172_v40, 4 }
 0x151   :  { %v1165_v25 = vsel %vm104_vm0, %v6542_v22, 0.0  ;;  %v741_v24 = vmul.f32 1.442695, %v615_v35  ;;  %v1773_v23 = vrot.slane %v1772_v20, 2  ;;  %v1792_v38 = vrot.slane %v1791_v7, 4  ;;  %v6553_v35 = vpop.permute.xlu0 %1457 }
 0x152   :  { %7952 = vst [vmem:[#allocation54_spill] sm:$0xff] %v6545_v31  ;;  %1657 = vperm.xlu0 %5109, %v6545_v31   ;;  %5359 = vrcp.f32 %v1164_v33  ;;  %v1155_v43 = vadd.f32 %v1154_v63, %v1153_v58  ;;  %v1174_v57 = vadd.f32 %v1173_v29, %v1172_v40  ;;  %v1166_v3 = vrot.slane %v1165_v25, 4  ;;  %v1326_v29 = vld [vmem:[#allocation2 + $0x14] sm:$0xf] }
 0x153   :  { %5361 = vpow2.f32 %v741_v24  ;;  %v1789_v51 = vrot.slane %v1788_v14, 1  ;;  %v1793_v16 = vadd.f32 %v1792_v38, %v1791_v7  ;;  %v1706_v32 = vmul.f32 %v6451_v47, %v1322_v44 }
 0x154   :  { %v1156_v59 = vrot.slane %v1155_v43, 1  ;;  %v1175_v61 = vrot.slane %v1174_v57, 2  ;;  %v1167_v46 = vadd.f32 %v1166_v3, %v1165_v25  ;;  %v1774_v25 = vadd.f32 %v1773_v23, %v1772_v20  ;;  %v1325_v23 = vld [vmem:[#allocation2 + $0x10] sm:$0xf] }
 0x155   :  { %v5354_v13 = vpop.eup %5353  ;;  %v1794_v3 = vrot.slane %v1793_v16, 2  ;;  %v1777_v7 = vsel %vm1769_vm1, %v1706_v32, 0.0  ;;  %v1710_v20 = vmul.f32 %v6456_v56, %v1326_v29  ;;  %vm2292_vm7 = vcmask 1046534  }
 0x156   :  { %v5356_v1 = vpop.eup %5355  ;;  %v6556_v58 = vmul.f32 %v5354_v13, %v6485_v37  ;;  %v1157_v40 = vadd.f32 %v1156_v59, %v1155_v43  ;;  %v1176_v33 = vadd.f32 %v1175_v61, %v1174_v57  ;;  %v1168_v63 = vrot.slane %v1167_v46, 2  ;;  %v6567_v13 = vpop.permute.xlu1 %1472 }
 0x157   :  { %v6558_v24 = vpop.eup %5357  ;;  %v6561_v31 = vmul.f32 %v5356_v1, %v6490_v2  ;;  %v1795_v57 = vadd.f32 %v1794_v3, %v1793_v16  ;;  %v1778_v2 = vrot.slane %v1777_v7, 4  ;;  %v1790_v61 = vadd.f32 %v1789_v51, %v1788_v14 }
 0x158   :  { %7953 = vst [vmem:[#allocation55_spill] sm:$0xff] %v6556_v58  ;;  %1672 = vperm.xlu1 %5110, %v6556_v58   ;;  %5363 = vrcp.f32 %v1157_v40  ;;  %v1177_v47 = vrot.slane %v1176_v33, 1  ;;  %v1169_v44 = vadd.f32 %v1168_v63, %v1167_v46  ;;  %v1186_v37 = vsel %vm104_vm0, %v6558_v24, 0.0  ;;  %v6572_v63 = vpop.permute.xlu0 %1467 }
 0x159   :  { %7954 = vst [vmem:[#allocation56_spill] sm:$0xff] %v6561_v31  ;;  %1667 = vperm.xlu0 %5109, %v6561_v31   ;;  %v1187_v43 = vrot.slane %v1186_v37, 4  ;;  %v1775_v1 = vrot.slane %v1774_v25, 1  ;;  %v1779_v46 = vadd.f32 %v1778_v2, %v1777_v7  ;;  %v1805_v40 = vsel %vm1769_vm1, %v1710_v20, 0.0 }
 0x15a   :  { %v1178_v38 = vadd.f32 %v1177_v47, %v1176_v33  ;;  %v1170_v59 = vrot.slane %v1169_v44, 1  ;;  %v1806_v16 = vrot.slane %v1805_v40, 4  ;;  %v1709_v3 = vmul.f32 %v6468_v17, %v1325_v23  ;;  %v1328_v47 = vld [vmem:[#allocation2 + $0x1c] sm:$0xf] }
 0x15b   :  { %v1188_v32 = vadd.f32 %v1187_v43, %v1186_v37  ;;  %v1796_v14 = vrot.slane %v1795_v57, 1  ;;  %v1780_v29 = vrot.slane %v1779_v46, 2  ;;  %vm2294_vm8 = vcmask 1047559  }
 0x15c   :  { %v5360_v58 = vpop.eup %5359  ;;  %5365 = vrcp.f32 %v1178_v38  ;;  %v1171_v31 = vadd.f32 %v1170_v59, %v1169_v44  ;;  %v1807_v37 = vadd.f32 %v1806_v16, %v1805_v40  ;;  %v1798_v43 = vsel %vm1769_vm1, %v1709_v3, 0.0  ;;  %v6583_v44 = vpop.permute.xlu1 %1482  ;;  %v1327_v16 = vld [vmem:[#allocation2 + $0x18] sm:$0xf] }
 0x15d   :  { %v6575_v56 = vpop.eup %5361  ;;  %v6578_v33 = vmul.f32 %v5360_v58, %v6506_v48  ;;  %v1189_v51 = vrot.slane %v1188_v32, 2  ;;  %v1781_v20 = vadd.f32 %v1780_v29, %v1779_v46  ;;  %v1799_v48 = vrot.slane %v1798_v43, 4  ;;  %v6587_v3 = vpop.permute.xlu0 %1477  ;;  %v1330_v46 = vld [vmem:[#allocation2 + $0x24] sm:$0xf] }
 0x15e   :  { %5367 = vrcp.f32 %v1171_v31  ;;  %v1179_v7 = vsel %vm104_vm0, %v6575_v56, 0.0  ;;  %v1776_v58 = vadd.f32 %v1775_v1, %v1774_v25  ;;  %v1808_v23 = vrot.slane %v1807_v37, 2 }
 0x15f   :  { %7955 = vst [vmem:[#allocation57_spill] sm:$0xff] %v6578_v33  ;;  %1682 = vperm.xlu1 %5110, %v6578_v33   ;;  %v1190_v17 = vadd.f32 %v1189_v51, %v1188_v32  ;;  %v1180_v2 = vrot.slane %v1179_v7, 4  ;;  %v1712_v38 = vmul.f32 %v6477_v5, %v1328_v47  ;;  %v1782_v11 = vrot.slane %v1781_v20, 1 }
 0x160   :  { %v1800_v40 = vadd.f32 %v1799_v48, %v1798_v43  ;;  %v1797_v15 = vadd.f32 %v1796_v14, %v1795_v57  ;;  %v1809_v33 = vadd.f32 %v1808_v23, %v1807_v37  ;;  %v1711_v43 = vmul.f32 %v6488_v36, %v1327_v16  ;;  %v1329_v48 = vld [vmem:[#allocation2 + $0x20] sm:$0xf] }
 0x161   :  { %v1191_v31 = vrot.slane %v1190_v17, 1  ;;  %v1181_v59 = vadd.f32 %v1180_v2, %v1179_v7  ;;  %v1819_v32 = vsel %vm1769_vm1, %v1712_v38, 0.0  ;;  %v1783_v51 = vadd.f32 %v1782_v11, %v1781_v20  ;;  %v6594_v2 = vpop.permute.xlu1 %1492  ;;  %v6605_v16 = vpop.permute.xlu0 %1487 }
 0x162   :  { %v5364_v34 = vpop.eup %5363  ;;  %v1810_v29 = vrot.slane %v1809_v33, 1  ;;  %v1801_v47 = vrot.slane %v1800_v40, 2  ;;  %v1820_v7 = vrot.slane %v1819_v32, 4  ;;  %v1714_v37 = vmul.f32 %v6497_v0, %v1330_v46 }
 0x163   :  { %v6591_v25 = vmul.f32 %v5364_v34, %v6523_v10  ;;  %v1192_v1 = vadd.f32 %v1191_v31, %v1190_v17  ;;  %v1182_v5 = vrot.slane %v1181_v59, 2  ;;  %v2283_v14 = vsel %vm2282_vm2, %v1783_v51, %v1776_v58 }
 0x164   :  { %v2285_v10 = vsel %vm2284_vm3, %v1790_v61, %v2283_v14  ;;  %v1811_v17 = vadd.f32 %v1810_v29, %v1809_v33  ;;  %v1802_v11 = vadd.f32 %v1801_v47, %v1800_v40  ;;  %v1821_v20 = vadd.f32 %v1820_v7, %v1819_v32  ;;  %v1331_v33 = vld [vmem:[#allocation2 + $0x28] sm:$0xf]  ;;  %v1334_v14 = vld [vmem:[#allocation2 + $0x34] sm:$0xf] }
 0x165   :  { %7956 = vst [vmem:[#allocation58_spill] sm:$0xff] %v6591_v25  ;;  %1677 = vperm.xlu0 %5109, %v6591_v25   ;;  %5369 = vrcp.f32 %v1192_v1  ;;  %v1183_v57 = vadd.f32 %v1182_v5, %v1181_v59  ;;  %v2287_v38 = vsel %vm2286_vm4, %v1797_v15, %v2285_v10  ;;  %v1812_v31 = vsel %vm1769_vm1, %v1711_v43, 0.0  ;;  %v1332_v59 = vld [vmem:[#allocation2 + $0x2c] sm:$0xf]  ;;  %v6614_v7 = vpop.permute.xlu1 %1502 }
 0x166   :  { %v5366_v34 = vpop.eup %5365  ;;  %v1803_v0 = vrot.slane %v1802_v11, 1  ;;  %v1822_v46 = vrot.slane %v1821_v20, 2  ;;  %v1813_v1 = vrot.slane %v1812_v31, 4  ;;  %v1833_v61 = vsel %vm1769_vm1, %v1714_v37, 0.0 }
 0x167   :  { %v6601_v23 = vmul.f32 %v5366_v34, %v6534_v30  ;;  %v1184_v36 = vrot.slane %v1183_v57, 1  ;;  %v1834_v15 = vrot.slane %v1833_v61, 4  ;;  %v1713_v32 = vmul.f32 %v6504_v8, %v1329_v48 }
 0x168   :  { %v5368_v58 = vpop.eup %5367  ;;  %v1804_v5 = vadd.f32 %v1803_v0, %v1802_v11  ;;  %v1823_v51 = vadd.f32 %v1822_v46, %v1821_v20  ;;  %v1814_v29 = vadd.f32 %v1813_v1, %v1812_v31  ;;  %v1716_v47 = vmul.f32 %v6514_v21, %v1332_v59  ;;  %v1333_v11 = vld [vmem:[#allocation2 + $0x30] sm:$0xf]  ;;  %v6623_v31 = vpop.permute.xlu0 %1497 }
 0x169   :  { %7957 = vst [vmem:[#allocation59_spill] sm:$0xff] %v6601_v23  ;;  %1692 = vperm.xlu1 %5110, %v6601_v23   ;;  %v6610_v30 = vmul.f32 %v5368_v58, %v6542_v22  ;;  %v1185_v40 = vadd.f32 %v1184_v36, %v1183_v57  ;;  %vm2353_vm9 = vcmask 64512   ;;  %v1835_v43 = vadd.f32 %v1834_v15, %v1833_v61 }
 0x16a   :  { %v1826_v22 = vsel %vm1769_vm1, %v1713_v32, 0.0  ;;  %v1715_v57 = vmul.f32 %v6521_v55, %v1331_v33  ;;  %v2289_v8 = vsel %vm2288_vm5, %v1804_v5, %v2287_v38  ;;  %v1824_v37 = vrot.slane %v1823_v51, 1  ;;  %v1336_v5 = vld [vmem:[#allocation2 + $0x3c] sm:$0xf] }
 0x16b   :  { %7958 = vst [vmem:[#allocation60_spill] sm:$0xff] %v6610_v30  ;;  %1687 = vperm.xlu0 %5109, %v6610_v30   ;;  %5371 = vrcp.f32 %v1185_v40  ;;  %v1815_v34 = vrot.slane %v1814_v29, 2  ;;  %v1827_v10 = vrot.slane %v1826_v22, 4  ;;  %v2291_v21 = vsel %vm2290_vm6, %v1811_v17, %v2289_v8 }
 0x16c   :  { %v1836_v20 = vrot.slane %v1835_v43, 2  ;;  %v1847_v48 = vsel %vm1769_vm1, %v1716_v47, 0.0  ;;  %v1840_v36 = vsel %vm1769_vm1, %v1715_v57, 0.0  ;;  %v1825_v59 = vadd.f32 %v1824_v37, %v1823_v51  ;;  %v6630_v47 = vpop.permute.xlu1 %1512 }
 0x16d   :  { %v1816_v58 = vadd.f32 %v1815_v34, %v1814_v29  ;;  %v1828_v0 = vadd.f32 %v1827_v10, %v1826_v22  ;;  %v1848_v55 = vrot.slane %v1847_v48, 4  ;;  %v1841_v38 = vrot.slane %v1840_v36, 4  ;;  %v6636_v10 = vpop.permute.xlu0 %1507 }
 0x16e   :  { %v1837_v1 = vadd.f32 %v1836_v20, %v1835_v43  ;;  %v1718_v61 = vmul.f32 %v6531_v6, %v1334_v14  ;;  %v1717_v33 = vmul.f32 %v6540_v49, %v1333_v11  ;;  %v1720_v34 = vmul.f32 %v6550_v18, %v1336_v5 }
 0x16f   :  { %v5370_v46 = vpop.eup %5369  ;;  %v1817_v40 = vrot.slane %v1816_v58, 1  ;;  %v1829_v15 = vrot.slane %v1828_v0, 2  ;;  %v1849_v32 = vadd.f32 %v1848_v55, %v1847_v48  ;;  %v1842_v29 = vadd.f32 %v1841_v38, %v1840_v36  ;;  %v1335_v55 = vld [vmem:[#allocation2 + $0x38] sm:$0xf] }
 0x170   :  { %v6628_v17 = vmul.f32 %v5370_v46, %v6558_v24  ;;  %v1838_v51 = vrot.slane %v1837_v1, 1  ;;  %v1861_v22 = vsel %vm1769_vm1, %v1718_v61, 0.0  ;;  %v1854_v43 = vsel %vm1769_vm1, %v1717_v33, 0.0 }
 0x171   :  { %v1818_v6 = vadd.f32 %v1817_v40, %v1816_v58  ;;  %v1830_v57 = vadd.f32 %v1829_v15, %v1828_v0  ;;  %v1850_v49 = vrot.slane %v1849_v32, 2  ;;  %v1862_v14 = vrot.slane %v1861_v22, 4 }
 0x172   :  { %1702 = vperm.xlu1 %5110, %v6628_v17   ;;  %v1839_v24 = vadd.f32 %v1838_v51, %v1837_v1  ;;  %v1843_v8 = vrot.slane %v1842_v29, 2  ;;  %v1855_v37 = vrot.slane %v1854_v43, 4  ;;  %v1875_v61 = vsel %vm1769_vm1, %v1720_v34, 0.0  ;;  %v1338_v1 = vld [vmem:[#allocation2 + $0x44] sm:$0xf] }
 0x173   :  { %v2293_v11 = vsel %vm2292_vm7, %v1818_v6, %v2291_v21  ;;  %v1831_v20 = vrot.slane %v1830_v57, 1  ;;  %v1851_v48 = vadd.f32 %v1850_v49, %v1849_v32  ;;  %v1863_v36 = vadd.f32 %v1862_v14, %v1861_v22  ;;  %v6645_v32 = vpop.permute.xlu1 %1522  ;;  %v1337_v22 = vld [vmem:[#allocation2 + $0x40] sm:$0xf]  ;;  %v1340_v34 = vld [vmem:[#allocation2 + $0x4c] sm:$0xf] }
 0x174   :  { %v2295_v38 = vsel %vm2294_vm8, %v1825_v59, %v2293_v11  ;;  %v1844_v58 = vadd.f32 %v1843_v8, %v1842_v29  ;;  %v1856_v0 = vadd.f32 %v1855_v37, %v1854_v43  ;;  %v5640_v18 = vmov 1   ;;  %v6653_v11 = vpop.permute.xlu0 %1517 }
 0x175   :  { %v5372_v46 = vpop.eup %5371  ;;  %2354 = vst.msk [vmem:[#allocation7] sm:$0xff] %vm2353_vm9, %v2295_v38  ;;  %v1832_v21 = vadd.f32 %v1831_v20, %v1830_v57  ;;  %v1852_v40 = vrot.slane %v1851_v48, 1  ;;  %v1864_v15 = vrot.slane %v1863_v36, 2  ;;  %v1876_v51 = vrot.slane %v1875_v61, 4  ;;  %v1339_v38 = vld [vmem:[#allocation2 + $0x48] sm:$0xf] }
 0x176   :  { %v6642_v33 = vmul.f32 %v5372_v46, %v6575_v56  ;;  %5112 = vset.pattern.permute.xlu1 %v5640_v18  ;;  %v1845_v59 = vrot.slane %v1844_v58, 1  ;;  %v1857_v5 = vrot.slane %v1856_v0, 2  ;;  %v1719_v29 = vmul.f32 %v6553_v35, %v1335_v55 }
 0x177   :  { %2367 = vperm.xlu1 %5112, %v5848_v54   ;;  %v2296_v56 = vsel %vm2282_vm2, %v1839_v24, %v1832_v21  ;;  %v1853_v43 = vadd.f32 %v1852_v40, %v1851_v48  ;;  %v1865_v6 = vadd.f32 %v1864_v15, %v1863_v36  ;;  %v1722_v57 = vmul.f32 %v6567_v13, %v1338_v1  ;;  %v6661_v40 = vpop.permute.xlu1 %1532 }
 0x178   :  { %1697 = vperm.xlu0 %5109, %v6642_v33   ;;  %v1846_v49 = vadd.f32 %v1845_v59, %v1844_v58  ;;  %v1858_v14 = vadd.f32 %v1857_v5, %v1856_v0  ;;  %v1877_v8 = vadd.f32 %v1876_v51, %v1875_v61  ;;  %v1868_v37 = vsel %vm1769_vm1, %v1719_v29, 0.0  ;;  %v1342_v58 = vld [vmem:[#allocation2 + $0x54] sm:$0xf] }
 0x179   :  { %v1866_v20 = vrot.slane %v1865_v6, 1  ;;  %v1869_v46 = vrot.slane %v1868_v37, 4  ;;  %v1889_v35 = vsel %vm1769_vm1, %v1722_v57, 0.0  ;;  %v1721_v55 = vmul.f32 %v6572_v63, %v1337_v22 }
 0x17a   :  { %v2297_v24 = vsel %vm2284_vm3, %v1846_v49, %v2296_v56  ;;  %v1859_v13 = vrot.slane %v1858_v14, 1  ;;  %v1878_v48 = vrot.slane %v1877_v8, 2  ;;  %v1890_v36 = vrot.slane %v1889_v35, 4  ;;  %v1341_v49 = vld [vmem:[#allocation2 + $0x50] sm:$0xf] }
 0x17b   :  { %2371 = vperm.xlu1 %5112, %v5832_v42   ;;  %v1867_v0 = vadd.f32 %v1866_v20, %v1865_v6  ;;  %v2298_v61 = vsel %vm2286_vm4, %v1853_v43, %v2297_v24  ;;  %v1870_v1 = vadd.f32 %v1869_v46, %v1868_v37  ;;  %v1882_v21 = vsel %vm1769_vm1, %v1721_v55, 0.0  ;;  %v6669_v37 = vpop.permute.xlu0 %1527 }
 0x17c   :  { %5111 = vset.pattern.permute.xlu0 %v5640_v18  ;;  %v1860_v63 = vadd.f32 %v1859_v13, %v1858_v14  ;;  %v1879_v15 = vadd.f32 %v1878_v48, %v1877_v8  ;;  %v1891_v59 = vadd.f32 %v1890_v36, %v1889_v35  ;;  %v1883_v5 = vrot.slane %v1882_v21, 4  ;;  %v1344_v35 = vld [vmem:[#allocation2 + $0x5c] sm:$0xf]  ;;  %v6677_v48 = vpop.permute.xlu1 %1542 }
 0x17d   :  { %2363 = vperm.xlu0 %5111, %v5840_v52   ;;  %v1871_v51 = vrot.slane %v1870_v1, 2  ;;  %v1724_v29 = vmul.f32 %v6583_v44, %v1340_v34  ;;  %v1723_v22 = vmul.f32 %v6587_v3, %v1339_v38  ;;  %v1726_v18 = vmul.f32 %v6594_v2, %v1342_v58 }
 0x17e   :  { %v2299_v56 = vsel %vm2288_vm5, %v1860_v63, %v2298_v61  ;;  %v1880_v43 = vrot.slane %v1879_v15, 1  ;;  %v1892_v6 = vrot.slane %v1891_v59, 2  ;;  %v1884_v57 = vadd.f32 %v1883_v5, %v1882_v21 }
 0x17f   :  { %2379 = vperm.xlu1 %5112, %v5858_v19   ;;  %v2300_v14 = vsel %vm2290_vm6, %v1867_v0, %v2299_v56  ;;  %v1872_v8 = vadd.f32 %v1871_v51, %v1870_v1  ;;  %v1903_v20 = vsel %vm1769_vm1, %v1724_v29, 0.0  ;;  %v1896_v44 = vsel %vm1769_vm1, %v1723_v22, 0.0  ;;  %v1343_v29 = vld [vmem:[#allocation2 + $0x58] sm:$0xf]  ;;  %v6683_v22 = vpop.permute.xlu0 %1537 }
 0x180   :  { %v1881_v3 = vadd.f32 %v1880_v43, %v1879_v15  ;;  %v1893_v2 = vadd.f32 %v1892_v6, %v1891_v59  ;;  %v1885_v34 = vrot.slane %v1884_v57, 2  ;;  %v1904_v46 = vrot.slane %v1903_v20, 4 }
 0x181   :  { %2375 = vperm.xlu0 %5111, %v5844_v50   ;;  %v1873_v55 = vrot.slane %v1872_v8, 1  ;;  %v1897_v38 = vrot.slane %v1896_v44, 4  ;;  %v1917_v24 = vsel %vm1769_vm1, %v1726_v18, 0.0  ;;  %v1725_v13 = vmul.f32 %v6605_v16, %v1341_v49 }
 0x182   :  { %v1894_v36 = vrot.slane %v1893_v2, 1  ;;  %v1886_v58 = vadd.f32 %v1885_v34, %v1884_v57  ;;  %v1905_v0 = vadd.f32 %v1904_v46, %v1903_v20  ;;  %v1918_v61 = vrot.slane %v1917_v24, 4  ;;  %v1346_v57 = vld [vmem:[#allocation2 + $0x64] sm:$0xf] }
 0x183   :  { %2387 = vperm.xlu1 %5112, %v5879_v12   ;;  %v1874_v1 = vadd.f32 %v1873_v55, %v1872_v8  ;;  %v1898_v21 = vadd.f32 %v1897_v38, %v1896_v44  ;;  %v1910_v63 = vsel %vm1769_vm1, %v1725_v13, 0.0  ;;  %v1728_v15 = vmul.f32 %v6614_v7, %v1344_v35 }
 0x184   :  { %v1895_v59 = vadd.f32 %v1894_v36, %v1893_v2  ;;  %v1887_v5 = vrot.slane %v1886_v58, 1  ;;  %v1906_v51 = vrot.slane %v1905_v0, 2  ;;  %v1919_v16 = vadd.f32 %v1918_v61, %v1917_v24  ;;  %v1345_v24 = vld [vmem:[#allocation2 + $0x60] sm:$0xf]  ;;  %v1348_v61 = vld [vmem:[#allocation2 + $0x6c] sm:$0xf] }
 0x185   :  { %2383 = vperm.xlu0 %5111, %v5855_v60   ;;  %v2301_v18 = vsel %vm2292_vm7, %v1874_v1, %v2300_v14  ;;  %v1899_v56 = vrot.slane %v1898_v21, 2  ;;  %v1911_v43 = vrot.slane %v1910_v63, 4  ;;  %v1931_v6 = vsel %vm1769_vm1, %v1728_v15, 0.0  ;;  %v6691_v14 = vpop.permute.xlu1 %1552  ;;  %v6699_v15 = vpop.permute.xlu0 %1547 }
 0x186   :  { %v2302_v7 = vsel %vm2294_vm8, %v1881_v3, %v2301_v18  ;;  %v1888_v49 = vadd.f32 %v1887_v5, %v1886_v58  ;;  %v1907_v8 = vadd.f32 %v1906_v51, %v1905_v0  ;;  %v1920_v20 = vrot.slane %v1919_v16, 2 }
 0x187   :  { %2395 = vperm.xlu1 %5112, %v5933_v9   ;;  %2355 = vst.msk [vmem:[#allocation7 + $0x8] sm:$0xff] %vm2353_vm9, %v2302_v7  ;;  %v1900_v44 = vadd.f32 %v1899_v56, %v1898_v21  ;;  %v1912_v2 = vadd.f32 %v1911_v43, %v1910_v63  ;;  %v1932_v34 = vrot.slane %v1931_v6, 4  ;;  %v1727_v46 = vmul.f32 %v6623_v31, %v1343_v29 }
 0x188   :  { %v2303_v35 = vsel %vm2282_vm2, %v1895_v59, %v1888_v49  ;;  %v1908_v55 = vrot.slane %v1907_v8, 1  ;;  %v1921_v38 = vadd.f32 %v1920_v20, %v1919_v16  ;;  %v1730_v3 = vmul.f32 %v6630_v47, %v1346_v57  ;;  %v1347_v49 = vld [vmem:[#allocation2 + $0x68] sm:$0xf] }
 0x189   :  { %2391 = vperm.xlu0 %5111, %v5865_v26   ;;  %v1901_v13 = vrot.slane %v1900_v44, 1  ;;  %v1913_v36 = vrot.slane %v1912_v2, 2  ;;  %v1933_v58 = vadd.f32 %v1932_v34, %v1931_v6  ;;  %v1924_v0 = vsel %vm1769_vm1, %v1727_v46, 0.0  ;;  %v6705_v20 = vpop.permute.xlu1 %1562 }
 0x18a   :  { %v1909_v31 = vadd.f32 %v1908_v55, %v1907_v8  ;;  %v1922_v1 = vrot.slane %v1921_v38, 1  ;;  %v1925_v21 = vrot.slane %v1924_v0, 4  ;;  %v1945_v63 = vsel %vm1769_vm1, %v1730_v3, 0.0  ;;  %v1350_v8 = vld [vmem:[#allocation2 + $0x74] sm:$0xf] }
 0x18b   :  { %2403 = vperm.xlu1 %5112, %v5947_v45   ;;  %v1902_v59 = vadd.f32 %v1901_v13, %v1900_v44  ;;  %v1914_v5 = vadd.f32 %v1913_v36, %v1912_v2  ;;  %v1934_v51 = vrot.slane %v1933_v58, 2  ;;  %v1946_v47 = vrot.slane %v1945_v63, 4  ;;  %v6714_v36 = vpop.permute.xlu0 %1557 }
 0x18c   :  { %v1923_v16 = vadd.f32 %v1922_v1, %v1921_v38  ;;  %v1926_v29 = vadd.f32 %v1925_v21, %v1924_v0  ;;  %v1729_v18 = vmul.f32 %v6636_v10, %v1345_v24  ;;  %v1732_v56 = vmul.f32 %v6645_v32, %v1348_v61  ;;  %v1349_v1 = vld [vmem:[#allocation2 + $0x70] sm:$0xf] }
 0x18d   :  { %2399 = vperm.xlu0 %5111, %v5928_v28   ;;  %v2304_v43 = vsel %vm2284_vm3, %v1902_v59, %v2303_v35  ;;  %v1915_v6 = vrot.slane %v1914_v5, 1  ;;  %v1935_v57 = vadd.f32 %v1934_v51, %v1933_v58  ;;  %v1947_v7 = vadd.f32 %v1946_v47, %v1945_v63  ;;  %v1352_v51 = vld [vmem:[#allocation2 + $0x7c] sm:$0xf] }
 0x18e   :  { %v2305_v44 = vsel %vm2286_vm4, %v1909_v31, %v2304_v43  ;;  %v1927_v2 = vrot.slane %v1926_v29, 2  ;;  %v1938_v34 = vsel %vm1769_vm1, %v1729_v18, 0.0  ;;  %v1959_v10 = vsel %vm1769_vm1, %v1732_v56, 0.0  ;;  %v6721_v18 = vpop.permute.xlu1 %1572 }
 0x18f   :  { %2411 = vperm.xlu1 %5112, %v5963_v4   ;;  %v1916_v46 = vadd.f32 %v1915_v6, %v1914_v5  ;;  %v1936_v32 = vrot.slane %v1935_v57, 1  ;;  %v1948_v55 = vrot.slane %v1947_v7, 2  ;;  %v1939_v35 = vrot.slane %v1938_v34, 4 }
 0x190   :  { %v1928_v38 = vadd.f32 %v1927_v2, %v1926_v29  ;;  %v1960_v3 = vrot.slane %v1959_v10, 4  ;;  %v1731_v24 = vmul.f32 %v6653_v11, %v1347_v49  ;;  %v1734_v13 = vmul.f32 %v6661_v40, %v1350_v8 }
 0x191   :  { %2407 = vperm.xlu0 %5111, %v5942_v53   ;;  %v2306_v58 = vsel %vm2288_vm5, %v1916_v46, %v2305_v44  ;;  %v1937_v0 = vadd.f32 %v1936_v32, %v1935_v57  ;;  %v1949_v61 = vadd.f32 %v1948_v55, %v1947_v7  ;;  %v1940_v31 = vadd.f32 %v1939_v35, %v1938_v34  ;;  %v1351_v44 = vld [vmem:[#allocation2 + $0x78] sm:$0xf]  ;;  %v6729_v32 = vpop.permute.xlu0 %1567 }
 0x192   :  { %v2307_v21 = vsel %vm2290_vm6, %v1923_v16, %v2306_v58  ;;  %v1929_v63 = vrot.slane %v1928_v38, 1  ;;  %v1961_v59 = vadd.f32 %v1960_v3, %v1959_v10  ;;  %v1952_v5 = vsel %vm1769_vm1, %v1731_v24, 0.0  ;;  %v1354_v3 = vld [vmem:[#allocation2 + $0x84] sm:$0xf] }
 0x193   :  { %2419 = vperm.xlu1 %5112, %v5989_v39   ;;  %v1950_v11 = vrot.slane %v1949_v61, 1  ;;  %v1941_v47 = vrot.slane %v1940_v31, 2  ;;  %v1953_v40 = vrot.slane %v1952_v5, 4  ;;  %v1973_v29 = vsel %vm1769_vm1, %v1734_v13, 0.0 }
 0x194   :  { %v1930_v56 = vadd.f32 %v1929_v63, %v1928_v38  ;;  %v1962_v43 = vrot.slane %v1961_v59, 2  ;;  %v1974_v6 = vrot.slane %v1973_v29, 4  ;;  %v1733_v57 = vmul.f32 %v6669_v37, %v1349_v1  ;;  %v1353_v63 = vld [vmem:[#allocation2 + $0x80] sm:$0xf] }
 0x195   :  { %2415 = vperm.xlu0 %5111, %v5957_v27   ;;  %v1951_v16 = vadd.f32 %v1950_v11, %v1949_v61  ;;  %v1942_v7 = vadd.f32 %v1941_v47, %v1940_v31  ;;  %v1954_v49 = vadd.f32 %v1953_v40, %v1952_v5  ;;  %v1736_v8 = vmul.f32 %v6677_v48, %v1352_v51 }
 0x196   :  { %v2308_v2 = vsel %vm2292_vm7, %v1930_v56, %v2307_v21  ;;  %v1963_v34 = vadd.f32 %v1962_v43, %v1961_v59  ;;  %v1975_v10 = vadd.f32 %v1974_v6, %v1973_v29  ;;  %v1966_v46 = vsel %vm1769_vm1, %v1733_v57, 0.0  ;;  %v7959_v59 = vld [vmem:[#allocation18_spill] sm:$0xff]  ;;  %v1356_v43 = vld [vmem:[#allocation2 + $0x8c] sm:$0xf] }
 0x197   :  { %2427 = vperm.xlu1 %5112, %v6016_v41   ;;  %v2309_v55 = vsel %vm2294_vm8, %v1937_v0, %v2308_v2  ;;  %v1943_v35 = vrot.slane %v1942_v7, 1  ;;  %v1955_v37 = vrot.slane %v1954_v49, 2  ;;  %v1967_v38 = vrot.slane %v1966_v46, 4  ;;  %v6736_v0 = vpop.permute.xlu1 %1582  ;;  %v7960_v6 = vld [vmem:[#allocation16_spill] sm:$0xff] }
 0x198   :  { %2356 = vst.msk [vmem:[#allocation7 + $0x10] sm:$0xff] %vm2353_vm9, %v2309_v55  ;;  %v1964_v48 = vrot.slane %v1963_v34, 1  ;;  %v1976_v24 = vrot.slane %v1975_v10, 2  ;;  %v1987_v13 = vsel %vm1769_vm1, %v1736_v8, 0.0  ;;  %v1735_v58 = vmul.f32 %v6683_v22, %v1351_v44  ;;  %v6745_v44 = vpop.permute.xlu0 %1577 }
 0x199   :  { %2423 = vperm.xlu0 %5111, %v5980_v62   ;;  %v1944_v61 = vadd.f32 %v1943_v35, %v1942_v7  ;;  %v1956_v31 = vadd.f32 %v1955_v37, %v1954_v49  ;;  %v1968_v1 = vadd.f32 %v1967_v38, %v1966_v46  ;;  %v1988_v21 = vrot.slane %v1987_v13, 4  ;;  %v7961_v46 = vld [vmem:[#allocation20_spill] sm:$0xff] }
 0x19a   :  { %v1965_v5 = vadd.f32 %v1964_v48, %v1963_v34  ;;  %v1977_v51 = vadd.f32 %v1976_v24, %v1975_v10  ;;  %v1980_v11 = vsel %vm1769_vm1, %v1735_v58, 0.0  ;;  %v1738_v47 = vmul.f32 %v6691_v14, %v1354_v3 }
 0x19b   :  { %2435 = vperm.xlu1 %5112, %v7959_v59   ;;  %v2310_v40 = vsel %vm2282_vm2, %v1951_v16, %v1944_v61  ;;  %v1957_v29 = vrot.slane %v1956_v31, 1  ;;  %v1969_v56 = vrot.slane %v1968_v1, 2  ;;  %v1989_v22 = vadd.f32 %v1988_v21, %v1987_v13  ;;  %v1358_v13 = vld [vmem:[#allocation2 + $0x94] sm:$0xf]  ;;  %v6751_v58 = vpop.permute.xlu1 %1592 }
 0x19c   :  { %v1978_v57 = vrot.slane %v1977_v51, 1  ;;  %v1981_v7 = vrot.slane %v1980_v11, 4  ;;  %v2001_v49 = vsel %vm1769_vm1, %v1738_v47, 0.0  ;;  %v1737_v8 = vmul.f32 %v6699_v15, %v1353_v63  ;;  %v1355_v15 = vld [vmem:[#allocation2 + $0x88] sm:$0xf]  ;;  %v7962_v61 = vld [vmem:[#allocation17_spill] sm:$0xff] }
 0x19d   :  { %2431 = vperm.xlu0 %5111, %v7960_v6   ;;  %v1958_v2 = vadd.f32 %v1957_v29, %v1956_v31  ;;  %v1970_v34 = vadd.f32 %v1969_v56, %v1968_v1  ;;  %v1990_v10 = vrot.slane %v1989_v22, 2  ;;  %v2002_v14 = vrot.slane %v2001_v49, 4 }
 0x19e   :  { %v1979_v16 = vadd.f32 %v1978_v57, %v1977_v51  ;;  %v1982_v55 = vadd.f32 %v1981_v7, %v1980_v11  ;;  %v1994_v35 = vsel %vm1769_vm1, %v1737_v8, 0.0  ;;  %v1740_v37 = vmul.f32 %v6705_v20, %v1356_v43  ;;  %v6759_v57 = vpop.permute.xlu0 %1587 }
 0x19f   :  { %2443 = vperm.xlu1 %5112, %v7961_v46   ;;  %v2311_v38 = vsel %vm2284_vm3, %v1958_v2, %v2310_v40  ;;  %v1971_v3 = vrot.slane %v1970_v34, 1  ;;  %v1991_v48 = vadd.f32 %v1990_v10, %v1989_v22  ;;  %v2003_v24 = vadd.f32 %v2002_v14, %v2001_v49  ;;  %v7963_v40 = vld [vmem:[#allocation22_spill] sm:$0xff]  ;;  %v1357_v2 = vld [vmem:[#allocation2 + $0x90] sm:$0xf] }
 0x1a0   :  { %v2312_v31 = vsel %vm2286_vm4, %v1965_v5, %v2311_v38  ;;  %v1983_v1 = vrot.slane %v1982_v55, 2  ;;  %v1995_v21 = vrot.slane %v1994_v35, 4  ;;  %v2015_v63 = vsel %vm1769_vm1, %v1740_v37, 0.0 }
 0x1a1   :  { %2439 = vperm.xlu0 %5111, %v7962_v61   ;;  %v1972_v51 = vadd.f32 %v1971_v3, %v1970_v34  ;;  %v1992_v11 = vrot.slane %v1991_v48, 1  ;;  %v2004_v20 = vrot.slane %v2003_v24, 2  ;;  %v2016_v47 = vrot.slane %v2015_v63, 4  ;;  %v7964_v34 = vld [vmem:[#allocation19_spill] sm:$0xff] }
 0x1a2   :  { %v1984_v29 = vadd.f32 %v1983_v1, %v1982_v55  ;;  %v1996_v56 = vadd.f32 %v1995_v21, %v1994_v35  ;;  %v1739_v22 = vmul.f32 %v6714_v36, %v1355_v15  ;;  %v1742_v43 = vmul.f32 %v6721_v18, %v1358_v13  ;;  %v1360_v35 = vld [vmem:[#allocation2 + $0x9c] sm:$0xf]  ;;  %v1603_v15 = vpop.permute.xlu1 %1602  ;;  %v7965_v13 = vld [vmem:[#allocation24_spill] sm:$0xff] }
 0x1a3   :  { %2451 = vperm.xlu1 %5112, %v7963_v40   ;;  %v2313_v5 = vsel %vm2288_vm5, %v1972_v51, %v2312_v31  ;;  %v1993_v7 = vadd.f32 %v1992_v11, %v1991_v48  ;;  %v2005_v49 = vadd.f32 %v2004_v20, %v2003_v24  ;;  %v2017_v8 = vadd.f32 %v2016_v47, %v2015_v63  ;;  %v1359_v11 = vld [vmem:[#allocation2 + $0x98] sm:$0xf]  ;;  %v7966_v20 = vld [vmem:[#allocation21_spill] sm:$0xff] }
 0x1a4   :  { %v2314_v10 = vsel %vm2290_vm6, %v1979_v16, %v2313_v5  ;;  %v1985_v14 = vrot.slane %v1984_v29, 1  ;;  %v1997_v37 = vrot.slane %v1996_v56, 2  ;;  %v2008_v55 = vsel %vm1769_vm1, %v1739_v22, 0.0 }
 0x1a5   :  { %2447 = vperm.xlu0 %5111, %v7964_v34   ;;  %v2006_v36 = vrot.slane %v2005_v49, 1  ;;  %v2018_v38 = vrot.slane %v2017_v8, 2  ;;  %v2009_v18 = vrot.slane %v2008_v55, 4  ;;  %v2029_v3 = vsel %vm1769_vm1, %v1742_v43, 0.0 }
 0x1a6   :  { %v1986_v48 = vadd.f32 %v1985_v14, %v1984_v29  ;;  %v1998_v24 = vadd.f32 %v1997_v37, %v1996_v56  ;;  %v2030_v31 = vrot.slane %v2029_v3, 4  ;;  %v1741_v1 = vmul.f32 %v6729_v32, %v1357_v2 }
 0x1a7   :  { %2459 = vperm.xlu1 %5112, %v7965_v13   ;;  %v2007_v21 = vadd.f32 %v2006_v36, %v2005_v49  ;;  %v2019_v16 = vadd.f32 %v2018_v38, %v2017_v8  ;;  %v2010_v63 = vadd.f32 %v2009_v18, %v2008_v55  ;;  %v1744_v51 = vmul.f32 %v6736_v0, %v1360_v35  ;;  %v1598_v13 = vpop.permute.xlu0 %1597  ;;  %v1362_v49 = vld [vmem:[#allocation2 + $0xa4] sm:$0xf]  ;;  %v7967_v8 = vld [vmem:[#allocation26_spill] sm:$0xff]  ;;  %v1361_v18 = vld [vmem:[#allocation2 + $0xa0] sm:$0xf] }
 0x1a8   :  { %v2315_v47 = vsel %vm2292_vm7, %v1986_v48, %v2314_v10  ;;  %v1999_v22 = vrot.slane %v1998_v24, 1  ;;  %v2031_v43 = vadd.f32 %v2030_v31, %v2029_v3  ;;  %v2022_v5 = vsel %vm1769_vm1, %v1741_v1, 0.0  ;;  %v1613_v3 = vpop.permute.xlu1 %1612  ;;  %v7968_v48 = vld [vmem:[#allocation23_spill] sm:$0xff] }
 0x1a9   :  { %2455 = vperm.xlu0 %5111, %v7966_v20   ;;  %v2316_v29 = vsel %vm2294_vm8, %v1993_v7, %v2315_v47  ;;  %v2020_v56 = vrot.slane %v2019_v16, 1  ;;  %v2011_v14 = vrot.slane %v2010_v63, 2  ;;  %v2023_v32 = vrot.slane %v2022_v5, 4  ;;  %v1364_v7 = vld [vmem:[#allocation2 + $0xac] sm:$0xf] }
 0x1aa   :  { %2357 = vst.msk [vmem:[#allocation7 + $0x18] sm:$0xff] %vm2353_vm9, %v2316_v29  ;;  %v2000_v0 = vadd.f32 %v1999_v22, %v1998_v24  ;;  %v2032_v2 = vrot.slane %v2031_v43, 2  ;;  %v2043_v37 = vsel %vm1769_vm1, %v1744_v51, 0.0  ;;  %v1743_v10 = vmul.f32 %v6745_v44, %v1359_v11 }
 0x1ab   :  { %2467 = vperm.xlu1 %5112, %v7967_v8   ;;  %v2021_v55 = vadd.f32 %v2020_v56, %v2019_v16  ;;  %v2012_v35 = vadd.f32 %v2011_v14, %v2010_v63  ;;  %v2024_v36 = vadd.f32 %v2023_v32, %v2022_v5  ;;  %v2044_v38 = vrot.slane %v2043_v37, 4  ;;  %v7969_v16 = vld [vmem:[#allocation28_spill] sm:$0xff]  ;;  %v1608_v14 = vpop.permute.xlu0 %1607 }
 0x1ac   :  { %v2317_v31 = vsel %vm2282_vm2, %v2007_v21, %v2000_v0  ;;  %v2033_v1 = vadd.f32 %v2032_v2, %v2031_v43  ;;  %v2036_v47 = vsel %vm1769_vm1, %v1743_v10, 0.0  ;;  %v1746_v24 = vmul.f32 %v6751_v58, %v1362_v49  ;;  %v7970_v2 = vld [vmem:[#allocation25_spill] sm:$0xff] }
 0x1ad   :  { %2463 = vperm.xlu0 %5111, %v7968_v48   ;;  %v2013_v22 = vrot.slane %v2012_v35, 1  ;;  %v2025_v51 = vrot.slane %v2024_v36, 2  ;;  %v2045_v29 = vadd.f32 %v2044_v38, %v2043_v37  ;;  %v2037_v44 = vrot.slane %v2036_v47, 4  ;;  %v1363_v38 = vld [vmem:[#allocation2 + $0xa8] sm:$0xf] }
 0x1ae   :  { %v2034_v63 = vrot.slane %v2033_v1, 1  ;;  %v2057_v11 = vsel %vm1769_vm1, %v1746_v24, 0.0  ;;  %v1745_v5 = vmul.f32 %v6759_v57, %v1361_v18  ;;  %v1748_v56 = vmul.f32 %v1603_v15, %v1364_v7  ;;  %v1366_v15 = vld [vmem:[#allocation2 + $0xb4] sm:$0xf]  ;;  %v1623_v18 = vpop.permute.xlu1 %1622 }
 0x1af   :  { %2475 = vperm.xlu1 %5112, %v7969_v16   ;;  %v2014_v32 = vadd.f32 %v2013_v22, %v2012_v35  ;;  %v2026_v21 = vadd.f32 %v2025_v51, %v2024_v36  ;;  %v2046_v43 = vrot.slane %v2045_v29, 2  ;;  %v2038_v0 = vadd.f32 %v2037_v44, %v2036_v47  ;;  %v7971_v35 = vld [vmem:[#allocation30_spill] sm:$0xff] }
 0x1b0   :  { %v2035_v58 = vadd.f32 %v2034_v63, %v2033_v1  ;;  %v2058_v49 = vrot.slane %v2057_v11, 4  ;;  %v2050_v37 = vsel %vm1769_vm1, %v1745_v5, 0.0  ;;  %v2071_v10 = vsel %vm1769_vm1, %v1748_v56, 0.0  ;;  %v7972_v5 = vld [vmem:[#allocation27_spill] sm:$0xff] }
 0x1b1   :  { %2471 = vperm.xlu0 %5111, %v7970_v2   ;;  %v2318_v16 = vsel %vm2284_vm3, %v2014_v32, %v2317_v31  ;;  %v2027_v24 = vrot.slane %v2026_v21, 1  ;;  %v2047_v8 = vadd.f32 %v2046_v43, %v2045_v29  ;;  %v2039_v57 = vrot.slane %v2038_v0, 2  ;;  %v1365_v43 = vld [vmem:[#allocation2 + $0xb0] sm:$0xf]  ;;  %v1618_v2 = vpop.permute.xlu0 %1617 }
 0x1b2   :  { %v2319_v36 = vsel %vm2286_vm4, %v2021_v55, %v2318_v16  ;;  %v2059_v7 = vadd.f32 %v2058_v49, %v2057_v11  ;;  %v2051_v47 = vrot.slane %v2050_v37, 4  ;;  %v2072_v1 = vrot.slane %v2071_v10, 4  ;;  %v7973_v16 = vld [vmem:[#allocation32_spill] sm:$0xff]  ;;  %v1368_v49 = vld [vmem:[#allocation2 + $0xbc] sm:$0xf] }
 0x1b3   :  { %2483 = vperm.xlu1 %5112, %v7971_v35   ;;  %v2028_v22 = vadd.f32 %v2027_v24, %v2026_v21  ;;  %v2048_v51 = vrot.slane %v2047_v8, 1  ;;  %v2040_v44 = vadd.f32 %v2039_v57, %v2038_v0  ;;  %v1747_v63 = vmul.f32 %v1598_v13, %v1363_v38  ;;  %v1633_v24 = vpop.permute.xlu1 %1632  ;;  %v7974_v57 = vld [vmem:[#allocation29_spill] sm:$0xff] }
 0x1b4   :  { %v2060_v56 = vrot.slane %v2059_v7, 2  ;;  %v2052_v31 = vadd.f32 %v2051_v47, %v2050_v37  ;;  %v2073_v32 = vadd.f32 %v2072_v1, %v2071_v10  ;;  %v1750_v29 = vmul.f32 %v1613_v3, %v1366_v15 }
 0x1b5   :  { %2479 = vperm.xlu0 %5111, %v7972_v5   ;;  %v2320_v48 = vsel %vm2288_vm5, %v2028_v22, %v2319_v36  ;;  %v2049_v35 = vadd.f32 %v2048_v51, %v2047_v8  ;;  %v2041_v20 = vrot.slane %v2040_v44, 1  ;;  %v2064_v55 = vsel %vm1769_vm1, %v1747_v63, 0.0  ;;  %v7975_v51 = vld [vmem:[#allocation34_spill] sm:$0xff] }
 0x1b6   :  { %v2321_v11 = vsel %vm2290_vm6, %v2035_v58, %v2320_v48  ;;  %v2061_v21 = vadd.f32 %v2060_v56, %v2059_v7  ;;  %v2053_v13 = vrot.slane %v2052_v31, 2  ;;  %v2074_v0 = vrot.slane %v2073_v32, 2  ;;  %v1367_v7 = vld [vmem:[#allocation2 + $0xb8] sm:$0xf]  ;;  %v1370_v56 = vld [vmem:[#allocation2 + $0xc4] sm:$0xf] }
 0x1b7   :  { %2491 = vperm.xlu1 %5112, %v7973_v16   ;;  %v2042_v38 = vadd.f32 %v2041_v20, %v2040_v44  ;;  %v2065_v37 = vrot.slane %v2064_v55, 4  ;;  %v2085_v3 = vsel %vm1769_vm1, %v1750_v29, 0.0  ;;  %v1749_v10 = vmul.f32 %v1608_v14, %v1365_v43  ;;  %v1628_v29 = vpop.permute.xlu0 %1627 }
 0x1b8   :  { %v2062_v8 = vrot.slane %v2061_v21, 1  ;;  %v2054_v15 = vadd.f32 %v2053_v13, %v2052_v31  ;;  %v2075_v36 = vadd.f32 %v2074_v0, %v2073_v32  ;;  %v2086_v47 = vrot.slane %v2085_v3, 4  ;;  %v7976_v13 = vld [vmem:[#allocation31_spill] sm:$0xff] }
 0x1b9   :  { %2487 = vperm.xlu0 %5111, %v7974_v57   ;;  %v2322_v1 = vsel %vm2292_vm7, %v2042_v38, %v2321_v11  ;;  %v2066_v22 = vadd.f32 %v2065_v37, %v2064_v55  ;;  %v2078_v48 = vsel %vm1769_vm1, %v1749_v10, 0.0  ;;  %v1752_v58 = vmul.f32 %v1623_v18, %v1368_v49  ;;  %v1369_v11 = vld [vmem:[#allocation2 + $0xc0] sm:$0xf] }
 0x1ba   :  { %v2323_v20 = vsel %vm2294_vm8, %v2049_v35, %v2322_v1  ;;  %v2063_v44 = vadd.f32 %v2062_v8, %v2061_v21  ;;  %v2055_v14 = vrot.slane %v2054_v15, 1  ;;  %v2076_v63 = vrot.slane %v2075_v36, 1  ;;  %v1372_v8 = vld [vmem:[#allocation2 + $0xcc] sm:$0xf]  ;;  %v1643_v1 = vpop.permute.xlu1 %1642 }
 0x1bb   :  { %2499 = vperm.xlu1 %5112, %v7975_v51   ;;  %2358 = vst.msk [vmem:[#allocation7 + $0x20] sm:$0xff] %vm2353_vm9, %v2323_v20  ;;  %v2067_v31 = vrot.slane %v2066_v22, 2  ;;  %v2087_v32 = vadd.f32 %v2086_v47, %v2085_v3  ;;  %v2079_v43 = vrot.slane %v2078_v48, 4  ;;  %v2099_v55 = vsel %vm1769_vm1, %v1752_v58, 0.0  ;;  %v7977_v51 = vld [vmem:[#allocation36_spill] sm:$0xff] }
 0x1bc   :  { %v2056_v18 = vadd.f32 %v2055_v14, %v2054_v15  ;;  %v2077_v0 = vadd.f32 %v2076_v63, %v2075_v36  ;;  %v2100_v49 = vrot.slane %v2099_v55, 4  ;;  %v1751_v38 = vmul.f32 %v1618_v2, %v1367_v7  ;;  %v7978_v14 = vld [vmem:[#allocation33_spill] sm:$0xff]  ;;  %v1638_v7 = vpop.permute.xlu0 %1637 }
 0x1bd   :  { %2495 = vperm.xlu0 %5111, %v7976_v13   ;;  %v2068_v35 = vadd.f32 %v2067_v31, %v2066_v22  ;;  %v2088_v21 = vrot.slane %v2087_v32, 2  ;;  %v2080_v37 = vadd.f32 %v2079_v43, %v2078_v48  ;;  %v1754_v10 = vmul.f32 %v1633_v24, %v1370_v56  ;;  %v7979_v43 = vld [vmem:[#allocation38_spill] sm:$0xff] }
 0x1be   :  { %v2324_v3 = vsel %vm2282_vm2, %v2063_v44, %v2056_v18  ;;  %v2101_v47 = vadd.f32 %v2100_v49, %v2099_v55  ;;  %v2092_v58 = vsel %vm1769_vm1, %v1751_v38, 0.0  ;;  %v1753_v20 = vmul.f32 %v1628_v29, %v1369_v11  ;;  %v1371_v18 = vld [vmem:[#allocation2 + $0xc8] sm:$0xf] }
 0x1bf   :  { %2507 = vperm.xlu1 %5112, %v7977_v51   ;;  %v2069_v16 = vrot.slane %v2068_v35, 1  ;;  %v2089_v13 = vadd.f32 %v2088_v21, %v2087_v32  ;;  %v2081_v15 = vrot.slane %v2080_v37, 2  ;;  %v2093_v36 = vrot.slane %v2092_v58, 4  ;;  %v1373_v51 = vld [vmem:[#allocation2 + $0xd0] sm:$0xf] }
 0x1c0   :  { %v2102_v2 = vrot.slane %v2101_v47, 2  ;;  %v2113_v22 = vsel %vm1769_vm1, %v1754_v10, 0.0  ;;  %v2106_v24 = vsel %vm1769_vm1, %v1753_v20, 0.0  ;;  %v1756_v48 = vmul.f32 %v1643_v1, %v1372_v8  ;;  %v1374_v10 = vld [vmem:[#allocation2 + $0xd4] sm:$0xf]  ;;  %v7980_v8 = vld [vmem:[#allocation35_spill] sm:$0xff] }
 0x1c1   :  { %2503 = vperm.xlu0 %5111, %v7978_v14   ;;  %v2070_v63 = vadd.f32 %v2069_v16, %v2068_v35  ;;  %v2090_v56 = vrot.slane %v2089_v13, 1  ;;  %v2082_v44 = vadd.f32 %v2081_v15, %v2080_v37  ;;  %v2094_v31 = vadd.f32 %v2093_v36, %v2092_v58 }
 0x1c2   :  { %v2103_v29 = vadd.f32 %v2102_v2, %v2101_v47  ;;  %v2114_v55 = vrot.slane %v2113_v22, 4  ;;  %v2107_v32 = vrot.slane %v2106_v24, 4  ;;  %v2127_v11 = vsel %vm1769_vm1, %v1756_v48, 0.0  ;;  %v1653_v20 = vpop.permute.xlu1 %1652  ;;  %v7981_v2 = vld [vmem:[#allocation40_spill] sm:$0xff] }
 0x1c3   :  { %2515 = vperm.xlu1 %5112, %v7979_v43   ;;  %v2325_v49 = vsel %vm2284_vm3, %v2070_v63, %v2324_v3  ;;  %v2083_v38 = vrot.slane %v2082_v44, 1  ;;  %v2095_v21 = vrot.slane %v2094_v31, 2  ;;  %v2091_v16 = vadd.f32 %v2090_v56, %v2089_v13 }
 0x1c4   :  { %v2104_v35 = vrot.slane %v2103_v29, 1  ;;  %v2115_v37 = vadd.f32 %v2114_v55, %v2113_v22  ;;  %v2108_v1 = vadd.f32 %v2107_v32, %v2106_v24  ;;  %v2128_v47 = vrot.slane %v2127_v11, 4  ;;  %v7982_v24 = vld [vmem:[#allocation37_spill] sm:$0xff] }
 0x1c5   :  { %2511 = vperm.xlu0 %5111, %v7980_v8   ;;  %v2084_v58 = vadd.f32 %v2083_v38, %v2082_v44  ;;  %v2096_v15 = vadd.f32 %v2095_v21, %v2094_v31  ;;  %v1755_v36 = vmul.f32 %v1638_v7, %v1371_v18  ;;  %v2326_v48 = vsel %vm2286_vm4, %v2077_v0, %v2325_v49  ;;  %v1648_v14 = vpop.permute.xlu0 %1647  ;;  %v1376_v7 = vld [vmem:[#allocation2 + $0xdc] sm:$0xf] }
 0x1c6   :  { %v2116_v43 = vrot.slane %v2115_v37, 2  ;;  %v2109_v3 = vrot.slane %v2108_v1, 2  ;;  %v1758_v63 = vmul.f32 %v1653_v20, %v1374_v10  ;;  %v2129_v13 = vadd.f32 %v2128_v47, %v2127_v11  ;;  %v7983_v18 = vld [vmem:[#allocation42_spill] sm:$0xff]  ;;  %v7984_v47 = vld [vmem:[#allocation39_spill] sm:$0xff] }
 0x1c7   :  { %2523 = vperm.xlu1 %5112, %v7981_v2   ;;  %v2327_v57 = vsel %vm2288_vm5, %v2084_v58, %v2326_v48  ;;  %v2097_v8 = vrot.slane %v2096_v15, 1  ;;  %v2120_v22 = vsel %vm1769_vm1, %v1755_v36, 0.0  ;;  %v2105_v56 = vadd.f32 %v2104_v35, %v2103_v29  ;;  %v1375_v48 = vld [vmem:[#allocation2 + $0xd8] sm:$0xf] }
 0x1c8   :  { %v2121_v44 = vrot.slane %v2120_v22, 4  ;;  %v2328_v31 = vsel %vm2290_vm6, %v2091_v16, %v2327_v57  ;;  %v2141_v0 = vsel %vm1769_vm1, %v1758_v63, 0.0  ;;  %v1757_v32 = vmul.f32 %v1648_v14, %v1373_v51  ;;  %v7985_v16 = vld [vmem:[#allocation44_spill] sm:$0xff] }
 0x1c9   :  { %2519 = vperm.xlu0 %5111, %v7982_v24   ;;  %v2098_v55 = vadd.f32 %v2097_v8, %v2096_v15  ;;  %v2117_v49 = vadd.f32 %v2116_v43, %v2115_v37  ;;  %v2110_v38 = vadd.f32 %v2109_v3, %v2108_v1  ;;  %v2142_v10 = vrot.slane %v2141_v0, 4 }
 0x1ca   :  { %v2122_v21 = vadd.f32 %v2121_v44, %v2120_v22  ;;  %v2130_v58 = vrot.slane %v2129_v13, 2  ;;  %v2134_v29 = vsel %vm1769_vm1, %v1757_v32, 0.0  ;;  %v7986_v44 = vld [vmem:[#allocation41_spill] sm:$0xff]  ;;  %v7987_v32 = vld [vmem:[#allocation46_spill] sm:$0xff]  ;;  %vm2682_vm10 = vcmask 126016  }
 0x1cb   :  { %2531 = vperm.xlu1 %5112, %v7983_v18   ;;  %v1663_v11 = vpop.permute.xlu1 %1662  ;;  %v2329_v20 = vsel %vm2292_vm7, %v2098_v55, %v2328_v31  ;;  %v2143_v51 = vadd.f32 %v2142_v10, %v2141_v0  ;;  %v2135_v14 = vrot.slane %v2134_v29, 4  ;;  %v2118_v37 = vrot.slane %v2117_v49, 1 }
 0x1cc   :  { %v1760_v35 = vmul.f32 %v1663_v11, %v1376_v7  ;;  %v2330_v57 = vsel %vm2294_vm8, %v2105_v56, %v2329_v20  ;;  %v2123_v8 = vrot.slane %v2122_v21, 2  ;;  %v2111_v1 = vrot.slane %v2110_v38, 1 }
 0x1cd   :  { %2527 = vperm.xlu0 %5111, %v7984_v47   ;;  %2359 = vst.msk [vmem:[#allocation7 + $0x28] sm:$0xff] %vm2353_vm9, %v2330_v57  ;;  %v2131_v3 = vadd.f32 %v2130_v58, %v2129_v13  ;;  %v2144_v63 = vrot.slane %v2143_v51, 2  ;;  %v2136_v22 = vadd.f32 %v2135_v14, %v2134_v29  ;;  %v2119_v10 = vadd.f32 %v2118_v37, %v2117_v49  ;;  %v7988_v13 = vld [vmem:[#allocation43_spill] sm:$0xff] }
 0x1ce   :  { %v2155_v43 = vsel %vm1769_vm1, %v1760_v35, 0.0  ;;  %v2124_v15 = vadd.f32 %v2123_v8, %v2122_v21  ;;  %v2112_v11 = vadd.f32 %v2111_v1, %v2110_v38  ;;  %v1378_v14 = vld [vmem:[#allocation2 + $0xe4] sm:$0xf]  ;;  %vm3259_vm11 = vcmask 130112  }
 0x1cf   :  { %2539 = vperm.xlu1 %5112, %v7985_v16   ;;  %v2156_v36 = vrot.slane %v2155_v43, 4  ;;  %v2137_v55 = vrot.slane %v2136_v22, 2  ;;  %v2132_v35 = vrot.slane %v2131_v3, 1  ;;  %v2145_v57 = vadd.f32 %v2144_v63, %v2143_v51  ;;  %v7990_v63 = vld [vmem:[#allocation45_spill] sm:$0xff] }
 0x1d0   :  { %v2125_v56 = vrot.slane %v2124_v15, 1  ;;  %v2331_v49 = vsel %vm2282_vm2, %v2119_v10, %v2112_v11  ;;  %v7992_v11 = vld [vmem:[#allocation47_spill] sm:$0xff]  ;;  %vm3588_vm12 = vcmask 191616   ;;  %vm4165_vm13 = vcmask 195712  }
 0x1d1   :  { %2535 = vperm.xlu0 %5111, %v7986_v44   ;;  %v2157_v7 = vadd.f32 %v2156_v36, %v2155_v43  ;;  %v1658_v31 = vpop.permute.xlu0 %1657  ;;  %v2138_v21 = vadd.f32 %v2137_v55, %v2136_v22  ;;  %v1377_v36 = vld [vmem:[#allocation2 + $0xe0] sm:$0xf]  ;;  %v7989_v44 = vld [vmem:[#allocation48_spill] sm:$0xff]  ;;  %v2133_v38 = vadd.f32 %v2132_v35, %v2131_v3  ;;  %v2146_v37 = vrot.slane %v2145_v57, 1 }
 0x1d2   :  { %v1759_v0 = vmul.f32 %v1658_v31, %v1375_v48  ;;  %v2126_v58 = vadd.f32 %v2125_v56, %v2124_v15  ;;  %v1380_v3 = vld [vmem:[#allocation2 + $0xec] sm:$0xf]  ;;  %vm4494_vm14 = vcmask 257216   ;;  %vm5071_vm15 = vcmask 261312  }
 0x1d3   :  { %2547 = vperm.xlu1 %5112, %v7987_v32   ;;  %v2158_v20 = vrot.slane %v2157_v7, 2  ;;  %v2139_v16 = vrot.slane %v2138_v21, 1 }
 0x1d4   :  { %v2148_v8 = vsel %vm1769_vm1, %v1759_v0, 0.0  ;;  %v2332_v22 = vsel %vm2284_vm3, %v2126_v58, %v2331_v49 }
 0x1d5   :  { %2543 = vperm.xlu0 %5111, %v7988_v13   ;;  %v2149_v29 = vrot.slane %v2148_v8, 4  ;;  %v2159_v43 = vadd.f32 %v2158_v20, %v2157_v7  ;;  %v2140_v15 = vadd.f32 %v2139_v16, %v2138_v21  ;;  %v7991_v7 = vld [vmem:[#allocation50_spill] sm:$0xff] }
 0x1d7   :  { %2555 = vperm.xlu1 %5112, %v7989_v44   ;;  %v2150_v48 = vadd.f32 %v2149_v29, %v2148_v8  ;;  %v1673_v31 = vpop.permute.xlu1 %1672  ;;  %v2160_v0 = vrot.slane %v2159_v43, 1  ;;  %v2147_v44 = vadd.f32 %v2146_v37, %v2145_v57  ;;  %v2333_v8 = vsel %vm2286_vm4, %v2133_v38, %v2332_v22  ;;  %v7994_v38 = vld [vmem:[#allocation49_spill] sm:$0xff]  ;;  %v1379_v22 = vld [vmem:[#allocation2 + $0xe8] sm:$0xf] }
 0x1d8   :  { %v1762_v51 = vmul.f32 %v1673_v31, %v1378_v14  ;;  %v1668_v1 = vpop.permute.xlu0 %1667  ;;  %v2334_v35 = vsel %vm2288_vm5, %v2140_v15, %v2333_v8  ;;  %v7993_v14 = vld [vmem:[#allocation52_spill] sm:$0xff]  ;;  %v1382_v8 = vld [vmem:[#allocation2 + $0xf4] sm:$0xf] }
 0x1d9   :  { %2551 = vperm.xlu0 %5111, %v7990_v63   ;;  %v2151_v56 = vrot.slane %v2150_v48, 2  ;;  %v1761_v55 = vmul.f32 %v1668_v1, %v1377_v36  ;;  %v2161_v16 = vadd.f32 %v2160_v0, %v2159_v43  ;;  %v2335_v57 = vsel %vm2290_vm6, %v2147_v44, %v2334_v35  ;;  %v7995_v43 = vld [vmem:[#allocation54_spill] sm:$0xff]  ;;  %v7997_v35 = vld [vmem:[#allocation56_spill] sm:$0xff] }
 0x1da   :  { %v2169_v10 = vsel %vm1769_vm1, %v1762_v51, 0.0 }
 0x1db   :  { %2563 = vperm.xlu1 %5112, %v7991_v7   ;;  %v2152_v20 = vadd.f32 %v2151_v56, %v2150_v48  ;;  %v2162_v58 = vsel %vm1769_vm1, %v1761_v55, 0.0  ;;  %v2170_v31 = vrot.slane %v2169_v10, 4 }
 0x1dc   :  { %v2163_v49 = vrot.slane %v2162_v58, 4 }
 0x1dd   :  { %2559 = vperm.xlu0 %5111, %v7992_v11   ;;  %v2153_v29 = vrot.slane %v2152_v20, 1  ;;  %v2171_v15 = vadd.f32 %v2170_v31, %v2169_v10 }
 0x1de   :  { %v1683_v21 = vpop.permute.xlu1 %1682  ;;  %v2164_v56 = vadd.f32 %v2163_v49, %v2162_v58 }
 0x1df   :  { %2571 = vperm.xlu1 %5112, %v7993_v14   ;;  %v2154_v36 = vadd.f32 %v2153_v29, %v2152_v20  ;;  %v1764_v48 = vmul.f32 %v1683_v21, %v1380_v3  ;;  %v7996_v20 = vld [vmem:[#allocation51_spill] sm:$0xff]  ;;  %v2172_v3 = vrot.slane %v2171_v15, 2 }
 0x1e0   :  { %v2165_v21 = vrot.slane %v2164_v56, 2 }
 0x1e1   :  { %2567 = vperm.xlu0 %5111, %v7994_v38   ;;  %v2336_v37 = vsel %vm2292_vm7, %v2154_v36, %v2335_v57  ;;  %v2183_v51 = vsel %vm1769_vm1, %v1764_v48, 0.0  ;;  %v1381_v57 = vld [vmem:[#allocation2 + $0xf0] sm:$0xf]  ;;  %v2173_v49 = vadd.f32 %v2172_v3, %v2171_v15  ;;  %v1384_v15 = vld [vmem:[#allocation2 + $0xfc] sm:$0xf] }
 0x1e2   :  { %v2337_v1 = vsel %vm2294_vm8, %v2161_v16, %v2336_v37  ;;  %v2184_v55 = vrot.slane %v2183_v51, 4  ;;  %v7998_v37 = vld [vmem:[#allocation53_spill] sm:$0xff] }
 0x1e3   :  { %2360 = vst.msk [vmem:[#allocation7 + $0x30] sm:$0xff] %vm2353_vm9, %v2337_v1  ;;  %2579 = vperm.xlu1 %5112, %v7995_v43  }
 0x1e4   :  { %v1678_v0 = vpop.permute.xlu0 %1677  ;;  %v2185_v16 = vadd.f32 %v2184_v55, %v2183_v51 }
 0x1e5   :  { %2575 = vperm.xlu0 %5111, %v7996_v20   ;;  %v1763_v44 = vmul.f32 %v1678_v0, %v1379_v22  ;;  %v2166_v0 = vadd.f32 %v2165_v21, %v2164_v56  ;;  %v7999_v20 = vld [vmem:[#allocation55_spill] sm:$0xff] }
 0x1e7   :  { %2587 = vperm.xlu1 %5112, %v7997_v35   ;;  %v2176_v29 = vsel %vm1769_vm1, %v1763_v44, 0.0  ;;  %v2186_v35 = vrot.slane %v2185_v16, 2  ;;  %v2167_v3 = vrot.slane %v2166_v0, 1 }
 0x1e8   :  { %v2177_v36 = vrot.slane %v2176_v29, 4  ;;  %v1693_v48 = vpop.permute.xlu1 %1692 }
 0x1e9   :  { %2583 = vperm.xlu0 %5111, %v7998_v37   ;;  %v1766_v10 = vmul.f32 %v1693_v48, %v1382_v8  ;;  %v2174_v8 = vrot.slane %v2173_v49, 1 }
 0x1ea   :  { %v2178_v58 = vadd.f32 %v2177_v36, %v2176_v29  ;;  %v1688_v31 = vpop.permute.xlu0 %1687  ;;  %v2187_v29 = vadd.f32 %v2186_v35, %v2185_v16  ;;  %v1383_v16 = vld [vmem:[#allocation2 + $0xf8] sm:$0xf] }
 0x1eb   :  { %2595 = vperm.xlu1 %5112, %v6591_v25   ;;  %v2197_v1 = vsel %vm1769_vm1, %v1766_v10, 0.0  ;;  %v1765_v22 = vmul.f32 %v1688_v31, %v1381_v57  ;;  %v8000_v57 = vld [vmem:[#allocation57_spill] sm:$0xff]  ;;  %v2175_v25 = vadd.f32 %v2174_v8, %v2173_v49  ;;  %v5641_v8 = vmov 2  }
 0x1ec   :  { %v2179_v43 = vrot.slane %v2178_v58, 2  ;;  %v2198_v44 = vrot.slane %v2197_v1, 4 }
 0x1ed   :  { %2591 = vperm.xlu0 %5111, %v7999_v20   ;;  %v2190_v51 = vsel %vm1769_vm1, %v1765_v22, 0.0 }
 0x1ee   :  { %v2180_v55 = vadd.f32 %v2179_v43, %v2178_v58  ;;  %v2199_v14 = vadd.f32 %v2198_v44, %v2197_v1  ;;  %v2191_v37 = vrot.slane %v2190_v51, 4  ;;  %v2168_v43 = vadd.f32 %v2167_v3, %v2166_v0 }
 0x1ef   :  { %2603 = vperm.xlu1 %5112, %v6610_v30   ;;  %v2188_v58 = vrot.slane %v2187_v29, 1 }
 0x1f0   :  { %v2192_v36 = vadd.f32 %v2191_v37, %v2190_v51  ;;  %v2181_v48 = vrot.slane %v2180_v55, 1  ;;  %v2200_v56 = vrot.slane %v2199_v14, 2  ;;  %v2338_v0 = vsel %vm2282_vm2, %v2175_v25, %v2168_v43  ;;  %v5374_v25 = vld [vmem:[#allocation2 + $0x8] sm:$0xf] }
 0x1f1   :  { %2599 = vperm.xlu0 %5111, %v8000_v57   ;;  %v1703_v21 = vpop.permute.xlu1 %1702  ;;  %v2189_v3 = vadd.f32 %v2188_v58, %v2187_v29 }
 0x1f2   :  { %v2193_v10 = vrot.slane %v2192_v36, 2  ;;  %v1768_v31 = vmul.f32 %v1703_v21, %v1384_v15  ;;  %v2182_v44 = vadd.f32 %v2181_v48, %v2180_v55  ;;  %v2201_v30 = vadd.f32 %v2200_v56, %v2199_v14  ;;  %v5373_v15 = vld [vmem:[#allocation2 + $0x4] sm:$0xf] }
 0x1f3   :  { %2611 = vperm.xlu1 %5112, %v6642_v33  }
 0x1f4   :  { %v2194_v1 = vadd.f32 %v2193_v10, %v2192_v36  ;;  %v2211_v22 = vsel %vm1769_vm1, %v1768_v31, 0.0  ;;  %v2339_v14 = vsel %vm2284_vm3, %v2182_v44, %v2338_v0  ;;  %v2202_v55 = vrot.slane %v2201_v30, 1 }
 0x1f5   :  { %2607 = vperm.xlu0 %5111, %v6601_v23   ;;  %v2212_v35 = vrot.slane %v2211_v22, 4 }
 0x1f6   :  { %v2195_v37 = vrot.slane %v2194_v1, 1  ;;  %v2368_v51 = vpop.permute.xlu1 %2367  ;;  %v2203_v44 = vadd.f32 %v2202_v55, %v2201_v30 }
 0x1f7   :  { %v2213_v57 = vadd.f32 %v2212_v35, %v2211_v22  ;;  %v1698_v20 = vpop.permute.xlu0 %1697  ;;  %v2619_v49 = vmul.f32 %v5373_v15, %v2368_v51  ;;  %5113 = vset.pattern.permute.xlu1 %v5641_v8  ;;  %v5375_v15 = vld [vmem:[#allocation2] sm:$0xf] }
 0x1f8   :  { %v1767_v36 = vmul.f32 %v1698_v20, %v1383_v16  ;;  %3269 = vperm.xlu1 %5113, %v5840_v52   ;;  %v2196_v21 = vadd.f32 %v2195_v37, %v2194_v1  ;;  %v2340_v20 = vsel %vm2286_vm4, %v2189_v3, %v2339_v14 }
 0x1f9   :  { %v2214_v48 = vrot.slane %v2213_v57, 2  ;;  %2615 = vperm.xlu0 %5111, %v6628_v17   ;;  %v2690_v56 = vsel %vm2682_vm10, %v2619_v49, 0.0 }
 0x1fa   :  { %v2204_v10 = vsel %vm1769_vm1, %v1767_v36, 0.0  ;;  %v2691_v31 = vrot.slane %v2690_v56, 4  ;;  %v2372_v22 = vpop.permute.xlu1 %2371  ;;  %v2341_v37 = vsel %vm2288_vm5, %v2196_v21, %v2340_v20 }
 0x1fb   :  { %v2215_v35 = vadd.f32 %v2214_v48, %v2213_v57  ;;  %v2205_v51 = vrot.slane %v2204_v10, 4  ;;  %v2620_v29 = vmul.f32 %v5374_v25, %v2372_v22 }
 0x1fc   :  { %v2692_v43 = vadd.f32 %v2691_v31, %v2690_v56  ;;  %v2364_v58 = vpop.permute.xlu0 %2363  ;;  %3277 = vperm.xlu1 %5113, %v5832_v42   ;;  %v5376_v56 = vld [vmem:[#allocation2 + $0x10] sm:$0xf] }
 0x1fd   :  { %v2206_v16 = vadd.f32 %v2205_v51, %v2204_v10  ;;  %v2618_v0 = vmul.f32 %v5375_v15, %v2364_v58  ;;  %5114 = vset.pattern.permute.xlu0 %v5641_v8  ;;  %v2697_v1 = vsel %vm2682_vm10, %v2620_v29, 0.0  ;;  %v2216_v48 = vrot.slane %v2215_v35, 1  ;;  %v5377_v51 = vld [vmem:[#allocation2 + $0xc] sm:$0xf] }
 0x1fe   :  { %v2693_v49 = vrot.slane %v2692_v43, 2  ;;  %3273 = vperm.xlu0 %5114, %v5848_v54   ;;  %v2698_v57 = vrot.slane %v2697_v1, 4  ;;  %v2380_v36 = vpop.permute.xlu1 %2379  ;;  %v2342_v8 = vsel %vm2290_vm6, %v2203_v44, %v2341_v37 }
 0x1ff   :  { %v2207_v3 = vrot.slane %v2206_v16, 2  ;;  %v2683_v14 = vsel %vm2682_vm10, %v2618_v0, 0.0  ;;  %v2622_v31 = vmul.f32 %v5376_v56, %v2380_v36 }
 0x200   :  { %v2694_v30 = vadd.f32 %v2693_v49, %v2692_v43  ;;  %v2684_v55 = vrot.slane %v2683_v14, 4  ;;  %v2699_v10 = vadd.f32 %v2698_v57, %v2697_v1  ;;  %v2376_v22 = vpop.permute.xlu0 %2375  ;;  %3281 = vperm.xlu1 %5113, %v5844_v50   ;;  %v2217_v43 = vadd.f32 %v2216_v48, %v2215_v35  ;;  %v5378_v57 = vld [vmem:[#allocation2 + $0x18] sm:$0xf] }
 0x201   :  { %v2208_v21 = vadd.f32 %v2207_v3, %v2206_v16  ;;  %v2621_v25 = vmul.f32 %v5377_v51, %v2376_v22  ;;  %v2711_v29 = vsel %vm2682_vm10, %v2622_v31, 0.0 }
 0x202   :  { %v2695_v20 = vrot.slane %v2694_v30, 1  ;;  %v2685_v58 = vadd.f32 %v2684_v55, %v2683_v14  ;;  %v2700_v15 = vrot.slane %v2699_v10, 2  ;;  %3285 = vperm.xlu0 %5114, %v5858_v19   ;;  %v2712_v0 = vrot.slane %v2711_v29, 4  ;;  %v2388_v36 = vpop.permute.xlu1 %2387  ;;  %v5379_v55 = vld [vmem:[#allocation2 + $0x14] sm:$0xf] }
 0x203   :  { %v2209_v49 = vrot.slane %v2208_v21, 1  ;;  %v2704_v1 = vsel %vm2682_vm10, %v2621_v25, 0.0  ;;  %v2624_v56 = vmul.f32 %v5378_v57, %v2388_v36 }
 0x204   :  { %v2696_v42 = vadd.f32 %v2695_v20, %v2694_v30  ;;  %v2686_v44 = vrot.slane %v2685_v58, 2  ;;  %v2701_v16 = vadd.f32 %v2700_v15, %v2699_v10  ;;  %v2705_v37 = vrot.slane %v2704_v1, 4  ;;  %v2384_v3 = vpop.permute.xlu0 %2383  ;;  %3289 = vperm.xlu1 %5113, %v5855_v60   ;;  %v5380_v15 = vld [vmem:[#allocation2 + $0x20] sm:$0xf] }
 0x205   :  { %v2210_v31 = vadd.f32 %v2209_v49, %v2208_v21  ;;  %v2713_v14 = vadd.f32 %v2712_v0, %v2711_v29  ;;  %v2623_v22 = vmul.f32 %v5379_v55, %v2384_v3  ;;  %v2725_v51 = vsel %vm2682_vm10, %v2624_v56, 0.0 }
 0x206   :  { %v2687_v19 = vadd.f32 %v2686_v44, %v2685_v58  ;;  %v2702_v35 = vrot.slane %v2701_v16, 1  ;;  %v2706_v48 = vadd.f32 %v2705_v37, %v2704_v1  ;;  %3293 = vperm.xlu0 %5114, %v5879_v12   ;;  %v2726_v25 = vrot.slane %v2725_v51, 4  ;;  %v2396_v36 = vpop.permute.xlu1 %2395  ;;  %v5381_v37 = vld [vmem:[#allocation2 + $0x1c] sm:$0xf] }
 0x207   :  { %v2343_v30 = vsel %vm2292_vm7, %v2210_v31, %v2342_v8  ;;  %v2714_v10 = vrot.slane %v2713_v14, 2  ;;  %v2718_v20 = vsel %vm2682_vm10, %v2623_v22, 0.0  ;;  %v2626_v57 = vmul.f32 %v5380_v15, %v2396_v36 }
 0x208   :  { %v2344_v21 = vsel %vm2294_vm8, %v2217_v43, %v2343_v30  ;;  %v2688_v29 = vrot.slane %v2687_v19, 1  ;;  %v2703_v0 = vadd.f32 %v2702_v35, %v2701_v16  ;;  %v2707_v49 = vrot.slane %v2706_v48, 2  ;;  %v2392_v56 = vpop.permute.xlu0 %2391  ;;  %3297 = vperm.xlu1 %5113, %v5865_v26  }
 0x209   :  { %2361 = vst.msk [vmem:[#allocation7 + $0x38] sm:$0xff] %vm2353_vm9, %v2344_v21  ;;  %v2715_v58 = vadd.f32 %v2714_v10, %v2713_v14  ;;  %v2719_v1 = vrot.slane %v2718_v20, 4  ;;  %v2727_v44 = vadd.f32 %v2726_v25, %v2725_v51  ;;  %v2625_v8 = vmul.f32 %v5381_v37, %v2392_v56 }
 0x20a   :  { %v2689_v3 = vadd.f32 %v2688_v29, %v2687_v19  ;;  %v2708_v31 = vadd.f32 %v2707_v49, %v2706_v48  ;;  %3301 = vperm.xlu0 %5114, %v5933_v9   ;;  %v2739_v55 = vsel %vm2682_vm10, %v2626_v57, 0.0  ;;  %v2404_v43 = vpop.permute.xlu1 %2403  ;;  %v5382_v49 = vld [vmem:[#allocation2 + $0x24] sm:$0xf]  ;;  %v5384_v9 = vld [vmem:[#allocation2 + $0x30] sm:$0xf] }
 0x20b   :  { %v2716_v22 = vrot.slane %v2715_v58, 1  ;;  %v2720_v16 = vadd.f32 %v2719_v1, %v2718_v20  ;;  %v2728_v35 = vrot.slane %v2727_v44, 2  ;;  %v2732_v36 = vsel %vm2682_vm10, %v2625_v8, 0.0  ;;  %v5383_v8 = vld [vmem:[#allocation2 + $0x28] sm:$0xf] }
 0x20c   :  { %v3195_v30 = vsel %vm2282_vm2, %v2696_v42, %v2689_v3  ;;  %v2709_v15 = vrot.slane %v2708_v31, 1  ;;  %v2733_v14 = vrot.slane %v2732_v36, 4  ;;  %v2740_v10 = vrot.slane %v2739_v55, 4  ;;  %v2400_v51 = vpop.permute.xlu0 %2399  ;;  %3305 = vperm.xlu1 %5113, %v5928_v28  }
 0x20d   :  { %v3196_v19 = vsel %vm2284_vm3, %v2703_v0, %v3195_v30  ;;  %v2717_v48 = vadd.f32 %v2716_v22, %v2715_v58  ;;  %v2721_v25 = vrot.slane %v2720_v16, 2  ;;  %v2729_v21 = vadd.f32 %v2728_v35, %v2727_v44 }
 0x20e   :  { %v2710_v57 = vadd.f32 %v2709_v15, %v2708_v31  ;;  %v2734_v29 = vadd.f32 %v2733_v14, %v2732_v36  ;;  %v2741_v20 = vadd.f32 %v2740_v10, %v2739_v55  ;;  %v2627_v56 = vmul.f32 %v5382_v49, %v2400_v51  ;;  %3309 = vperm.xlu0 %5114, %v5947_v45   ;;  %v2412_v42 = vpop.permute.xlu1 %2411  ;;  %v5385_v14 = vld [vmem:[#allocation2 + $0x2c] sm:$0xf] }
 0x20f   :  { %v2722_v1 = vadd.f32 %v2721_v25, %v2720_v16  ;;  %v2730_v37 = vrot.slane %v2729_v21, 1  ;;  %v2628_v3 = vmul.f32 %v5383_v8, %v2404_v43  ;;  %v2630_v28 = vmul.f32 %v5384_v9, %v2412_v42 }
 0x210   :  { %v3197_v0 = vsel %vm2286_vm4, %v2710_v57, %v3196_v19  ;;  %v2735_v58 = vrot.slane %v2734_v29, 2  ;;  %v2742_v22 = vrot.slane %v2741_v20, 2  ;;  %v2746_v44 = vsel %vm2682_vm10, %v2627_v56, 0.0  ;;  %v2408_v31 = vpop.permute.xlu0 %2407  ;;  %3313 = vperm.xlu1 %5113, %v5942_v53  }
 0x211   :  { %v3198_v55 = vsel %vm2288_vm5, %v2717_v48, %v3197_v0  ;;  %v2723_v35 = vrot.slane %v2722_v1, 1  ;;  %v2731_v36 = vadd.f32 %v2730_v37, %v2729_v21  ;;  %v2747_v30 = vrot.slane %v2746_v44, 4 }
 0x212   :  { %v2736_v16 = vadd.f32 %v2735_v58, %v2734_v29  ;;  %v2743_v15 = vadd.f32 %v2742_v22, %v2741_v20  ;;  %v2753_v43 = vsel %vm2682_vm10, %v2628_v3, 0.0  ;;  %v2629_v9 = vmul.f32 %v5385_v14, %v2408_v31  ;;  %3317 = vperm.xlu0 %5114, %v5963_v4   ;;  %v2420_v10 = vpop.permute.xlu1 %2419 }
 0x213   :  { %v2724_v51 = vadd.f32 %v2723_v35, %v2722_v1  ;;  %v2748_v19 = vadd.f32 %v2747_v30, %v2746_v44  ;;  %v2754_v25 = vrot.slane %v2753_v43, 4  ;;  %v2767_v57 = vsel %vm2682_vm10, %v2630_v28, 0.0  ;;  %v5386_v35 = vld [vmem:[#allocation2 + $0x34] sm:$0xf] }
 0x214   :  { %v2737_v49 = vrot.slane %v2736_v16, 1  ;;  %v2744_v56 = vrot.slane %v2743_v15, 1  ;;  %v2760_v48 = vsel %vm2682_vm10, %v2629_v9, 0.0  ;;  %v2768_v21 = vrot.slane %v2767_v57, 4  ;;  %v2416_v42 = vpop.permute.xlu0 %2415  ;;  %3321 = vperm.xlu1 %5113, %v5957_v27  }
 0x215   :  { %v3199_v29 = vsel %vm2290_vm6, %v2724_v51, %v3198_v55  ;;  %v2749_v20 = vrot.slane %v2748_v19, 2  ;;  %v2755_v37 = vadd.f32 %v2754_v25, %v2753_v43  ;;  %v2761_v8 = vrot.slane %v2760_v48, 4  ;;  %v5387_v55 = vld [vmem:[#allocation2 + $0x38] sm:$0xf]  ;;  %v5388_v25 = vld [vmem:[#allocation2 + $0x40] sm:$0xf] }
 0x216   :  { %v3200_v3 = vsel %vm2292_vm7, %v2731_v36, %v3199_v29  ;;  %v2738_v1 = vadd.f32 %v2737_v49, %v2736_v16  ;;  %v2745_v0 = vadd.f32 %v2744_v56, %v2743_v15  ;;  %v2769_v58 = vadd.f32 %v2768_v21, %v2767_v57  ;;  %3325 = vperm.xlu0 %5114, %v5989_v39   ;;  %v2428_v28 = vpop.permute.xlu1 %2427 }
 0x217   :  { %v2750_v22 = vadd.f32 %v2749_v20, %v2748_v19  ;;  %v2756_v44 = vrot.slane %v2755_v37, 2  ;;  %v2762_v31 = vadd.f32 %v2761_v8, %v2760_v48  ;;  %v2631_v30 = vmul.f32 %v5386_v35, %v2416_v42  ;;  %v5389_v48 = vld [vmem:[#allocation2 + $0x3c] sm:$0xf] }
 0x218   :  { %v3201_v14 = vsel %vm2294_vm8, %v2738_v1, %v3200_v3  ;;  %v2770_v9 = vrot.slane %v2769_v58, 2  ;;  %v2632_v51 = vmul.f32 %v5387_v55, %v2420_v10  ;;  %v2424_v43 = vpop.permute.xlu0 %2423  ;;  %v2634_v4 = vmul.f32 %v5388_v25, %v2428_v28  ;;  %3329 = vperm.xlu1 %5113, %v5980_v62  }
 0x219   :  { %3260 = vst.msk [vmem:[#allocation7] sm:$0xff] %vm3259_vm11, %v3201_v14  ;;  %v2751_v36 = vrot.slane %v2750_v22, 1  ;;  %v2757_v16 = vadd.f32 %v2756_v44, %v2755_v37  ;;  %v2763_v15 = vrot.slane %v2762_v31, 2  ;;  %v2774_v19 = vsel %vm2682_vm10, %v2631_v30, 0.0 }
 0x21a   :  { %v2771_v57 = vadd.f32 %v2770_v9, %v2769_v58  ;;  %v2775_v49 = vrot.slane %v2774_v19, 4  ;;  %v2781_v56 = vsel %vm2682_vm10, %v2632_v51, 0.0  ;;  %v2633_v21 = vmul.f32 %v5389_v48, %v2424_v43  ;;  %3333 = vperm.xlu0 %5114, %v6016_v41   ;;  %v2436_v10 = vpop.permute.xlu1 %2435 }
 0x21b   :  { %v2752_v42 = vadd.f32 %v2751_v36, %v2750_v22  ;;  %v2758_v29 = vrot.slane %v2757_v16, 1  ;;  %v2764_v20 = vadd.f32 %v2763_v15, %v2762_v31  ;;  %v2782_v8 = vrot.slane %v2781_v56, 4 }
 0x21c   :  { %v2772_v3 = vrot.slane %v2771_v57, 1  ;;  %v2776_v1 = vadd.f32 %v2775_v49, %v2774_v19  ;;  %v2788_v37 = vsel %vm2682_vm10, %v2633_v21, 0.0  ;;  %v2795_v28 = vsel %vm2682_vm10, %v2634_v4, 0.0  ;;  %v2432_v44 = vpop.permute.xlu0 %2431  ;;  %3337 = vperm.xlu1 %5113, %v7960_v6   ;;  %v5390_v4 = vld [vmem:[#allocation2 + $0x44] sm:$0xf] }
 0x21d   :  { %v3202_v58 = vsel %vm2282_vm2, %v2752_v42, %v2745_v0  ;;  %v2759_v35 = vadd.f32 %v2758_v29, %v2757_v16  ;;  %v2765_v30 = vrot.slane %v2764_v20, 1  ;;  %v2783_v14 = vadd.f32 %v2782_v8, %v2781_v56  ;;  %v5391_v0 = vld [vmem:[#allocation2 + $0x48] sm:$0xf]  ;;  %v5392_v29 = vld [vmem:[#allocation2 + $0x4c] sm:$0xf] }
 0x21e   :  { %v2773_v9 = vadd.f32 %v2772_v3, %v2771_v57  ;;  %v2777_v55 = vrot.slane %v2776_v1, 2  ;;  %v2789_v22 = vrot.slane %v2788_v37, 4  ;;  %v2796_v51 = vrot.slane %v2795_v28, 4  ;;  %3341 = vperm.xlu0 %5114, %v7959_v59   ;;  %v2444_v31 = vpop.permute.xlu1 %2443 }
 0x21f   :  { %v3203_v43 = vsel %vm2284_vm3, %v2759_v35, %v3202_v58  ;;  %v2766_v25 = vadd.f32 %v2765_v30, %v2764_v20  ;;  %v2784_v36 = vrot.slane %v2783_v14, 2  ;;  %v2635_v15 = vmul.f32 %v5390_v4, %v2432_v44 }
 0x220   :  { %v2778_v19 = vadd.f32 %v2777_v55, %v2776_v1  ;;  %v2790_v49 = vadd.f32 %v2789_v22, %v2788_v37  ;;  %v2797_v48 = vadd.f32 %v2796_v51, %v2795_v28  ;;  %v2636_v16 = vmul.f32 %v5391_v0, %v2436_v10  ;;  %v2440_v21 = vpop.permute.xlu0 %2439  ;;  %3345 = vperm.xlu1 %5113, %v7962_v61  }
 0x221   :  { %v3204_v57 = vsel %vm2286_vm4, %v2766_v25, %v3203_v43  ;;  %v2785_v56 = vadd.f32 %v2784_v36, %v2783_v14  ;;  %v2802_v42 = vsel %vm2682_vm10, %v2635_v15, 0.0  ;;  %v2637_v8 = vmul.f32 %v5392_v29, %v2440_v21  ;;  %v5393_v36 = vld [vmem:[#allocation2 + $0x50] sm:$0xf] }
 0x222   :  { %v3205_v20 = vsel %vm2288_vm5, %v2773_v9, %v3204_v57  ;;  %v2779_v3 = vrot.slane %v2778_v19, 1  ;;  %v2791_v58 = vrot.slane %v2790_v49, 2  ;;  %v2798_v44 = vrot.slane %v2797_v48, 2  ;;  %3349 = vperm.xlu0 %5114, %v7961_v46   ;;  %v2452_v1 = vpop.permute.xlu1 %2451 }
 0x223   :  { %v2786_v37 = vrot.slane %v2785_v56, 1  ;;  %v2803_v10 = vrot.slane %v2802_v42, 4  ;;  %v2809_v28 = vsel %vm2682_vm10, %v2636_v16, 0.0  ;;  %v2816_v35 = vsel %vm2682_vm10, %v2637_v8, 0.0 }
 0x224   :  { %v2780_v30 = vadd.f32 %v2779_v3, %v2778_v19  ;;  %v2792_v14 = vadd.f32 %v2791_v58, %v2790_v49  ;;  %v2799_v55 = vadd.f32 %v2798_v44, %v2797_v48  ;;  %v2810_v22 = vrot.slane %v2809_v28, 4  ;;  %v2448_v51 = vpop.permute.xlu0 %2447  ;;  %3353 = vperm.xlu1 %5113, %v7964_v34  }
 0x225   :  { %v2787_v9 = vadd.f32 %v2786_v37, %v2785_v56  ;;  %v2804_v43 = vadd.f32 %v2803_v10, %v2802_v42  ;;  %v2817_v25 = vrot.slane %v2816_v35, 4  ;;  %v2638_v4 = vmul.f32 %v5393_v36, %v2444_v31  ;;  %v8001_v31 = vld [vmem:[#allocation21_spill] sm:$0xff] }
 0x226   :  { %v3206_v15 = vsel %vm2290_vm6, %v2780_v30, %v3205_v20  ;;  %v2793_v0 = vrot.slane %v2792_v14, 1  ;;  %v2800_v21 = vrot.slane %v2799_v55, 1  ;;  %v2811_v57 = vadd.f32 %v2810_v22, %v2809_v28  ;;  %3357 = vperm.xlu0 %5114, %v7963_v40   ;;  %v2460_v16 = vpop.permute.xlu1 %2459  ;;  %v5394_v37 = vld [vmem:[#allocation2 + $0x54] sm:$0xf]  ;;  %v5395_v28 = vld [vmem:[#allocation2 + $0x58] sm:$0xf] }
 0x227   :  { %v3207_v19 = vsel %vm2292_vm7, %v2787_v9, %v3206_v15  ;;  %v2805_v49 = vrot.slane %v2804_v43, 2  ;;  %v2818_v48 = vadd.f32 %v2817_v25, %v2816_v35  ;;  %v2823_v29 = vsel %vm2682_vm10, %v2638_v4, 0.0  ;;  %v5396_v35 = vld [vmem:[#allocation2 + $0x5c] sm:$0xf]  ;;  %v8002_v4 = vld [vmem:[#allocation24_spill] sm:$0xff] }
 0x228   :  { %v2794_v8 = vadd.f32 %v2793_v0, %v2792_v14  ;;  %v2801_v56 = vadd.f32 %v2800_v21, %v2799_v55  ;;  %v2812_v42 = vrot.slane %v2811_v57, 2  ;;  %v2824_v3 = vrot.slane %v2823_v29, 4  ;;  %v2456_v58 = vpop.permute.xlu0 %2455  ;;  %3361 = vperm.xlu1 %5113, %v8001_v31  }
 0x229   :  { %v2806_v20 = vadd.f32 %v2805_v49, %v2804_v43  ;;  %v2819_v44 = vrot.slane %v2818_v48, 2  ;;  %v2639_v10 = vmul.f32 %v5394_v37, %v2448_v51  ;;  %v2640_v30 = vmul.f32 %v5395_v28, %v2452_v1 }
 0x22a   :  { %v3208_v22 = vsel %vm2294_vm8, %v2794_v8, %v3207_v19  ;;  %v2813_v9 = vadd.f32 %v2812_v42, %v2811_v57  ;;  %v2825_v36 = vadd.f32 %v2824_v3, %v2823_v29  ;;  %v2641_v25 = vmul.f32 %v5396_v35, %v2456_v58  ;;  %3365 = vperm.xlu0 %5114, %v8002_v4   ;;  %v2468_v14 = vpop.permute.xlu1 %2467  ;;  %v8003_v57 = vld [vmem:[#allocation23_spill] sm:$0xff] }
 0x22b   :  { %3261 = vst.msk [vmem:[#allocation7 + $0x8] sm:$0xff] %vm3259_vm11, %v3208_v22  ;;  %v2807_v55 = vrot.slane %v2806_v20, 1  ;;  %v2820_v15 = vadd.f32 %v2819_v44, %v2818_v48  ;;  %v2830_v43 = vsel %vm2682_vm10, %v2639_v10, 0.0  ;;  %v2837_v0 = vsel %vm2682_vm10, %v2640_v30, 0.0  ;;  %v5397_v3 = vld [vmem:[#allocation2 + $0x60] sm:$0xf] }
 0x22c   :  { %v2814_v51 = vrot.slane %v2813_v9, 1  ;;  %v2826_v21 = vrot.slane %v2825_v36, 2  ;;  %v2831_v1 = vrot.slane %v2830_v43, 4  ;;  %v2838_v49 = vrot.slane %v2837_v0, 4  ;;  %v2464_v19 = vpop.permute.xlu0 %2463  ;;  %3369 = vperm.xlu1 %5113, %v8003_v57   ;;  %v8004_v10 = vld [vmem:[#allocation26_spill] sm:$0xff] }
 0x22d   :  { %v2808_v29 = vadd.f32 %v2807_v55, %v2806_v20  ;;  %v2821_v8 = vrot.slane %v2820_v15, 1  ;;  %v2844_v42 = vsel %vm2682_vm10, %v2641_v25, 0.0  ;;  %v2642_v58 = vmul.f32 %v5397_v3, %v2460_v16  ;;  %v8005_v16 = vld [vmem:[#allocation25_spill] sm:$0xff] }
 0x22e   :  { %v2815_v37 = vadd.f32 %v2814_v51, %v2813_v9  ;;  %v2827_v28 = vadd.f32 %v2826_v21, %v2825_v36  ;;  %v2832_v48 = vadd.f32 %v2831_v1, %v2830_v43  ;;  %v2839_v44 = vadd.f32 %v2838_v49, %v2837_v0  ;;  %3373 = vperm.xlu0 %5114, %v8004_v10   ;;  %v2476_v30 = vpop.permute.xlu1 %2475  ;;  %v5398_v0 = vld [vmem:[#allocation2 + $0x64] sm:$0xf]  ;;  %v5399_v1 = vld [vmem:[#allocation2 + $0x68] sm:$0xf] }
 0x22f   :  { %v3209_v22 = vsel %vm2282_vm2, %v2808_v29, %v2801_v56  ;;  %v2822_v35 = vadd.f32 %v2821_v8, %v2820_v15  ;;  %v2845_v4 = vrot.slane %v2844_v42, 4  ;;  %v2851_v40 = vsel %vm2682_vm10, %v2642_v58, 0.0  ;;  %v8006_v29 = vld [vmem:[#allocation28_spill] sm:$0xff] }
 0x230   :  { %v3210_v20 = vsel %vm2284_vm3, %v2815_v37, %v3209_v22  ;;  %v2828_v55 = vrot.slane %v2827_v28, 1  ;;  %v2833_v57 = vrot.slane %v2832_v48, 2  ;;  %v2840_v25 = vrot.slane %v2839_v44, 2  ;;  %v2472_v31 = vpop.permute.xlu0 %2471  ;;  %3377 = vperm.xlu1 %5113, %v8005_v16   ;;  %v5400_v22 = vld [vmem:[#allocation2 + $0x6c] sm:$0xf] }
 0x231   :  { %v3211_v9 = vsel %vm2286_vm4, %v2822_v35, %v3210_v20  ;;  %v2846_v36 = vadd.f32 %v2845_v4, %v2844_v42  ;;  %v2852_v43 = vrot.slane %v2851_v40, 4  ;;  %v2643_v51 = vmul.f32 %v5398_v0, %v2464_v19 }
 0x232   :  { %v2829_v21 = vadd.f32 %v2828_v55, %v2827_v28  ;;  %v2834_v56 = vadd.f32 %v2833_v57, %v2832_v48  ;;  %v2841_v15 = vadd.f32 %v2840_v25, %v2839_v44  ;;  %v2644_v49 = vmul.f32 %v5399_v1, %v2468_v14  ;;  %3381 = vperm.xlu0 %5114, %v8006_v29   ;;  %v2484_v8 = vpop.permute.xlu1 %2483  ;;  %v5402_v29 = vld [vmem:[#allocation2 + $0x74] sm:$0xf] }
 0x233   :  { %v2847_v3 = vrot.slane %v2846_v36, 2  ;;  %v2853_v58 = vadd.f32 %v2852_v43, %v2851_v40  ;;  %v2858_v37 = vsel %vm2682_vm10, %v2643_v51, 0.0  ;;  %v2645_v10 = vmul.f32 %v5400_v22, %v2472_v31  ;;  %v8007_v43 = vld [vmem:[#allocation30_spill] sm:$0xff] }
 0x234   :  { %v3212_v35 = vsel %vm2288_vm5, %v2829_v21, %v3211_v9  ;;  %v2835_v4 = vrot.slane %v2834_v56, 1  ;;  %v2842_v42 = vrot.slane %v2841_v15, 1  ;;  %v2859_v20 = vrot.slane %v2858_v37, 4  ;;  %v2480_v19 = vpop.permute.xlu0 %2479  ;;  %3385 = vperm.xlu1 %5113, %v7972_v5   ;;  %v5401_v21 = vld [vmem:[#allocation2 + $0x70] sm:$0xf] }
 0x235   :  { %v2848_v57 = vadd.f32 %v2847_v3, %v2846_v36  ;;  %v2854_v28 = vrot.slane %v2853_v58, 2  ;;  %v2865_v14 = vsel %vm2682_vm10, %v2644_v49, 0.0  ;;  %v2872_v48 = vsel %vm2682_vm10, %v2645_v10, 0.0  ;;  %v8008_v10 = vld [vmem:[#allocation29_spill] sm:$0xff] }
 0x236   :  { %v2836_v44 = vadd.f32 %v2835_v4, %v2834_v56  ;;  %v2843_v40 = vadd.f32 %v2842_v42, %v2841_v15  ;;  %v2860_v55 = vadd.f32 %v2859_v20, %v2858_v37  ;;  %v2866_v25 = vrot.slane %v2865_v14, 4  ;;  %3389 = vperm.xlu0 %5114, %v8007_v43   ;;  %v2492_v31 = vpop.permute.xlu1 %2491 }
 0x237   :  { %v2849_v9 = vrot.slane %v2848_v57, 1  ;;  %v2855_v0 = vadd.f32 %v2854_v28, %v2853_v58  ;;  %v2873_v51 = vrot.slane %v2872_v48, 4  ;;  %v2646_v1 = vmul.f32 %v5401_v21, %v2476_v30  ;;  %v8009_v28 = vld [vmem:[#allocation32_spill] sm:$0xff] }
 0x238   :  { %v3213_v22 = vsel %vm2290_vm6, %v2836_v44, %v3212_v35  ;;  %v2861_v36 = vrot.slane %v2860_v55, 2  ;;  %v2867_v3 = vadd.f32 %v2866_v25, %v2865_v14  ;;  %v2647_v49 = vmul.f32 %v5402_v29, %v2480_v19  ;;  %v2488_v5 = vpop.permute.xlu0 %2487  ;;  %3393 = vperm.xlu1 %5113, %v8008_v10  }
 0x239   :  { %v3214_v56 = vsel %vm2292_vm7, %v2843_v40, %v3213_v22  ;;  %v2850_v15 = vadd.f32 %v2849_v9, %v2848_v57  ;;  %v2856_v37 = vrot.slane %v2855_v0, 1  ;;  %v2874_v4 = vadd.f32 %v2873_v51, %v2872_v48  ;;  %v5403_v48 = vld [vmem:[#allocation2 + $0x78] sm:$0xf]  ;;  %v8010_v51 = vld [vmem:[#allocation31_spill] sm:$0xff]  ;;  %v5404_v22 = vld [vmem:[#allocation2 + $0x7c] sm:$0xf] }
 0x23a   :  { %v2862_v42 = vadd.f32 %v2861_v36, %v2860_v55  ;;  %v2868_v20 = vrot.slane %v2867_v3, 2  ;;  %v2879_v58 = vsel %vm2682_vm10, %v2646_v1, 0.0  ;;  %v2886_v30 = vsel %vm2682_vm10, %v2647_v49, 0.0  ;;  %3397 = vperm.xlu0 %5114, %v8009_v28   ;;  %v2500_v35 = vpop.permute.xlu1 %2499  ;;  %v5405_v49 = vld [vmem:[#allocation2 + $0x80] sm:$0xf] }
 0x23b   :  { %v3215_v14 = vsel %vm2294_vm8, %v2850_v15, %v3214_v56  ;;  %v2857_v29 = vadd.f32 %v2856_v37, %v2855_v0  ;;  %v2875_v19 = vrot.slane %v2874_v4, 2  ;;  %v2880_v44 = vrot.slane %v2879_v58, 4 }
 0x23c   :  { %3262 = vst.msk [vmem:[#allocation7 + $0x10] sm:$0xff] %vm3259_vm11, %v3215_v14  ;;  %v2863_v40 = vrot.slane %v2862_v42, 1  ;;  %v2869_v57 = vadd.f32 %v2868_v20, %v2867_v3  ;;  %v2887_v25 = vrot.slane %v2886_v30, 4  ;;  %v2648_v55 = vmul.f32 %v5403_v48, %v2484_v8  ;;  %v2496_v9 = vpop.permute.xlu0 %2495  ;;  %3401 = vperm.xlu1 %5113, %v8010_v51   ;;  %v8011_v14 = vld [vmem:[#allocation34_spill] sm:$0xff]  ;;  %v8013_v51 = vld [vmem:[#allocation36_spill] sm:$0xff] }
 0x23d   :  { %v2876_v21 = vadd.f32 %v2875_v19, %v2874_v4  ;;  %v2881_v1 = vadd.f32 %v2880_v44, %v2879_v58  ;;  %v2649_v36 = vmul.f32 %v5404_v22, %v2488_v5  ;;  %v2650_v28 = vmul.f32 %v5405_v49, %v2492_v31  ;;  %v8012_v31 = vld [vmem:[#allocation33_spill] sm:$0xff] }
 0x23e   :  { %v2864_v56 = vadd.f32 %v2863_v40, %v2862_v42  ;;  %v2870_v0 = vrot.slane %v2869_v57, 1  ;;  %v2888_v15 = vadd.f32 %v2887_v25, %v2886_v30  ;;  %v2893_v37 = vsel %vm2682_vm10, %v2648_v55, 0.0  ;;  %3405 = vperm.xlu0 %5114, %v8011_v14   ;;  %v2508_v3 = vpop.permute.xlu1 %2507 }
 0x23f   :  { %v2877_v20 = vrot.slane %v2876_v21, 1  ;;  %v2882_v43 = vrot.slane %v2881_v1, 2  ;;  %v2894_v8 = vrot.slane %v2893_v37, 4  ;;  %v2900_v48 = vsel %vm2682_vm10, %v2649_v36, 0.0 }
 0x240   :  { %v3216_v4 = vsel %vm2282_vm2, %v2864_v56, %v2857_v29  ;;  %v2871_v58 = vadd.f32 %v2870_v0, %v2869_v57  ;;  %v2889_v19 = vrot.slane %v2888_v15, 2  ;;  %v2901_v5 = vrot.slane %v2900_v48, 4  ;;  %v2504_v44 = vpop.permute.xlu0 %2503  ;;  %3409 = vperm.xlu1 %5113, %v8012_v31   ;;  %v5406_v0 = vld [vmem:[#allocation2 + $0x84] sm:$0xf] }
 0x241   :  { %v2878_v42 = vadd.f32 %v2877_v20, %v2876_v21  ;;  %v2883_v30 = vadd.f32 %v2882_v43, %v2881_v1  ;;  %v2895_v40 = vadd.f32 %v2894_v8, %v2893_v37  ;;  %v2907_v25 = vsel %vm2682_vm10, %v2650_v28, 0.0  ;;  %v5407_v1 = vld [vmem:[#allocation2 + $0x88] sm:$0xf]  ;;  %v8014_v20 = vld [vmem:[#allocation35_spill] sm:$0xff] }
 0x242   :  { %v3217_v55 = vsel %vm2284_vm3, %v2871_v58, %v3216_v4  ;;  %v2890_v22 = vadd.f32 %v2889_v19, %v2888_v15  ;;  %v2902_v49 = vadd.f32 %v2901_v5, %v2900_v48  ;;  %v2908_v14 = vrot.slane %v2907_v25, 4  ;;  %3413 = vperm.xlu0 %5114, %v8013_v51   ;;  %v2516_v36 = vpop.permute.xlu1 %2515  ;;  %v5408_v4 = vld [vmem:[#allocation2 + $0x8c] sm:$0xf]  ;;  %v8015_v51 = vld [vmem:[#allocation38_spill] sm:$0xff] }
 0x243   :  { %v3218_v29 = vsel %vm2286_vm4, %v2878_v42, %v3217_v55  ;;  %v2884_v57 = vrot.slane %v2883_v30, 1  ;;  %v2896_v56 = vrot.slane %v2895_v40, 2  ;;  %v2651_v10 = vmul.f32 %v5406_v0, %v2496_v9 }
 0x244   :  { %v2891_v31 = vrot.slane %v2890_v22, 1  ;;  %v2903_v21 = vrot.slane %v2902_v49, 2  ;;  %v2909_v43 = vadd.f32 %v2908_v14, %v2907_v25  ;;  %v2652_v37 = vmul.f32 %v5407_v1, %v2500_v35  ;;  %v2512_v28 = vpop.permute.xlu0 %2511  ;;  %3417 = vperm.xlu1 %5113, %v8014_v20  }
 0x245   :  { %v2885_v15 = vadd.f32 %v2884_v57, %v2883_v30  ;;  %v2897_v8 = vadd.f32 %v2896_v56, %v2895_v40  ;;  %v2914_v48 = vsel %vm2682_vm10, %v2651_v10, 0.0  ;;  %v2653_v58 = vmul.f32 %v5408_v4, %v2504_v44  ;;  %v5409_v56 = vld [vmem:[#allocation2 + $0x90] sm:$0xf]  ;;  %v5410_v4 = vld [vmem:[#allocation2 + $0x94] sm:$0xf] }
 0x246   :  { %v2892_v19 = vadd.f32 %v2891_v31, %v2890_v22  ;;  %v2904_v5 = vadd.f32 %v2903_v21, %v2902_v49  ;;  %v2910_v42 = vrot.slane %v2909_v43, 2  ;;  %v2915_v55 = vrot.slane %v2914_v48, 4  ;;  %3421 = vperm.xlu0 %5114, %v8015_v51   ;;  %v2524_v9 = vpop.permute.xlu1 %2523 }
 0x247   :  { %v3219_v14 = vsel %vm2288_vm5, %v2885_v15, %v3218_v29  ;;  %v2898_v25 = vrot.slane %v2897_v8, 1  ;;  %v2921_v35 = vsel %vm2682_vm10, %v2652_v37, 0.0  ;;  %v2928_v0 = vsel %vm2682_vm10, %v2653_v58, 0.0 }
 0x248   :  { %v3220_v30 = vsel %vm2290_vm6, %v2892_v19, %v3219_v14  ;;  %v2905_v40 = vrot.slane %v2904_v5, 1  ;;  %v2911_v10 = vadd.f32 %v2910_v42, %v2909_v43  ;;  %v2916_v57 = vadd.f32 %v2915_v55, %v2914_v48  ;;  %v2520_v44 = vpop.permute.xlu0 %2519  ;;  %3425 = vperm.xlu1 %5113, %v7982_v24  }
 0x249   :  { %v2899_v31 = vadd.f32 %v2898_v25, %v2897_v8  ;;  %v2922_v22 = vrot.slane %v2921_v35, 4  ;;  %v2929_v49 = vrot.slane %v2928_v0, 4  ;;  %v2654_v21 = vmul.f32 %v5409_v56, %v2508_v3  ;;  %v5411_v56 = vld [vmem:[#allocation2 + $0x98] sm:$0xf] }
 0x24a   :  { %v2906_v1 = vadd.f32 %v2905_v40, %v2904_v5  ;;  %v2912_v29 = vrot.slane %v2911_v10, 1  ;;  %v2917_v15 = vrot.slane %v2916_v57, 2  ;;  %v2655_v37 = vmul.f32 %v5410_v4, %v2512_v28  ;;  %3429 = vperm.xlu0 %5114, %v7981_v2   ;;  %v2532_v58 = vpop.permute.xlu1 %2531  ;;  %v5414_v2 = vld [vmem:[#allocation2 + $0xa4] sm:$0xf] }
 0x24b   :  { %v3221_v19 = vsel %vm2292_vm7, %v2899_v31, %v3220_v30  ;;  %v2923_v43 = vadd.f32 %v2922_v22, %v2921_v35  ;;  %v2930_v48 = vadd.f32 %v2929_v49, %v2928_v0  ;;  %v2935_v42 = vsel %vm2682_vm10, %v2654_v21, 0.0  ;;  %v5412_v22 = vld [vmem:[#allocation2 + $0x9c] sm:$0xf] }
 0x24c   :  { %v3222_v8 = vsel %vm2294_vm8, %v2906_v1, %v3221_v19  ;;  %v2913_v55 = vadd.f32 %v2912_v29, %v2911_v10  ;;  %v2918_v14 = vadd.f32 %v2917_v15, %v2916_v57  ;;  %v2936_v25 = vrot.slane %v2935_v42, 4  ;;  %v2528_v3 = vpop.permute.xlu0 %2527  ;;  %3433 = vperm.xlu1 %5113, %v7984_v47   ;;  %v5413_v29 = vld [vmem:[#allocation2 + $0xa0] sm:$0xf] }
 0x24d   :  { %3263 = vst.msk [vmem:[#allocation7 + $0x18] sm:$0xff] %vm3259_vm11, %v3222_v8  ;;  %v2924_v28 = vrot.slane %v2923_v43, 2  ;;  %v2931_v5 = vrot.slane %v2930_v48, 2  ;;  %v2942_v40 = vsel %vm2682_vm10, %v2655_v37, 0.0  ;;  %v2656_v30 = vmul.f32 %v5411_v56, %v2516_v36  ;;  %v8016_v56 = vld [vmem:[#allocation41_spill] sm:$0xff] }
 0x24e   :  { %v2919_v35 = vrot.slane %v2918_v14, 1  ;;  %v2937_v0 = vadd.f32 %v2936_v25, %v2935_v42  ;;  %v2943_v31 = vrot.slane %v2942_v40, 4  ;;  %v2657_v49 = vmul.f32 %v5412_v22, %v2520_v44  ;;  %3437 = vperm.xlu0 %5114, %v7983_v18   ;;  %v6987_v10 = vpop.permute.xlu1 %2539 }
 0x24f   :  { %v2925_v57 = vadd.f32 %v2924_v28, %v2923_v43  ;;  %v2932_v21 = vadd.f32 %v2931_v5, %v2930_v48  ;;  %v2949_v1 = vsel %vm2682_vm10, %v2656_v30, 0.0  ;;  %v2658_v15 = vmul.f32 %v5413_v29, %v2524_v9  ;;  %v8017_v30 = vld [vmem:[#allocation44_spill] sm:$0xff] }
 0x250   :  { %v2920_v4 = vadd.f32 %v2919_v35, %v2918_v14  ;;  %v2938_v19 = vrot.slane %v2937_v0, 2  ;;  %v2944_v37 = vadd.f32 %v2943_v31, %v2942_v40  ;;  %v2950_v8 = vrot.slane %v2949_v1, 4  ;;  %v2536_v36 = vpop.permute.xlu0 %2535  ;;  %3441 = vperm.xlu1 %5113, %v8016_v56  }
 0x251   :  { %v2926_v42 = vrot.slane %v2925_v57, 1  ;;  %v2933_v25 = vrot.slane %v2932_v21, 1  ;;  %v2956_v44 = vsel %vm2682_vm10, %v2657_v49, 0.0  ;;  %v2963_v22 = vsel %vm2682_vm10, %v2658_v15, 0.0  ;;  %v5415_v15 = vld [vmem:[#allocation2 + $0xa8] sm:$0xf] }
 0x252   :  { %v3223_v43 = vsel %vm2282_vm2, %v2920_v4, %v2913_v55  ;;  %v2939_v48 = vadd.f32 %v2938_v19, %v2937_v0  ;;  %v2945_v28 = vrot.slane %v2944_v37, 2  ;;  %v2951_v5 = vadd.f32 %v2950_v8, %v2949_v1  ;;  %3445 = vperm.xlu0 %5114, %v8017_v30   ;;  %v6995_v9 = vpop.permute.xlu1 %2547 }
 0x253   :  { %v2927_v14 = vadd.f32 %v2926_v42, %v2925_v57  ;;  %v2934_v40 = vadd.f32 %v2933_v25, %v2932_v21  ;;  %v2957_v35 = vrot.slane %v2956_v44, 4  ;;  %v2964_v31 = vrot.slane %v2963_v22, 4 }
 0x254   :  { %v2940_v29 = vrot.slane %v2939_v48, 1  ;;  %v2946_v56 = vadd.f32 %v2945_v28, %v2944_v37  ;;  %v2952_v18 = vrot.slane %v2951_v5, 2  ;;  %v2659_v49 = vmul.f32 %v5414_v2, %v2528_v3  ;;  %v2544_v47 = vpop.permute.xlu0 %2543  ;;  %3449 = vperm.xlu1 %5113, %v7988_v13  }
 0x255   :  { %v3224_v55 = vsel %vm2284_vm3, %v2927_v14, %v3223_v43  ;;  %v2958_v0 = vadd.f32 %v2957_v35, %v2956_v44  ;;  %v2965_v1 = vadd.f32 %v2964_v31, %v2963_v22  ;;  %v2660_v4 = vmul.f32 %v5415_v15, %v2532_v58  ;;  %v5416_v14 = vld [vmem:[#allocation2 + $0xac] sm:$0xf] }
 0x256   :  { %v3225_v19 = vsel %vm2286_vm4, %v2934_v40, %v3224_v55  ;;  %v2941_v57 = vadd.f32 %v2940_v29, %v2939_v48  ;;  %v2947_v21 = vrot.slane %v2946_v56, 1  ;;  %v2953_v8 = vadd.f32 %v2952_v18, %v2951_v5  ;;  %3453 = vperm.xlu0 %5114, %v7987_v32   ;;  %v7001_v37 = vpop.permute.xlu1 %2555  ;;  %v8018_v15 = vld [vmem:[#allocation48_spill] sm:$0xff] }
 0x257   :  { %v2959_v42 = vrot.slane %v2958_v0, 2  ;;  %v2966_v2 = vrot.slane %v2965_v1, 2  ;;  %v2970_v3 = vsel %vm2682_vm10, %v2659_v49, 0.0  ;;  %v2977_v25 = vsel %vm2682_vm10, %v2660_v4, 0.0  ;;  %v5417_v49 = vld [vmem:[#allocation2 + $0xb0] sm:$0xf] }
 0x258   :  { %v3226_v44 = vsel %vm2288_vm5, %v2941_v57, %v3225_v19  ;;  %v2948_v22 = vadd.f32 %v2947_v21, %v2946_v56  ;;  %v2954_v43 = vrot.slane %v2953_v8, 1  ;;  %v2971_v58 = vrot.slane %v2970_v3, 4  ;;  %v2552_v28 = vpop.permute.xlu0 %2551  ;;  %3457 = vperm.xlu1 %5113, %v7990_v63  }
 0x259   :  { %v2960_v48 = vadd.f32 %v2959_v42, %v2958_v0  ;;  %v2967_v18 = vadd.f32 %v2966_v2, %v2965_v1  ;;  %v2978_v5 = vrot.slane %v2977_v25, 4  ;;  %v2661_v40 = vmul.f32 %v5416_v14, %v2536_v36 }
 0x25a   :  { %v3227_v35 = vsel %vm2290_vm6, %v2948_v22, %v3226_v44  ;;  %v2955_v31 = vadd.f32 %v2954_v43, %v2953_v8  ;;  %v2972_v29 = vadd.f32 %v2971_v58, %v2970_v3  ;;  %v2662_v55 = vmul.f32 %v5417_v49, %v6987_v10  ;;  %3461 = vperm.xlu0 %5114, %v8018_v15   ;;  %v7010_v56 = vpop.permute.xlu1 %2563  ;;  %v5418_v58 = vld [vmem:[#allocation2 + $0xb4] sm:$0xf] }
 0x25b   :  { %v2961_v4 = vrot.slane %v2960_v48, 1  ;;  %v2968_v19 = vrot.slane %v2967_v18, 1  ;;  %v2979_v57 = vadd.f32 %v2978_v5, %v2977_v25  ;;  %v2984_v0 = vsel %vm2682_vm10, %v2661_v40, 0.0  ;;  %v5419_v25 = vld [vmem:[#allocation2 + $0xb8] sm:$0xf] }
 0x25c   :  { %v3228_v1 = vsel %vm2292_vm7, %v2955_v31, %v3227_v35  ;;  %v2973_v21 = vrot.slane %v2972_v29, 2  ;;  %v2985_v36 = vrot.slane %v2984_v0, 4  ;;  %v2991_v42 = vsel %vm2682_vm10, %v2662_v55, 0.0  ;;  %v2560_v8 = vpop.permute.xlu0 %2559  ;;  %3465 = vperm.xlu1 %5113, %v7992_v11   ;;  %v5420_v55 = vld [vmem:[#allocation2 + $0xbc] sm:$0xf] }
 0x25d   :  { %v2962_v2 = vadd.f32 %v2961_v4, %v2960_v48  ;;  %v2969_v10 = vadd.f32 %v2968_v19, %v2967_v18  ;;  %v2980_v3 = vrot.slane %v2979_v57, 2  ;;  %v2992_v44 = vrot.slane %v2991_v42, 4 }
 0x25e   :  { %v2974_v22 = vadd.f32 %v2973_v21, %v2972_v29  ;;  %v2986_v43 = vadd.f32 %v2985_v36, %v2984_v0  ;;  %v2663_v14 = vmul.f32 %v5418_v58, %v2544_v47  ;;  %v2664_v5 = vmul.f32 %v5419_v25, %v6995_v9  ;;  %3469 = vperm.xlu0 %5114, %v7991_v7   ;;  %v7018_v40 = vpop.permute.xlu1 %2571 }
 0x25f   :  { %v3229_v35 = vsel %vm2294_vm8, %v2962_v2, %v3228_v1  ;;  %v2981_v31 = vadd.f32 %v2980_v3, %v2979_v57  ;;  %v2993_v49 = vadd.f32 %v2992_v44, %v2991_v42  ;;  %v2665_v48 = vmul.f32 %v5420_v55, %v2552_v28  ;;  %v5421_v28 = vld [vmem:[#allocation2 + $0xc0] sm:$0xf]  ;;  %v8019_v3 = vld [vmem:[#allocation52_spill] sm:$0xff] }
 0x260   :  { %3264 = vst.msk [vmem:[#allocation7 + $0x20] sm:$0xff] %vm3259_vm11, %v3229_v35  ;;  %v2975_v18 = vrot.slane %v2974_v22, 1  ;;  %v2987_v29 = vrot.slane %v2986_v43, 2  ;;  %v2998_v4 = vsel %vm2682_vm10, %v2663_v14, 0.0  ;;  %v3005_v47 = vsel %vm2682_vm10, %v2664_v5, 0.0  ;;  %v2568_v19 = vpop.permute.xlu0 %2567  ;;  %3473 = vperm.xlu1 %5113, %v7994_v38  }
 0x261   :  { %v2982_v9 = vrot.slane %v2981_v31, 1  ;;  %v2994_v0 = vrot.slane %v2993_v49, 2  ;;  %v2999_v21 = vrot.slane %v2998_v4, 4  ;;  %v3006_v36 = vrot.slane %v3005_v47, 4 }
 0x262   :  { %v2976_v1 = vadd.f32 %v2975_v18, %v2974_v22  ;;  %v2988_v57 = vadd.f32 %v2987_v29, %v2986_v43  ;;  %v3012_v42 = vsel %vm2682_vm10, %v2665_v48, 0.0  ;;  %v2666_v2 = vmul.f32 %v5421_v28, %v7001_v37  ;;  %3477 = vperm.xlu0 %5114, %v8019_v3   ;;  %v7028_v44 = vpop.permute.xlu1 %2579  ;;  %v8020_v48 = vld [vmem:[#allocation51_spill] sm:$0xff] }
 0x263   :  { %v2983_v58 = vadd.f32 %v2982_v9, %v2981_v31  ;;  %v2995_v14 = vadd.f32 %v2994_v0, %v2993_v49  ;;  %v3000_v25 = vadd.f32 %v2999_v21, %v2998_v4  ;;  %v3007_v5 = vadd.f32 %v3006_v36, %v3005_v47  ;;  %v5422_v4 = vld [vmem:[#allocation2 + $0xc4] sm:$0xf]  ;;  %v8021_v9 = vld [vmem:[#allocation54_spill] sm:$0xff] }
 0x264   :  { %v3230_v35 = vsel %vm2282_vm2, %v2976_v1, %v2969_v10  ;;  %v2989_v55 = vrot.slane %v2988_v57, 1  ;;  %v3013_v63 = vrot.slane %v3012_v42, 4  ;;  %v3019_v22 = vsel %vm2682_vm10, %v2666_v2, 0.0  ;;  %v7032_v43 = vpop.permute.xlu0 %2575  ;;  %3481 = vperm.xlu1 %5113, %v8020_v48   ;;  %v5423_v1 = vld [vmem:[#allocation2 + $0xc8] sm:$0xf] }
 0x265   :  { %v3231_v37 = vsel %vm2284_vm3, %v2983_v58, %v3230_v35  ;;  %v2996_v18 = vrot.slane %v2995_v14, 1  ;;  %v3001_v29 = vrot.slane %v3000_v25, 2  ;;  %v3008_v28 = vrot.slane %v3007_v5, 2 }
 0x266   :  { %v2990_v32 = vadd.f32 %v2989_v55, %v2988_v57  ;;  %v3014_v31 = vadd.f32 %v3013_v63, %v3012_v42  ;;  %v3020_v49 = vrot.slane %v3019_v22, 4  ;;  %v2667_v47 = vmul.f32 %v5422_v4, %v2560_v8  ;;  %3485 = vperm.xlu0 %5114, %v8021_v9   ;;  %v7037_v10 = vpop.permute.xlu1 %2587  ;;  %v8022_v42 = vld [vmem:[#allocation53_spill] sm:$0xff] }
 0x267   :  { %v2997_v0 = vadd.f32 %v2996_v18, %v2995_v14  ;;  %v3002_v21 = vadd.f32 %v3001_v29, %v3000_v25  ;;  %v3009_v36 = vadd.f32 %v3008_v28, %v3007_v5  ;;  %v2668_v2 = vmul.f32 %v5423_v1, %v7010_v56  ;;  %v5424_v18 = vld [vmem:[#allocation2 + $0xcc] sm:$0xf] }
 0x268   :  { %v3232_v58 = vsel %vm2286_vm4, %v2990_v32, %v3231_v37  ;;  %v3015_v35 = vrot.slane %v3014_v31, 2  ;;  %v3021_v48 = vadd.f32 %v3020_v49, %v3019_v22  ;;  %v3026_v57 = vsel %vm2682_vm10, %v2667_v47, 0.0  ;;  %v2584_v63 = vpop.permute.xlu0 %2583  ;;  %3489 = vperm.xlu1 %5113, %v8022_v42   ;;  %v8023_v29 = vld [vmem:[#allocation56_spill] sm:$0xff]  ;;  %v8024_v42 = vld [vmem:[#allocation55_spill] sm:$0xff] }
 0x269   :  { %v3233_v8 = vsel %vm2288_vm5, %v2997_v0, %v3232_v58  ;;  %v3003_v55 = vrot.slane %v3002_v21, 1  ;;  %v3010_v4 = vrot.slane %v3009_v36, 1  ;;  %v3027_v9 = vrot.slane %v3026_v57, 4  ;;  %v5425_v58 = vld [vmem:[#allocation2 + $0xd0] sm:$0xf] }
 0x26a   :  { %v3016_v14 = vadd.f32 %v3015_v35, %v3014_v31  ;;  %v3022_v25 = vrot.slane %v3021_v48, 2  ;;  %v3033_v5 = vsel %vm2682_vm10, %v2668_v2, 0.0  ;;  %v2669_v56 = vmul.f32 %v5424_v18, %v2568_v19  ;;  %3493 = vperm.xlu0 %5114, %v8023_v29   ;;  %v7046_v32 = vpop.permute.xlu1 %2595 }
 0x26b   :  { %v3004_v22 = vadd.f32 %v3003_v55, %v3002_v21  ;;  %v3011_v37 = vadd.f32 %v3010_v4, %v3009_v36  ;;  %v3028_v28 = vadd.f32 %v3027_v9, %v3026_v57  ;;  %v3034_v49 = vrot.slane %v3033_v5, 4 }
 0x26c   :  { %v3017_v47 = vrot.slane %v3016_v14, 1  ;;  %v3023_v1 = vadd.f32 %v3022_v25, %v3021_v48  ;;  %v3040_v0 = vsel %vm2682_vm10, %v2669_v56, 0.0  ;;  %v2670_v31 = vmul.f32 %v5425_v58, %v7018_v40  ;;  %v2592_v35 = vpop.permute.xlu0 %2591  ;;  %3497 = vperm.xlu1 %5113, %v8024_v42   ;;  %v8025_v48 = vld [vmem:[#allocation58_spill] sm:$0xff] }
 0x26d   :  { %v3234_v19 = vsel %vm2290_vm6, %v3004_v22, %v3233_v8  ;;  %v3029_v2 = vrot.slane %v3028_v28, 2  ;;  %v3035_v18 = vadd.f32 %v3034_v49, %v3033_v5  ;;  %v3041_v13 = vrot.slane %v3040_v0, 4  ;;  %v5426_v22 = vld [vmem:[#allocation2 + $0xd4] sm:$0xf]  ;;  %v5427_v49 = vld [vmem:[#allocation2 + $0xd8] sm:$0xf] }
 0x26e   :  { %v3235_v21 = vsel %vm2292_vm7, %v3011_v37, %v3234_v19  ;;  %v3018_v36 = vadd.f32 %v3017_v47, %v3016_v14  ;;  %v3024_v9 = vrot.slane %v3023_v1, 1  ;;  %v3047_v57 = vsel %vm2682_vm10, %v2670_v31, 0.0  ;;  %3501 = vperm.xlu0 %5114, %v8025_v48   ;;  %v7055_v55 = vpop.permute.xlu1 %2603  ;;  %v8026_v47 = vld [vmem:[#allocation57_spill] sm:$0xff] }
 0x26f   :  { %v3030_v4 = vadd.f32 %v3029_v2, %v3028_v28  ;;  %v3036_v40 = vrot.slane %v3035_v18, 2  ;;  %v3042_v25 = vadd.f32 %v3041_v13, %v3040_v0  ;;  %v3048_v56 = vrot.slane %v3047_v57, 4 }
 0x270   :  { %v3236_v58 = vsel %vm2294_vm8, %v3018_v36, %v3235_v21  ;;  %v3025_v8 = vadd.f32 %v3024_v9, %v3023_v1  ;;  %v2671_v5 = vmul.f32 %v5426_v22, %v7032_v43  ;;  %v2672_v14 = vmul.f32 %v5427_v49, %v7028_v44  ;;  %v2600_v37 = vpop.permute.xlu0 %2599  ;;  %3505 = vperm.xlu1 %5113, %v8026_v47   ;;  %v5428_v1 = vld [vmem:[#allocation2 + $0xdc] sm:$0xf]  ;;  %v5429_v36 = vld [vmem:[#allocation2 + $0xe0] sm:$0xf]  ;;  %v8027_v9 = vld [vmem:[#allocation60_spill] sm:$0xff] }
 0x271   :  { %3265 = vst.msk [vmem:[#allocation7 + $0x28] sm:$0xff] %vm3259_vm11, %v3236_v58  ;;  %v3031_v31 = vrot.slane %v3030_v4, 1  ;;  %v3037_v19 = vadd.f32 %v3036_v40, %v3035_v18  ;;  %v3043_v28 = vrot.slane %v3042_v25, 2  ;;  %v3049_v2 = vadd.f32 %v3048_v56, %v3047_v57 }
 0x272   :  { %v3054_v13 = vsel %vm2682_vm10, %v2671_v5, 0.0  ;;  %v3061_v0 = vsel %vm2682_vm10, %v2672_v14, 0.0  ;;  %v2673_v21 = vmul.f32 %v5428_v1, %v2584_v63  ;;  %v2674_v43 = vmul.f32 %v5429_v36, %v7037_v10  ;;  %3509 = vperm.xlu0 %5114, %v8027_v9   ;;  %v7066_v44 = vpop.permute.xlu1 %2611 }
 0x273   :  { %v3032_v22 = vadd.f32 %v3031_v31, %v3030_v4  ;;  %v3038_v49 = vrot.slane %v3037_v19, 1  ;;  %v3044_v58 = vadd.f32 %v3043_v28, %v3042_v25  ;;  %v3050_v30 = vrot.slane %v3049_v2, 2 }
 0x274   :  { %v3055_v18 = vrot.slane %v3054_v13, 4  ;;  %v3062_v40 = vrot.slane %v3061_v0, 4  ;;  %v3068_v57 = vsel %vm2682_vm10, %v2673_v21, 0.0  ;;  %v3075_v56 = vsel %vm2682_vm10, %v2674_v43, 0.0  ;;  %v7070_v5 = vpop.permute.xlu0 %2607  ;;  %3513 = vperm.xlu1 %5113, %v6601_v23   ;;  %v5430_v43 = vld [vmem:[#allocation2 + $0xe4] sm:$0xf] }
 0x275   :  { %v3237_v10 = vsel %vm2282_vm2, %v3032_v22, %v3025_v8  ;;  %v3039_v63 = vadd.f32 %v3038_v49, %v3037_v19  ;;  %v3045_v14 = vrot.slane %v3044_v58, 1  ;;  %v3051_v1 = vadd.f32 %v3050_v30, %v3049_v2 }
 0x276   :  { %v3056_v36 = vadd.f32 %v3055_v18, %v3054_v13  ;;  %v3063_v4 = vadd.f32 %v3062_v40, %v3061_v0  ;;  %v3069_v31 = vrot.slane %v3068_v57, 4  ;;  %v3076_v25 = vrot.slane %v3075_v56, 4  ;;  %3517 = vperm.xlu0 %5114, %v6642_v33   ;;  %v5431_v0 = vld [vmem:[#allocation2 + $0xe8] sm:$0xf] }
 0x277   :  { %v3238_v28 = vsel %vm2284_vm3, %v3039_v63, %v3237_v10  ;;  %v3046_v21 = vadd.f32 %v3045_v14, %v3044_v58  ;;  %v3052_v9 = vrot.slane %v3051_v1, 1  ;;  %v2675_v3 = vmul.f32 %v5430_v43, %v2592_v35  ;;  %v7076_v38 = vpop.permute.xlu1 %3269  ;;  %v5432_v14 = vld [vmem:[#allocation2 + $0xec] sm:$0xf] }
 0x278   :  { %v3057_v23 = vrot.slane %v3056_v36, 2  ;;  %v3064_v47 = vrot.slane %v3063_v4, 2  ;;  %v3070_v8 = vadd.f32 %v3069_v31, %v3068_v57  ;;  %v3077_v19 = vadd.f32 %v3076_v25, %v3075_v56  ;;  %v7078_v22 = vpop.permute.xlu0 %2615  ;;  %3521 = vperm.xlu1 %5113, %v6628_v17   ;;  %v5433_v25 = vld [vmem:[#allocation2 + $0xf0] sm:$0xf] }
 0x279   :  { %v3239_v30 = vsel %vm2286_vm4, %v3046_v21, %v3238_v28  ;;  %v3053_v2 = vadd.f32 %v3052_v9, %v3051_v1  ;;  %v3082_v13 = vsel %vm2682_vm10, %v2675_v3, 0.0  ;;  %v2676_v49 = vmul.f32 %v5431_v0, %v7046_v32 }
 0x27a   :  { %v3058_v58 = vadd.f32 %v3057_v23, %v3056_v36  ;;  %v3065_v35 = vadd.f32 %v3064_v47, %v3063_v4  ;;  %v3071_v18 = vrot.slane %v3070_v8, 2  ;;  %v3078_v40 = vrot.slane %v3077_v19, 2 }
 0x27b   :  { %v5642_v10 = vmov 3   ;;  %v3240_v57 = vsel %vm2288_vm5, %v3053_v2, %v3239_v30  ;;  %v3083_v56 = vrot.slane %v3082_v13, 4  ;;  %v3089_v63 = vsel %vm2682_vm10, %v2676_v49, 0.0  ;;  %v7087_v9 = vpop.permute.xlu1 %3277 }
 0x27c   :  { %5115 = vset.pattern.permute.xlu0 %v5642_v10  ;;  %v2677_v31 = vmul.f32 %v5432_v14, %v2600_v37  ;;  %v3059_v3 = vrot.slane %v3058_v58, 1  ;;  %v3066_v1 = vrot.slane %v3065_v35, 1  ;;  %v3072_v32 = vadd.f32 %v3071_v18, %v3070_v8  ;;  %5116 = vset.pattern.permute.xlu1 %v5642_v10 }
 0x27d   :  { %4175 = vperm.xlu0 %5115, %v5840_v52   ;;  %v3079_v23 = vadd.f32 %v3078_v40, %v3077_v19  ;;  %v3084_v47 = vadd.f32 %v3083_v56, %v3082_v13  ;;  %v3090_v36 = vrot.slane %v3089_v63, 4  ;;  %v2678_v28 = vmul.f32 %v5433_v25, %v7055_v55  ;;  %v7091_v21 = vpop.permute.xlu0 %3273  ;;  %4179 = vperm.xlu1 %5116, %v5848_v54  }
 0x27e   :  { %v3096_v4 = vsel %vm2682_vm10, %v2677_v31, 0.0  ;;  %v3060_v37 = vadd.f32 %v3059_v3, %v3058_v58  ;;  %v3067_v52 = vadd.f32 %v3066_v1, %v3065_v35  ;;  %v3073_v43 = vrot.slane %v3072_v32, 1  ;;  %v5435_v1 = vld [vmem:[#allocation2 + $0xf8] sm:$0xf] }
 0x27f   :  { %v3080_v30 = vrot.slane %v3079_v23, 1  ;;  %v3085_v2 = vrot.slane %v3084_v47, 2  ;;  %v3091_v0 = vadd.f32 %v3090_v36, %v3089_v63  ;;  %v3097_v8 = vrot.slane %v3096_v4, 4  ;;  %v7096_v13 = vpop.permute.xlu1 %3281  ;;  %v8028_v63 = vld [vmem:[#allocation11_spill] sm:$0xff]  ;;  %v5436_v36 = vld [vmem:[#allocation2 + $0xfc] sm:$0xf] }
 0x280   :  { %v3103_v19 = vsel %vm2682_vm10, %v2678_v28, 0.0  ;;  %v3241_v49 = vsel %vm2290_vm6, %v3060_v37, %v3240_v57  ;;  %v3074_v55 = vadd.f32 %v3073_v43, %v3072_v32  ;;  %v2680_v57 = vmul.f32 %v5435_v1, %v7066_v44 }
 0x281   :  { %4187 = vperm.xlu0 %5115, %v5844_v50   ;;  %v3081_v18 = vadd.f32 %v3080_v30, %v3079_v23  ;;  %v3104_v40 = vrot.slane %v3103_v19, 4  ;;  %v3242_v54 = vsel %vm2292_vm7, %v3067_v52, %v3241_v49  ;;  %v3086_v58 = vadd.f32 %v3085_v2, %v3084_v47  ;;  %v7100_v56 = vpop.permute.xlu0 %3285  ;;  %4183 = vperm.xlu1 %5116, %v8028_v63   ;;  %v5434_v50 = vld [vmem:[#allocation2 + $0xf4] sm:$0xf] }
 0x282   :  { %v3092_v35 = vrot.slane %v3091_v0, 2  ;;  %v3098_v10 = vadd.f32 %v3097_v8, %v3096_v4  ;;  %v3243_v14 = vsel %vm2294_vm8, %v3074_v55, %v3242_v54  ;;  %v2679_v3 = vmul.f32 %v5434_v50, %v7070_v5 }
 0x283   :  { %v3105_v31 = vadd.f32 %v3104_v40, %v3103_v19  ;;  %3266 = vst.msk [vmem:[#allocation7 + $0x30] sm:$0xff] %vm3259_vm11, %v3243_v14  ;;  %v3087_v32 = vrot.slane %v3086_v58, 1  ;;  %v2681_v4 = vmul.f32 %v5436_v36, %v7078_v22  ;;  %v7109_v25 = vpop.permute.xlu1 %3289  ;;  %v3117_v5 = vsel %vm2682_vm10, %v2680_v57, 0.0  ;;  %v5437_v19 = vld [vmem:[#allocation2] sm:$0xf] }
 0x284   :  { %v3093_v23 = vadd.f32 %v3092_v35, %v3091_v0  ;;  %v3099_v47 = vrot.slane %v3098_v10, 2  ;;  %v3110_v37 = vsel %vm2682_vm10, %v2679_v3, 0.0  ;;  %v8029_v0 = vld [vmem:[#allocation12_spill] sm:$0xff]  ;;  %v3118_v22 = vrot.slane %v3117_v5, 4 }
 0x285   :  { %4195 = vperm.xlu0 %5115, %v5855_v60   ;;  %v3106_v28 = vrot.slane %v3105_v31, 2  ;;  %v3088_v52 = vadd.f32 %v3087_v32, %v3086_v58  ;;  %v3111_v30 = vrot.slane %v3110_v37, 4  ;;  %v7113_v2 = vpop.permute.xlu0 %3293  ;;  %4191 = vperm.xlu1 %5116, %v8029_v0   ;;  %v3124_v60 = vsel %vm2682_vm10, %v2681_v4, 0.0 }
 0x286   :  { %v3094_v44 = vrot.slane %v3093_v23, 1  ;;  %v3100_v43 = vadd.f32 %v3099_v47, %v3098_v10  ;;  %v3524_v49 = vmul.f32 %v5437_v19, %v7076_v38  ;;  %v3119_v63 = vadd.f32 %v3118_v22, %v3117_v5 }
 0x287   :  { %v3107_v8 = vadd.f32 %v3106_v28, %v3105_v31  ;;  %v3244_v55 = vsel %vm2282_vm2, %v3088_v52, %v3081_v18  ;;  %v3112_v35 = vadd.f32 %v3111_v30, %v3110_v37  ;;  %v7120_v58 = vpop.permute.xlu1 %3297  ;;  %v3125_v14 = vrot.slane %v3124_v60, 4  ;;  %v5439_v37 = vld [vmem:[#allocation2 + $0x8] sm:$0xf]  ;;  %v8030_v52 = vld [vmem:[#allocation13_spill] sm:$0xff] }
 0x288   :  { %v3095_v40 = vadd.f32 %v3094_v44, %v3093_v23  ;;  %v3101_v54 = vrot.slane %v3100_v43, 1  ;;  %v3589_v31 = vsel %vm3588_vm12, %v3524_v49, 0.0  ;;  %v3120_v32 = vrot.slane %v3119_v63, 2  ;;  %v8031_v49 = vld [vmem:[#allocation14_spill] sm:$0xff] }
 0x289   :  { %4203 = vperm.xlu0 %5115, %v5865_v26   ;;  %v3108_v10 = vrot.slane %v3107_v8, 1  ;;  %v3113_v1 = vrot.slane %v3112_v35, 2  ;;  %v3590_v57 = vrot.slane %v3589_v31, 4  ;;  %v7124_v38 = vpop.permute.xlu0 %3301  ;;  %4199 = vperm.xlu1 %5116, %v5879_v12   ;;  %v3126_v23 = vadd.f32 %v3125_v14, %v3124_v60  ;;  %v5438_v26 = vld [vmem:[#allocation2 + $0x4] sm:$0xf] }
 0x28a   :  { %v3245_v50 = vsel %vm2284_vm3, %v3095_v40, %v3244_v55  ;;  %v3102_v3 = vadd.f32 %v3101_v54, %v3100_v43  ;;  %v3525_v47 = vmul.f32 %v5438_v26, %v7091_v21  ;;  %v3526_v5 = vmul.f32 %v5439_v37, %v7087_v9  ;;  %v5440_v54 = vld [vmem:[#allocation2 + $0x10] sm:$0xf] }
 0x28b   :  { %v3109_v18 = vadd.f32 %v3108_v10, %v3107_v8  ;;  %v3114_v4 = vadd.f32 %v3113_v1, %v3112_v35  ;;  %v3591_v28 = vadd.f32 %v3590_v57, %v3589_v31  ;;  %v7131_v44 = vpop.permute.xlu1 %3305  ;;  %v3121_v12 = vadd.f32 %v3120_v32, %v3119_v63  ;;  %v5441_v31 = vld [vmem:[#allocation2 + $0xc] sm:$0xf] }
 0x28c   :  { %v3246_v36 = vsel %vm2286_vm4, %v3102_v3, %v3245_v50  ;;  %v3127_v30 = vrot.slane %v3126_v23, 2  ;;  %v3596_v0 = vsel %vm3588_vm12, %v3525_v47, 0.0  ;;  %v3603_v60 = vsel %vm3588_vm12, %v3526_v5, 0.0 }
 0x28d   :  { %4211 = vperm.xlu0 %5115, %v8030_v52   ;;  %v3247_v43 = vsel %vm2288_vm5, %v3109_v18, %v3246_v36  ;;  %v3115_v8 = vrot.slane %v3114_v4, 1  ;;  %v3592_v22 = vrot.slane %v3591_v28, 2  ;;  %v3597_v21 = vrot.slane %v3596_v0, 4  ;;  %v7136_v19 = vpop.permute.xlu0 %3309  ;;  %4207 = vperm.xlu1 %5116, %v8031_v49  }
 0x28e   :  { %v3122_v9 = vrot.slane %v3121_v12, 1  ;;  %v3128_v55 = vadd.f32 %v3127_v30, %v3126_v23  ;;  %v3604_v40 = vrot.slane %v3603_v60, 4  ;;  %v3528_v35 = vmul.f32 %v5440_v54, %v7100_v56  ;;  %v8032_v54 = vld [vmem:[#allocation15_spill] sm:$0xff] }
 0x28f   :  { %v3116_v10 = vadd.f32 %v3115_v8, %v3114_v4  ;;  %v3593_v63 = vadd.f32 %v3592_v22, %v3591_v28  ;;  %v3598_v14 = vadd.f32 %v3597_v21, %v3596_v0  ;;  %v3527_v50 = vmul.f32 %v5441_v31, %v7096_v13  ;;  %v7142_v3 = vpop.permute.xlu1 %3313  ;;  %v5442_v8 = vld [vmem:[#allocation2 + $0x18] sm:$0xf]  ;;  %v5443_v22 = vld [vmem:[#allocation2 + $0x14] sm:$0xf] }
 0x290   :  { %v3123_v1 = vadd.f32 %v3122_v9, %v3121_v12  ;;  %v3129_v57 = vrot.slane %v3128_v55, 1  ;;  %v3605_v18 = vadd.f32 %v3604_v40, %v3603_v60  ;;  %v3617_v32 = vsel %vm3588_vm12, %v3528_v35, 0.0 }
 0x291   :  { %4219 = vperm.xlu0 %5115, %v5942_v53   ;;  %v3248_v23 = vsel %vm2290_vm6, %v3116_v10, %v3247_v43  ;;  %v3594_v26 = vrot.slane %v3593_v63, 1  ;;  %v3599_v47 = vrot.slane %v3598_v14, 2  ;;  %v3618_v56 = vrot.slane %v3617_v32, 4  ;;  %v7146_v36 = vpop.permute.xlu0 %3317  ;;  %4215 = vperm.xlu1 %5116, %v5947_v45  }
 0x292   :  { %v3249_v13 = vsel %vm2292_vm7, %v3123_v1, %v3248_v23  ;;  %v3130_v4 = vadd.f32 %v3129_v57, %v3128_v55  ;;  %v3606_v53 = vrot.slane %v3605_v18, 2  ;;  %v3610_v28 = vsel %vm3588_vm12, %v3527_v50, 0.0  ;;  %v5444_v55 = vld [vmem:[#allocation2 + $0x20] sm:$0xf] }
 0x293   :  { %v3595_v37 = vadd.f32 %v3594_v26, %v3593_v63  ;;  %v3600_v5 = vadd.f32 %v3599_v47, %v3598_v14  ;;  %v3619_v52 = vadd.f32 %v3618_v56, %v3617_v32  ;;  %v3611_v12 = vrot.slane %v3610_v28, 4  ;;  %v7152_v43 = vpop.permute.xlu1 %3321 }
 0x294   :  { %v3250_v30 = vsel %vm2294_vm8, %v3130_v4, %v3249_v13  ;;  %v3607_v0 = vadd.f32 %v3606_v53, %v3605_v18  ;;  %v3530_v45 = vmul.f32 %v5442_v8, %v7113_v2  ;;  %v3529_v21 = vmul.f32 %v5443_v22, %v7109_v25  ;;  %v5445_v18 = vld [vmem:[#allocation2 + $0x1c] sm:$0xf]  ;;  %v5446_v8 = vld [vmem:[#allocation2 + $0x28] sm:$0xf] }
 0x295   :  { %4227 = vperm.xlu0 %5115, %v5957_v27   ;;  %3267 = vst.msk [vmem:[#allocation7 + $0x38] sm:$0xff] %vm3259_vm11, %v3250_v30  ;;  %v3601_v60 = vrot.slane %v3600_v5, 1  ;;  %v3620_v49 = vrot.slane %v3619_v52, 2  ;;  %v3612_v9 = vadd.f32 %v3611_v12, %v3610_v28  ;;  %v3532_v40 = vmul.f32 %v5444_v55, %v7124_v38  ;;  %v7159_v27 = vpop.permute.xlu0 %3325  ;;  %4223 = vperm.xlu1 %5116, %v8032_v54  }
 0x296   :  { %v3608_v35 = vrot.slane %v3607_v0, 1  ;;  %v3631_v10 = vsel %vm3588_vm12, %v3530_v45, 0.0  ;;  %v3624_v2 = vsel %vm3588_vm12, %v3529_v21, 0.0  ;;  %v3531_v32 = vmul.f32 %v5445_v18, %v7120_v58 }
 0x297   :  { %v3602_v63 = vadd.f32 %v3601_v60, %v3600_v5  ;;  %v3621_v14 = vadd.f32 %v3620_v49, %v3619_v52  ;;  %v3613_v25 = vrot.slane %v3612_v9, 2  ;;  %v3632_v31 = vrot.slane %v3631_v10, 4  ;;  %v7165_v50 = vpop.permute.xlu1 %3329 }
 0x298   :  { %v3609_v1 = vadd.f32 %v3608_v35, %v3607_v0  ;;  %v3625_v57 = vrot.slane %v3624_v2, 4  ;;  %v3645_v38 = vsel %vm3588_vm12, %v3532_v40, 0.0  ;;  %v3638_v28 = vsel %vm3588_vm12, %v3531_v32, 0.0 }
 0x299   :  { %4235 = vperm.xlu0 %5115, %v5980_v62   ;;  %v4101_v23 = vsel %vm2282_vm2, %v3602_v63, %v3595_v37  ;;  %v3622_v26 = vrot.slane %v3621_v14, 1  ;;  %v3614_v47 = vadd.f32 %v3613_v25, %v3612_v9  ;;  %v3633_v56 = vadd.f32 %v3632_v31, %v3631_v10  ;;  %v7170_v13 = vpop.permute.xlu0 %3333  ;;  %4231 = vperm.xlu1 %5116, %v5989_v39   ;;  %v5447_v39 = vld [vmem:[#allocation2 + $0x24] sm:$0xf]  ;;  %v5448_v9 = vld [vmem:[#allocation2 + $0x30] sm:$0xf] }
 0x29a   :  { %v4102_v62 = vsel %vm2284_vm3, %v3609_v1, %v4101_v23  ;;  %v3626_v4 = vadd.f32 %v3625_v57, %v3624_v2  ;;  %v3646_v53 = vrot.slane %v3645_v38, 4  ;;  %v3639_v30 = vrot.slane %v3638_v28, 4 }
 0x29b   :  { %v3623_v5 = vadd.f32 %v3622_v26, %v3621_v14  ;;  %v3615_v52 = vrot.slane %v3614_v47, 1  ;;  %v3634_v12 = vrot.slane %v3633_v56, 2  ;;  %v7176_v58 = vpop.permute.xlu1 %3337  ;;  %v3534_v45 = vmul.f32 %v5446_v8, %v7136_v19 }
 0x29c   :  { %v3627_v37 = vrot.slane %v3626_v4, 2  ;;  %v3647_v0 = vadd.f32 %v3646_v53, %v3645_v38  ;;  %v3533_v22 = vmul.f32 %v5447_v39, %v7131_v44  ;;  %v3640_v49 = vadd.f32 %v3639_v30, %v3638_v28  ;;  %v5450_v28 = vld [vmem:[#allocation2 + $0x38] sm:$0xf] }
 0x29d   :  { %4243 = vperm.xlu0 %5115, %v7960_v6   ;;  %v3616_v21 = vadd.f32 %v3615_v52, %v3614_v47  ;;  %v3635_v60 = vadd.f32 %v3634_v12, %v3633_v56  ;;  %v3536_v55 = vmul.f32 %v5448_v9, %v7146_v36  ;;  %v7181_v40 = vpop.permute.xlu0 %3341  ;;  %4239 = vperm.xlu1 %5116, %v6016_v41   ;;  %v3659_v35 = vsel %vm3588_vm12, %v3534_v45, 0.0 }
 0x29e   :  { %v3628_v6 = vadd.f32 %v3627_v37, %v3626_v4  ;;  %v3648_v54 = vrot.slane %v3647_v0, 2  ;;  %v3652_v19 = vsel %vm3588_vm12, %v3533_v22, 0.0  ;;  %v3641_v2 = vrot.slane %v3640_v49, 2  ;;  %v5449_v4 = vld [vmem:[#allocation2 + $0x2c] sm:$0xf] }
 0x29f   :  { %v4103_v10 = vsel %vm2286_vm4, %v3616_v21, %v4102_v62  ;;  %v3636_v44 = vrot.slane %v3635_v60, 1  ;;  %v3660_v63 = vrot.slane %v3659_v35, 4  ;;  %v7188_v14 = vpop.permute.xlu1 %3345  ;;  %v3653_v41 = vrot.slane %v3652_v19, 4 }
 0x2a0   :  { %v3629_v36 = vrot.slane %v3628_v6, 1  ;;  %v4104_v25 = vsel %vm2288_vm5, %v3623_v5, %v4103_v10  ;;  %v3649_v31 = vadd.f32 %v3648_v54, %v3647_v0  ;;  %v3642_v57 = vadd.f32 %v3641_v2, %v3640_v49  ;;  %v8033_v54 = vld [vmem:[#allocation21_spill] sm:$0xff] }
 0x2a1   :  { %4251 = vperm.xlu0 %5115, %v7962_v61   ;;  %v3637_v1 = vadd.f32 %v3636_v44, %v3635_v60  ;;  %v3661_v38 = vadd.f32 %v3660_v63, %v3659_v35  ;;  %v3673_v18 = vsel %vm3588_vm12, %v3536_v55, 0.0  ;;  %v7192_v32 = vpop.permute.xlu0 %3349  ;;  %4247 = vperm.xlu1 %5116, %v7959_v59   ;;  %v3654_v47 = vadd.f32 %v3653_v41, %v3652_v19  ;;  %v5451_v55 = vld [vmem:[#allocation2 + $0x34] sm:$0xf]  ;;  %v5452_v44 = vld [vmem:[#allocation2 + $0x40] sm:$0xf] }
 0x2a2   :  { %v3630_v23 = vadd.f32 %v3629_v36, %v3628_v6  ;;  %v3650_v26 = vrot.slane %v3649_v31, 1  ;;  %v3674_v61 = vrot.slane %v3673_v18, 4  ;;  %v3643_v56 = vrot.slane %v3642_v57, 1 }
 0x2a3   :  { %v3662_v62 = vrot.slane %v3661_v38, 2  ;;  %v3535_v53 = vmul.f32 %v5449_v4, %v7142_v3  ;;  %v3538_v5 = vmul.f32 %v5450_v28, %v7159_v27  ;;  %v7198_v52 = vpop.permute.xlu1 %3353  ;;  %v3655_v59 = vrot.slane %v3654_v47, 2 }
 0x2a4   :  { %v4105_v12 = vsel %vm2290_vm6, %v3630_v23, %v4104_v25  ;;  %v3651_v30 = vadd.f32 %v3650_v26, %v3649_v31  ;;  %v3675_v37 = vadd.f32 %v3674_v61, %v3673_v18  ;;  %v3644_v0 = vadd.f32 %v3643_v56, %v3642_v57  ;;  %v5453_v31 = vld [vmem:[#allocation2 + $0x3c] sm:$0xf]  ;;  %v5454_v61 = vld [vmem:[#allocation2 + $0x48] sm:$0xf] }
 0x2a5   :  { %4259 = vperm.xlu0 %5115, %v7964_v34   ;;  %v4106_v8 = vsel %vm2292_vm7, %v3637_v1, %v4105_v12  ;;  %v3663_v45 = vadd.f32 %v3662_v62, %v3661_v38  ;;  %v3666_v39 = vsel %vm3588_vm12, %v3535_v53, 0.0  ;;  %v7203_v22 = vpop.permute.xlu0 %3357  ;;  %4255 = vperm.xlu1 %5116, %v7961_v46   ;;  %v3656_v3 = vadd.f32 %v3655_v59, %v3654_v47  ;;  %v8034_v1 = vld [vmem:[#allocation22_spill] sm:$0xff]  ;;  %v8035_v62 = vld [vmem:[#allocation23_spill] sm:$0xff] }
 0x2a6   :  { %v3676_v27 = vrot.slane %v3675_v37, 2  ;;  %v3667_v34 = vrot.slane %v3666_v39, 4  ;;  %v3687_v21 = vsel %vm3588_vm12, %v3538_v5, 0.0  ;;  %v4107_v60 = vsel %vm2294_vm8, %v3644_v0, %v4106_v8 }
 0x2a7   :  { %v3664_v49 = vrot.slane %v3663_v45, 1  ;;  %v3688_v9 = vrot.slane %v3687_v21, 4  ;;  %v3537_v6 = vmul.f32 %v5451_v55, %v7152_v43  ;;  %v7210_v35 = vpop.permute.xlu1 %3361  ;;  %4166 = vst.msk [vmem:[#allocation7] sm:$0xff] %vm4165_vm13, %v4107_v60  ;;  %v3657_v19 = vrot.slane %v3656_v3, 1 }
 0x2a8   :  { %v3677_v46 = vadd.f32 %v3676_v27, %v3675_v37  ;;  %v3668_v10 = vadd.f32 %v3667_v34, %v3666_v39  ;;  %v3540_v2 = vmul.f32 %v5452_v44, %v7170_v13  ;;  %v3539_v41 = vmul.f32 %v5453_v31, %v7165_v50  ;;  %v5455_v27 = vld [vmem:[#allocation2 + $0x44] sm:$0xf] }
 0x2a9   :  { %4267 = vperm.xlu0 %5115, %v8033_v54   ;;  %v3665_v63 = vadd.f32 %v3664_v49, %v3663_v45  ;;  %v3689_v36 = vadd.f32 %v3688_v9, %v3687_v21  ;;  %v3680_v25 = vsel %vm3588_vm12, %v3537_v6, 0.0  ;;  %v7216_v43 = vpop.permute.xlu0 %3365  ;;  %4263 = vperm.xlu1 %5116, %v8034_v1   ;;  %v3658_v57 = vadd.f32 %v3657_v19, %v3656_v3  ;;  %v8036_v45 = vld [vmem:[#allocation24_spill] sm:$0xff]  ;;  %v5456_v19 = vld [vmem:[#allocation2 + $0x50] sm:$0xf] }
 0x2aa   :  { %v3678_v38 = vrot.slane %v3677_v46, 1  ;;  %v3669_v18 = vrot.slane %v3668_v10, 2  ;;  %v3681_v23 = vrot.slane %v3680_v25, 4  ;;  %v3701_v47 = vsel %vm3588_vm12, %v3540_v2, 0.0 }
 0x2ab   :  { %v3690_v26 = vrot.slane %v3689_v36, 2  ;;  %v3694_v13 = vsel %vm3588_vm12, %v3539_v41, 0.0  ;;  %v3542_v56 = vmul.f32 %v5454_v61, %v7181_v40  ;;  %v7223_v4 = vpop.permute.xlu1 %3369  ;;  %v4108_v50 = vsel %vm2282_vm2, %v3658_v57, %v3651_v30  ;;  %v5457_v61 = vld [vmem:[#allocation2 + $0x4c] sm:$0xf] }
 0x2ac   :  { %v3679_v53 = vadd.f32 %v3678_v38, %v3677_v46  ;;  %v3670_v28 = vadd.f32 %v3669_v18, %v3668_v10  ;;  %v3682_v5 = vadd.f32 %v3681_v23, %v3680_v25  ;;  %v4109_v12 = vsel %vm2284_vm3, %v3665_v63, %v4108_v50 }
 0x2ad   :  { %4275 = vperm.xlu0 %5115, %v8035_v62   ;;  %v3691_v59 = vadd.f32 %v3690_v26, %v3689_v36  ;;  %v3702_v37 = vrot.slane %v3701_v47, 4  ;;  %v3695_v0 = vrot.slane %v3694_v13, 4  ;;  %v7227_v8 = vpop.permute.xlu0 %3373  ;;  %4271 = vperm.xlu1 %5116, %v8036_v45   ;;  %v3715_v3 = vsel %vm3588_vm12, %v3542_v56, 0.0  ;;  %v8037_v36 = vld [vmem:[#allocation26_spill] sm:$0xff] }
 0x2ae   :  { %v3671_v39 = vrot.slane %v3670_v28, 1  ;;  %v3683_v40 = vrot.slane %v3682_v5, 2  ;;  %v3541_v34 = vmul.f32 %v5455_v27, %v7176_v58  ;;  %v3716_v49 = vrot.slane %v3715_v3, 4 }
 0x2af   :  { %v3692_v30 = vrot.slane %v3691_v59, 1  ;;  %v3703_v21 = vadd.f32 %v3702_v37, %v3701_v47  ;;  %v3696_v60 = vadd.f32 %v3695_v0, %v3694_v13  ;;  %v7233_v9 = vpop.permute.xlu1 %3377  ;;  %v3544_v46 = vmul.f32 %v5456_v19, %v7192_v32  ;;  %v8038_v32 = vld [vmem:[#allocation27_spill] sm:$0xff]  ;;  %v5459_v19 = vld [vmem:[#allocation2 + $0x54] sm:$0xf] }
 0x2b0   :  { %v3672_v55 = vadd.f32 %v3671_v39, %v3670_v28  ;;  %v3684_v6 = vadd.f32 %v3683_v40, %v3682_v5  ;;  %v3708_v54 = vsel %vm3588_vm12, %v3541_v34, 0.0  ;;  %v3717_v63 = vadd.f32 %v3716_v49, %v3715_v3  ;;  %v5458_v5 = vld [vmem:[#allocation2 + $0x58] sm:$0xf]  ;;  %v8040_v34 = vld [vmem:[#allocation29_spill] sm:$0xff] }
 0x2b1   :  { %4283 = vperm.xlu0 %5115, %v8005_v16   ;;  %v3693_v10 = vadd.f32 %v3692_v30, %v3691_v59  ;;  %v3704_v44 = vrot.slane %v3703_v21, 2  ;;  %v3697_v2 = vrot.slane %v3696_v60, 2  ;;  %v7237_v58 = vpop.permute.xlu0 %3381  ;;  %4279 = vperm.xlu1 %5116, %v8037_v36   ;;  %v3709_v31 = vrot.slane %v3708_v54, 4  ;;  %v8039_v59 = vld [vmem:[#allocation28_spill] sm:$0xff] }
 0x2b2   :  { %v4110_v25 = vsel %vm2286_vm4, %v3672_v55, %v4109_v12  ;;  %v3685_v16 = vrot.slane %v3684_v6, 1  ;;  %v3729_v41 = vsel %vm3588_vm12, %v3544_v46, 0.0  ;;  %v3718_v18 = vrot.slane %v3717_v63, 2 }
 0x2b3   :  { %v4111_v1 = vsel %vm2288_vm5, %v3679_v53, %v4110_v25  ;;  %v3705_v57 = vadd.f32 %v3704_v44, %v3703_v21  ;;  %v3698_v38 = vadd.f32 %v3697_v2, %v3696_v60  ;;  %v7244_v23 = vpop.permute.xlu1 %3385  ;;  %v3710_v47 = vadd.f32 %v3709_v31, %v3708_v54  ;;  %v5460_v25 = vld [vmem:[#allocation2 + $0x60] sm:$0xf] }
 0x2b4   :  { %v3686_v26 = vadd.f32 %v3685_v16, %v3684_v6  ;;  %v3730_v13 = vrot.slane %v3729_v41, 4  ;;  %v3543_v56 = vmul.f32 %v5457_v61, %v7188_v14  ;;  %v3719_v28 = vadd.f32 %v3718_v18, %v3717_v63  ;;  %v8042_v18 = vld [vmem:[#allocation31_spill] sm:$0xff] }
 0x2b5   :  { %4291 = vperm.xlu0 %5115, %v8038_v32   ;;  %v3706_v62 = vrot.slane %v3705_v57, 1  ;;  %v3699_v50 = vrot.slane %v3698_v38, 1  ;;  %v3546_v12 = vmul.f32 %v5458_v5, %v7203_v22  ;;  %v7248_v53 = vpop.permute.xlu0 %3389  ;;  %4287 = vperm.xlu1 %5116, %v8039_v59   ;;  %v3711_v0 = vrot.slane %v3710_v47, 2 }
 0x2b6   :  { %v4112_v37 = vsel %vm2290_vm6, %v3686_v26, %v4111_v1  ;;  %v3731_v45 = vadd.f32 %v3730_v13, %v3729_v41  ;;  %v3722_v39 = vsel %vm3588_vm12, %v3543_v56, 0.0  ;;  %v3720_v27 = vrot.slane %v3719_v28, 1  ;;  %v5461_v1 = vld [vmem:[#allocation2 + $0x5c] sm:$0xf] }
 0x2b7   :  { %v3707_v40 = vadd.f32 %v3706_v62, %v3705_v57  ;;  %v3700_v3 = vadd.f32 %v3699_v50, %v3698_v38  ;;  %v4113_v14 = vsel %vm2292_vm7, %v3693_v10, %v4112_v37  ;;  %v7255_v30 = vpop.permute.xlu1 %3393  ;;  %v3712_v22 = vadd.f32 %v3711_v0, %v3710_v47  ;;  %v8041_v10 = vld [vmem:[#allocation30_spill] sm:$0xff]  ;;  %v5462_v38 = vld [vmem:[#allocation2 + $0x68] sm:$0xf] }
 0x2b8   :  { %v3732_v21 = vrot.slane %v3731_v45, 2  ;;  %v3723_v60 = vrot.slane %v3722_v39, 4  ;;  %v3743_v49 = vsel %vm3588_vm12, %v3546_v12, 0.0  ;;  %v3721_v6 = vadd.f32 %v3720_v27, %v3719_v28 }
 0x2b9   :  { %4299 = vperm.xlu0 %5115, %v8040_v34   ;;  %v4114_v55 = vsel %vm2294_vm8, %v3700_v3, %v4113_v14  ;;  %v3744_v54 = vrot.slane %v3743_v49, 4  ;;  %v3545_v46 = vmul.f32 %v5459_v19, %v7198_v52  ;;  %v7260_v44 = vpop.permute.xlu0 %3397  ;;  %4295 = vperm.xlu1 %5116, %v8041_v10   ;;  %v3713_v2 = vrot.slane %v3712_v22, 1  ;;  %v8044_v3 = vld [vmem:[#allocation33_spill] sm:$0xff] }
 0x2ba   :  { %4167 = vst.msk [vmem:[#allocation7 + $0x8] sm:$0xff] %vm4165_vm13, %v4114_v55  ;;  %v3733_v63 = vadd.f32 %v3732_v21, %v3731_v45  ;;  %v3724_v36 = vadd.f32 %v3723_v60, %v3722_v39  ;;  %v3548_v16 = vmul.f32 %v5460_v25, %v7216_v43  ;;  %v3547_v57 = vmul.f32 %v5461_v1, %v7210_v35  ;;  %v8043_v35 = vld [vmem:[#allocation32_spill] sm:$0xff]  ;;  %v5463_v21 = vld [vmem:[#allocation2 + $0x64] sm:$0xf] }
 0x2bb   :  { %v3745_v31 = vadd.f32 %v3744_v54, %v3743_v49  ;;  %v3736_v41 = vsel %vm3588_vm12, %v3545_v46, 0.0  ;;  %v3550_v52 = vmul.f32 %v5462_v38, %v7227_v8  ;;  %v7269_v32 = vpop.permute.xlu1 %3401  ;;  %v3714_v26 = vadd.f32 %v3713_v2, %v3712_v22  ;;  %v5464_v54 = vld [vmem:[#allocation2 + $0x70] sm:$0xf]  ;;  %v8045_v46 = vld [vmem:[#allocation34_spill] sm:$0xff] }
 0x2bc   :  { %v3734_v47 = vrot.slane %v3733_v63, 1  ;;  %v3725_v13 = vrot.slane %v3724_v36, 2  ;;  %v3737_v61 = vrot.slane %v3736_v41, 4  ;;  %v3757_v43 = vsel %vm3588_vm12, %v3548_v16, 0.0 }
 0x2bd   :  { %4307 = vperm.xlu0 %5115, %v8042_v18   ;;  %v3746_v56 = vrot.slane %v3745_v31, 2  ;;  %v3750_v62 = vsel %vm3588_vm12, %v3547_v57, 0.0  ;;  %v3771_v50 = vsel %vm3588_vm12, %v3550_v52, 0.0  ;;  %v7274_v28 = vpop.permute.xlu0 %3405  ;;  %4303 = vperm.xlu1 %5116, %v8043_v35   ;;  %v4115_v8 = vsel %vm2282_vm2, %v3714_v26, %v3707_v40 }
 0x2be   :  { %v3735_v5 = vadd.f32 %v3734_v47, %v3733_v63  ;;  %v3726_v12 = vadd.f32 %v3725_v13, %v3724_v36  ;;  %v3738_v59 = vadd.f32 %v3737_v61, %v3736_v41  ;;  %v4116_v37 = vsel %vm2284_vm3, %v3721_v6, %v4115_v8  ;;  %v8046_v61 = vld [vmem:[#allocation36_spill] sm:$0xff] }
 0x2bf   :  { %v3747_v0 = vadd.f32 %v3746_v56, %v3745_v31  ;;  %v3758_v45 = vrot.slane %v3757_v43, 4  ;;  %v3751_v39 = vrot.slane %v3750_v62, 4  ;;  %v7280_v14 = vpop.permute.xlu1 %3409  ;;  %v3772_v22 = vrot.slane %v3771_v50, 4 }
 0x2c0   :  { %v3727_v27 = vrot.slane %v3726_v12, 1  ;;  %v3739_v34 = vrot.slane %v3738_v59, 2  ;;  %v3549_v60 = vmul.f32 %v5463_v21, %v7223_v4  ;;  %v3552_v19 = vmul.f32 %v5464_v54, %v7237_v58 }
 0x2c1   :  { %4315 = vperm.xlu0 %5115, %v8044_v3   ;;  %v3748_v49 = vrot.slane %v3747_v0, 1  ;;  %v3759_v40 = vadd.f32 %v3758_v45, %v3757_v43  ;;  %v3752_v55 = vadd.f32 %v3751_v39, %v3750_v62  ;;  %v7284_v6 = vpop.permute.xlu0 %3413  ;;  %4311 = vperm.xlu1 %5116, %v8045_v46   ;;  %v3773_v63 = vadd.f32 %v3772_v22, %v3771_v50  ;;  %v5465_v62 = vld [vmem:[#allocation2 + $0x6c] sm:$0xf] }
 0x2c2   :  { %v3728_v10 = vadd.f32 %v3727_v27, %v3726_v12  ;;  %v3740_v2 = vadd.f32 %v3739_v34, %v3738_v59  ;;  %v3764_v36 = vsel %vm3588_vm12, %v3549_v60, 0.0  ;;  %v3785_v38 = vsel %vm3588_vm12, %v3552_v19, 0.0  ;;  %v5466_v59 = vld [vmem:[#allocation2 + $0x78] sm:$0xf]  ;;  %v5467_v19 = vld [vmem:[#allocation2 + $0x74] sm:$0xf] }
 0x2c3   :  { %v3749_v25 = vadd.f32 %v3748_v49, %v3747_v0  ;;  %v3760_v16 = vrot.slane %v3759_v40, 2  ;;  %v3753_v31 = vrot.slane %v3752_v55, 2  ;;  %v3765_v41 = vrot.slane %v3764_v36, 4  ;;  %v7289_v4 = vpop.permute.xlu1 %3417 }
 0x2c4   :  { %v4117_v1 = vsel %vm2286_vm4, %v3728_v10, %v4116_v37  ;;  %v3741_v58 = vrot.slane %v3740_v2, 1  ;;  %v3774_v57 = vrot.slane %v3773_v63, 2  ;;  %v3551_v50 = vmul.f32 %v5465_v62, %v7233_v9  ;;  %v8047_v10 = vld [vmem:[#allocation39_spill] sm:$0xff] }
 0x2c5   :  { %4323 = vperm.xlu0 %5115, %v8014_v20   ;;  %v4118_v52 = vsel %vm2288_vm5, %v3735_v5, %v4117_v1  ;;  %v3761_v18 = vadd.f32 %v3760_v16, %v3759_v40  ;;  %v3754_v26 = vadd.f32 %v3753_v31, %v3752_v55  ;;  %v3766_v47 = vadd.f32 %v3765_v41, %v3764_v36  ;;  %v7294_v13 = vpop.permute.xlu0 %3421  ;;  %v5468_v36 = vld [vmem:[#allocation2 + $0x80] sm:$0xf]  ;;  %v5469_v16 = vld [vmem:[#allocation2 + $0x7c] sm:$0xf] }
 0x2c6   :  { %4319 = vperm.xlu1 %5116, %v8046_v61   ;;  %v3742_v56 = vadd.f32 %v3741_v58, %v3740_v2  ;;  %v3775_v43 = vadd.f32 %v3774_v57, %v3773_v63  ;;  %v3786_v20 = vrot.slane %v3785_v38, 4  ;;  %v3554_v37 = vmul.f32 %v5466_v59, %v7248_v53  ;;  %v5470_v57 = vld [vmem:[#allocation2 + $0x88] sm:$0xf] }
 0x2c7   :  { %v3762_v35 = vrot.slane %v3761_v18, 1  ;;  %v3755_v8 = vrot.slane %v3754_v26, 1  ;;  %v3767_v12 = vrot.slane %v3766_v47, 2  ;;  %v7300_v5 = vpop.permute.xlu1 %3425  ;;  %v3778_v3 = vsel %vm3588_vm12, %v3551_v50, 0.0 }
 0x2c8   :  { %v4119_v0 = vsel %vm2290_vm6, %v3742_v56, %v4118_v52  ;;  %v3776_v45 = vrot.slane %v3775_v43, 1  ;;  %v3787_v39 = vadd.f32 %v3786_v20, %v3785_v38  ;;  %v3799_v49 = vsel %vm3588_vm12, %v3554_v37, 0.0  ;;  %v8048_v52 = vld [vmem:[#allocation40_spill] sm:$0xff] }
 0x2c9   :  { %4331 = vperm.xlu0 %5115, %v7982_v24   ;;  %v3763_v27 = vadd.f32 %v3762_v35, %v3761_v18  ;;  %v3756_v34 = vadd.f32 %v3755_v8, %v3754_v26  ;;  %v4120_v9 = vsel %vm2292_vm7, %v3749_v25, %v4119_v0  ;;  %v3768_v22 = vadd.f32 %v3767_v12, %v3766_v47  ;;  %v7305_v21 = vpop.permute.xlu0 %3429 }
 0x2ca   :  { %4327 = vperm.xlu1 %5116, %v8015_v51   ;;  %v3777_v53 = vadd.f32 %v3776_v45, %v3775_v43  ;;  %v3788_v60 = vrot.slane %v3787_v39, 2  ;;  %v3779_v24 = vrot.slane %v3778_v3, 4  ;;  %v3800_v54 = vrot.slane %v3799_v49, 4 }
 0x2cb   :  { %v4121_v40 = vsel %vm2294_vm8, %v3756_v34, %v4120_v9  ;;  %v3769_v55 = vrot.slane %v3768_v22, 1  ;;  %v3553_v46 = vmul.f32 %v5467_v19, %v7244_v23  ;;  %v7312_v2 = vpop.permute.xlu1 %3433  ;;  %v3556_v25 = vmul.f32 %v5468_v36, %v7260_v44 }
 0x2cc   :  { %4168 = vst.msk [vmem:[#allocation7 + $0x10] sm:$0xff] %vm4165_vm13, %v4121_v40  ;;  %v3789_v63 = vadd.f32 %v3788_v60, %v3787_v39  ;;  %v3780_v51 = vadd.f32 %v3779_v24, %v3778_v3  ;;  %v3555_v31 = vmul.f32 %v5469_v16, %v7255_v30  ;;  %v3801_v1 = vadd.f32 %v3800_v54, %v3799_v49 }
 0x2cd   :  { %4339 = vperm.xlu0 %5115, %v8047_v10   ;;  %v3770_v41 = vadd.f32 %v3769_v55, %v3768_v22  ;;  %v3792_v58 = vsel %vm3588_vm12, %v3553_v46, 0.0  ;;  %v3558_v23 = vmul.f32 %v5470_v57, %v7274_v28  ;;  %v7319_v38 = vpop.permute.xlu0 %3437  ;;  %v3813_v61 = vsel %vm3588_vm12, %v3556_v25, 0.0 }
 0x2ce   :  { %4335 = vperm.xlu1 %5116, %v8048_v52   ;;  %v3790_v18 = vrot.slane %v3789_v63, 1  ;;  %v3781_v26 = vrot.slane %v3780_v51, 2  ;;  %v3793_v47 = vrot.slane %v3792_v58, 4  ;;  %v3802_v56 = vrot.slane %v3801_v1, 2 }
 0x2cf   :  { %v4122_v44 = vsel %vm2282_vm2, %v3770_v41, %v3763_v27  ;;  %v3814_v30 = vrot.slane %v3813_v61, 4  ;;  %v3806_v43 = vsel %vm3588_vm12, %v3555_v31, 0.0  ;;  %v7326_v20 = vpop.permute.xlu1 %3441  ;;  %v3827_v37 = vsel %vm3588_vm12, %v3558_v23, 0.0  ;;  %v5473_v23 = vld [vmem:[#allocation2 + $0x8c] sm:$0xf] }
 0x2d0   :  { %v3791_v28 = vadd.f32 %v3790_v18, %v3789_v63  ;;  %v3782_v62 = vadd.f32 %v3781_v26, %v3780_v51  ;;  %v4123_v50 = vsel %vm2284_vm3, %v3777_v53, %v4122_v44  ;;  %v3794_v35 = vadd.f32 %v3793_v47, %v3792_v58  ;;  %v5472_v53 = vld [vmem:[#allocation2 + $0x90] sm:$0xf]  ;;  %v5474_v47 = vld [vmem:[#allocation2 + $0x98] sm:$0xf] }
 0x2d1   :  { %4371 = vperm.xlu0 %5115, %v7992_v11   ;;  %v3803_v8 = vadd.f32 %v3802_v56, %v3801_v1  ;;  %v3815_v12 = vadd.f32 %v3814_v30, %v3813_v61  ;;  %v3807_v59 = vrot.slane %v3806_v43, 4  ;;  %v7330_v0 = vpop.permute.xlu0 %3445  ;;  %v3828_v3 = vrot.slane %v3827_v37, 4  ;;  %v5471_v11 = vld [vmem:[#allocation2 + $0x84] sm:$0xf]  ;;  %v8049_v56 = vld [vmem:[#allocation42_spill] sm:$0xff] }
 0x2d2   :  { %4367 = vperm.xlu1 %5116, %v8018_v15   ;;  %v3783_v45 = vrot.slane %v3782_v62, 1  ;;  %v3795_v39 = vrot.slane %v3794_v35, 2  ;;  %v3557_v27 = vmul.f32 %v5471_v11, %v7269_v32  ;;  %v3560_v60 = vmul.f32 %v5472_v53, %v7284_v6 }
 0x2d3   :  { %v3804_v34 = vrot.slane %v3803_v8, 1  ;;  %v3816_v9 = vrot.slane %v3815_v12, 2  ;;  %v3808_v22 = vadd.f32 %v3807_v59, %v3806_v43  ;;  %v7336_v24 = vpop.permute.xlu1 %3449  ;;  %v3829_v55 = vadd.f32 %v3828_v3, %v3827_v37 }
 0x2d4   :  { %v3784_v49 = vadd.f32 %v3783_v45, %v3782_v62  ;;  %v3796_v40 = vadd.f32 %v3795_v39, %v3794_v35  ;;  %v3820_v15 = vsel %vm3588_vm12, %v3557_v27, 0.0  ;;  %v3562_v61 = vmul.f32 %v5474_v47, %v7294_v13  ;;  %v5475_v45 = vld [vmem:[#allocation2 + $0x94] sm:$0xf] }
 0x2d5   :  { %4403 = vperm.xlu0 %5115, %v8024_v42   ;;  %v3805_v54 = vadd.f32 %v3804_v34, %v3803_v8  ;;  %v3817_v19 = vadd.f32 %v3816_v9, %v3815_v12  ;;  %v3809_v46 = vrot.slane %v3808_v22, 2  ;;  %v3821_v10 = vrot.slane %v3820_v15, 4  ;;  %v7339_v32 = vpop.permute.xlu0 %3453  ;;  %v8050_v8 = vld [vmem:[#allocation41_spill] sm:$0xff] }
 0x2d6   :  { %4399 = vperm.xlu1 %5116, %v8023_v29   ;;  %v4124_v63 = vsel %vm2286_vm4, %v3784_v49, %v4123_v50  ;;  %v3797_v6 = vrot.slane %v3796_v40, 1  ;;  %v3830_v51 = vrot.slane %v3829_v55, 2  ;;  %v3841_v42 = vsel %vm3588_vm12, %v3560_v60, 0.0  ;;  %v5476_v60 = vld [vmem:[#allocation2 + $0xa0] sm:$0xf] }
 0x2d7   :  { %v4125_v36 = vsel %vm2288_vm5, %v3791_v28, %v4124_v63  ;;  %v3818_v25 = vrot.slane %v3817_v19, 1  ;;  %v3810_v16 = vadd.f32 %v3809_v46, %v3808_v22  ;;  %v3822_v31 = vadd.f32 %v3821_v10, %v3820_v15  ;;  %v7346_v41 = vpop.permute.xlu1 %3457  ;;  %v8051_v46 = vld [vmem:[#allocation57_spill] sm:$0xff] }
 0x2d8   :  { %v3798_v1 = vadd.f32 %v3797_v6, %v3796_v40  ;;  %v3831_v58 = vadd.f32 %v3830_v51, %v3829_v55  ;;  %v3842_v57 = vrot.slane %v3841_v42, 4  ;;  %v3559_v29 = vmul.f32 %v5473_v23, %v7280_v14  ;;  %v5477_v40 = vld [vmem:[#allocation2 + $0x9c] sm:$0xf]  ;;  %v5478_v51 = vld [vmem:[#allocation2 + $0xa8] sm:$0xf] }
 0x2d9   :  { %4375 = vperm.xlu0 %5115, %v7991_v7   ;;  %v3819_v52 = vadd.f32 %v3818_v25, %v3817_v19  ;;  %v3811_v18 = vrot.slane %v3810_v16, 1  ;;  %v3823_v26 = vrot.slane %v3822_v31, 2  ;;  %v7350_v44 = vpop.permute.xlu0 %3461  ;;  %v3855_v37 = vsel %vm3588_vm12, %v3562_v61, 0.0 }
 0x2da   :  { %4343 = vperm.xlu1 %5116, %v8049_v56   ;;  %v4126_v7 = vsel %vm2290_vm6, %v3798_v1, %v4125_v36  ;;  %v3832_v30 = vrot.slane %v3831_v58, 1  ;;  %v3843_v43 = vadd.f32 %v3842_v57, %v3841_v42  ;;  %v3834_v28 = vsel %vm3588_vm12, %v3559_v29, 0.0 }
 0x2db   :  { %v3812_v62 = vadd.f32 %v3811_v18, %v3810_v16  ;;  %v4127_v50 = vsel %vm2292_vm7, %v3805_v54, %v4126_v7  ;;  %v3824_v14 = vadd.f32 %v3823_v26, %v3822_v31  ;;  %v3835_v35 = vrot.slane %v3834_v28, 4  ;;  %v7357_v12 = vpop.permute.xlu1 %3465  ;;  %v8052_v31 = vld [vmem:[#allocation49_spill] sm:$0xff] }
 0x2dc   :  { %v3833_v13 = vadd.f32 %v3832_v30, %v3831_v58  ;;  %v3844_v59 = vrot.slane %v3843_v43, 2  ;;  %v3561_v39 = vmul.f32 %v5475_v45, %v7289_v4  ;;  %v3856_v34 = vrot.slane %v3855_v37, 4  ;;  %v5479_v30 = vld [vmem:[#allocation2 + $0xa4] sm:$0xf] }
 0x2dd   :  { %4347 = vperm.xlu0 %5115, %v8050_v8   ;;  %v4128_v3 = vsel %vm2294_vm8, %v3812_v62, %v4127_v50  ;;  %v3825_v11 = vrot.slane %v3824_v14, 1  ;;  %v3836_v27 = vadd.f32 %v3835_v35, %v3834_v28  ;;  %v7362_v9 = vpop.permute.xlu0 %3469  ;;  %v3564_v49 = vmul.f32 %v5476_v60, %v7305_v21 }
 0x2de   :  { %4407 = vperm.xlu1 %5116, %v8025_v48   ;;  %4169 = vst.msk [vmem:[#allocation7 + $0x18] sm:$0xff] %vm4165_vm13, %v4128_v3  ;;  %v3845_v22 = vadd.f32 %v3844_v59, %v3843_v43  ;;  %v3848_v53 = vsel %vm3588_vm12, %v3561_v39, 0.0  ;;  %v3563_v4 = vmul.f32 %v5477_v40, %v7300_v5  ;;  %v3857_v54 = vadd.f32 %v3856_v34, %v3855_v37  ;;  %v8055_v34 = vld [vmem:[#allocation43_spill] sm:$0xff] }
 0x2df   :  { %v3826_v55 = vadd.f32 %v3825_v11, %v3824_v14  ;;  %v3837_v15 = vrot.slane %v3836_v27, 2  ;;  %v3849_v19 = vrot.slane %v3848_v53, 4  ;;  %v7370_v10 = vpop.permute.xlu1 %3473  ;;  %v3869_v63 = vsel %vm3588_vm12, %v3564_v49, 0.0  ;;  %v5480_v14 = vld [vmem:[#allocation2 + $0xb0] sm:$0xf] }
 0x2e0   :  { %v3846_v48 = vrot.slane %v3845_v22, 1  ;;  %v3862_v6 = vsel %vm3588_vm12, %v3563_v4, 0.0  ;;  %v3566_v42 = vmul.f32 %v5478_v51, %v7319_v38  ;;  %v3858_v5 = vrot.slane %v3857_v54, 2  ;;  %v8053_v38 = vld [vmem:[#allocation52_spill] sm:$0xff] }
 0x2e1   :  { %4411 = vperm.xlu0 %5115, %v8051_v46   ;;  %v4129_v21 = vsel %vm2282_vm2, %v3826_v55, %v3819_v52  ;;  %v3838_v36 = vadd.f32 %v3837_v15, %v3836_v27  ;;  %v3850_v25 = vadd.f32 %v3849_v19, %v3848_v53  ;;  %v7376_v16 = vpop.permute.xlu0 %3477  ;;  %v3870_v57 = vrot.slane %v3869_v63, 4  ;;  %v5481_v15 = vld [vmem:[#allocation2 + $0xac] sm:$0xf] }
 0x2e2   :  { %4379 = vperm.xlu1 %5116, %v8052_v31   ;;  %v3847_v1 = vadd.f32 %v3846_v48, %v3845_v22  ;;  %v4130_v58 = vsel %vm2284_vm3, %v3833_v13, %v4129_v21  ;;  %v3863_v23 = vrot.slane %v3862_v6, 4  ;;  %v3859_v18 = vadd.f32 %v3858_v5, %v3857_v54  ;;  %v8054_v13 = vld [vmem:[#allocation44_spill] sm:$0xff]  ;;  %v5482_v5 = vld [vmem:[#allocation2 + $0xb8] sm:$0xf]  ;;  %v8057_v31 = vld [vmem:[#allocation59_spill] sm:$0xff] }
 0x2e3   :  { %v3839_v29 = vrot.slane %v3838_v36, 1  ;;  %v3851_v26 = vrot.slane %v3850_v25, 2  ;;  %v3883_v47 = vsel %vm3588_vm12, %v3566_v42, 0.0  ;;  %v7382_v52 = vpop.permute.xlu1 %3481  ;;  %v3871_v61 = vadd.f32 %v3870_v57, %v3869_v63  ;;  %v8056_v46 = vld [vmem:[#allocation60_spill] sm:$0xff] }
 0x2e4   :  { %v3864_v56 = vadd.f32 %v3863_v23, %v3862_v6  ;;  %v3884_v7 = vrot.slane %v3883_v47, 4  ;;  %v3565_v43 = vmul.f32 %v5479_v30, %v7312_v2  ;;  %v3860_v62 = vrot.slane %v3859_v18, 1  ;;  %v5483_v30 = vld [vmem:[#allocation2 + $0xb4] sm:$0xf] }
 0x2e5   :  { %4383 = vperm.xlu0 %5115, %v8053_v38   ;;  %v3840_v28 = vadd.f32 %v3839_v29, %v3838_v36  ;;  %v3852_v50 = vadd.f32 %v3851_v26, %v3850_v25  ;;  %v3568_v35 = vmul.f32 %v5480_v14, %v7330_v0  ;;  %v7386_v8 = vpop.permute.xlu0 %3485  ;;  %v3872_v59 = vrot.slane %v3871_v61, 2  ;;  %v5484_v14 = vld [vmem:[#allocation2 + $0xc0] sm:$0xf] }
 0x2e6   :  { %4351 = vperm.xlu1 %5116, %v8054_v13   ;;  %v3865_v37 = vrot.slane %v3864_v56, 2  ;;  %v3885_v45 = vadd.f32 %v3884_v7, %v3883_v47  ;;  %v3876_v39 = vsel %vm3588_vm12, %v3565_v43, 0.0  ;;  %v3861_v11 = vadd.f32 %v3860_v62, %v3859_v18  ;;  %v8059_v13 = vld [vmem:[#allocation54_spill] sm:$0xff] }
 0x2e7   :  { %v4131_v3 = vsel %vm2286_vm4, %v3840_v28, %v4130_v58  ;;  %v3853_v27 = vrot.slane %v3852_v50, 1  ;;  %v3877_v2 = vrot.slane %v3876_v39, 4  ;;  %v7392_v22 = vpop.permute.xlu1 %3489  ;;  %v3873_v53 = vadd.f32 %v3872_v59, %v3871_v61  ;;  %v8058_v61 = vld [vmem:[#allocation51_spill] sm:$0xff] }
 0x2e8   :  { %v4132_v0 = vsel %vm2288_vm5, %v3847_v1, %v4131_v3  ;;  %v3866_v60 = vadd.f32 %v3865_v37, %v3864_v56  ;;  %v3886_v49 = vrot.slane %v3885_v45, 2  ;;  %v3897_v55 = vsel %vm3588_vm12, %v3568_v35, 0.0 }
 0x2e9   :  { %4355 = vperm.xlu0 %5115, %v8055_v34   ;;  %v3854_v40 = vadd.f32 %v3853_v27, %v3852_v50  ;;  %v3878_v4 = vadd.f32 %v3877_v2, %v3876_v39  ;;  %v3567_v54 = vmul.f32 %v5481_v15, %v7326_v20  ;;  %v7397_v19 = vpop.permute.xlu0 %3493  ;;  %v3874_v48 = vrot.slane %v3873_v53, 1  ;;  %v5485_v39 = vld [vmem:[#allocation2 + $0xbc] sm:$0xf] }
 0x2ea   :  { %4415 = vperm.xlu1 %5116, %v8056_v46   ;;  %v3867_v63 = vrot.slane %v3866_v60, 1  ;;  %v3887_v6 = vadd.f32 %v3886_v49, %v3885_v45  ;;  %v3898_v51 = vrot.slane %v3897_v55, 4  ;;  %v3570_v25 = vmul.f32 %v5482_v5, %v7339_v32 }
 0x2eb   :  { %v4133_v42 = vsel %vm2290_vm6, %v3854_v40, %v4132_v0  ;;  %v3879_v21 = vrot.slane %v3878_v4, 2  ;;  %v3890_v36 = vsel %vm3588_vm12, %v3567_v54, 0.0  ;;  %v7404_v1 = vpop.permute.xlu1 %3497  ;;  %v3875_v20 = vadd.f32 %v3874_v48, %v3873_v53  ;;  %v8061_v54 = vld [vmem:[#allocation45_spill] sm:$0xff] }
 0x2ec   :  { %v3868_v58 = vadd.f32 %v3867_v63, %v3866_v60  ;;  %v4134_v57 = vsel %vm2292_vm7, %v3861_v11, %v4133_v42  ;;  %v3888_v23 = vrot.slane %v3887_v6, 1  ;;  %v3899_v18 = vadd.f32 %v3898_v51, %v3897_v55  ;;  %v5486_v11 = vld [vmem:[#allocation2 + $0xc8] sm:$0xf] }
 0x2ed   :  { %4419 = vperm.xlu0 %5115, %v8057_v31   ;;  %v3880_v29 = vadd.f32 %v3879_v21, %v3878_v4  ;;  %v3891_v26 = vrot.slane %v3890_v36, 4  ;;  %v3911_v47 = vsel %vm3588_vm12, %v3570_v25, 0.0  ;;  %v7408_v38 = vpop.permute.xlu0 %3501  ;;  %v3569_v43 = vmul.f32 %v5483_v30, %v7336_v24 }
 0x2ee   :  { %4387 = vperm.xlu1 %5116, %v8058_v61   ;;  %v4135_v32 = vsel %vm2294_vm8, %v3868_v58, %v4134_v57  ;;  %v3889_v56 = vadd.f32 %v3888_v23, %v3887_v6  ;;  %v3912_v7 = vrot.slane %v3911_v47, 4  ;;  %v3900_v62 = vrot.slane %v3899_v18, 2  ;;  %v5487_v58 = vld [vmem:[#allocation2 + $0xc4] sm:$0xf] }
 0x2ef   :  { %4170 = vst.msk [vmem:[#allocation7 + $0x20] sm:$0xff] %vm4165_vm13, %v4135_v32  ;;  %v3881_v28 = vrot.slane %v3880_v29, 1  ;;  %v3892_v50 = vadd.f32 %v3891_v26, %v3890_v36  ;;  %v3572_v35 = vmul.f32 %v5484_v14, %v7350_v44  ;;  %v7416_v59 = vpop.permute.xlu1 %3505  ;;  %v3904_v45 = vsel %vm3588_vm12, %v3569_v43, 0.0  ;;  %v8060_v44 = vld [vmem:[#allocation46_spill] sm:$0xff]  ;;  %v5488_v26 = vld [vmem:[#allocation2 + $0xd0] sm:$0xf] }
 0x2f0   :  { %v3913_v37 = vadd.f32 %v3912_v7, %v3911_v47  ;;  %v3571_v3 = vmul.f32 %v5485_v39, %v7346_v41  ;;  %v3574_v24 = vmul.f32 %v5486_v11, %v7362_v9  ;;  %v3901_v2 = vadd.f32 %v3900_v62, %v3899_v18  ;;  %v8062_v62 = vld [vmem:[#allocation53_spill] sm:$0xff] }
 0x2f1   :  { %4391 = vperm.xlu0 %5115, %v8059_v13   ;;  %v3882_v27 = vadd.f32 %v3881_v28, %v3880_v29  ;;  %v3893_v34 = vrot.slane %v3892_v50, 2  ;;  %v3905_v0 = vrot.slane %v3904_v45, 4  ;;  %v7421_v53 = vpop.permute.xlu0 %3509  ;;  %v3925_v49 = vsel %vm3588_vm12, %v3572_v35, 0.0 }
 0x2f2   :  { %4359 = vperm.xlu1 %5116, %v8060_v44   ;;  %v3914_v60 = vrot.slane %v3913_v37, 2  ;;  %v3918_v40 = vsel %vm3588_vm12, %v3571_v3, 0.0  ;;  %v3939_v4 = vsel %vm3588_vm12, %v3574_v24, 0.0  ;;  %v3902_v55 = vrot.slane %v3901_v2, 1  ;;  %v5489_v24 = vld [vmem:[#allocation2 + $0xcc] sm:$0xf] }
 0x2f3   :  { %v4136_v41 = vsel %vm2282_vm2, %v3882_v27, %v3875_v20  ;;  %v3894_v15 = vadd.f32 %v3893_v34, %v3892_v50  ;;  %v3906_v9 = vadd.f32 %v3905_v0, %v3904_v45  ;;  %v7429_v46 = vpop.permute.xlu1 %3513  ;;  %v3926_v63 = vrot.slane %v3925_v49, 4 }
 0x2f4   :  { %v3915_v48 = vadd.f32 %v3914_v60, %v3913_v37  ;;  %v3919_v6 = vrot.slane %v3918_v40, 4  ;;  %v4137_v42 = vsel %vm2284_vm3, %v3889_v56, %v4136_v41  ;;  %v3940_v36 = vrot.slane %v3939_v4, 4 }
 0x2f5   :  { %4363 = vperm.xlu0 %5115, %v8061_v54   ;;  %v3895_v51 = vrot.slane %v3894_v15, 1  ;;  %v3907_v21 = vrot.slane %v3906_v9, 2  ;;  %v7432_v5 = vpop.permute.xlu0 %3517  ;;  %v3903_v25 = vadd.f32 %v3902_v55, %v3901_v2  ;;  %v3927_v31 = vadd.f32 %v3926_v63, %v3925_v49  ;;  %v5490_v2 = vld [vmem:[#allocation2 + $0xd8] sm:$0xf] }
 0x2f6   :  { %4423 = vperm.xlu1 %5116, %v6642_v33   ;;  %v3920_v20 = vadd.f32 %v3919_v6, %v3918_v40  ;;  %v3573_v57 = vmul.f32 %v5487_v58, %v7357_v12  ;;  %v3941_v18 = vadd.f32 %v3940_v36, %v3939_v4  ;;  %v3576_v47 = vmul.f32 %v5488_v26, %v7376_v16 }
 0x2f7   :  { %v3896_v23 = vadd.f32 %v3895_v51, %v3894_v15  ;;  %v3908_v29 = vadd.f32 %v3907_v21, %v3906_v9  ;;  %v7438_v61 = vpop.permute.xlu1 %3521  ;;  %v3916_v32 = vrot.slane %v3915_v48, 1  ;;  %v3928_v56 = vrot.slane %v3927_v31, 2  ;;  %v5491_v51 = vld [vmem:[#allocation2 + $0xd4] sm:$0xf]  ;;  %v5492_v21 = vld [vmem:[#allocation2 + $0xe0] sm:$0xf] }
 0x2f8   :  { %v3921_v7 = vrot.slane %v3920_v20, 2  ;;  %v3932_v33 = vsel %vm3588_vm12, %v3573_v57, 0.0  ;;  %v3942_v28 = vrot.slane %v3941_v18, 2  ;;  %v3575_v27 = vmul.f32 %v5489_v24, %v7370_v10  ;;  %v7477_v24 = vld [vmem:[#allocation2 + $0xe4] sm:$0xf] }
 0x2f9   :  { %4427 = vperm.xlu0 %5115, %v6628_v17   ;;  %v4138_v30 = vsel %vm2286_vm4, %v3896_v23, %v4137_v42  ;;  %v3909_v43 = vrot.slane %v3908_v29, 1  ;;  %v3933_v12 = vrot.slane %v3932_v33, 4  ;;  %v3929_v14 = vadd.f32 %v3928_v56, %v3927_v31 }
 0x2fa   :  { %4395 = vperm.xlu1 %5116, %v8062_v62   ;;  %v4139_v50 = vsel %vm2288_vm5, %v3903_v25, %v4138_v30  ;;  %v3922_v16 = vadd.f32 %v3921_v7, %v3920_v20  ;;  %v3953_v17 = vsel %vm3588_vm12, %v3576_v47, 0.0  ;;  %v3943_v37 = vadd.f32 %v3942_v28, %v3941_v18  ;;  %v5493_v18 = vld [vmem:[#allocation2 + $0xdc] sm:$0xf]  ;;  %v5494_v47 = vld [vmem:[#allocation2 + $0xe8] sm:$0xf] }
 0x2fb   :  { %v3910_v13 = vadd.f32 %v3909_v43, %v3908_v29  ;;  %v3934_v45 = vadd.f32 %v3933_v12, %v3932_v33  ;;  %v3954_v39 = vrot.slane %v3953_v17, 4  ;;  %v3930_v3 = vrot.slane %v3929_v14, 1 }
 0x2fc   :  { %v7445_v35 = vpop.permute.xlu0 %4175  ;;  %v3923_v11 = vrot.slane %v3922_v16, 1  ;;  %v3578_v34 = vmul.f32 %v5490_v2, %v7386_v8  ;;  %v7449_v0 = vpop.permute.xlu1 %4179  ;;  %v3917_v44 = vadd.f32 %v3916_v32, %v3915_v48  ;;  %v3944_v55 = vrot.slane %v3943_v37, 1 }
 0x2fd   :  { %v4140_v60 = vsel %vm2290_vm6, %v3910_v13, %v4139_v50  ;;  %v3935_v49 = vrot.slane %v3934_v45, 2  ;;  %v3955_v40 = vadd.f32 %v3954_v39, %v3953_v17  ;;  %v3931_v4 = vadd.f32 %v3930_v3, %v3929_v14 }
 0x2fe   :  { %v3924_v41 = vadd.f32 %v3923_v11, %v3922_v16  ;;  %v3946_v15 = vsel %vm3588_vm12, %v3575_v27, 0.0  ;;  %v4141_v54 = vsel %vm2292_vm7, %v3917_v44, %v4140_v60  ;;  %v3967_v48 = vsel %vm3588_vm12, %v3578_v34, 0.0  ;;  %v5496_v60 = vld [vmem:[#allocation2 + $0xf0] sm:$0xf] }
 0x2ff   :  { %v3936_v10 = vadd.f32 %v3935_v49, %v3934_v45  ;;  %v3956_v63 = vrot.slane %v3955_v40, 2  ;;  %v3947_v6 = vrot.slane %v3946_v15, 4  ;;  %v3577_v42 = vmul.f32 %v5491_v51, %v7382_v52 }
 0x300   :  { %v7453_v9 = vpop.permute.xlu0 %4187  ;;  %v4142_v8 = vsel %vm2294_vm8, %v3924_v41, %v4141_v54  ;;  %v3580_v36 = vmul.f32 %v5492_v21, %v7397_v19  ;;  %v7460_v25 = vpop.permute.xlu1 %4183  ;;  %v3968_v57 = vrot.slane %v3967_v48, 4  ;;  %v3579_v26 = vmul.f32 %v5493_v18, %v7392_v22  ;;  %v7491_v18 = vld [vmem:[#allocation2 + $0xec] sm:$0xf] }
 0x301   :  { %4171 = vst.msk [vmem:[#allocation7 + $0x28] sm:$0xff] %vm4165_vm13, %v4142_v8  ;;  %v3937_v31 = vrot.slane %v3936_v10, 1  ;;  %v3957_v20 = vadd.f32 %v3956_v63, %v3955_v40  ;;  %v3948_v58 = vadd.f32 %v3947_v6, %v3946_v15  ;;  %v3960_v23 = vsel %vm3588_vm12, %v3577_v42, 0.0 }
 0x302   :  { %v3981_v29 = vsel %vm3588_vm12, %v3580_v36, 0.0  ;;  %v3582_v52 = vmul.f32 %v5494_v47, %v7408_v38  ;;  %v3945_v19 = vadd.f32 %v3944_v55, %v3943_v37  ;;  %v3969_v33 = vadd.f32 %v3968_v57, %v3967_v48 }
 0x303   :  { %v3938_v56 = vadd.f32 %v3937_v31, %v3936_v10  ;;  %v3949_v7 = vrot.slane %v3948_v58, 2  ;;  %v3961_v30 = vrot.slane %v3960_v23, 4  ;;  %v3982_v43 = vrot.slane %v3981_v29, 4 }
 0x304   :  { %v7467_v32 = vpop.permute.xlu0 %4195  ;;  %v3974_v28 = vsel %vm3588_vm12, %v3579_v26, 0.0  ;;  %v3995_v12 = vsel %vm3588_vm12, %v3582_v52, 0.0  ;;  %v7471_v62 = vpop.permute.xlu1 %4191  ;;  %v3958_v22 = vrot.slane %v3957_v20, 1  ;;  %v3970_v16 = vrot.slane %v3969_v33, 2 }
 0x305   :  { %v4143_v50 = vsel %vm2282_vm2, %v3938_v56, %v3931_v4  ;;  %v3950_v14 = vadd.f32 %v3949_v7, %v3948_v58  ;;  %v3962_v17 = vadd.f32 %v3961_v30, %v3960_v23  ;;  %v3983_v13 = vadd.f32 %v3982_v43, %v3981_v29 }
 0x306   :  { %v4144_v38 = vsel %vm2284_vm3, %v3945_v19, %v4143_v50  ;;  %v3975_v37 = vrot.slane %v3974_v28, 4  ;;  %v3971_v3 = vadd.f32 %v3970_v16, %v3969_v33  ;;  %v3996_v11 = vrot.slane %v3995_v12, 4  ;;  %v5498_v19 = vld [vmem:[#allocation2 + $0xf8] sm:$0xf] }
 0x307   :  { %v3951_v39 = vrot.slane %v3950_v14, 1  ;;  %v3581_v27 = vmul.f32 %v7477_v24, %v7404_v1  ;;  %v3963_v2 = vrot.slane %v3962_v17, 2  ;;  %v3984_v34 = vrot.slane %v3983_v13, 2 }
 0x308   :  { %v7475_v45 = vpop.permute.xlu0 %4203  ;;  %v3976_v44 = vadd.f32 %v3975_v37, %v3974_v28  ;;  %v3584_v49 = vmul.f32 %v5496_v60, %v7421_v53  ;;  %v7482_v40 = vpop.permute.xlu1 %4199  ;;  %v3972_v41 = vrot.slane %v3971_v3, 1  ;;  %v3997_v55 = vadd.f32 %v3996_v11, %v3995_v12 }
 0x309   :  { %v3952_v4 = vadd.f32 %v3951_v39, %v3950_v14  ;;  %v3988_v15 = vsel %vm3588_vm12, %v3581_v27, 0.0  ;;  %v3964_v54 = vadd.f32 %v3963_v2, %v3962_v17  ;;  %v3985_v10 = vadd.f32 %v3984_v34, %v3983_v13 }
 0x30a   :  { %v3977_v63 = vrot.slane %v3976_v44, 2  ;;  %v3989_v6 = vrot.slane %v3988_v15, 4  ;;  %v3959_v1 = vadd.f32 %v3958_v22, %v3957_v20  ;;  %v3998_v51 = vrot.slane %v3997_v55, 2 }
 0x30b   :  { %v4145_v48 = vsel %vm2286_vm4, %v3952_v4, %v4144_v38  ;;  %v4009_v42 = vsel %vm3588_vm12, %v3584_v49, 0.0  ;;  %v3973_v53 = vadd.f32 %v3972_v41, %v3971_v3  ;;  %v3965_v21 = vrot.slane %v3964_v54, 1  ;;  %v5499_v3 = vld [vmem:[#allocation2 + $0xf4] sm:$0xf] }
 0x30c   :  { %v7485_v8 = vpop.permute.xlu0 %4211  ;;  %v3986_v36 = vrot.slane %v3985_v10, 1  ;;  %v3978_v31 = vadd.f32 %v3977_v63, %v3976_v44  ;;  %v7489_v58 = vpop.permute.xlu1 %4207  ;;  %v3999_v57 = vadd.f32 %v3998_v51, %v3997_v55  ;;  %v3990_v23 = vadd.f32 %v3989_v6, %v3988_v15  ;;  %v5500_v44 = vld [vmem:[#allocation2] sm:$0xf]  ;;  %v5501_v55 = vld [vmem:[#allocation2 + $0xfc] sm:$0xf] }
 0x30d   :  { %v4010_v29 = vrot.slane %v4009_v42, 4  ;;  %v3583_v26 = vmul.f32 %v7491_v18, %v7416_v59  ;;  %v3966_v20 = vadd.f32 %v3965_v21, %v3964_v54  ;;  %v4146_v47 = vsel %vm2288_vm5, %v3959_v1, %v4145_v48 }
 0x30e   :  { %v3979_v52 = vrot.slane %v3978_v31, 1  ;;  %v3586_v56 = vmul.f32 %v5498_v19, %v7432_v5  ;;  %v3987_v33 = vadd.f32 %v3986_v36, %v3985_v10  ;;  %v3991_v30 = vrot.slane %v3990_v23, 2 }
 0x30f   :  { %v4011_v43 = vadd.f32 %v4010_v29, %v4009_v42  ;;  %v4002_v28 = vsel %vm3588_vm12, %v3583_v26, 0.0  ;;  %v4147_v12 = vsel %vm2290_vm6, %v3966_v20, %v4146_v47  ;;  %v4000_v38 = vrot.slane %v3999_v57, 1 }
 0x310   :  { %v7497_v7 = vpop.permute.xlu0 %4219  ;;  %v3980_v50 = vadd.f32 %v3979_v52, %v3978_v31  ;;  %v4003_v22 = vrot.slane %v4002_v28, 4  ;;  %v4023_v59 = vsel %vm3588_vm12, %v3586_v56, 0.0  ;;  %v7502_v14 = vpop.permute.xlu1 %4215  ;;  %v4148_v16 = vsel %vm2292_vm7, %v3973_v53, %v4147_v12  ;;  %v5502_v52 = vld [vmem:[#allocation2 + $0xc] sm:$0xf]  ;;  %v5503_v56 = vld [vmem:[#allocation2 + $0x4] sm:$0xf] }
 0x311   :  { %v3992_v17 = vadd.f32 %v3991_v30, %v3990_v23  ;;  %v4012_v5 = vrot.slane %v4011_v43, 2  ;;  %v4024_v39 = vrot.slane %v4023_v59, 4  ;;  %v3585_v11 = vmul.f32 %v5499_v3, %v7429_v46  ;;  %v5504_v12 = vld [vmem:[#allocation2 + $0x14] sm:$0xf] }
 0x312   :  { %v4149_v13 = vsel %vm2294_vm8, %v3980_v50, %v4148_v16  ;;  %v4004_v37 = vadd.f32 %v4003_v22, %v4002_v28  ;;  %v4430_v60 = vmul.f32 %v5500_v44, %v7445_v35  ;;  %v3587_v15 = vmul.f32 %v5501_v55, %v7438_v61 }
 0x313   :  { %4172 = vst.msk [vmem:[#allocation7 + $0x30] sm:$0xff] %vm4165_vm13, %v4149_v13  ;;  %v3993_v2 = vrot.slane %v3992_v17, 1  ;;  %v4013_v34 = vadd.f32 %v4012_v5, %v4011_v43  ;;  %v4025_v4 = vadd.f32 %v4024_v39, %v4023_v59  ;;  %v4016_v41 = vsel %vm3588_vm12, %v3585_v11, 0.0 }
 0x314   :  { %v7507_v27 = vpop.permute.xlu0 %4227  ;;  %v4005_v49 = vrot.slane %v4004_v37, 2  ;;  %v7513_v54 = vpop.permute.xlu1 %4223  ;;  %v4001_v46 = vadd.f32 %v4000_v38, %v3999_v57  ;;  %v4017_v63 = vrot.slane %v4016_v41, 4  ;;  %v4495_v6 = vsel %vm4494_vm14, %v4430_v60, 0.0 }
 0x315   :  { %v3994_v10 = vadd.f32 %v3993_v2, %v3992_v17  ;;  %v4026_v48 = vrot.slane %v4025_v4, 2  ;;  %v4496_v51 = vrot.slane %v4495_v6, 4  ;;  %v4030_v42 = vsel %vm3588_vm12, %v3587_v15, 0.0 }
 0x316   :  { %v4006_v1 = vadd.f32 %v4005_v49, %v4004_v37  ;;  %v4014_v21 = vrot.slane %v4013_v34, 1  ;;  %v4018_v36 = vadd.f32 %v4017_v63, %v4016_v41  ;;  %v4031_v31 = vrot.slane %v4030_v42, 4  ;;  %v5505_v49 = vld [vmem:[#allocation2 + $0x8] sm:$0xf] }
 0x317   :  { %v4150_v53 = vsel %vm2282_vm2, %v3994_v10, %v3987_v33  ;;  %v4027_v57 = vadd.f32 %v4026_v48, %v4025_v4  ;;  %v4497_v29 = vadd.f32 %v4496_v51, %v4495_v6  ;;  %v4433_v19 = vmul.f32 %v5502_v52, %v7453_v9 }
 0x318   :  { %v7517_v35 = vpop.permute.xlu0 %4235  ;;  %v4007_v61 = vrot.slane %v4006_v1, 1  ;;  %v4151_v23 = vsel %vm2284_vm3, %v4001_v46, %v4150_v53  ;;  %v7521_v26 = vpop.permute.xlu1 %4231  ;;  %v4019_v20 = vrot.slane %v4018_v36, 2  ;;  %v4032_v47 = vadd.f32 %v4031_v31, %v4030_v42 }
 0x319   :  { %v4431_v30 = vmul.f32 %v5503_v56, %v7449_v0  ;;  %v4028_v33 = vrot.slane %v4027_v57, 1  ;;  %v4498_v28 = vrot.slane %v4497_v29, 2  ;;  %v4435_v50 = vmul.f32 %v5504_v12, %v7467_v32  ;;  %v5507_v56 = vld [vmem:[#allocation2 + $0x10] sm:$0xf] }
 0x31a   :  { %v4008_v43 = vadd.f32 %v4007_v61, %v4006_v1  ;;  %v4020_v59 = vadd.f32 %v4019_v20, %v4018_v36  ;;  %v4033_v16 = vrot.slane %v4032_v47, 2  ;;  %v4516_v38 = vsel %vm4494_vm14, %v4433_v19, 0.0  ;;  %v5506_v1 = vld [vmem:[#allocation2 + $0x1c] sm:$0xf] }
 0x31b   :  { %v4502_v17 = vsel %vm4494_vm14, %v4431_v30, 0.0  ;;  %v4015_v5 = vadd.f32 %v4014_v21, %v4013_v34  ;;  %v4499_v13 = vadd.f32 %v4498_v28, %v4497_v29  ;;  %v4517_v37 = vrot.slane %v4516_v38, 4 }
 0x31c   :  { %v7526_v22 = vpop.permute.xlu0 %4243  ;;  %v4152_v9 = vsel %vm2286_vm4, %v4008_v43, %v4151_v23  ;;  %v7531_v0 = vpop.permute.xlu1 %4239  ;;  %v4029_v39 = vadd.f32 %v4028_v33, %v4027_v57  ;;  %v4021_v3 = vrot.slane %v4020_v59, 1  ;;  %v4034_v11 = vadd.f32 %v4033_v16, %v4032_v47  ;;  %v5508_v43 = vld [vmem:[#allocation2 + $0x24] sm:$0xf] }
 0x31d   :  { %v4503_v2 = vrot.slane %v4502_v17, 4  ;;  %v4153_v32 = vsel %vm2288_vm5, %v4015_v5, %v4152_v9  ;;  %v4518_v44 = vadd.f32 %v4517_v37, %v4516_v38  ;;  %v4530_v60 = vsel %vm4494_vm14, %v4435_v50, 0.0 }
 0x31e   :  { %v4432_v4 = vmul.f32 %v5505_v49, %v7460_v25  ;;  %v4022_v34 = vadd.f32 %v4021_v3, %v4020_v59  ;;  %v4035_v55 = vrot.slane %v4034_v11, 1  ;;  %v4531_v46 = vrot.slane %v4530_v60, 4 }
 0x31f   :  { %v4504_v15 = vadd.f32 %v4503_v2, %v4502_v17  ;;  %v4500_v10 = vrot.slane %v4499_v13, 1  ;;  %v4519_v63 = vrot.slane %v4518_v44, 2  ;;  %v4437_v48 = vmul.f32 %v5506_v1, %v7475_v45 }
 0x320   :  { %v7536_v41 = vpop.permute.xlu0 %4251  ;;  %v4509_v6 = vsel %vm4494_vm14, %v4432_v4, 0.0  ;;  %v7540_v51 = vpop.permute.xlu1 %4247  ;;  %v4154_v42 = vsel %vm2290_vm6, %v4022_v34, %v4153_v32  ;;  %v4036_v53 = vadd.f32 %v4035_v55, %v4034_v11  ;;  %v4532_v25 = vadd.f32 %v4531_v46, %v4530_v60 }
 0x321   :  { %v4505_v21 = vrot.slane %v4504_v15, 2  ;;  %v4155_v36 = vsel %vm2292_vm7, %v4029_v39, %v4154_v42  ;;  %v4520_v31 = vadd.f32 %v4519_v63, %v4518_v44  ;;  %v4510_v61 = vrot.slane %v4509_v6, 4  ;;  %v5510_v44 = vld [vmem:[#allocation2 + $0x2c] sm:$0xf] }
 0x322   :  { %v4544_v23 = vsel %vm4494_vm14, %v4437_v48, 0.0  ;;  %v4156_v29 = vsel %vm2294_vm8, %v4036_v53, %v4155_v36  ;;  %v4533_v47 = vrot.slane %v4532_v25, 2  ;;  %v4434_v30 = vmul.f32 %v5507_v56, %v7471_v62  ;;  %v5512_v36 = vld [vmem:[#allocation2 + $0x34] sm:$0xf] }
 0x323   :  { %v4506_v20 = vadd.f32 %v4505_v21, %v4504_v15  ;;  %v4545_v45 = vrot.slane %v4544_v23, 4  ;;  %4173 = vst.msk [vmem:[#allocation7 + $0x38] sm:$0xff] %vm4165_vm13, %v4156_v29  ;;  %v4521_v52 = vrot.slane %v4520_v31, 1  ;;  %v4511_v19 = vadd.f32 %v4510_v61, %v4509_v6  ;;  %v5511_v21 = vld [vmem:[#allocation2 + $0x20] sm:$0xf] }
 0x324   :  { %v7545_v57 = vpop.permute.xlu0 %4259  ;;  %v4439_v33 = vmul.f32 %v5508_v43, %v7485_v8  ;;  %v7551_v28 = vpop.permute.xlu1 %4255  ;;  %v4534_v50 = vadd.f32 %v4533_v47, %v4532_v25  ;;  %v4501_v16 = vadd.f32 %v4500_v10, %v4499_v13  ;;  %v4523_v17 = vsel %vm4494_vm14, %v4434_v30, 0.0  ;;  %v5509_v8 = vld [vmem:[#allocation2 + $0x18] sm:$0xf] }
 0x325   :  { %v4507_v12 = vrot.slane %v4506_v20, 1  ;;  %v4546_v59 = vadd.f32 %v4545_v45, %v4544_v23  ;;  %v4512_v38 = vrot.slane %v4511_v19, 2  ;;  %v4522_v37 = vadd.f32 %v4521_v52, %v4520_v31 }
 0x326   :  { %v4558_v5 = vsel %vm4494_vm14, %v4439_v33, 0.0  ;;  %v4524_v62 = vrot.slane %v4523_v17, 4  ;;  %v4436_v32 = vmul.f32 %v5509_v8, %v7482_v40  ;;  %v4441_v60 = vmul.f32 %v5510_v44, %v7497_v7 }
 0x327   :  { %v4508_v39 = vadd.f32 %v4507_v12, %v4506_v20  ;;  %v4547_v3 = vrot.slane %v4546_v59, 2  ;;  %v4513_v11 = vadd.f32 %v4512_v38, %v4511_v19  ;;  %v4559_v2 = vrot.slane %v4558_v5, 4 }
 0x328   :  { %v7555_v9 = vpop.permute.xlu0 %4267  ;;  %v7559_v13 = vpop.permute.xlu1 %4263  ;;  %v4535_v4 = vrot.slane %v4534_v50, 1  ;;  %v4525_v55 = vadd.f32 %v4524_v62, %v4523_v17  ;;  %v4537_v10 = vsel %vm4494_vm14, %v4436_v32, 0.0  ;;  %v4572_v63 = vsel %vm4494_vm14, %v4441_v60, 0.0 }
 0x329   :  { %v5007_v49 = vsel %vm2282_vm2, %v4508_v39, %v4501_v16  ;;  %v4548_v34 = vadd.f32 %v4547_v3, %v4546_v59  ;;  %v4514_v15 = vrot.slane %v4513_v11, 1  ;;  %v4560_v46 = vadd.f32 %v4559_v2, %v4558_v5  ;;  %v5513_v16 = vld [vmem:[#allocation2 + $0x28] sm:$0xf]  ;;  %v5514_v3 = vld [vmem:[#allocation2 + $0x3c] sm:$0xf] }
 0x32a   :  { %v4526_v40 = vrot.slane %v4525_v55, 2  ;;  %v4538_v48 = vrot.slane %v4537_v10, 4  ;;  %v4573_v42 = vrot.slane %v4572_v63, 4  ;;  %v4438_v25 = vmul.f32 %v5511_v21, %v7489_v58 }
 0x32b   :  { %v4549_v1 = vrot.slane %v4548_v34, 1  ;;  %v4515_v7 = vadd.f32 %v4514_v15, %v4513_v11  ;;  %v4561_v53 = vrot.slane %v4560_v46, 2  ;;  %v4443_v31 = vmul.f32 %v5512_v36, %v7507_v27 }
 0x32c   :  { %v7564_v6 = vpop.permute.xlu0 %4275  ;;  %v7568_v61 = vpop.permute.xlu1 %4271  ;;  %v4536_v23 = vadd.f32 %v4535_v4, %v4534_v50  ;;  %v4527_v29 = vadd.f32 %v4526_v40, %v4525_v55  ;;  %v4539_v20 = vadd.f32 %v4538_v48, %v4537_v10  ;;  %v4574_v47 = vadd.f32 %v4573_v42, %v4572_v63  ;;  %v5515_v42 = vld [vmem:[#allocation2 + $0x30] sm:$0xf] }
 0x32d   :  { %v4550_v45 = vadd.f32 %v4549_v1, %v4548_v34  ;;  %v4562_v52 = vadd.f32 %v4561_v53, %v4560_v46  ;;  %v4551_v19 = vsel %vm4494_vm14, %v4438_v25, 0.0  ;;  %v4586_v56 = vsel %vm4494_vm14, %v4443_v31, 0.0  ;;  %v5516_v53 = vld [vmem:[#allocation2 + $0x44] sm:$0xf] }
 0x32e   :  { %v5008_v58 = vsel %vm2284_vm3, %v4515_v7, %v5007_v49  ;;  %v4528_v43 = vrot.slane %v4527_v29, 1  ;;  %v4540_v33 = vrot.slane %v4539_v20, 2  ;;  %v4575_v27 = vrot.slane %v4574_v47, 2 }
 0x32f   :  { %v4563_v12 = vrot.slane %v4562_v52, 1  ;;  %v4552_v59 = vrot.slane %v4551_v19, 4  ;;  %v4587_v50 = vrot.slane %v4586_v56, 4  ;;  %v4440_v38 = vmul.f32 %v5513_v16, %v7502_v14 }
 0x330   :  { %v7572_v30 = vpop.permute.xlu0 %4283  ;;  %v4529_v17 = vadd.f32 %v4528_v43, %v4527_v29  ;;  %v4541_v5 = vadd.f32 %v4540_v33, %v4539_v20  ;;  %v4576_v39 = vadd.f32 %v4575_v27, %v4574_v47  ;;  %v4445_v62 = vmul.f32 %v5514_v3, %v7517_v35  ;;  %v7577_v11 = vpop.permute.xlu1 %4279  ;;  %v5517_v29 = vld [vmem:[#allocation2 + $0x38] sm:$0xf] }
 0x331   :  { %v5009_v2 = vsel %vm2286_vm4, %v4522_v37, %v5008_v58  ;;  %v4553_v8 = vadd.f32 %v4552_v59, %v4551_v19  ;;  %v4588_v32 = vadd.f32 %v4587_v50, %v4586_v56  ;;  %v4565_v44 = vsel %vm4494_vm14, %v4440_v38, 0.0 }
 0x332   :  { %v5010_v60 = vsel %vm2288_vm5, %v4529_v17, %v5009_v2  ;;  %v4564_v49 = vadd.f32 %v4563_v12, %v4562_v52  ;;  %v4542_v4 = vrot.slane %v4541_v5, 1  ;;  %v4566_v34 = vrot.slane %v4565_v44, 4 }
 0x333   :  { %v4577_v55 = vrot.slane %v4576_v39, 1  ;;  %v4554_v15 = vrot.slane %v4553_v8, 2  ;;  %v4589_v46 = vrot.slane %v4588_v32, 2  ;;  %v4600_v35 = vsel %vm4494_vm14, %v4445_v62, 0.0  ;;  %v5519_v62 = vld [vmem:[#allocation2 + $0x40] sm:$0xf] }
 0x334   :  { %v7582_v14 = vpop.permute.xlu0 %4291  ;;  %v4543_v10 = vadd.f32 %v4542_v4, %v4541_v5  ;;  %v5011_v63 = vsel %vm2290_vm6, %v4536_v23, %v5010_v60  ;;  %v4567_v37 = vadd.f32 %v4566_v34, %v4565_v44  ;;  %v4601_v1 = vrot.slane %v4600_v35, 4  ;;  %v7590_v47 = vpop.permute.xlu1 %4287 }
 0x335   :  { %v4555_v40 = vadd.f32 %v4554_v15, %v4553_v8  ;;  %v4590_v48 = vadd.f32 %v4589_v46, %v4588_v32  ;;  %v4442_v7 = vmul.f32 %v5515_v42, %v7513_v54  ;;  %v4447_v21 = vmul.f32 %v5516_v53, %v7526_v22  ;;  %v5520_v46 = vld [vmem:[#allocation2 + $0x54] sm:$0xf] }
 0x336   :  { %v5012_v25 = vsel %vm2292_vm7, %v4543_v10, %v5011_v63  ;;  %v4568_v36 = vrot.slane %v4567_v37, 2  ;;  %v4602_v31 = vadd.f32 %v4601_v1, %v4600_v35  ;;  %v4444_v20 = vmul.f32 %v5517_v29, %v7521_v26 }
 0x337   :  { %v5013_v23 = vsel %vm2294_vm8, %v4550_v45, %v5012_v25  ;;  %v4578_v52 = vadd.f32 %v4577_v55, %v4576_v39  ;;  %v4556_v19 = vrot.slane %v4555_v40, 1  ;;  %v4579_v56 = vsel %vm4494_vm14, %v4442_v7, 0.0  ;;  %v5518_v39 = vld [vmem:[#allocation2 + $0x4c] sm:$0xf]  ;;  %v5521_v25 = vld [vmem:[#allocation2 + $0x48] sm:$0xf] }
 0x338   :  { %5072 = vst.msk [vmem:[#allocation7] sm:$0xff] %vm5071_vm15, %v5013_v23  ;;  %v4569_v54 = vadd.f32 %v4568_v36, %v4567_v37  ;;  %v4603_v58 = vrot.slane %v4602_v31, 2  ;;  %v4580_v22 = vrot.slane %v4579_v56, 4  ;;  %v4614_v43 = vsel %vm4494_vm14, %v4447_v21, 0.0  ;;  %v7596_v33 = vpop.permute.xlu0 %4299  ;;  %v7602_v4 = vpop.permute.xlu1 %4295 }
 0x339   :  { %v4557_v27 = vadd.f32 %v4556_v19, %v4555_v40  ;;  %v4591_v12 = vrot.slane %v4590_v48, 1  ;;  %v4615_v26 = vrot.slane %v4614_v43, 4  ;;  %v4593_v59 = vsel %vm4494_vm14, %v4444_v20, 0.0 }
 0x33a   :  { %v4570_v50 = vrot.slane %v4569_v54, 1  ;;  %v4604_v45 = vadd.f32 %v4603_v58, %v4602_v31  ;;  %v4581_v16 = vadd.f32 %v4580_v22, %v4579_v56  ;;  %v4594_v38 = vrot.slane %v4593_v59, 4  ;;  %v5522_v56 = vld [vmem:[#allocation2 + $0x5c] sm:$0xf] }
 0x33b   :  { %v5014_v17 = vsel %vm2282_vm2, %v4564_v49, %v4557_v27  ;;  %v4616_v5 = vadd.f32 %v4615_v26, %v4614_v43  ;;  %v4449_v3 = vmul.f32 %v5518_v39, %v7536_v41  ;;  %v4446_v2 = vmul.f32 %v5519_v62, %v7531_v0 }
 0x33c   :  { %v4571_v8 = vadd.f32 %v4570_v50, %v4569_v54  ;;  %v4605_v32 = vrot.slane %v4604_v45, 1  ;;  %v4582_v44 = vrot.slane %v4581_v16, 2  ;;  %v4595_v60 = vadd.f32 %v4594_v38, %v4593_v59  ;;  %v7608_v0 = vpop.permute.xlu0 %4307  ;;  %v7615_v58 = vpop.permute.xlu1 %4303 }
 0x33d   :  { %v4617_v34 = vrot.slane %v4616_v5, 2  ;;  %v4628_v55 = vsel %vm4494_vm14, %v4449_v3, 0.0  ;;  %v4607_v15 = vsel %vm4494_vm14, %v4446_v2, 0.0  ;;  %v4451_v49 = vmul.f32 %v5520_v46, %v7545_v57  ;;  %v5523_v3 = vld [vmem:[#allocation2 + $0x50] sm:$0xf] }
 0x33e   :  { %v4592_v35 = vadd.f32 %v4591_v12, %v4590_v48  ;;  %v5015_v41 = vsel %vm2284_vm3, %v4571_v8, %v5014_v17  ;;  %v4583_v10 = vadd.f32 %v4582_v44, %v4581_v16  ;;  %v4596_v63 = vrot.slane %v4595_v60, 2 }
 0x33f   :  { %v4606_v37 = vadd.f32 %v4605_v32, %v4604_v45  ;;  %v4618_v1 = vadd.f32 %v4617_v34, %v4616_v5  ;;  %v4629_v40 = vrot.slane %v4628_v55, 4  ;;  %v4608_v42 = vrot.slane %v4607_v15, 4 }
 0x340   :  { %v4584_v7 = vrot.slane %v4583_v10, 1  ;;  %v4597_v53 = vadd.f32 %v4596_v63, %v4595_v60  ;;  %v4642_v21 = vsel %vm4494_vm14, %v4451_v49, 0.0  ;;  %v4448_v36 = vmul.f32 %v5521_v25, %v7540_v51  ;;  %v7619_v50 = vpop.permute.xlu0 %4315  ;;  %v7628_v46 = vpop.permute.xlu1 %4311 }
 0x341   :  { %v5016_v57 = vsel %vm2286_vm4, %v4578_v52, %v5015_v41  ;;  %v4630_v48 = vadd.f32 %v4629_v40, %v4628_v55  ;;  %v4609_v31 = vadd.f32 %v4608_v42, %v4607_v15  ;;  %v4643_v29 = vrot.slane %v4642_v21, 4  ;;  %v5524_v55 = vld [vmem:[#allocation2 + $0x64] sm:$0xf] }
 0x342   :  { %v4585_v20 = vadd.f32 %v4584_v7, %v4583_v10  ;;  %v4598_v23 = vrot.slane %v4597_v53, 1  ;;  %v4621_v19 = vsel %vm4494_vm14, %v4448_v36, 0.0  ;;  %v4453_v54 = vmul.f32 %v5522_v56, %v7555_v9 }
 0x343   :  { %v4619_v22 = vrot.slane %v4618_v1, 1  ;;  %v4631_v43 = vrot.slane %v4630_v48, 2  ;;  %v4610_v27 = vrot.slane %v4609_v31, 2  ;;  %v4644_v12 = vadd.f32 %v4643_v29, %v4642_v21 }
 0x344   :  { %v5017_v51 = vsel %vm2288_vm5, %v4585_v20, %v5016_v57  ;;  %v4599_v26 = vadd.f32 %v4598_v23, %v4597_v53  ;;  %v4622_v52 = vrot.slane %v4621_v19, 4  ;;  %v4656_v59 = vsel %vm4494_vm14, %v4453_v54, 0.0  ;;  %v7632_v42 = vpop.permute.xlu0 %4323  ;;  %v5527_v23 = vld [vmem:[#allocation2 + $0x60] sm:$0xf] }
 0x345   :  { %v5018_v45 = vsel %vm2290_vm6, %v4592_v35, %v5017_v51  ;;  %v4632_v16 = vadd.f32 %v4631_v43, %v4630_v48  ;;  %v4611_v38 = vadd.f32 %v4610_v27, %v4609_v31  ;;  %v4645_v17 = vrot.slane %v4644_v12, 2  ;;  %v7639_v27 = vpop.permute.xlu1 %4319 }
 0x346   :  { %v5019_v9 = vsel %vm2292_vm7, %v4599_v26, %v5018_v45  ;;  %v4623_v5 = vadd.f32 %v4622_v52, %v4621_v19  ;;  %v4657_v39 = vrot.slane %v4656_v59, 4  ;;  %v4450_v62 = vmul.f32 %v5523_v3, %v7551_v28 }
 0x347   :  { %v5020_v2 = vsel %vm2294_vm8, %v4606_v37, %v5019_v9  ;;  %v4633_v8 = vrot.slane %v4632_v16, 1  ;;  %v4612_v32 = vrot.slane %v4611_v38, 1  ;;  %v4455_v15 = vmul.f32 %v5524_v55, %v7564_v6  ;;  %v5525_v37 = vld [vmem:[#allocation2 + $0x58] sm:$0xf] }
 0x348   :  { %5073 = vst.msk [vmem:[#allocation7 + $0x8] sm:$0xff] %vm5071_vm15, %v5020_v2  ;;  %v4624_v44 = vrot.slane %v4623_v5, 2  ;;  %v4658_v60 = vadd.f32 %v4657_v39, %v4656_v59  ;;  %v4635_v34 = vsel %vm4494_vm14, %v4450_v62, 0.0  ;;  %v4620_v49 = vadd.f32 %v4619_v22, %v4618_v1  ;;  %v5526_v1 = vld [vmem:[#allocation2 + $0x6c] sm:$0xf] }
 0x349   :  { %v4646_v35 = vadd.f32 %v4645_v17, %v4644_v12  ;;  %v4636_v41 = vrot.slane %v4635_v34, 4  ;;  %v4670_v63 = vsel %vm4494_vm14, %v4455_v15, 0.0  ;;  %v4452_v40 = vmul.f32 %v5525_v37, %v7559_v13  ;;  %v5528_v22 = vld [vmem:[#allocation2 + $0x74] sm:$0xf]  ;;  %v5529_v62 = vld [vmem:[#allocation2 + $0x68] sm:$0xf] }
 0x34a   :  { %v4625_v10 = vadd.f32 %v4624_v44, %v4623_v5  ;;  %v4659_v28 = vrot.slane %v4658_v60, 2  ;;  %v4634_v7 = vadd.f32 %v4633_v8, %v4632_v16  ;;  %v4613_v53 = vadd.f32 %v4612_v32, %v4611_v38  ;;  %v7644_v16 = vpop.permute.xlu0 %4331  ;;  %v5530_v44 = vld [vmem:[#allocation2 + $0x7c] sm:$0xf] }
 0x34b   :  { %v4637_v21 = vadd.f32 %v4636_v41, %v4635_v34  ;;  %v4671_v25 = vrot.slane %v4670_v63, 4  ;;  %v4649_v57 = vsel %vm4494_vm14, %v4452_v40, 0.0  ;;  %v4457_v48 = vmul.f32 %v5526_v1, %v7572_v30  ;;  %v7651_v41 = vpop.permute.xlu1 %4327 }
 0x34c   :  { %v4626_v36 = vrot.slane %v4625_v10, 1  ;;  %v4660_v6 = vadd.f32 %v4659_v28, %v4658_v60  ;;  %v4650_v20 = vrot.slane %v4649_v57, 4  ;;  %v4454_v19 = vmul.f32 %v5527_v23, %v7568_v61 }
 0x34d   :  { %v4638_v31 = vrot.slane %v4637_v21, 2  ;;  %v4672_v29 = vadd.f32 %v4671_v25, %v4670_v63  ;;  %v4647_v13 = vrot.slane %v4646_v35, 1  ;;  %v4684_v54 = vsel %vm4494_vm14, %v4457_v48, 0.0 }
 0x34e   :  { %v4627_v56 = vadd.f32 %v4626_v36, %v4625_v10  ;;  %v4459_v43 = vmul.f32 %v5528_v22, %v7582_v14  ;;  %v4651_v26 = vadd.f32 %v4650_v20, %v4649_v57  ;;  %v4685_v52 = vrot.slane %v4684_v54, 4  ;;  %v7654_v25 = vpop.permute.xlu0 %4339  ;;  %v5531_v57 = vld [vmem:[#allocation2 + $0x70] sm:$0xf] }
 0x34f   :  { %v4639_v12 = vadd.f32 %v4638_v31, %v4637_v21  ;;  %v4673_v51 = vrot.slane %v4672_v29, 2  ;;  %v5021_v30 = vsel %vm2282_vm2, %v4620_v49, %v4613_v53  ;;  %v4661_v59 = vrot.slane %v4660_v6, 1 }
 0x350   :  { %v4663_v45 = vsel %vm4494_vm14, %v4454_v19, 0.0  ;;  %v4698_v61 = vsel %vm4494_vm14, %v4459_v43, 0.0  ;;  %v5022_v38 = vsel %vm2284_vm3, %v4627_v56, %v5021_v30  ;;  %v4652_v14 = vrot.slane %v4651_v26, 2  ;;  %v5532_v19 = vld [vmem:[#allocation2 + $0x84] sm:$0xf]  ;;  %v7663_v43 = vpop.permute.xlu1 %4335 }
 0x351   :  { %v4640_v17 = vrot.slane %v4639_v12, 1  ;;  %v4674_v9 = vadd.f32 %v4673_v51, %v4672_v29  ;;  %v4686_v5 = vadd.f32 %v4685_v52, %v4684_v54  ;;  %v4664_v39 = vrot.slane %v4663_v45, 4 }
 0x352   :  { %v4699_v3 = vrot.slane %v4698_v61, 4  ;;  %v4456_v2 = vmul.f32 %v5529_v62, %v7577_v11  ;;  %v4653_v32 = vadd.f32 %v4652_v14, %v4651_v26  ;;  %v4461_v60 = vmul.f32 %v5530_v44, %v7596_v33 }
 0x353   :  { %v4641_v8 = vadd.f32 %v4640_v17, %v4639_v12  ;;  %v5023_v34 = vsel %vm2286_vm4, %v4634_v7, %v5022_v38  ;;  %v4687_v55 = vrot.slane %v4686_v5, 2  ;;  %v4665_v15 = vadd.f32 %v4664_v39, %v4663_v45  ;;  %v5533_v45 = vld [vmem:[#allocation2 + $0x78] sm:$0xf] }
 0x354   :  { %v4677_v49 = vsel %vm4494_vm14, %v4456_v2, 0.0  ;;  %v4648_v10 = vadd.f32 %v4647_v13, %v4646_v35  ;;  %v4654_v63 = vrot.slane %v4653_v32, 1  ;;  %v4662_v40 = vadd.f32 %v4661_v59, %v4660_v6 }
 0x355   :  { %v5024_v28 = vsel %vm2288_vm5, %v4641_v8, %v5023_v34  ;;  %v4678_v37 = vrot.slane %v4677_v49, 4  ;;  %v4675_v11 = vrot.slane %v4674_v9, 1  ;;  %v4666_v53 = vrot.slane %v4665_v15, 2  ;;  %v5535_v8 = vld [vmem:[#allocation2 + $0x80] sm:$0xf] }
 0x356   :  { %v4700_v21 = vadd.f32 %v4699_v3, %v4698_v61  ;;  %v4655_v33 = vadd.f32 %v4654_v63, %v4653_v32  ;;  %v4712_v7 = vsel %vm4494_vm14, %v4461_v60, 0.0  ;;  %v4458_v1 = vmul.f32 %v5531_v57, %v7590_v47 }
 0x357   :  { %v4679_v36 = vadd.f32 %v4678_v37, %v4677_v49  ;;  %v5025_v48 = vsel %vm2290_vm6, %v4648_v10, %v5024_v28  ;;  %v4688_v35 = vadd.f32 %v4687_v55, %v4686_v5  ;;  %v4667_v31 = vadd.f32 %v4666_v53, %v4665_v15  ;;  %v5534_v5 = vld [vmem:[#allocation2 + $0x8c] sm:$0xf]  ;;  %v5536_v49 = vld [vmem:[#allocation2 + $0x94] sm:$0xf] }
 0x358   :  { %v4713_v29 = vrot.slane %v4712_v7, 4  ;;  %v5026_v20 = vsel %vm2292_vm7, %v4655_v33, %v5025_v48  ;;  %v4691_v23 = vsel %vm4494_vm14, %v4458_v1, 0.0  ;;  %v4463_v13 = vmul.f32 %v5532_v19, %v7608_v0  ;;  %v7668_v0 = vpop.permute.xlu0 %4371 }
 0x359   :  { %v4680_v6 = vrot.slane %v4679_v36, 2  ;;  %v5027_v56 = vsel %vm2294_vm8, %v4662_v40, %v5026_v20  ;;  %v4668_v54 = vrot.slane %v4667_v31, 1  ;;  %v4701_v22 = vrot.slane %v4700_v21, 2  ;;  %v5537_v20 = vld [vmem:[#allocation2 + $0x88] sm:$0xf] }
 0x35a   :  { %5074 = vst.msk [vmem:[#allocation7 + $0x10] sm:$0xff] %vm5071_vm15, %v5027_v56  ;;  %v4714_v12 = vadd.f32 %v4713_v29, %v4712_v7  ;;  %v4692_v51 = vrot.slane %v4691_v23, 4  ;;  %v4726_v26 = vsel %vm4494_vm14, %v4463_v13, 0.0  ;;  %v4676_v52 = vadd.f32 %v4675_v11, %v4674_v9 }
 0x35b   :  { %v4681_v47 = vadd.f32 %v4680_v6, %v4679_v36  ;;  %v4689_v30 = vrot.slane %v4688_v35, 1  ;;  %v4727_v59 = vrot.slane %v4726_v26, 4  ;;  %v4460_v61 = vmul.f32 %v5533_v45, %v7602_v4 }
 0x35c   :  { %v4715_v17 = vrot.slane %v4714_v12, 2  ;;  %v4693_v14 = vadd.f32 %v4692_v51, %v4691_v23  ;;  %v4465_v39 = vmul.f32 %v5534_v5, %v7619_v50  ;;  %v4669_v3 = vadd.f32 %v4668_v54, %v4667_v31  ;;  %v7676_v50 = vpop.permute.xlu1 %4367  ;;  %v5538_v23 = vld [vmem:[#allocation2 + $0x9c] sm:$0xf] }
 0x35d   :  { %v4682_v38 = vrot.slane %v4681_v47, 1  ;;  %v4702_v62 = vadd.f32 %v4701_v22, %v4700_v21  ;;  %v4705_v2 = vsel %vm4494_vm14, %v4460_v61, 0.0  ;;  %v4462_v9 = vmul.f32 %v5535_v8, %v7615_v58  ;;  %v7679_v21 = vpop.permute.xlu0 %4403 }
 0x35e   :  { %v4694_v44 = vrot.slane %v4693_v14, 2  ;;  %v4728_v60 = vadd.f32 %v4727_v59, %v4726_v26  ;;  %v4706_v34 = vrot.slane %v4705_v2, 4  ;;  %v4716_v4 = vadd.f32 %v4715_v17, %v4714_v12  ;;  %v5539_v17 = vld [vmem:[#allocation2 + $0x90] sm:$0xf] }
 0x35f   :  { %v4683_v32 = vadd.f32 %v4682_v38, %v4681_v47  ;;  %v4740_v55 = vsel %vm4494_vm14, %v4465_v39, 0.0  ;;  %v4719_v15 = vsel %vm4494_vm14, %v4462_v9, 0.0  ;;  %v4467_v10 = vmul.f32 %v5536_v49, %v7632_v42 }
 0x360   :  { %v4690_v28 = vadd.f32 %v4689_v30, %v4688_v35  ;;  %v4695_v63 = vadd.f32 %v4694_v44, %v4693_v14  ;;  %v4707_v37 = vadd.f32 %v4706_v34, %v4705_v2  ;;  %v5028_v40 = vsel %vm2282_vm2, %v4676_v52, %v4669_v3  ;;  %v7686_v47 = vpop.permute.xlu1 %4399 }
 0x361   :  { %v4703_v58 = vrot.slane %v4702_v62, 1  ;;  %v4741_v11 = vrot.slane %v4740_v55, 4  ;;  %v4720_v53 = vrot.slane %v4719_v15, 4  ;;  %v5029_v33 = vsel %vm2284_vm3, %v4683_v32, %v5028_v40  ;;  %v7691_v45 = vpop.permute.xlu0 %4375 }
 0x362   :  { %v4696_v36 = vrot.slane %v4695_v63, 1  ;;  %v4708_v7 = vrot.slane %v4707_v37, 2  ;;  %v4754_v57 = vsel %vm4494_vm14, %v4467_v10, 0.0  ;;  %v4717_v1 = vrot.slane %v4716_v4, 1  ;;  %v5540_v10 = vld [vmem:[#allocation2 + $0x98] sm:$0xf] }
 0x363   :  { %v4729_v42 = vrot.slane %v4728_v60, 2  ;;  %v4742_v48 = vadd.f32 %v4741_v11, %v4740_v55  ;;  %v4721_v31 = vadd.f32 %v4720_v53, %v4719_v15  ;;  %v4464_v6 = vmul.f32 %v5537_v20, %v7628_v46  ;;  %v5541_v11 = vld [vmem:[#allocation2 + $0xa4] sm:$0xf] }
 0x364   :  { %v4697_v35 = vadd.f32 %v4696_v36, %v4695_v63  ;;  %v4709_v29 = vadd.f32 %v4708_v7, %v4707_v37  ;;  %v4469_v19 = vmul.f32 %v5538_v23, %v7644_v16  ;;  %v5030_v13 = vsel %vm2286_vm4, %v4690_v28, %v5029_v33  ;;  %v7698_v34 = vpop.permute.xlu1 %4343  ;;  %v5542_v7 = vld [vmem:[#allocation2 + $0xc4] sm:$0xf] }
 0x365   :  { %v4743_v56 = vrot.slane %v4742_v48, 2  ;;  %v4722_v54 = vrot.slane %v4721_v31, 2  ;;  %v4755_v22 = vrot.slane %v4754_v57, 4  ;;  %v4733_v26 = vsel %vm4494_vm14, %v4464_v6, 0.0  ;;  %v7702_v63 = vpop.permute.xlu0 %4347 }
 0x366   :  { %v5031_v12 = vsel %vm2288_vm5, %v4697_v35, %v5030_v13  ;;  %v4710_v51 = vrot.slane %v4709_v29, 1  ;;  %v4768_v52 = vsel %vm4494_vm14, %v4469_v19, 0.0  ;;  %v4704_v30 = vadd.f32 %v4703_v58, %v4702_v62 }
 0x367   :  { %v4730_v59 = vadd.f32 %v4729_v42, %v4728_v60  ;;  %v4723_v46 = vadd.f32 %v4722_v54, %v4721_v31  ;;  %v4734_v61 = vrot.slane %v4733_v26, 4  ;;  %v4769_v38 = vrot.slane %v4768_v52, 4 }
 0x368   :  { %v4711_v16 = vadd.f32 %v4710_v51, %v4709_v29  ;;  %v4466_v14 = vmul.f32 %v5539_v17, %v7639_v27  ;;  %v4718_v5 = vadd.f32 %v4717_v1, %v4716_v4  ;;  %v5032_v39 = vsel %vm2290_vm6, %v4704_v30, %v5031_v12  ;;  %v5543_v1 = vld [vmem:[#allocation2 + $0xa0] sm:$0xf]  ;;  %v7710_v23 = vpop.permute.xlu1 %4407 }
 0x369   :  { %v4744_v3 = vadd.f32 %v4743_v56, %v4742_v48  ;;  %v4756_v2 = vadd.f32 %v4755_v22, %v4754_v57  ;;  %v4735_v9 = vadd.f32 %v4734_v61, %v4733_v26  ;;  %v4770_v32 = vadd.f32 %v4769_v38, %v4768_v52  ;;  %v4412_v12 = vpop.permute.xlu0 %4411 }
 0x36a   :  { %v5033_v8 = vsel %vm2292_vm7, %v4711_v16, %v5032_v39  ;;  %v4747_v62 = vsel %vm4494_vm14, %v4466_v14, 0.0  ;;  %v4724_v60 = vrot.slane %v4723_v46, 1  ;;  %v4731_v4 = vrot.slane %v4730_v59, 1 }
 0x36b   :  { %v5034_v44 = vsel %vm2294_vm8, %v4718_v5, %v5033_v8  ;;  %v4736_v55 = vrot.slane %v4735_v9, 2  ;;  %v4748_v27 = vrot.slane %v4747_v62, 4  ;;  %v4757_v15 = vrot.slane %v4756_v2, 2 }
 0x36c   :  { %5075 = vst.msk [vmem:[#allocation7 + $0x18] sm:$0xff] %vm5071_vm15, %v5034_v44  ;;  %v4771_v49 = vrot.slane %v4770_v32, 2  ;;  %v4468_v28 = vmul.f32 %v5540_v10, %v7651_v41  ;;  %v4745_v37 = vrot.slane %v4744_v3, 1  ;;  %v4471_v53 = vmul.f32 %v5541_v11, %v7654_v25  ;;  %v5546_v10 = vld [vmem:[#allocation2 + $0xe0] sm:$0xf] }
 0x36d   :  { %v4737_v40 = vadd.f32 %v4736_v55, %v4735_v9  ;;  %v4749_v58 = vadd.f32 %v4748_v27, %v4747_v62  ;;  %v4725_v33 = vadd.f32 %v4724_v60, %v4723_v46  ;;  %v4479_v57 = vmul.f32 %v5542_v7, %v7668_v0  ;;  %v4384_v27 = vpop.permute.xlu0 %4383 }
 0x36e   :  { %v4761_v36 = vsel %vm4494_vm14, %v4468_v28, 0.0  ;;  %v4470_v42 = vmul.f32 %v5543_v1, %v7663_v43  ;;  %v4732_v35 = vadd.f32 %v4731_v4, %v4730_v59  ;;  %v4758_v29 = vadd.f32 %v4757_v15, %v4756_v2  ;;  %v7721_v2 = vpop.permute.xlu1 %4379 }
 0x36f   :  { %v4738_v48 = vrot.slane %v4737_v40, 1  ;;  %v4750_v31 = vrot.slane %v4749_v58, 2  ;;  %v4762_v41 = vrot.slane %v4761_v36, 4  ;;  %v4772_v20 = vadd.f32 %v4771_v49, %v4770_v32  ;;  %v5545_v32 = vld [vmem:[#allocation2 + $0xc8] sm:$0xf] }
 0x370   :  { %v4487_v6 = vmul.f32 %v7477_v24, %v7679_v21  ;;  %v4782_v13 = vsel %vm4494_vm14, %v4471_v53, 0.0  ;;  %v4746_v0 = vadd.f32 %v4745_v37, %v4744_v3  ;;  %v5035_v54 = vsel %vm2282_vm2, %v4732_v35, %v4725_v33  ;;  %v5544_v24 = vld [vmem:[#allocation2 + $0xc0] sm:$0xf] }
 0x371   :  { %v4739_v25 = vadd.f32 %v4738_v48, %v4737_v40  ;;  %v4751_v19 = vadd.f32 %v4750_v31, %v4749_v58  ;;  %v4763_v56 = vadd.f32 %v4762_v41, %v4761_v36  ;;  %v4838_v43 = vsel %vm4494_vm14, %v4479_v57, 0.0  ;;  %v5547_v36 = vld [vmem:[#allocation2 + $0xac] sm:$0xf] }
 0x372   :  { %v4775_v22 = vsel %vm4494_vm14, %v4470_v42, 0.0  ;;  %v4478_v21 = vmul.f32 %v5544_v24, %v7676_v50  ;;  %v4759_v30 = vrot.slane %v4758_v29, 1  ;;  %v4773_v59 = vrot.slane %v4772_v20, 1  ;;  %v7732_v42 = vpop.permute.xlu1 %4351 }
 0x373   :  { %v5036_v51 = vsel %vm2284_vm3, %v4739_v25, %v5035_v54  ;;  %v4752_v26 = vrot.slane %v4751_v19, 1  ;;  %v4764_v52 = vrot.slane %v4763_v56, 2  ;;  %v4783_v46 = vrot.slane %v4782_v13, 4  ;;  %v4356_v25 = vpop.permute.xlu0 %4355 }
 0x374   :  { %v4894_v16 = vsel %vm4494_vm14, %v4487_v6, 0.0  ;;  %v4831_v17 = vsel %vm4494_vm14, %v4478_v21, 0.0  ;;  %v5037_v14 = vsel %vm2286_vm4, %v4746_v0, %v5036_v51  ;;  %v4839_v5 = vrot.slane %v4838_v43, 4  ;;  %v5550_v51 = vld [vmem:[#allocation2 + $0xd0] sm:$0xf] }
 0x375   :  { %v4753_v61 = vadd.f32 %v4752_v26, %v4751_v19  ;;  %v4765_v38 = vadd.f32 %v4764_v52, %v4763_v56  ;;  %v4776_v39 = vrot.slane %v4775_v22, 4  ;;  %v4832_v3 = vrot.slane %v4831_v17, 4  ;;  %v5549_v56 = vld [vmem:[#allocation2 + $0xe8] sm:$0xf] }
 0x376   :  { %v4895_v50 = vrot.slane %v4894_v16, 4  ;;  %v4480_v62 = vmul.f32 %v5545_v32, %v7691_v45  ;;  %v4760_v44 = vadd.f32 %v4759_v30, %v4758_v29  ;;  %v4774_v60 = vadd.f32 %v4773_v59, %v4772_v20  ;;  %v5548_v20 = vld [vmem:[#allocation2 + $0xa8] sm:$0xf] }
 0x377   :  { %v5038_v8 = vsel %vm2288_vm5, %v4753_v61, %v5037_v14  ;;  %v4766_v9 = vrot.slane %v4765_v38, 1  ;;  %v4784_v55 = vadd.f32 %v4783_v46, %v4782_v13  ;;  %v4833_v15 = vadd.f32 %v4832_v3, %v4831_v17  ;;  %v4420_v3 = vpop.permute.xlu0 %4419 }
 0x378   :  { %v4845_v49 = vsel %vm4494_vm14, %v4480_v62, 0.0  ;;  %v4486_v28 = vmul.f32 %v5546_v10, %v7686_v47  ;;  %v5039_v37 = vsel %vm2290_vm6, %v4760_v44, %v5038_v8  ;;  %v4840_v40 = vadd.f32 %v4839_v5, %v4838_v43  ;;  %v5551_v44 = vld [vmem:[#allocation2 + $0xcc] sm:$0xf] }
 0x379   :  { %v4767_v4 = vadd.f32 %v4766_v9, %v4765_v38  ;;  %v4777_v58 = vadd.f32 %v4776_v39, %v4775_v22  ;;  %v4846_v11 = vrot.slane %v4845_v49, 4  ;;  %v4896_v33 = vadd.f32 %v4895_v50, %v4894_v16 }
 0x37a   :  { %v4887_v45 = vsel %vm4494_vm14, %v4486_v28, 0.0  ;;  %v4473_v7 = vmul.f32 %v5547_v36, %v7702_v63  ;;  %v4785_v57 = vrot.slane %v4784_v55, 2  ;;  %v4834_v47 = vrot.slane %v4833_v15, 2 }
 0x37b   :  { %v5040_v53 = vsel %vm2292_vm7, %v4767_v4, %v5039_v37  ;;  %v4847_v48 = vadd.f32 %v4846_v11, %v4845_v49  ;;  %v4888_v31 = vrot.slane %v4887_v45, 4  ;;  %v4841_v35 = vrot.slane %v4840_v40, 2 }
 0x37c   :  { %v5041_v1 = vsel %vm2294_vm8, %v4774_v60, %v5040_v53  ;;  %v4796_v41 = vsel %vm4494_vm14, %v4473_v7, 0.0  ;;  %v4778_v29 = vrot.slane %v4777_v58, 2  ;;  %v4472_v6 = vmul.f32 %v5548_v20, %v7698_v34  ;;  %v5552_v53 = vld [vmem:[#allocation2 + $0xb4] sm:$0xf] }
 0x37d   :  { %5076 = vst.msk [vmem:[#allocation7 + $0x20] sm:$0xff] %vm5071_vm15, %v5041_v1  ;;  %v4897_v19 = vrot.slane %v4896_v33, 2  ;;  %v4797_v63 = vrot.slane %v4796_v41, 4  ;;  %v4489_v13 = vmul.f32 %v7491_v18, %v4412_v12  ;;  %v4488_v0 = vmul.f32 %v5549_v56, %v7710_v23  ;;  %v4416_v18 = vpop.permute.xlu1 %4415  ;;  %v4392_v1 = vpop.permute.xlu0 %4391 }
 0x37e   :  { %v4848_v54 = vrot.slane %v4847_v48, 2  ;;  %v4889_v43 = vadd.f32 %v4888_v31, %v4887_v45  ;;  %v4789_v22 = vsel %vm4494_vm14, %v4472_v6, 0.0  ;;  %v4482_v26 = vmul.f32 %v5550_v51, %v4384_v27 }
 0x37f   :  { %v4786_v52 = vadd.f32 %v4785_v57, %v4784_v55  ;;  %v4835_v24 = vadd.f32 %v4834_v47, %v4833_v15  ;;  %v4790_v21 = vrot.slane %v4789_v22, 4  ;;  %v4908_v30 = vsel %vm4494_vm14, %v4489_v13, 0.0  ;;  %v5553_v57 = vld [vmem:[#allocation2 + $0xb0] sm:$0xf] }
 0x380   :  { %v4842_v34 = vadd.f32 %v4841_v35, %v4840_v40  ;;  %v4779_v59 = vadd.f32 %v4778_v29, %v4777_v58  ;;  %v4909_v46 = vrot.slane %v4908_v30, 4  ;;  %v4901_v16 = vsel %vm4494_vm14, %v4488_v0, 0.0 }
 0x381   :  { %v4898_v12 = vadd.f32 %v4897_v19, %v4896_v33  ;;  %v4798_v61 = vadd.f32 %v4797_v63, %v4796_v41  ;;  %v4791_v23 = vadd.f32 %v4790_v21, %v4789_v22  ;;  %v4902_v38 = vrot.slane %v4901_v16, 4  ;;  %v4388_v37 = vpop.permute.xlu1 %4387 }
 0x382   :  { %v4849_v17 = vadd.f32 %v4848_v54, %v4847_v48  ;;  %v4890_v14 = vrot.slane %v4889_v43, 2  ;;  %v4910_v5 = vadd.f32 %v4909_v46, %v4908_v30  ;;  %v4859_v39 = vsel %vm4494_vm14, %v4482_v26, 0.0  ;;  %v5554_v54 = vld [vmem:[#allocation2 + $0xf4] sm:$0xf] }
 0x383   :  { %v4787_v8 = vrot.slane %v4786_v52, 1  ;;  %v4836_v9 = vrot.slane %v4835_v24, 1  ;;  %v4792_v50 = vrot.slane %v4791_v23, 2  ;;  %v4780_v32 = vrot.slane %v4779_v59, 1 }
 0x384   :  { %v4903_v62 = vadd.f32 %v4902_v38, %v4901_v16  ;;  %v4481_v60 = vmul.f32 %v5551_v44, %v7721_v2  ;;  %v4843_v55 = vrot.slane %v4842_v34, 1  ;;  %v4899_v27 = vrot.slane %v4898_v12, 1  ;;  %v4364_v16 = vpop.permute.xlu0 %4363  ;;  %v5556_v38 = vld [vmem:[#allocation2 + $0xd8] sm:$0xf] }
 0x385   :  { %v4799_v4 = vrot.slane %v4798_v61, 2  ;;  %v4860_v15 = vrot.slane %v4859_v39, 4  ;;  %v4850_v49 = vrot.slane %v4849_v17, 1  ;;  %v4891_v10 = vadd.f32 %v4890_v14, %v4889_v43  ;;  %v4360_v22 = vpop.permute.xlu1 %4359 }
 0x386   :  { %v4911_v28 = vrot.slane %v4910_v5, 2  ;;  %v4788_v40 = vadd.f32 %v4787_v8, %v4786_v52  ;;  %v4837_v58 = vadd.f32 %v4836_v9, %v4835_v24  ;;  %v4793_v11 = vadd.f32 %v4792_v50, %v4791_v23  ;;  %v5555_v24 = vld [vmem:[#allocation2 + $0xf0] sm:$0xf]  ;;  %v5557_v9 = vld [vmem:[#allocation2 + $0xd4] sm:$0xf] }
 0x387   :  { %v4475_v33 = vmul.f32 %v5552_v53, %v4356_v25  ;;  %v4781_v45 = vadd.f32 %v4780_v32, %v4779_v59  ;;  %v4904_v36 = vrot.slane %v4903_v62, 2  ;;  %v4852_v7 = vsel %vm4494_vm14, %v4481_v60, 0.0  ;;  %v5558_v32 = vld [vmem:[#allocation2 + $0xbc] sm:$0xf] }
 0x388   :  { %v4474_v2 = vmul.f32 %v5553_v57, %v7732_v42  ;;  %v4844_v47 = vadd.f32 %v4843_v55, %v4842_v34  ;;  %v4900_v48 = vadd.f32 %v4899_v27, %v4898_v12  ;;  %v4800_v31 = vadd.f32 %v4799_v4, %v4798_v61  ;;  %v4428_v53 = vpop.permute.xlu0 %4427 }
 0x389   :  { %v4861_v41 = vadd.f32 %v4860_v15, %v4859_v39  ;;  %v4851_v35 = vadd.f32 %v4850_v49, %v4849_v17  ;;  %v4892_v29 = vrot.slane %v4891_v10, 1  ;;  %v4912_v20 = vadd.f32 %v4911_v28, %v4910_v5  ;;  %v4424_v4 = vpop.permute.xlu1 %4423 }
 0x38a   :  { %v4810_v6 = vsel %vm4494_vm14, %v4475_v33, 0.0  ;;  %v5049_v19 = vsel %vm2282_vm2, %v4844_v47, %v4837_v58  ;;  %v4794_v25 = vrot.slane %v4793_v11, 1  ;;  %v4853_v63 = vrot.slane %v4852_v7, 4 }
 0x38b   :  { %v4803_v13 = vsel %vm4494_vm14, %v4474_v2, 0.0  ;;  %v5042_v56 = vsel %vm2282_vm2, %v4788_v40, %v4781_v45  ;;  %v4905_v0 = vadd.f32 %v4904_v36, %v4903_v62  ;;  %v4491_v43 = vmul.f32 %v5554_v54, %v4420_v3 }
 0x38c   :  { %v4804_v42 = vrot.slane %v4803_v13, 4  ;;  %v4801_v51 = vrot.slane %v4800_v31, 1  ;;  %v4862_v26 = vrot.slane %v4861_v41, 2  ;;  %v4811_v52 = vrot.slane %v4810_v6, 4 }
 0x38d   :  { %v4490_v21 = vmul.f32 %v5555_v24, %v4416_v18  ;;  %v7751_v30 = vsel %vm2284_vm3, %v4851_v35, %v5049_v19  ;;  %v4893_v34 = vadd.f32 %v4892_v29, %v4891_v10  ;;  %v4913_v59 = vrot.slane %v4912_v20, 1  ;;  %v5560_v29 = vld [vmem:[#allocation2 + $0xfc] sm:$0xf] }
 0x38e   :  { %v4805_v46 = vadd.f32 %v4804_v42, %v4803_v13  ;;  %v4795_v12 = vadd.f32 %v4794_v25, %v4793_v11  ;;  %v4854_v61 = vadd.f32 %v4853_v63, %v4852_v7  ;;  %v4484_v17 = vmul.f32 %v5556_v38, %v4392_v1  ;;  %v5559_v7 = vld [vmem:[#allocation2 + $0xb8] sm:$0xf]  ;;  %v4396_v13 = vpop.permute.xlu1 %4395 }
 0x38f   :  { %v4915_v23 = vsel %vm4494_vm14, %v4490_v21, 0.0  ;;  %v4906_v14 = vrot.slane %v4905_v0, 1  ;;  %v4922_v39 = vsel %vm4494_vm14, %v4491_v43, 0.0  ;;  %v7755_v8 = vadd.f32 %v4862_v26, %v4861_v41  ;;  %v5561_v21 = vld [vmem:[#allocation2 + $0xf8] sm:$0xf] }
 0x390   :  { %v4806_v5 = vrot.slane %v4805_v46, 2  ;;  %v4916_v3 = vrot.slane %v4915_v23, 4  ;;  %v4812_v18 = vadd.f32 %v4811_v52, %v4810_v6  ;;  %v4483_v50 = vmul.f32 %v5557_v9, %v4388_v37 }
 0x391   :  { %v4477_v62 = vmul.f32 %v5558_v32, %v4364_v16  ;;  %v5056_v44 = vsel %vm2282_vm2, %v4900_v48, %v4893_v34  ;;  %v4802_v60 = vadd.f32 %v4801_v51, %v4800_v31  ;;  %v7758_v55 = vadd.f32 %v4913_v59, %v4912_v20  ;;  %v5562_v59 = vld [vmem:[#allocation2 + $0xdc] sm:$0xf] }
 0x392   :  { %v4917_v27 = vadd.f32 %v4916_v3, %v4915_v23  ;;  %v4855_v15 = vrot.slane %v4854_v61, 2  ;;  %v4923_v49 = vrot.slane %v4922_v39, 4  ;;  %v4873_v10 = vsel %vm4494_vm14, %v4484_v17, 0.0 }
 0x393   :  { %v4866_v28 = vsel %vm4494_vm14, %v4483_v50, 0.0  ;;  %v5043_v40 = vsel %vm2284_vm3, %v4795_v12, %v5042_v56  ;;  %v4907_v58 = vadd.f32 %v4906_v14, %v4905_v0  ;;  %v4807_v11 = vadd.f32 %v4806_v5, %v4805_v46 }
 0x394   :  { %v4867_v37 = vrot.slane %v4866_v28, 4  ;;  %v4864_v33 = vrot.slane %v7755_v8, 1  ;;  %v4813_v45 = vrot.slane %v4812_v18, 2  ;;  %v4824_v36 = vsel %vm4494_vm14, %v4477_v62, 0.0 }
 0x395   :  { %v4476_v57 = vmul.f32 %v5559_v7, %v4360_v22  ;;  %v4918_v2 = vrot.slane %v4917_v27, 2  ;;  %v4874_v1 = vrot.slane %v4873_v10, 4  ;;  %v4825_v48 = vrot.slane %v4824_v36, 4 }
 0x396   :  { %v4868_v47 = vadd.f32 %v4867_v37, %v4866_v28  ;;  %v4856_v31 = vadd.f32 %v4855_v15, %v4854_v61  ;;  %v4924_v41 = vadd.f32 %v4923_v49, %v4922_v39  ;;  %v4493_v20 = vmul.f32 %v5560_v29, %v4428_v53 }
 0x397   :  { %v4817_v35 = vsel %vm4494_vm14, %v4476_v57, 0.0  ;;  %v5057_v6 = vsel %vm2284_vm3, %v4907_v58, %v5056_v44  ;;  %v4808_v19 = vrot.slane %v4807_v11, 1  ;;  %v5044_v25 = vsel %vm2286_vm4, %v4802_v60, %v5043_v40 }
 0x398   :  { %v4826_v63 = vadd.f32 %v4825_v48, %v4824_v36  ;;  %v4814_v56 = vadd.f32 %v4813_v45, %v4812_v18  ;;  %v4869_v0 = vrot.slane %v4868_v47, 2  ;;  %v4818_v42 = vrot.slane %v4817_v35, 4 }
 0x399   :  { %v4936_v54 = vsel %vm4494_vm14, %v4493_v20, 0.0  ;;  %v4919_v43 = vadd.f32 %v4918_v2, %v4917_v27  ;;  %v4875_v22 = vadd.f32 %v4874_v1, %v4873_v10  ;;  %v4925_v52 = vrot.slane %v4924_v41, 2 }
 0x39a   :  { %v4827_v51 = vrot.slane %v4826_v63, 2  ;;  %v4937_v26 = vrot.slane %v4936_v54, 4  ;;  %v4819_v24 = vadd.f32 %v4818_v42, %v4817_v35  ;;  %v4492_v34 = vmul.f32 %v5561_v21, %v4424_v4 }
 0x39b   :  { %v4485_v46 = vmul.f32 %v5562_v59, %v4396_v13  ;;  %v4857_v16 = vrot.slane %v4856_v31, 1  ;;  %v4809_v12 = vadd.f32 %v4808_v19, %v4807_v11  ;;  %v4815_v38 = vrot.slane %v4814_v56, 1 }
 0x39c   :  { %v4828_v61 = vadd.f32 %v4827_v51, %v4826_v63  ;;  %v4938_v23 = vadd.f32 %v4937_v26, %v4936_v54  ;;  %v4870_v17 = vadd.f32 %v4869_v0, %v4868_v47  ;;  %v4820_v14 = vrot.slane %v4819_v24, 2 }
 0x39d   :  { %v4929_v5 = vsel %vm4494_vm14, %v4492_v34, 0.0  ;;  %v4920_v39 = vrot.slane %v4919_v43, 1  ;;  %v4876_v3 = vrot.slane %v4875_v22, 2  ;;  %v4865_v50 = vadd.f32 %v4864_v33, %v7755_v8 }
 0x39e   :  { %v4939_v18 = vrot.slane %v4938_v23, 2  ;;  %v4930_v9 = vrot.slane %v4929_v5, 4  ;;  %v4926_v32 = vadd.f32 %v4925_v52, %v4924_v41  ;;  %v4821_v62 = vadd.f32 %v4820_v14, %v4819_v24 }
 0x39f   :  { %v4880_v44 = vsel %vm4494_vm14, %v4485_v46, 0.0  ;;  %v4858_v60 = vadd.f32 %v4857_v16, %v4856_v31  ;;  %v5045_v27 = vsel %vm2288_vm5, %v4809_v12, %v5044_v25  ;;  %v4829_v4 = vrot.slane %v4828_v61, 1 }
 0x3a0   :  { %v4931_v15 = vadd.f32 %v4930_v9, %v4929_v5  ;;  %v4871_v49 = vrot.slane %v4870_v17, 1  ;;  %v4822_v10 = vrot.slane %v4821_v62, 1  ;;  %v4940_v28 = vadd.f32 %v4939_v18, %v4938_v23 }
 0x3a1   :  { %v4881_v40 = vrot.slane %v4880_v44, 4  ;;  %v4816_v58 = vadd.f32 %v4815_v38, %v4814_v56  ;;  %v4921_v11 = vadd.f32 %v4920_v39, %v4919_v43  ;;  %v4877_v37 = vadd.f32 %v4876_v3, %v4875_v22 }
 0x3a2   :  { %v4932_v53 = vrot.slane %v4931_v15, 2  ;;  %v4927_v45 = vrot.slane %v4926_v32, 1  ;;  %v5058_v8 = vsel %vm2286_vm4, %v7758_v55, %v5057_v6  ;;  %v4823_v33 = vadd.f32 %v4822_v10, %v4821_v62 }
 0x3a3   :  { %v4882_v36 = vadd.f32 %v4881_v40, %v4880_v44  ;;  %v5051_v7 = vsel %vm2286_vm4, %v4858_v60, %v7751_v30  ;;  %v4830_v57 = vadd.f32 %v4829_v4, %v4828_v61  ;;  %v5046_v2 = vsel %vm2290_vm6, %v4816_v58, %v5045_v27 }
 0x3a4   :  { %v4933_v1 = vadd.f32 %v4932_v53, %v4931_v15  ;;  %v4872_v47 = vadd.f32 %v4871_v49, %v4870_v17  ;;  %v5047_v48 = vsel %vm2292_vm7, %v4823_v33, %v5046_v2  ;;  %v4941_v31 = vrot.slane %v4940_v28, 1 }
 0x3a5   :  { %v4883_v41 = vrot.slane %v4882_v36, 2  ;;  %v5059_v35 = vsel %vm2288_vm5, %v4921_v11, %v5058_v8  ;;  %v4878_v29 = vrot.slane %v4877_v37, 1  ;;  %v5048_v20 = vsel %vm2294_vm8, %v4830_v57, %v5047_v48 }
 0x3a6   :  { %v4934_v55 = vrot.slane %v4933_v1, 1  ;;  %v4928_v6 = vadd.f32 %v4927_v45, %v4926_v32  ;;  %5077 = vst.msk [vmem:[#allocation7 + $0x28] sm:$0xff] %vm5071_vm15, %v5048_v20  ;;  %v5052_v30 = vsel %vm2288_vm5, %v4865_v50, %v5051_v7  ;;  %v4942_v13 = vadd.f32 %v4941_v31, %v4940_v28 }
 0x3a7   :  { %v4884_v19 = vadd.f32 %v4883_v41, %v4882_v36  ;;  %v5053_v63 = vsel %vm2290_vm6, %v4872_v47, %v5052_v30  ;;  %v4879_v42 = vadd.f32 %v4878_v29, %v4877_v37 }
 0x3a8   :  { %v4935_v25 = vadd.f32 %v4934_v55, %v4933_v1  ;;  %v5060_v56 = vsel %vm2290_vm6, %v4928_v6, %v5059_v35 }
 0x3a9   :  { %v4885_v0 = vrot.slane %v4884_v19, 1  ;;  %v5054_v51 = vsel %vm2292_vm7, %v4879_v42, %v5053_v63 }
 0x3aa   :  { %v5061_v54 = vsel %vm2292_vm7, %v4935_v25, %v5060_v56 }
 0x3ab   :  { %v5062_v43 = vsel %vm2294_vm8, %v4942_v13, %v5061_v54  ;;  %v4886_v22 = vadd.f32 %v4885_v0, %v4884_v19 }
 0x3ac   :  { %5079 = vst.msk [vmem:[#allocation7 + $0x38] sm:$0xff] %vm5071_vm15, %v5062_v43 }
 0x3ad   :  { %v5055_v26 = vsel %vm2294_vm8, %v4886_v22, %v5054_v51 }
 0x3ae   :  { %5078 = vst.msk [vmem:[#allocation7 + $0x30] sm:$0xff] %vm5071_vm15, %v5055_v26 }
 0x3af   :  { %5618 = shalt.err (!%p5615_p6)
}
 0x3b0   :  { %s5619_s10 = scalar_lea.hbm %s7805_s2, 1024 }
 0x3b1   :  { %p5620_p7 = scmp.ne.s32.totalorder %s7805_s2, %s5619_s10  ;;  %p5623_p8 = scmp.lt.u32.totalorder %s5619_s10, %s7805_s2 }
 0x3b3   :  { %p5625_p9 = pnand %p5623_p8, %p5620_p7 }
 0x3b5   :  { %5628 = shalt.err (!%p5625_p9)
}
 0x3b6   :  { %s5644_s15 = smov 128   ;;  %s5645_s16 = smov 8  }
 0x3b7   :  { %5091 = dma.vmem_to_hbm [thread:$0]  %s5086_s6, 1024, %s7805_s2, [#allocation4], %s5644_s15, %s5644_s15, %s5645_s16  }
 0x3b8   :  { %5633 = dma.done.wait [#allocation4], 1024  }
 0x3b9   :  { %5634 = vsyncadd [#allocation4], 4294966272 }
 0x3ba   :  { %5095 = vsyncpa [#allocation3], 1 }
 0x3bb   :  { %5096 = vsyncpa [#allocation6], 1 }
 0x3bc   :  { %5097 = vsyncpa [#allocation4], 1 }

</bundles_post_ra>
